<compile_context>
chip_gen: v6e
topology: v6e:2x2x1
jax: 0.10.0
libtpu: 0.0.40
codegen_flags: <defaults>
</compile_context>

<pallas_src>
import functools

import jax
import jax.numpy as jnp
from jax.experimental import pallas as pl
from jax.experimental.pallas import tpu as pltpu

C0 = 8   # sublane-aligned start column of the halo-buffer interior


# ----------------------------------------------------------------------------
# Fused Pallas kernel: both backbones + split RPN conv + fused 1x1 heads
# ----------------------------------------------------------------------------

def _fused_kernel(x_rgb_ref, x_hha_ref,
                  w_rgb1_ref, b_rgb1_ref, w_rgb2_ref, b_rgb2_ref,
                  w_hha1_ref, b_hha1_ref, w_hha2_ref, b_hha2_ref,
                  w_rpn_rgb_ref, w_rpn_hha_ref, b_rpn_ref,
                  w_head_ref, b_head_ref,
                  o_ref,
                  pad_ref,
                  *, H, W, CM):
    """One image per grid step; every intermediate stays in VMEM/vregs."""

    # Clear the halo scratch once per image.  At CM=8 this is ~9 KB of stores
    # (16x less than the old 128-lane version); clearing the full buffer
    # (rather than border-only) also provides the exact zeros in lanes
    # [Cin, CM) that the two conv1 layers rely on.
    pad_ref[...] = jnp.zeros((H + 2, W + 2 * C0, CM), jnp.bfloat16)

    def conv3x3(x_hwc, w_ref):
        """3x3 / stride-1 SAME conv as ONE dense-K im2col matmul.

        K = 9*CM real taps*channels (72 here) instead of 9*128.  Only the 3
        dx-shifted views need sublane realignment; the 3 dy shifts are free
        leading-dim row slices of those views.
        """
        cin = x_hwc.shape[-1]
        # Interior starts at a multiple-of-8 column (C0) -> aligned stores.
        pad_ref[1:H + 1, C0:C0 + W, :cin] = x_hwc
        # 3 dx-shifted views packed densely along lanes -> (H+2, W, 3*CM).
        d = jnp.concatenate(
            [pad_ref[:, C0 - 1 + dx:C0 - 1 + dx + W, :] for dx in range(3)],
            axis=-1)
        # dy shifts are free row slices -> (H, W, 9*CM).
        patches = jnp.concatenate([d[dy:dy + H] for dy in range(3)], axis=-1)
        return jnp.dot(patches.reshape(H * W, 9 * CM), w_ref[...],
                       preferred_element_type=jnp.float32)

    def bias_relu(acc, b_ref):
        y = jnp.maximum(acc + b_ref[...], 0.0)
        return y.astype(jnp.bfloat16).reshape(H, W, -1)

    x_rgb = x_rgb_ref[0]                                  # (H, W, Cin) bf16
    x_hha = x_hha_ref[0]

    # Both conv1 layers first: they rely on lanes [Cin, CM) of the freshly
    # cleared halo buffer being zero (every later conv rewrites all CM lanes).
    r = bias_relu(conv3x3(x_rgb, w_rgb1_ref), b_rgb1_ref)
    h = bias_relu(conv3x3(x_hha, w_hha1_ref), b_hha1_ref)
    r = bias_relu(conv3x3(r, w_rgb2_ref), b_rgb2_ref)      # (H, W, BC) bf16
    h = bias_relu(conv3x3(h, w_hha2_ref), b_hha2_ref)      # (H, W, BC) bf16

    # RPN shared 3x3 conv over concat([rgb_feat, hha_feat], channel), split by
    # linearity so the concat is never materialized; the two halves run
    # back-to-back so the f32 accumulator is short-lived (stems stay bf16).
    t_acc = conv3x3(r, w_rpn_rgb_ref)
    t_acc = t_acc + conv3x3(h, w_rpn_hha_ref)
    t = bias_relu(t_acc, b_rpn_ref)                        # (H, W, 2*BC) bf16

    # Fused 1x1 heads [objectness | bbox] as one matmul (Cout padded 15 -> 16).
    y = jnp.dot(t.reshape(H * W, t.shape[-1]), w_head_ref[...],
                preferred_element_type=jnp.float32) + b_head_ref[...]
    o_ref[0] = y.reshape(H, W, y.shape[-1])


# ----------------------------------------------------------------------------
# Wrapper: weight repacking + single pallas_call
# ----------------------------------------------------------------------------

def _pack_conv_w(w, cm):
    """(3, 3, Cin, Cout) f32 -> (9*cm, Cout) bf16, K rows (dy, dx, c)-major,
    channels zero-padded Cin -> cm (matches the in-kernel im2col packing)."""
    kh, kw, cin, cout = w.shape
    wp = jnp.zeros((kh, kw, cm, cout), jnp.float32).at[:, :, :cin, :].set(w)
    return wp.reshape(kh * kw * cm, cout).astype(jnp.bfloat16)


def _bias2d(b, width=None):
    width = b.shape[0] if width is None else width
    return jnp.zeros((1, width), jnp.float32).at[0, :b.shape[0]].set(b)


@jax.jit
def depth_rcnn_forward(images_nchw, hhas_nchw, params):
    """Inference forward. Returns RPN objectness logits and bbox regression
    deltas in NCHW (PyTorch conv-output convention)."""
    N, cin, H, W = images_nchw.shape
    BC = params["rgb_backbone"]["conv1_b"].shape[0]       # backbone channels
    na = params["rpn_cls_b"].shape[0]                     # anchors per loc
    CM = BC                                               # dense-K channel width
    CO = 8 * ((5 * na + 7) // 8)                          # fused head width

    # Single dense K group per conv at this scale; a real R-CNN backbone
    # (e.g. 256-channel FPN features) would need multi-K-group handling.
    assert cin <= CM and 9 * CM <= 128 and 5 * na <= CO

    def prep(x):   # NCHW -> NHWC bf16, keep the real channel count in HBM
        return jnp.transpose(x, (0, 2, 3, 1)).astype(jnp.bfloat16)

    x_rgb, x_hha = prep(images_nchw), prep(hhas_nchw)

    pr, ph = params["rgb_backbone"], params["hha_backbone"]
    w_rgb1, b_rgb1 = _pack_conv_w(pr["conv1_w"], CM), _bias2d(pr["conv1_b"])
    w_rgb2, b_rgb2 = _pack_conv_w(pr["conv2_w"], CM), _bias2d(pr["conv2_b"])
    w_hha1, b_hha1 = _pack_conv_w(ph["conv1_w"], CM), _bias2d(ph["conv1_b"])
    w_hha2, b_hha2 = _pack_conv_w(ph["conv2_w"], CM), _bias2d(ph["conv2_b"])

    # RPN 3x3 conv acts on concat([rgb_feat, hha_feat], channel); split its
    # input channels so the concat never has to be materialized in-kernel.
    w_rpn = params["rpn_conv_w"]                          # (3, 3, 2*BC, 2*BC)
    w_rpn_rgb = _pack_conv_w(w_rpn[:, :, :BC, :], CM)
    w_rpn_hha = _pack_conv_w(w_rpn[:, :, BC:, :], CM)
    b_rpn = _bias2d(params["rpn_conv_b"])

    # Fused 1x1 heads: [cls | bbox] along Cout, padded 15 -> 16.
    w_head = jnp.concatenate([params["rpn_cls_w"], params["rpn_bbox_w"]],
                             axis=-1)                     # (2*BC, 5*na)
    w_head_p = (jnp.zeros((2 * BC, CO), jnp.float32)
                .at[:, :5 * na].set(w_head)).astype(jnp.bfloat16)
    b_head = _bias2d(jnp.concatenate([params["rpn_cls_b"],
                                      params["rpn_bbox_b"]]), CO)

    # Advisory scheduling hint: real dense flops / bytes (not padded ones).
    flops = int(N * (2 * 2 * H * W * 9 * cin * BC          # conv1 x 2 streams
                     + 2 * 2 * H * W * 9 * BC * BC         # conv2 x 2 streams
                     + 2 * 2 * H * W * 9 * BC * 2 * BC     # rpn conv (2 halves)
                     + 2 * H * W * 2 * BC * 5 * na))       # fused 1x1 heads
    w_bytes = 2 * (4 * 9 * CM * BC + 2 * 9 * CM * 2 * BC + 2 * BC * CO)
    bytes_accessed = int(2 * N * H * W * cin * 2 + w_bytes
                         + (4 * BC + 2 * BC + CO) * 4
                         + N * H * W * CO * 4)

    rep = lambda shape: pl.BlockSpec(shape, lambda n: (0,) * len(shape))
    img_spec = pl.BlockSpec((1, H, W, cin), lambda n: (n, 0, 0, 0))

    out = pl.pallas_call(
        functools.partial(_fused_kernel, H=H, W=W, CM=CM),
        out_shape=jax.ShapeDtypeStruct((N, H, W, CO), jnp.float32),
        grid=(N,),
        in_specs=[
            img_spec, img_spec,
            rep((9 * CM, BC)), rep((1, BC)), rep((9 * CM, BC)), rep((1, BC)),
            rep((9 * CM, BC)), rep((1, BC)), rep((9 * CM, BC)), rep((1, BC)),
            rep((9 * CM, 2 * BC)), rep((9 * CM, 2 * BC)), rep((1, 2 * BC)),
            rep((2 * BC, CO)), rep((1, CO)),
        ],
        out_specs=pl.BlockSpec((1, H, W, CO), lambda n: (n, 0, 0, 0)),
        scratch_shapes=[pltpu.VMEM((H + 2, W + 2 * C0, CM), jnp.bfloat16)],
        compiler_params=pltpu.CompilerParams(
            dimension_semantics=("parallel",),
            vmem_limit_bytes=32 * 1024 * 1024),
        cost_estimate=pl.CostEstimate(flops=flops, transcendentals=0,
                                      bytes_accessed=bytes_accessed),
    )(x_rgb, x_hha,
      w_rgb1, b_rgb1, w_rgb2, b_rgb2,
      w_hha1, b_hha1, w_hha2, b_hha2,
      w_rpn_rgb, w_rpn_hha, b_rpn,
      w_head_p, b_head)

    # TODO(synk): anchor generation, box decoding, top-k + NMS proposal
    # selection and roi_heads (ROIAlign + box/mask heads) are data-dependent
    # ops with no clean Pallas equivalent; not implemented.
    # TODO(synk): training-time loss dict * self.weight_dict is skipped
    # (inference path only).
    objectness = jnp.transpose(out[..., :na], (0, 3, 1, 2))        # NCHW
    bbox_reg = jnp.transpose(out[..., na:5 * na], (0, 3, 1, 2))    # NCHW
    return objectness, bbox_reg


# ----------------------------------------------------------------------------
# Synthetic deterministic params (backbone here is a small 2-layer conv stem)
# ----------------------------------------------------------------------------

def init_params(key, in_ch=3, backbone_ch=8, num_anchors=3):
    ks = jax.random.split(key, 8)
    std = 0.1

    def nrm(k, shape):
        return (std * jax.random.normal(k, shape)).astype(jnp.float32)

    def backbone(k):
        k0, k1, k2, k3 = jax.random.split(k, 4)
        return {
            "conv1_w": nrm(k0, (3, 3, in_ch, backbone_ch)),
            "conv1_b": nrm(k1, (backbone_ch,)),
            "conv2_w": nrm(k2, (3, 3, backbone_ch, backbone_ch)),
            "conv2_b": nrm(k3, (backbone_ch,)),
        }

    feat_ch = 2 * backbone_ch   # RGB + HHA concat (MODEL.BACKBONE.DEPTH=True)
    return {
        "rgb_backbone": backbone(ks[0]),
        "hha_backbone": backbone(ks[1]),
        "rpn_conv_w": nrm(ks[2], (3, 3, feat_ch, feat_ch)),
        "rpn_conv_b": nrm(ks[3], (feat_ch,)),
        "rpn_cls_w": nrm(ks[4], (feat_ch, num_anchors)),
        "rpn_cls_b": nrm(ks[5], (num_anchors,)),
        "rpn_bbox_w": nrm(ks[6], (feat_ch, 4 * num_anchors)),
        "rpn_bbox_b": nrm(ks[7], (4 * num_anchors,)),
    }


# ----------------------------------------------------------------------------
# Pure-JAX reference (lax.conv), same bf16-input / f32-accumulate precision
# ----------------------------------------------------------------------------

def _ref_conv3x3(x_bf16, w, b, relu):
    y = jax.lax.conv_general_dilated(
        x_bf16, w.astype(jnp.bfloat16), window_strides=(1, 1), padding="SAME",
        dimension_numbers=("NHWC", "HWIO", "NHWC"),
        preferred_element_type=jnp.float32) + b
    return jnp.maximum(y, 0.0) if relu else y


def _ref_forward(images_nchw, hhas_nchw, p):
    def stem(x, q):
        x = _ref_conv3x3(x, q["conv1_w"], q["conv1_b"], True).astype(jnp.bfloat16)
        x = _ref_conv3x3(x, q["conv2_w"], q["conv2_b"], True).astype(jnp.bfloat16)
        return x

    images = jnp.transpose(images_nchw, (0, 2, 3, 1)).astype(jnp.bfloat16)
    hhas = jnp.transpose(hhas_nchw, (0, 2, 3, 1)).astype(jnp.bfloat16)
    feats = jnp.concatenate([stem(images, p["rgb_backbone"]),
                             stem(hhas, p["hha_backbone"])], axis=-1)
    t = _ref_conv3x3(feats, p["rpn_conv_w"], p["rpn_conv_b"], True)
    t = t.astype(jnp.bfloat16)
    obj = jnp.einsum("nhwc,ck->nhwk", t, p["rpn_cls_w"].astype(jnp.bfloat16),
                     preferred_element_type=jnp.float32) + p["rpn_cls_b"]
    box = jnp.einsum("nhwc,ck->nhwk", t, p["rpn_bbox_w"].astype(jnp.bfloat16),
                     preferred_element_type=jnp.float32) + p["rpn_bbox_b"]
    return (jnp.transpose(obj, (0, 3, 1, 2)),
            jnp.transpose(box, (0, 3, 1, 2)))


# ----------------------------------------------------------------------------
# Main
# ----------------------------------------------------------------------------

if __name__ == "__main__":
    key = jax.random.PRNGKey(0)
    k_img, k_hha, k_par = jax.random.split(key, 3)

    N, C_IN, H, W = 2, 3, 16, 16
    BACKBONE_CH, NUM_ANCHORS = 8, 3

    images = jax.random.normal(k_img, (N, C_IN, H, W), jnp.float32)   # NCHW
    hhas = jax.random.normal(k_hha, (N, C_IN, H, W), jnp.float32)     # NCHW
    params = init_params(k_par, in_ch=C_IN, backbone_ch=BACKBONE_CH,
                         num_anchors=NUM_ANCHORS)

    objectness, bbox_reg = depth_rcnn_forward(images, hhas, params)
    jax.block_until_ready((objectness, bbox_reg))

    assert objectness.shape == (N, NUM_ANCHORS, H, W)
    assert bbox_reg.shape == (N, 4 * NUM_ANCHORS, H, W)

    ref_obj, ref_box = _ref_forward(images, hhas, params)
    err_o = float(jnp.max(jnp.abs(objectness - ref_obj)))
    err_b = float(jnp.max(jnp.abs(bbox_reg - ref_box)))
    assert jnp.allclose(objectness, ref_obj, atol=2e-3, rtol=2e-2), err_o
    assert jnp.allclose(bbox_reg, ref_box, atol=2e-3, rtol=2e-2), err_b

    print("KERNEL_OK")
</pallas_src>

<mosaic_0001>
module attributes {stable_mosaic.version = 11 : i64} {
  func.func @_fused_kernel(%arg0: i32, %arg1: memref<1x16x16x3xbf16, #tpu.memory_space<vmem>>, %arg2: memref<1x16x16x3xbf16, #tpu.memory_space<vmem>>, %arg3: memref<72x8xbf16, #tpu.memory_space<vmem>>, %arg4: memref<1x8xf32, #tpu.memory_space<vmem>>, %arg5: memref<72x8xbf16, #tpu.memory_space<vmem>>, %arg6: memref<1x8xf32, #tpu.memory_space<vmem>>, %arg7: memref<72x8xbf16, #tpu.memory_space<vmem>>, %arg8: memref<1x8xf32, #tpu.memory_space<vmem>>, %arg9: memref<72x8xbf16, #tpu.memory_space<vmem>>, %arg10: memref<1x8xf32, #tpu.memory_space<vmem>>, %arg11: memref<72x16xbf16, #tpu.memory_space<vmem>>, %arg12: memref<72x16xbf16, #tpu.memory_space<vmem>>, %arg13: memref<1x16xf32, #tpu.memory_space<vmem>>, %arg14: memref<16x16xbf16, #tpu.memory_space<vmem>>, %arg15: memref<1x16xf32, #tpu.memory_space<vmem>>, %arg16: memref<1x16x16x16xf32, #tpu.memory_space<vmem>>, %arg17: memref<18x32x8xbf16, #tpu.memory_space<vmem>>) attributes {dimension_semantics = [#tpu.dimension_semantics<parallel>], iteration_bounds = array<i64: 2>, scalar_prefetch = 0 : i64, scratch_operands = 1 : i64, tpu.core_type = #tpu.core_type<tc>, window_params = [{transform_indices = @transform_0, window_bounds = array<i64: 1, 16, 16, 3>}, {transform_indices = @transform_1, window_bounds = array<i64: 1, 16, 16, 3>}, {pipeline_mode = #tpu.pipeline_mode<synchronous>, transform_indices = @transform_2, window_bounds = array<i64: 72, 8>}, {pipeline_mode = #tpu.pipeline_mode<synchronous>, transform_indices = @transform_3, window_bounds = array<i64: 1, 8>}, {pipeline_mode = #tpu.pipeline_mode<synchronous>, transform_indices = @transform_4, window_bounds = array<i64: 72, 8>}, {pipeline_mode = #tpu.pipeline_mode<synchronous>, transform_indices = @transform_5, window_bounds = array<i64: 1, 8>}, {pipeline_mode = #tpu.pipeline_mode<synchronous>, transform_indices = @transform_6, window_bounds = array<i64: 72, 8>}, {pipeline_mode = #tpu.pipeline_mode<synchronous>, transform_indices = @transform_7, window_bounds = array<i64: 1, 8>}, {pipeline_mode = #tpu.pipeline_mode<synchronous>, transform_indices = @transform_8, window_bounds = array<i64: 72, 8>}, {pipeline_mode = #tpu.pipeline_mode<synchronous>, transform_indices = @transform_9, window_bounds = array<i64: 1, 8>}, {pipeline_mode = #tpu.pipeline_mode<synchronous>, transform_indices = @transform_10, window_bounds = array<i64: 72, 16>}, {pipeline_mode = #tpu.pipeline_mode<synchronous>, transform_indices = @transform_11, window_bounds = array<i64: 72, 16>}, {pipeline_mode = #tpu.pipeline_mode<synchronous>, transform_indices = @transform_12, window_bounds = array<i64: 1, 16>}, {pipeline_mode = #tpu.pipeline_mode<synchronous>, transform_indices = @transform_13, window_bounds = array<i64: 16, 16>}, {pipeline_mode = #tpu.pipeline_mode<synchronous>, transform_indices = @transform_14, window_bounds = array<i64: 1, 16>}, {transform_indices = @transform_15, window_bounds = array<i64: 1, 16, 16, 16>}]} {
    %cst = arith.constant 0.000000e+00 : bf16
    %0 = vector.broadcast %cst : bf16 to vector<18x32x8xbf16>
    %c0 = arith.constant 0 : index
    %c0_0 = arith.constant 0 : index
    %c0_1 = arith.constant 0 : index
    %1 = vector.load %arg17[%c0, %c0_0, %c0_1] : memref<18x32x8xbf16, #tpu.memory_space<vmem>>, vector<18x32x8xbf16>
    tpu.vector_store %arg17[%c0, %c0_0, %c0_1], %0 {strides = array<i32>} : memref<18x32x8xbf16, #tpu.memory_space<vmem>>, vector<18x32x8xbf16>,
    %c0_2 = arith.constant 0 : index
    %c0_3 = arith.constant 0 : index
    %c0_4 = arith.constant 0 : index
    %c0_5 = arith.constant 0 : index
    %2 = vector.load %arg1[%c0_2, %c0_3, %c0_4, %c0_5] : memref<1x16x16x3xbf16, #tpu.memory_space<vmem>>, vector<1x16x16x3xbf16>
    %3 = vector.shape_cast %2 : vector<1x16x16x3xbf16> to vector<16x16x3xbf16>
    %c0_6 = arith.constant 0 : index
    %c0_7 = arith.constant 0 : index
    %c0_8 = arith.constant 0 : index
    %c0_9 = arith.constant 0 : index
    %4 = vector.load %arg2[%c0_6, %c0_7, %c0_8, %c0_9] : memref<1x16x16x3xbf16, #tpu.memory_space<vmem>>, vector<1x16x16x3xbf16>
    %5 = vector.shape_cast %4 : vector<1x16x16x3xbf16> to vector<16x16x3xbf16>
    %c1 = arith.constant 1 : index
    %c8 = arith.constant 8 : index
    %c0_10 = arith.constant 0 : index
    %6 = vector.load %arg17[%c1, %c8, %c0_10] : memref<18x32x8xbf16, #tpu.memory_space<vmem>>, vector<16x16x3xbf16>
    tpu.vector_store %arg17[%c1, %c8, %c0_10], %3 {strides = array<i32>} : memref<18x32x8xbf16, #tpu.memory_space<vmem>>, vector<16x16x3xbf16>,
    %c0_11 = arith.constant 0 : index
    %c7 = arith.constant 7 : index
    %c0_12 = arith.constant 0 : index
    %7 = vector.load %arg17[%c0_11, %c7, %c0_12] : memref<18x32x8xbf16, #tpu.memory_space<vmem>>, vector<18x16x8xbf16>
    %c0_13 = arith.constant 0 : index
    %c8_14 = arith.constant 8 : index
    %c0_15 = arith.constant 0 : index
    %8 = vector.load %arg17[%c0_13, %c8_14, %c0_15] : memref<18x32x8xbf16, #tpu.memory_space<vmem>>, vector<18x16x8xbf16>
    %c0_16 = arith.constant 0 : index
    %c9 = arith.constant 9 : index
    %c0_17 = arith.constant 0 : index
    %9 = vector.load %arg17[%c0_16, %c9, %c0_17] : memref<18x32x8xbf16, #tpu.memory_space<vmem>>, vector<18x16x8xbf16>
    %10 = tpu.concatenate %7, %8, %9 in 2 : vector<18x16x8xbf16>, vector<18x16x8xbf16>, vector<18x16x8xbf16> -> vector<18x16x24xbf16>
    %11 = vector.extract_strided_slice %10 {offsets = [0, 0, 0], sizes = [16, 16, 24], strides = [1, 1, 1]} : vector<18x16x24xbf16> to vector<16x16x24xbf16>
    %12 = vector.extract_strided_slice %10 {offsets = [1, 0, 0], sizes = [16, 16, 24], strides = [1, 1, 1]} : vector<18x16x24xbf16> to vector<16x16x24xbf16>
    %13 = vector.extract_strided_slice %10 {offsets = [2, 0, 0], sizes = [16, 16, 24], strides = [1, 1, 1]} : vector<18x16x24xbf16> to vector<16x16x24xbf16>
    %14 = tpu.concatenate %11, %12, %13 in 2 : vector<16x16x24xbf16>, vector<16x16x24xbf16>, vector<16x16x24xbf16> -> vector<16x16x72xbf16>
    %15 = vector.shape_cast %14 : vector<16x16x72xbf16> to vector<256x72xbf16>
    %c0_18 = arith.constant 0 : index
    %c0_19 = arith.constant 0 : index
    %16 = vector.load %arg3[%c0_18, %c0_19] : memref<72x8xbf16, #tpu.memory_space<vmem>>, vector<72x8xbf16>
    %cst_20 = arith.constant dense<0.000000e+00> : vector<256x8xf32>
    %17 = tpu.matmul %15, %16, %cst_20 {dimension_numbers = #tpu.dot_dimension_numbers<[1], [0], [0], [1], [0, 0, 1, 1], [], []>} : vector<256x72xbf16>, vector<72x8xbf16>, vector<256x8xf32> -> vector<256x8xf32>
    %c0_21 = arith.constant 0 : index
    %c0_22 = arith.constant 0 : index
    %18 = vector.load %arg4[%c0_21, %c0_22] : memref<1x8xf32, #tpu.memory_space<vmem>>, vector<1x8xf32>
    %19 = vector.broadcast %18 : vector<1x8xf32> to vector<256x8xf32>
    %20 = arith.addf %17, %19 : vector<256x8xf32>
    %cst_23 = arith.constant 0.000000e+00 : f32
    %21 = vector.broadcast %cst_23 : f32 to vector<256x8xf32>
    %22 = arith.maximumf %20, %21 : vector<256x8xf32>
    %23 = arith.truncf %22 : vector<256x8xf32> to vector<256x8xbf16>
    %24 = vector.shape_cast %23 : vector<256x8xbf16> to vector<16x16x8xbf16>
    %c1_24 = arith.constant 1 : index
    %c8_25 = arith.constant 8 : index
    %c0_26 = arith.constant 0 : index
    %25 = vector.load %arg17[%c1_24, %c8_25, %c0_26] : memref<18x32x8xbf16, #tpu.memory_space<vmem>>, vector<16x16x3xbf16>
    tpu.vector_store %arg17[%c1_24, %c8_25, %c0_26], %5 {strides = array<i32>} : memref<18x32x8xbf16, #tpu.memory_space<vmem>>, vector<16x16x3xbf16>,
    %c0_27 = arith.constant 0 : index
    %c7_28 = arith.constant 7 : index
    %c0_29 = arith.constant 0 : index
    %26 = vector.load %arg17[%c0_27, %c7_28, %c0_29] : memref<18x32x8xbf16, #tpu.memory_space<vmem>>, vector<18x16x8xbf16>
    %c0_30 = arith.constant 0 : index
    %c8_31 = arith.constant 8 : index
    %c0_32 = arith.constant 0 : index
    %27 = vector.load %arg17[%c0_30, %c8_31, %c0_32] : memref<18x32x8xbf16, #tpu.memory_space<vmem>>, vector<18x16x8xbf16>
    %c0_33 = arith.constant 0 : index
    %c9_34 = arith.constant 9 : index
    %c0_35 = arith.constant 0 : index
    %28 = vector.load %arg17[%c0_33, %c9_34, %c0_35] : memref<18x32x8xbf16, #tpu.memory_space<vmem>>, vector<18x16x8xbf16>
    %29 = tpu.concatenate %26, %27, %28 in 2 : vector<18x16x8xbf16>, vector<18x16x8xbf16>, vector<18x16x8xbf16> -> vector<18x16x24xbf16>
    %30 = vector.extract_strided_slice %29 {offsets = [0, 0, 0], sizes = [16, 16, 24], strides = [1, 1, 1]} : vector<18x16x24xbf16> to vector<16x16x24xbf16>
    %31 = vector.extract_strided_slice %29 {offsets = [1, 0, 0], sizes = [16, 16, 24], strides = [1, 1, 1]} : vector<18x16x24xbf16> to vector<16x16x24xbf16>
    %32 = vector.extract_strided_slice %29 {offsets = [2, 0, 0], sizes = [16, 16, 24], strides = [1, 1, 1]} : vector<18x16x24xbf16> to vector<16x16x24xbf16>
    %33 = tpu.concatenate %30, %31, %32 in 2 : vector<16x16x24xbf16>, vector<16x16x24xbf16>, vector<16x16x24xbf16> -> vector<16x16x72xbf16>
    %34 = vector.shape_cast %33 : vector<16x16x72xbf16> to vector<256x72xbf16>
    %c0_36 = arith.constant 0 : index
    %c0_37 = arith.constant 0 : index
    %35 = vector.load %arg7[%c0_36, %c0_37] : memref<72x8xbf16, #tpu.memory_space<vmem>>, vector<72x8xbf16>
    %cst_38 = arith.constant dense<0.000000e+00> : vector<256x8xf32>
    %36 = tpu.matmul %34, %35, %cst_38 {dimension_numbers = #tpu.dot_dimension_numbers<[1], [0], [0], [1], [0, 0, 1, 1], [], []>} : vector<256x72xbf16>, vector<72x8xbf16>, vector<256x8xf32> -> vector<256x8xf32>
    %c0_39 = arith.constant 0 : index
    %c0_40 = arith.constant 0 : index
    %37 = vector.load %arg8[%c0_39, %c0_40] : memref<1x8xf32, #tpu.memory_space<vmem>>, vector<1x8xf32>
    %38 = vector.broadcast %37 : vector<1x8xf32> to vector<256x8xf32>
    %39 = arith.addf %36, %38 : vector<256x8xf32>
    %cst_41 = arith.constant 0.000000e+00 : f32
    %40 = vector.broadcast %cst_41 : f32 to vector<256x8xf32>
    %41 = arith.maximumf %39, %40 : vector<256x8xf32>
    %42 = arith.truncf %41 : vector<256x8xf32> to vector<256x8xbf16>
    %43 = vector.shape_cast %42 : vector<256x8xbf16> to vector<16x16x8xbf16>
    %c1_42 = arith.constant 1 : index
    %c8_43 = arith.constant 8 : index
    %c0_44 = arith.constant 0 : index
    %44 = vector.load %arg17[%c1_42, %c8_43, %c0_44] : memref<18x32x8xbf16, #tpu.memory_space<vmem>>, vector<16x16x8xbf16>
    tpu.vector_store %arg17[%c1_42, %c8_43, %c0_44], %24 {strides = array<i32>} : memref<18x32x8xbf16, #tpu.memory_space<vmem>>, vector<16x16x8xbf16>,
    %c0_45 = arith.constant 0 : index
    %c7_46 = arith.constant 7 : index
    %c0_47 = arith.constant 0 : index
    %45 = vector.load %arg17[%c0_45, %c7_46, %c0_47] : memref<18x32x8xbf16, #tpu.memory_space<vmem>>, vector<18x16x8xbf16>
    %c0_48 = arith.constant 0 : index
    %c8_49 = arith.constant 8 : index
    %c0_50 = arith.constant 0 : index
    %46 = vector.load %arg17[%c0_48, %c8_49, %c0_50] : memref<18x32x8xbf16, #tpu.memory_space<vmem>>, vector<18x16x8xbf16>
    %c0_51 = arith.constant 0 : index
    %c9_52 = arith.constant 9 : index
    %c0_53 = arith.constant 0 : index
    %47 = vector.load %arg17[%c0_51, %c9_52, %c0_53] : memref<18x32x8xbf16, #tpu.memory_space<vmem>>, vector<18x16x8xbf16>
    %48 = tpu.concatenate %45, %46, %47 in 2 : vector<18x16x8xbf16>, vector<18x16x8xbf16>, vector<18x16x8xbf16> -> vector<18x16x24xbf16>
    %49 = vector.extract_strided_slice %48 {offsets = [0, 0, 0], sizes = [16, 16, 24], strides = [1, 1, 1]} : vector<18x16x24xbf16> to vector<16x16x24xbf16>
    %50 = vector.extract_strided_slice %48 {offsets = [1, 0, 0], sizes = [16, 16, 24], strides = [1, 1, 1]} : vector<18x16x24xbf16> to vector<16x16x24xbf16>
    %51 = vector.extract_strided_slice %48 {offsets = [2, 0, 0], sizes = [16, 16, 24], strides = [1, 1, 1]} : vector<18x16x24xbf16> to vector<16x16x24xbf16>
    %52 = tpu.concatenate %49, %50, %51 in 2 : vector<16x16x24xbf16>, vector<16x16x24xbf16>, vector<16x16x24xbf16> -> vector<16x16x72xbf16>
    %53 = vector.shape_cast %52 : vector<16x16x72xbf16> to vector<256x72xbf16>
    %c0_54 = arith.constant 0 : index
    %c0_55 = arith.constant 0 : index
    %54 = vector.load %arg5[%c0_54, %c0_55] : memref<72x8xbf16, #tpu.memory_space<vmem>>, vector<72x8xbf16>
    %cst_56 = arith.constant dense<0.000000e+00> : vector<256x8xf32>
    %55 = tpu.matmul %53, %54, %cst_56 {dimension_numbers = #tpu.dot_dimension_numbers<[1], [0], [0], [1], [0, 0, 1, 1], [], []>} : vector<256x72xbf16>, vector<72x8xbf16>, vector<256x8xf32> -> vector<256x8xf32>
    %c0_57 = arith.constant 0 : index
    %c0_58 = arith.constant 0 : index
    %56 = vector.load %arg6[%c0_57, %c0_58] : memref<1x8xf32, #tpu.memory_space<vmem>>, vector<1x8xf32>
    %57 = vector.broadcast %56 : vector<1x8xf32> to vector<256x8xf32>
    %58 = arith.addf %55, %57 : vector<256x8xf32>
    %cst_59 = arith.constant 0.000000e+00 : f32
    %59 = vector.broadcast %cst_59 : f32 to vector<256x8xf32>
    %60 = arith.maximumf %58, %59 : vector<256x8xf32>
    %61 = arith.truncf %60 : vector<256x8xf32> to vector<256x8xbf16>
    %62 = vector.shape_cast %61 : vector<256x8xbf16> to vector<16x16x8xbf16>
    %c1_60 = arith.constant 1 : index
    %c8_61 = arith.constant 8 : index
    %c0_62 = arith.constant 0 : index
    %63 = vector.load %arg17[%c1_60, %c8_61, %c0_62] : memref<18x32x8xbf16, #tpu.memory_space<vmem>>, vector<16x16x8xbf16>
    tpu.vector_store %arg17[%c1_60, %c8_61, %c0_62], %43 {strides = array<i32>} : memref<18x32x8xbf16, #tpu.memory_space<vmem>>, vector<16x16x8xbf16>,
    %c0_63 = arith.constant 0 : index
    %c7_64 = arith.constant 7 : index
    %c0_65 = arith.constant 0 : index
    %64 = vector.load %arg17[%c0_63, %c7_64, %c0_65] : memref<18x32x8xbf16, #tpu.memory_space<vmem>>, vector<18x16x8xbf16>
    %c0_66 = arith.constant 0 : index
    %c8_67 = arith.constant 8 : index
    %c0_68 = arith.constant 0 : index
    %65 = vector.load %arg17[%c0_66, %c8_67, %c0_68] : memref<18x32x8xbf16, #tpu.memory_space<vmem>>, vector<18x16x8xbf16>
    %c0_69 = arith.constant 0 : index
    %c9_70 = arith.constant 9 : index
    %c0_71 = arith.constant 0 : index
    %66 = vector.load %arg17[%c0_69, %c9_70, %c0_71] : memref<18x32x8xbf16, #tpu.memory_space<vmem>>, vector<18x16x8xbf16>
    %67 = tpu.concatenate %64, %65, %66 in 2 : vector<18x16x8xbf16>, vector<18x16x8xbf16>, vector<18x16x8xbf16> -> vector<18x16x24xbf16>
    %68 = vector.extract_strided_slice %67 {offsets = [0, 0, 0], sizes = [16, 16, 24], strides = [1, 1, 1]} : vector<18x16x24xbf16> to vector<16x16x24xbf16>
    %69 = vector.extract_strided_slice %67 {offsets = [1, 0, 0], sizes = [16, 16, 24], strides = [1, 1, 1]} : vector<18x16x24xbf16> to vector<16x16x24xbf16>
    %70 = vector.extract_strided_slice %67 {offsets = [2, 0, 0], sizes = [16, 16, 24], strides = [1, 1, 1]} : vector<18x16x24xbf16> to vector<16x16x24xbf16>
    %71 = tpu.concatenate %68, %69, %70 in 2 : vector<16x16x24xbf16>, vector<16x16x24xbf16>, vector<16x16x24xbf16> -> vector<16x16x72xbf16>
    %72 = vector.shape_cast %71 : vector<16x16x72xbf16> to vector<256x72xbf16>
    %c0_72 = arith.constant 0 : index
    %c0_73 = arith.constant 0 : index
    %73 = vector.load %arg9[%c0_72, %c0_73] : memref<72x8xbf16, #tpu.memory_space<vmem>>, vector<72x8xbf16>
    %cst_74 = arith.constant dense<0.000000e+00> : vector<256x8xf32>
    %74 = tpu.matmul %72, %73, %cst_74 {dimension_numbers = #tpu.dot_dimension_numbers<[1], [0], [0], [1], [0, 0, 1, 1], [], []>} : vector<256x72xbf16>, vector<72x8xbf16>, vector<256x8xf32> -> vector<256x8xf32>
    %c0_75 = arith.constant 0 : index
    %c0_76 = arith.constant 0 : index
    %75 = vector.load %arg10[%c0_75, %c0_76] : memref<1x8xf32, #tpu.memory_space<vmem>>, vector<1x8xf32>
    %76 = vector.broadcast %75 : vector<1x8xf32> to vector<256x8xf32>
    %77 = arith.addf %74, %76 : vector<256x8xf32>
    %cst_77 = arith.constant 0.000000e+00 : f32
    %78 = vector.broadcast %cst_77 : f32 to vector<256x8xf32>
    %79 = arith.maximumf %77, %78 : vector<256x8xf32>
    %80 = arith.truncf %79 : vector<256x8xf32> to vector<256x8xbf16>
    %81 = vector.shape_cast %80 : vector<256x8xbf16> to vector<16x16x8xbf16>
    %c1_78 = arith.constant 1 : index
    %c8_79 = arith.constant 8 : index
    %c0_80 = arith.constant 0 : index
    %82 = vector.load %arg17[%c1_78, %c8_79, %c0_80] : memref<18x32x8xbf16, #tpu.memory_space<vmem>>, vector<16x16x8xbf16>
    tpu.vector_store %arg17[%c1_78, %c8_79, %c0_80], %62 {strides = array<i32>} : memref<18x32x8xbf16, #tpu.memory_space<vmem>>, vector<16x16x8xbf16>,
    %c0_81 = arith.constant 0 : index
    %c7_82 = arith.constant 7 : index
    %c0_83 = arith.constant 0 : index
    %83 = vector.load %arg17[%c0_81, %c7_82, %c0_83] : memref<18x32x8xbf16, #tpu.memory_space<vmem>>, vector<18x16x8xbf16>
    %c0_84 = arith.constant 0 : index
    %c8_85 = arith.constant 8 : index
    %c0_86 = arith.constant 0 : index
    %84 = vector.load %arg17[%c0_84, %c8_85, %c0_86] : memref<18x32x8xbf16, #tpu.memory_space<vmem>>, vector<18x16x8xbf16>
    %c0_87 = arith.constant 0 : index
    %c9_88 = arith.constant 9 : index
    %c0_89 = arith.constant 0 : index
    %85 = vector.load %arg17[%c0_87, %c9_88, %c0_89] : memref<18x32x8xbf16, #tpu.memory_space<vmem>>, vector<18x16x8xbf16>
    %86 = tpu.concatenate %83, %84, %85 in 2 : vector<18x16x8xbf16>, vector<18x16x8xbf16>, vector<18x16x8xbf16> -> vector<18x16x24xbf16>
    %87 = vector.extract_strided_slice %86 {offsets = [0, 0, 0], sizes = [16, 16, 24], strides = [1, 1, 1]} : vector<18x16x24xbf16> to vector<16x16x24xbf16>
    %88 = vector.extract_strided_slice %86 {offsets = [1, 0, 0], sizes = [16, 16, 24], strides = [1, 1, 1]} : vector<18x16x24xbf16> to vector<16x16x24xbf16>
    %89 = vector.extract_strided_slice %86 {offsets = [2, 0, 0], sizes = [16, 16, 24], strides = [1, 1, 1]} : vector<18x16x24xbf16> to vector<16x16x24xbf16>
    %90 = tpu.concatenate %87, %88, %89 in 2 : vector<16x16x24xbf16>, vector<16x16x24xbf16>, vector<16x16x24xbf16> -> vector<16x16x72xbf16>
    %91 = vector.shape_cast %90 : vector<16x16x72xbf16> to vector<256x72xbf16>
    %c0_90 = arith.constant 0 : index
    %c0_91 = arith.constant 0 : index
    %92 = vector.load %arg11[%c0_90, %c0_91] : memref<72x16xbf16, #tpu.memory_space<vmem>>, vector<72x16xbf16>
    %cst_92 = arith.constant dense<0.000000e+00> : vector<256x16xf32>
    %93 = tpu.matmul %91, %92, %cst_92 {dimension_numbers = #tpu.dot_dimension_numbers<[1], [0], [0], [1], [0, 0, 1, 1], [], []>} : vector<256x72xbf16>, vector<72x16xbf16>, vector<256x16xf32> -> vector<256x16xf32>
    %c1_93 = arith.constant 1 : index
    %c8_94 = arith.constant 8 : index
    %c0_95 = arith.constant 0 : index
    %94 = vector.load %arg17[%c1_93, %c8_94, %c0_95] : memref<18x32x8xbf16, #tpu.memory_space<vmem>>, vector<16x16x8xbf16>
    tpu.vector_store %arg17[%c1_93, %c8_94, %c0_95], %81 {strides = array<i32>} : memref<18x32x8xbf16, #tpu.memory_space<vmem>>, vector<16x16x8xbf16>,
    %c0_96 = arith.constant 0 : index
    %c7_97 = arith.constant 7 : index
    %c0_98 = arith.constant 0 : index
    %95 = vector.load %arg17[%c0_96, %c7_97, %c0_98] : memref<18x32x8xbf16, #tpu.memory_space<vmem>>, vector<18x16x8xbf16>
    %c0_99 = arith.constant 0 : index
    %c8_100 = arith.constant 8 : index
    %c0_101 = arith.constant 0 : index
    %96 = vector.load %arg17[%c0_99, %c8_100, %c0_101] : memref<18x32x8xbf16, #tpu.memory_space<vmem>>, vector<18x16x8xbf16>
    %c0_102 = arith.constant 0 : index
    %c9_103 = arith.constant 9 : index
    %c0_104 = arith.constant 0 : index
    %97 = vector.load %arg17[%c0_102, %c9_103, %c0_104] : memref<18x32x8xbf16, #tpu.memory_space<vmem>>, vector<18x16x8xbf16>
    %98 = tpu.concatenate %95, %96, %97 in 2 : vector<18x16x8xbf16>, vector<18x16x8xbf16>, vector<18x16x8xbf16> -> vector<18x16x24xbf16>
    %99 = vector.extract_strided_slice %98 {offsets = [0, 0, 0], sizes = [16, 16, 24], strides = [1, 1, 1]} : vector<18x16x24xbf16> to vector<16x16x24xbf16>
    %100 = vector.extract_strided_slice %98 {offsets = [1, 0, 0], sizes = [16, 16, 24], strides = [1, 1, 1]} : vector<18x16x24xbf16> to vector<16x16x24xbf16>
    %101 = vector.extract_strided_slice %98 {offsets = [2, 0, 0], sizes = [16, 16, 24], strides = [1, 1, 1]} : vector<18x16x24xbf16> to vector<16x16x24xbf16>
    %102 = tpu.concatenate %99, %100, %101 in 2 : vector<16x16x24xbf16>, vector<16x16x24xbf16>, vector<16x16x24xbf16> -> vector<16x16x72xbf16>
    %103 = vector.shape_cast %102 : vector<16x16x72xbf16> to vector<256x72xbf16>
    %c0_105 = arith.constant 0 : index
    %c0_106 = arith.constant 0 : index
    %104 = vector.load %arg12[%c0_105, %c0_106] : memref<72x16xbf16, #tpu.memory_space<vmem>>, vector<72x16xbf16>
    %cst_107 = arith.constant dense<0.000000e+00> : vector<256x16xf32>
    %105 = tpu.matmul %103, %104, %cst_107 {dimension_numbers = #tpu.dot_dimension_numbers<[1], [0], [0], [1], [0, 0, 1, 1], [], []>} : vector<256x72xbf16>, vector<72x16xbf16>, vector<256x16xf32> -> vector<256x16xf32>
    %106 = arith.addf %93, %105 : vector<256x16xf32>
    %c0_108 = arith.constant 0 : index
    %c0_109 = arith.constant 0 : index
    %107 = vector.load %arg13[%c0_108, %c0_109] : memref<1x16xf32, #tpu.memory_space<vmem>>, vector<1x16xf32>
    %108 = vector.broadcast %107 : vector<1x16xf32> to vector<256x16xf32>
    %109 = arith.addf %106, %108 : vector<256x16xf32>
    %cst_110 = arith.constant 0.000000e+00 : f32
    %110 = vector.broadcast %cst_110 : f32 to vector<256x16xf32>
    %111 = arith.maximumf %109, %110 : vector<256x16xf32>
    %112 = arith.truncf %111 : vector<256x16xf32> to vector<256x16xbf16>
    %113 = vector.shape_cast %112 : vector<256x16xbf16> to vector<16x16x16xbf16>
    %114 = vector.shape_cast %113 : vector<16x16x16xbf16> to vector<256x16xbf16>
    %c0_111 = arith.constant 0 : index
    %c0_112 = arith.constant 0 : index
    %115 = vector.load %arg14[%c0_111, %c0_112] : memref<16x16xbf16, #tpu.memory_space<vmem>>, vector<16x16xbf16>
    %cst_113 = arith.constant dense<0.000000e+00> : vector<256x16xf32>
    %116 = tpu.matmul %114, %115, %cst_113 {dimension_numbers = #tpu.dot_dimension_numbers<[1], [0], [0], [1], [0, 0, 1, 1], [], []>} : vector<256x16xbf16>, vector<16x16xbf16>, vector<256x16xf32> -> vector<256x16xf32>
    %c0_114 = arith.constant 0 : index
    %c0_115 = arith.constant 0 : index
    %117 = vector.load %arg15[%c0_114, %c0_115] : memref<1x16xf32, #tpu.memory_space<vmem>>, vector<1x16xf32>
    %118 = vector.broadcast %117 : vector<1x16xf32> to vector<256x16xf32>
    %119 = arith.addf %116, %118 : vector<256x16xf32>
    %120 = vector.shape_cast %119 : vector<256x16xf32> to vector<16x16x16xf32>
    %c0_116 = arith.constant 0 : index
    %c0_117 = arith.constant 0 : index
    %c0_118 = arith.constant 0 : index
    %c0_119 = arith.constant 0 : index
    %121 = vector.load %arg16[%c0_116, %c0_117, %c0_118, %c0_119] : memref<1x16x16x16xf32, #tpu.memory_space<vmem>>, vector<1x16x16x16xf32>
    %122 = vector.shape_cast %121 : vector<1x16x16x16xf32> to vector<16x16x16xf32>
    %123 = vector.shape_cast %120 : vector<16x16x16xf32> to vector<1x16x16x16xf32>
    tpu.vector_store %arg16[%c0_116, %c0_117, %c0_118, %c0_119], %123 {strides = array<i32>} : memref<1x16x16x16xf32, #tpu.memory_space<vmem>>, vector<1x16x16x16xf32>,
    return
  }
  func.func @transform_0(%arg0: i32) -> (i32, i32, i32, i32) {
    %c0_i32 = arith.constant 0 : i32
    %c0_i32_0 = arith.constant 0 : i32
    %c0_i32_1 = arith.constant 0 : i32
    %c0_i32_2 = arith.constant 0 : i32
    return %arg0, %c0_i32, %c0_i32_0, %c0_i32_1 : i32, i32, i32, i32
  }
  func.func @transform_1(%arg0: i32) -> (i32, i32, i32, i32) {
    %c0_i32 = arith.constant 0 : i32
    %c0_i32_0 = arith.constant 0 : i32
    %c0_i32_1 = arith.constant 0 : i32
    %c0_i32_2 = arith.constant 0 : i32
    return %arg0, %c0_i32, %c0_i32_0, %c0_i32_1 : i32, i32, i32, i32
  }
  func.func @transform_2(%arg0: i32) -> (i32, i32) {
    %c0_i32 = arith.constant 0 : i32
    %c0_i32_0 = arith.constant 0 : i32
    %c0_i32_1 = arith.constant 0 : i32
    return %c0_i32, %c0_i32_0 : i32, i32
  }
  func.func @transform_3(%arg0: i32) -> (i32, i32) {
    %c0_i32 = arith.constant 0 : i32
    %c0_i32_0 = arith.constant 0 : i32
    %c0_i32_1 = arith.constant 0 : i32
    return %c0_i32, %c0_i32_0 : i32, i32
  }
  func.func @transform_4(%arg0: i32) -> (i32, i32) {
    %c0_i32 = arith.constant 0 : i32
    %c0_i32_0 = arith.constant 0 : i32
    %c0_i32_1 = arith.constant 0 : i32
    return %c0_i32, %c0_i32_0 : i32, i32
  }
  func.func @transform_5(%arg0: i32) -> (i32, i32) {
    %c0_i32 = arith.constant 0 : i32
    %c0_i32_0 = arith.constant 0 : i32
    %c0_i32_1 = arith.constant 0 : i32
    return %c0_i32, %c0_i32_0 : i32, i32
  }
  func.func @transform_6(%arg0: i32) -> (i32, i32) {
    %c0_i32 = arith.constant 0 : i32
    %c0_i32_0 = arith.constant 0 : i32
    %c0_i32_1 = arith.constant 0 : i32
    return %c0_i32, %c0_i32_0 : i32, i32
  }
  func.func @transform_7(%arg0: i32) -> (i32, i32) {
    %c0_i32 = arith.constant 0 : i32
    %c0_i32_0 = arith.constant 0 : i32
    %c0_i32_1 = arith.constant 0 : i32
    return %c0_i32, %c0_i32_0 : i32, i32
  }
  func.func @transform_8(%arg0: i32) -> (i32, i32) {
    %c0_i32 = arith.constant 0 : i32
    %c0_i32_0 = arith.constant 0 : i32
    %c0_i32_1 = arith.constant 0 : i32
    return %c0_i32, %c0_i32_0 : i32, i32
  }
  func.func @transform_9(%arg0: i32) -> (i32, i32) {
    %c0_i32 = arith.constant 0 : i32
    %c0_i32_0 = arith.constant 0 : i32
    %c0_i32_1 = arith.constant 0 : i32
    return %c0_i32, %c0_i32_0 : i32, i32
  }
  func.func @transform_10(%arg0: i32) -> (i32, i32) {
    %c0_i32 = arith.constant 0 : i32
    %c0_i32_0 = arith.constant 0 : i32
    %c0_i32_1 = arith.constant 0 : i32
    return %c0_i32, %c0_i32_0 : i32, i32
  }
  func.func @transform_11(%arg0: i32) -> (i32, i32) {
    %c0_i32 = arith.constant 0 : i32
    %c0_i32_0 = arith.constant 0 : i32
    %c0_i32_1 = arith.constant 0 : i32
    return %c0_i32, %c0_i32_0 : i32, i32
  }
  func.func @transform_12(%arg0: i32) -> (i32, i32) {
    %c0_i32 = arith.constant 0 : i32
    %c0_i32_0 = arith.constant 0 : i32
    %c0_i32_1 = arith.constant 0 : i32
    return %c0_i32, %c0_i32_0 : i32, i32
  }
  func.func @transform_13(%arg0: i32) -> (i32, i32) {
    %c0_i32 = arith.constant 0 : i32
    %c0_i32_0 = arith.constant 0 : i32
    %c0_i32_1 = arith.constant 0 : i32
    return %c0_i32, %c0_i32_0 : i32, i32
  }
  func.func @transform_14(%arg0: i32) -> (i32, i32) {
    %c0_i32 = arith.constant 0 : i32
    %c0_i32_0 = arith.constant 0 : i32
    %c0_i32_1 = arith.constant 0 : i32
    return %c0_i32, %c0_i32_0 : i32, i32
  }
  func.func @transform_15(%arg0: i32) -> (i32, i32, i32, i32) {
    %c0_i32 = arith.constant 0 : i32
    %c0_i32_0 = arith.constant 0 : i32
    %c0_i32_1 = arith.constant 0 : i32
    %c0_i32_2 = arith.constant 0 : i32
    return %arg0, %c0_i32, %c0_i32_0, %c0_i32_1 : i32, i32, i32, i32
  }
}

</mosaic_0001>

<bundles_post_ra>
// kernel: depth_rcnn_forward.1
= control target key start
LH: loop header
LB: loop body
LE: loop exit
PB: predicated region body
PF: predicated region fallthrough
CT: control target
= control target key end

     0   :  { %s12962_s18 = smov 0   ;;  %s18660_s0 = inlined_call_operand.vmem [shape: bf16[2,16,16,3], index: 0, kind: input, shape index: {}]   ;;  %s18661_s1 = inlined_call_operand.vmem [shape: bf16[2,16,16,3], index: 1, kind: input, shape index: {}]   ;;  %s18662_s2 = inlined_call_operand.vmem [shape: bf16[72,8], index: 2, kind: input, shape index: {}]   ;;  %s18663_s3 = inlined_call_operand.vmem [shape: f32[1,8], index: 3, kind: input, shape index: {}]   ;;  %s18664_s4 = inlined_call_operand.vmem [shape: bf16[72,8], index: 4, kind: input, shape index: {}]   ;;  %s18665_s5 = inlined_call_operand.vmem [shape: f32[1,8], index: 5, kind: input, shape index: {}]   ;;  %s18666_s6 = inlined_call_operand.vmem [shape: bf16[72,8], index: 6, kind: input, shape index: {}]   ;;  %s18667_s7 = inlined_call_operand.vmem [shape: f32[1,8], index: 7, kind: input, shape index: {}]   ;;  %s18668_s8 = inlined_call_operand.vmem [shape: bf16[72,8], index: 8, kind: input, shape index: {}]   ;;  %s18669_s9 = inlined_call_operand.vmem [shape: f32[1,8], index: 9, kind: input, shape index: {}]   ;;  %s18670_s10 = inlined_call_operand.vmem [shape: bf16[72,16], index: 10, kind: input, shape index: {}]   ;;  %s18671_s11 = inlined_call_operand.vmem [shape: bf16[72,16], index: 11, kind: input, shape index: {}]   ;;  %s18672_s12 = inlined_call_operand.vmem [shape: f32[1,16], index: 12, kind: input, shape index: {}]   ;;  %s18673_s13 = inlined_call_operand.vmem [shape: bf16[16,16], index: 13, kind: input, shape index: {}]   ;;  %s18674_s14 = inlined_call_operand.vmem [shape: f32[1,16], index: 14, kind: input, shape index: {}]   ;;  %s18675_s15 = inlined_call_operand.vmem [shape: f32[2,16,16,16], index: 15, kind: output, shape index: {}]  }
   0x1 LB: > { %s11137_s19 = sadd.s32 4294967295, %s12875_s18   ;;  %p11141_p0 = scmp.ge.s32.totalorder %s12875_s18, 1  ;;  %s12875_s18 = sphi %s12962_s18, %s25_s18  }
   0x2   : > { %p447_p1 = scmp.lt.s32.totalorder %s12875_s18, 3 }
   0x4   : > { %p448_p2 = pnand %p11141_p0, %p447_p1 }
   0x6   : > { %451 = sbr.rel (%p448_p2) target bundleno = 2436 (0x984), region = 80 }
   0xb   : > { %vm516_vm0 = vcmask 60416   ;;  %p12972_p3 = scmp.lt.s32.totalorder %s11137_s19, 1  ;;  %v12877_v0 = vmov 0   ;;  %vm654_vm1 = vcmask 19456   ;;  %s12878_s28 = smov 8   ;;  %vm1155_vm2 = vcmask 1042432  }
   0xc   : > { %518 = vst.msk [vmem:[#allocation2 + $0x4] sm:$0xf] %vm516_vm0, %v12877_v0  ;;  %519 = vst.msk [vmem:[#allocation2 + $0x8] sm:$0xf] %vm516_vm0, %v12877_v0  ;;  %s12879_s29 = smov 16   ;;  %vm1282_vm3 = vcmask 64512  }
   0xd   : > { %517 = vst.msk [vmem:[#allocation2] sm:$0xf] %vm516_vm0, %v12877_v0  ;;  %520 = vst.msk [vmem:[#allocation2 + $0xc] sm:$0xf] %vm516_vm0, %v12877_v0  ;;  %s19293_s19 = smov (!%p12972_p3, %s11137_s19), 1  ;;  %vm1373_vm4 = vcmask 130048  }
   0xe   : > { %521 = vst.msk [vmem:[#allocation2 + $0x10] sm:$0xf] %vm516_vm0, %v12877_v0  ;;  %522 = vst.msk [vmem:[#allocation2 + $0x14] sm:$0xf] %vm516_vm0, %v12877_v0  ;;  %s11859_s21 = sshll.u32 %s19293_s19, 7  ;;  %s12880_s30 = smov 24  }
   0xf   : > { %523 = vst.msk [vmem:[#allocation2 + $0x18] sm:$0xf] %vm516_vm0, %v12877_v0  ;;  %524 = vst.msk [vmem:[#allocation2 + $0x1c] sm:$0xf] %vm516_vm0, %v12877_v0  ;;  %s13130_s24 = scalar_lea.vmem %s18660_s0, %s11859_s21  ;;  %s13141_s27 = scalar_lea.vmem %s18661_s1, %s11859_s21  ;;  %vm2071_vm5 = vcmask 1043456   ;;  %vm1673_vm6 = vcmask 392192  }
  0x10   : > { %525 = vst.msk [vmem:[#allocation2 + $0x20] sm:$0xf] %vm516_vm0, %v12877_v0  ;;  %526 = vst.msk [vmem:[#allocation2 + $0x24] sm:$0xf] %vm516_vm0, %v12877_v0  ;;  %v591_v1 = vld [vmem:[%s13130_s24 + $0x8] sm:$0xf] }
  0x11   : > { %527 = vst.msk [vmem:[#allocation2 + $0x28] sm:$0xf] %vm516_vm0, %v12877_v0  ;;  %528 = vst.msk [vmem:[#allocation2 + $0x2c] sm:$0xf] %vm516_vm0, %v12877_v0  ;;  %v592_v2 = vld [vmem:[%s13130_s24 + $0xc] sm:$0xf] }
  0x12   : > { %529 = vst.msk [vmem:[#allocation2 + $0x30] sm:$0xf] %vm516_vm0, %v12877_v0  ;;  %530 = vst.msk [vmem:[#allocation2 + $0x34] sm:$0xf] %vm516_vm0, %v12877_v0  ;;  %v589_v3 = vld [vmem:[%s13130_s24] sm:$0xf] }
  0x13   : > { %531 = vst.msk [vmem:[#allocation2 + $0x38] sm:$0xf] %vm516_vm0, %v12877_v0  ;;  %532 = vst.msk [vmem:[#allocation2 + $0x3c] sm:$0xf] %vm516_vm0, %v12877_v0  ;;  %v590_v4 = vld [vmem:[%s13130_s24 + $0x4] sm:$0xf] }
  0x14   : > { %533 = vst.msk [vmem:[#allocation2 + $0x40] sm:$0xf] %vm516_vm0, %v12877_v0  ;;  %534 = vst.msk [vmem:[#allocation2 + $0x44] sm:$0xf] %vm516_vm0, %v12877_v0  ;;  %v688_v5 = vld [vmem:[#allocation2 + $0x4] sm:$0xf] }
  0x15   : > { %535 = vst.msk [vmem:[#allocation2 + $0x48] sm:$0xf] %vm516_vm0, %v12877_v0  ;;  %536 = vst.msk [vmem:[#allocation2 + $0x4c] sm:$0xf] %vm516_vm0, %v12877_v0  ;;  %v689_v6 = vld [vmem:[#allocation2 + $0x8] sm:$0xf] }
  0x16   : > { %537 = vst.msk [vmem:[#allocation2 + $0x50] sm:$0xf] %vm516_vm0, %v12877_v0  ;;  %538 = vst.msk [vmem:[#allocation2 + $0x54] sm:$0xf] %vm516_vm0, %v12877_v0  ;;  %v13145_v7 = vcombine.low %v688_v5, %v689_v6  ;;  %v593_v8 = vld [vmem:[%s13130_s24 + $0x10] sm:$0xf] }
  0x17   : > { %539 = vst.msk [vmem:[#allocation2 + $0x58] sm:$0xf] %vm516_vm0, %v12877_v0  ;;  %540 = vst.msk [vmem:[#allocation2 + $0x5c] sm:$0xf] %vm516_vm0, %v12877_v0  ;;  %v594_v9 = vld [vmem:[%s13130_s24 + $0x14] sm:$0xf] }
  0x18   : > { %541 = vst.msk [vmem:[#allocation2 + $0x60] sm:$0xf] %vm516_vm0, %v12877_v0  ;;  %542 = vst.msk [vmem:[#allocation2 + $0x64] sm:$0xf] %vm516_vm0, %v12877_v0  ;;  %v623_v10 = vld [vmem:[%s13141_s27 + $0x8] sm:$0xf] }
  0x19   : > { %543 = vst.msk [vmem:[#allocation2 + $0x68] sm:$0xf] %vm516_vm0, %v12877_v0  ;;  %544 = vst.msk [vmem:[#allocation2 + $0x6c] sm:$0xf] %vm516_vm0, %v12877_v0  ;;  %v624_v11 = vld [vmem:[%s13141_s27 + $0xc] sm:$0xf] }
  0x1a   : > { %545 = vst.msk [vmem:[#allocation2 + $0x70] sm:$0xf] %vm516_vm0, %v12877_v0  ;;  %546 = vst.msk [vmem:[#allocation2 + $0x74] sm:$0xf] %vm516_vm0, %v12877_v0  ;;  %v595_v12 = vld [vmem:[%s13130_s24 + $0x18] sm:$0xf] }
  0x1b   : > { %547 = vst.msk [vmem:[#allocation2 + $0x78] sm:$0xf] %vm516_vm0, %v12877_v0  ;;  %548 = vst.msk [vmem:[#allocation2 + $0x7c] sm:$0xf] %vm516_vm0, %v12877_v0  ;;  %v922_v13 = vshrl.u32 %v13145_v7, 16  ;;  %v925_v14 = vshll.u32 %v13145_v7, 16 }
  0x1c   : > { %549 = vst.msk [vmem:[#allocation2 + $0x80] sm:$0xf] %vm516_vm0, %v12877_v0  ;;  %550 = vst.msk [vmem:[#allocation2 + $0x84] sm:$0xf] %vm516_vm0, %v12877_v0  ;;  %v621_v15 = vld [vmem:[%s13141_s27] sm:$0xf] }
  0x1d   : > { %551 = vst.msk [vmem:[#allocation2 + $0x88] sm:$0xf] %vm516_vm0, %v12877_v0  ;;  %552 = vst.msk [vmem:[#allocation2 + $0x8c] sm:$0xf] %vm516_vm0, %v12877_v0  ;;  %v596_v16 = vld [vmem:[%s13130_s24 + $0x1c] sm:$0xf] }
  0x1e   : > { %553 = vst.msk [vmem:[#allocation2 + $0x90] sm:$0xf] %vm516_vm0, %v12877_v0  ;;  %554 = vst.msk [vmem:[#allocation2 + $0x94] sm:$0xf] %vm516_vm0, %v12877_v0  ;;  %v622_v17 = vld [vmem:[%s13141_s27 + $0x4] sm:$0xf] }
  0x1f   : > { %555 = vst.msk [vmem:[#allocation2 + $0x98] sm:$0xf] %vm516_vm0, %v12877_v0  ;;  %556 = vst.msk [vmem:[#allocation2 + $0x9c] sm:$0xf] %vm516_vm0, %v12877_v0  ;;  %v597_v18 = vld [vmem:[%s13130_s24 + $0x20] sm:$0xf] }
  0x20   : > { %557 = vst.msk [vmem:[#allocation2 + $0xa0] sm:$0xf] %vm516_vm0, %v12877_v0  ;;  %558 = vst.msk [vmem:[#allocation2 + $0xa4] sm:$0xf] %vm516_vm0, %v12877_v0  ;;  %v598_v19 = vld [vmem:[%s13130_s24 + $0x24] sm:$0xf] }
  0x21   : > { %559 = vst.msk [vmem:[#allocation2 + $0xa8] sm:$0xf] %vm516_vm0, %v12877_v0  ;;  %560 = vst.msk [vmem:[#allocation2 + $0xac] sm:$0xf] %vm516_vm0, %v12877_v0  ;;  %v924_v20 = vrot.slane %v922_v13, 4  ;;  %v927_v21 = vrot.slane %v925_v14, 5 }
  0x22   : > { %561 = vst.msk [vmem:[#allocation2 + $0xb0] sm:$0xf] %vm516_vm0, %v12877_v0  ;;  %562 = vst.msk [vmem:[#allocation2 + $0xb4] sm:$0xf] %vm516_vm0, %v12877_v0  ;;  %v625_v22 = vld [vmem:[%s13141_s27 + $0x10] sm:$0xf] }
  0x23   : > { %563 = vst.msk [vmem:[#allocation2 + $0xb8] sm:$0xf] %vm516_vm0, %v12877_v0  ;;  %564 = vst.msk [vmem:[#allocation2 + $0xbc] sm:$0xf] %vm516_vm0, %v12877_v0  ;;  %v626_v23 = vld [vmem:[%s13141_s27 + $0x14] sm:$0xf]  ;;  %v928_v28 = vor.u32 %v927_v21, %v924_v20 }
  0x24   : > { %565 = vst.msk [vmem:[#allocation2 + $0xc0] sm:$0xf] %vm516_vm0, %v12877_v0  ;;  %566 = vst.msk [vmem:[#allocation2 + $0xc4] sm:$0xf] %vm516_vm0, %v12877_v0  ;;  %v627_v26 = vld [vmem:[%s13141_s27 + $0x18] sm:$0xf] }
  0x25   : > { %567 = vst.msk [vmem:[#allocation2 + $0xc8] sm:$0xf] %vm516_vm0, %v12877_v0  ;;  %568 = vst.msk [vmem:[#allocation2 + $0xcc] sm:$0xf] %vm516_vm0, %v12877_v0  ;;  %v599_v27 = vld [vmem:[%s13130_s24 + $0x28] sm:$0xf]  ;;  %1065 = vrot.lane.b32.xlu0 %v928_v28, %s12878_s28 }
  0x26   : > { %569 = vst.msk [vmem:[#allocation2 + $0xd0] sm:$0xf] %vm516_vm0, %v12877_v0  ;;  %570 = vst.msk [vmem:[#allocation2 + $0xd4] sm:$0xf] %vm516_vm0, %v12877_v0  ;;  %v600_v32 = vld [vmem:[%s13130_s24 + $0x2c] sm:$0xf] }
  0x27   : > { %571 = vst.msk [vmem:[#allocation2 + $0xd8] sm:$0xf] %vm516_vm0, %v12877_v0  ;;  %572 = vst.msk [vmem:[#allocation2 + $0xdc] sm:$0xf] %vm516_vm0, %v12877_v0  ;;  %v628_v34 = vld [vmem:[%s13141_s27 + $0x1c] sm:$0xf] }
  0x28   : > { %573 = vst.msk [vmem:[#allocation2 + $0xe0] sm:$0xf] %vm516_vm0, %v12877_v0  ;;  %574 = vst.msk [vmem:[#allocation2 + $0xe4] sm:$0xf] %vm516_vm0, %v12877_v0  ;;  %v629_v35 = vld [vmem:[%s13141_s27 + $0x20] sm:$0xf] }
  0x29   : > { %575 = vst.msk [vmem:[#allocation2 + $0xe8] sm:$0xf] %vm516_vm0, %v12877_v0  ;;  %576 = vst.msk [vmem:[#allocation2 + $0xec] sm:$0xf] %vm516_vm0, %v12877_v0  ;;  %v601_v36 = vld [vmem:[%s13130_s24 + $0x30] sm:$0xf] }
  0x2a   : > { %577 = vst.msk [vmem:[#allocation2 + $0xf0] sm:$0xf] %vm516_vm0, %v12877_v0  ;;  %578 = vst.msk [vmem:[#allocation2 + $0xf4] sm:$0xf] %vm516_vm0, %v12877_v0  ;;  %v630_v41 = vld [vmem:[%s13141_s27 + $0x24] sm:$0xf] }
  0x2b   : > { %579 = vst.msk [vmem:[#allocation2 + $0xf8] sm:$0xf] %vm516_vm0, %v12877_v0  ;;  %580 = vst.msk [vmem:[#allocation2 + $0xfc] sm:$0xf] %vm516_vm0, %v12877_v0  ;;  %v631_v46 = vld [vmem:[%s13141_s27 + $0x28] sm:$0xf] }
  0x2c   : > { %581 = vst.msk [vmem:[#allocation2 + $0x100] sm:$0xf] %vm516_vm0, %v12877_v0  ;;  %582 = vst.msk [vmem:[#allocation2 + $0x104] sm:$0xf] %vm516_vm0, %v12877_v0  ;;  %v602_v47 = vld [vmem:[%s13130_s24 + $0x34] sm:$0xf] }
  0x2d   : > { %583 = vst.msk [vmem:[#allocation2 + $0x108] sm:$0xf] %vm516_vm0, %v12877_v0  ;;  %584 = vst.msk [vmem:[#allocation2 + $0x10c] sm:$0xf] %vm516_vm0, %v12877_v0  ;;  %v632_v51 = vld [vmem:[%s13141_s27 + $0x2c] sm:$0xf] }
  0x2e   : > { %585 = vst.msk [vmem:[#allocation2 + $0x110] sm:$0xf] %vm516_vm0, %v12877_v0  ;;  %586 = vst.msk [vmem:[#allocation2 + $0x114] sm:$0xf] %vm516_vm0, %v12877_v0  ;;  %v633_v60 = vld [vmem:[%s13141_s27 + $0x30] sm:$0xf] }
  0x2f   : > { %587 = vst.msk [vmem:[#allocation2 + $0x118] sm:$0xf] %vm516_vm0, %v12877_v0  ;;  %588 = vst.msk [vmem:[#allocation2 + $0x11c] sm:$0xf] %vm516_vm0, %v12877_v0  ;;  %v603_v61 = vld [vmem:[%s13130_s24 + $0x38] sm:$0xf] }
  0x30   : > { %657 = vst.msk [vmem:[#allocation2 + $0x24] sm:$0xf] %vm654_vm1, %v591_v1  ;;  %658 = vst.msk [vmem:[#allocation2 + $0x28] sm:$0xf] %vm654_vm1, %v592_v2  ;;  %v607_v28 = vld [vmem:[%s13130_s24 + $0x48] sm:$0xf] }
  0x31   : > { %655 = vst.msk [vmem:[#allocation2 + $0x14] sm:$0xf] %vm654_vm1, %v589_v3  ;;  %656 = vst.msk [vmem:[#allocation2 + $0x18] sm:$0xf] %vm654_vm1, %v590_v4  ;;  %v604_v3 = vld [vmem:[%s13130_s24 + $0x3c] sm:$0xf] }
  0x32   : > { %659 = vst.msk [vmem:[#allocation2 + $0x34] sm:$0xf] %vm654_vm1, %v593_v8  ;;  %660 = vst.msk [vmem:[#allocation2 + $0x38] sm:$0xf] %vm654_vm1, %v594_v9  ;;  %s12881_s16 = smov 48   ;;  %vm1608_vm7 = vcmask 195584  }
  0x33   : > { %661 = vst.msk [vmem:[#allocation2 + $0x44] sm:$0xf] %vm654_vm1, %v595_v12  ;;  %662 = vst.msk [vmem:[#allocation2 + $0x48] sm:$0xf] %vm654_vm1, %v596_v16  ;;  %v634_v12 = vld [vmem:[%s13141_s27 + $0x34] sm:$0xf] }
  0x34   : > { %663 = vst.msk [vmem:[#allocation2 + $0x54] sm:$0xf] %vm654_vm1, %v597_v18  ;;  %664 = vst.msk [vmem:[#allocation2 + $0x58] sm:$0xf] %vm654_vm1, %v598_v19  ;;  %v605_v16 = vld [vmem:[%s13130_s24 + $0x40] sm:$0xf] }
  0x35   : > { %665 = vst.msk [vmem:[#allocation2 + $0x64] sm:$0xf] %vm654_vm1, %v599_v27  ;;  %666 = vst.msk [vmem:[#allocation2 + $0x68] sm:$0xf] %vm654_vm1, %v600_v32  ;;  %v635_v27 = vld [vmem:[%s13141_s27 + $0x38] sm:$0xf] }
  0x36   : > { %667 = vst.msk [vmem:[#allocation2 + $0x74] sm:$0xf] %vm654_vm1, %v601_v36  ;;  %668 = vst.msk [vmem:[#allocation2 + $0x78] sm:$0xf] %vm654_vm1, %v602_v47  ;;  %v636_v36 = vld [vmem:[%s13141_s27 + $0x3c] sm:$0xf] }
  0x37   : > { %v13167_v24 = vld [vmem:[#allocation2 + $0x24] sm:$0xf]  ;;  %v13169_v25 = vld [vmem:[#allocation2 + $0x28] sm:$0xf]  ;;  %669 = vst.msk [vmem:[#allocation2 + $0x84] sm:$0xf] %vm654_vm1, %v603_v61 }
  0x38   : > { %v13175_v29 = vcombine.low %v13167_v24, %v13169_v25  ;;  %2286 = vst.msk [vmem:[#allocation2 + $0x24] sm:$0xf] %vm654_vm1, %v623_v10  ;;  %2287 = vst.msk [vmem:[#allocation2 + $0x28] sm:$0xf] %vm654_vm1, %v624_v11  ;;  %v13179_v30 = vld [vmem:[#allocation2 + $0x14] sm:$0xf] }
  0x39   : > { %v13181_v31 = vld [vmem:[#allocation2 + $0x18] sm:$0xf]  ;;  %2284 = vst.msk [vmem:[#allocation2 + $0x14] sm:$0xf] %vm654_vm1, %v621_v15  ;;  %v13198_v39 = vld [vmem:[#allocation2 + $0x34] sm:$0xf] }
  0x3a   : > { %v13187_v33 = vcombine.low %v13179_v30, %v13181_v31  ;;  %2285 = vst.msk [vmem:[#allocation2 + $0x18] sm:$0xf] %vm654_vm1, %v622_v17  ;;  %v938_v37 = vshrl.u32 %v13175_v29, 16  ;;  %v941_v38 = vshll.u32 %v13175_v29, 16  ;;  %v13200_v40 = vld [vmem:[#allocation2 + $0x38] sm:$0xf] }
  0x3b   : > { %v13208_v44 = vcombine.low %v13198_v39, %v13200_v40  ;;  %2288 = vst.msk [vmem:[#allocation2 + $0x34] sm:$0xf] %vm654_vm1, %v625_v22  ;;  %2289 = vst.msk [vmem:[#allocation2 + $0x38] sm:$0xf] %vm654_vm1, %v626_v23  ;;  %v13212_v45 = vld [vmem:[#allocation2 + $0x44] sm:$0xf] }
  0x3c   : > { %v930_v42 = vshrl.u32 %v13187_v33, 16  ;;  %v933_v43 = vshll.u32 %v13187_v33, 16  ;;  %v940_v48 = vrot.slane %v938_v37, 4  ;;  %v943_v49 = vrot.slane %v941_v38, 5  ;;  %v13216_v50 = vld [vmem:[#allocation2 + $0x48] sm:$0xf] }
  0x3d   : > { %2290 = vst.msk [vmem:[#allocation2 + $0x44] sm:$0xf] %vm654_vm1, %v627_v26  ;;  %v946_v54 = vshrl.u32 %v13208_v44, 16  ;;  %v949_v55 = vshll.u32 %v13208_v44, 16  ;;  %2291 = vst.msk [vmem:[#allocation2 + $0x48] sm:$0xf] %vm654_vm1, %v628_v34  ;;  %v13228_v58 = vcombine.low %v13212_v45, %v13216_v50 }
  0x3e   : > { %v932_v52 = vrot.slane %v930_v42, 4  ;;  %v935_v53 = vrot.slane %v933_v43, 5  ;;  %v13224_v56 = vld [vmem:[#allocation2 + $0x54] sm:$0xf]  ;;  %v944_v57 = vor.u32 %v943_v49, %v940_v48  ;;  %v13230_v59 = vld [vmem:[#allocation2 + $0x58] sm:$0xf] }
  0x3f   : > { %18848 = vst [vmem:[#allocation3_spill] sm:$0xff] %v13230_v59  ;;  %2292 = vst.msk [vmem:[#allocation2 + $0x54] sm:$0xf] %vm654_vm1, %v629_v35  ;;  %v948_v63 = vrot.slane %v946_v54, 4  ;;  %v951_v0 = vrot.slane %v949_v55, 5  ;;  %v13237_v1 = vcombine.low %v13224_v56, %v13230_v59  ;;  %v954_v4 = vshrl.u32 %v13228_v58, 16 }
  0x40   : > { %v936_v62 = vor.u32 %v935_v53, %v932_v52  ;;  %2293 = vst.msk [vmem:[#allocation2 + $0x58] sm:$0xf] %vm654_vm1, %v630_v41  ;;  %v13240_v2 = vld [vmem:[#allocation2 + $0x64] sm:$0xf]  ;;  %1069 = vrot.lane.b32.xlu1 %v944_v57, %s12878_s28  ;;  %v957_v5 = vshll.u32 %v13228_v58, 16  ;;  %vm2022_vm9 = vcmask 588800  }
  0x41   : > { %18849 = vst [vmem:[#allocation4_spill] sm:$0xff] %v13240_v2  ;;  %v13247_v6 = vld [vmem:[#allocation2 + $0x68] sm:$0xf]  ;;  %2294 = vst.msk [vmem:[#allocation2 + $0x64] sm:$0xf] %vm654_vm1, %v631_v46  ;;  %v952_v8 = vor.u32 %v951_v0, %v948_v63  ;;  %v962_v9 = vshrl.u32 %v13237_v1, 16 }
  0x42   : > { %18850 = vst [vmem:[#allocation5_spill] sm:$0xff] %v13247_v6  ;;  %670 = vst.msk [vmem:[#allocation2 + $0x88] sm:$0xf] %vm654_vm1, %v604_v3  ;;  %1067 = vrot.lane.b32.xlu0 %v936_v62, %s12878_s28  ;;  %v965_v10 = vshll.u32 %v13237_v1, 16  ;;  %v13256_v11 = vcombine.low %v13240_v2, %v13247_v6  ;;  %v13260_v13 = vld [vmem:[#allocation2 + $0x74] sm:$0xf] }
  0x43   : > { %2295 = vst.msk [vmem:[#allocation2 + $0x68] sm:$0xf] %vm654_vm1, %v632_v51  ;;  %18851 = vst [vmem:[#allocation6_spill] sm:$0xff] %v13260_v13  ;;  %v956_v14 = vrot.slane %v954_v4, 4  ;;  %v959_v15 = vrot.slane %v957_v5, 5  ;;  %v964_v18 = vrot.slane %v962_v9, 4 }
  0x44   : > { %2296 = vst.msk [vmem:[#allocation2 + $0x74] sm:$0xf] %vm654_vm1, %v633_v60  ;;  %v606_v17 = vld [vmem:[%s13130_s24 + $0x44] sm:$0xf]  ;;  %v967_v19 = vrot.slane %v965_v10, 5  ;;  %v970_v20 = vshrl.u32 %v13256_v11, 16  ;;  %1071 = vrot.lane.b32.xlu1 %v952_v8, %s12878_s28 }
  0x45   : > { %v973_v21 = vshll.u32 %v13256_v11, 16  ;;  %v13267_v22 = vld [vmem:[#allocation2 + $0x78] sm:$0xf]  ;;  %671 = vst.msk [vmem:[#allocation2 + $0x94] sm:$0xf] %vm654_vm1, %v605_v16  ;;  %v960_v23 = vor.u32 %v959_v15, %v956_v14 }
  0x46   : > { %18852 = vst [vmem:[#allocation7_spill] sm:$0xff] %v13267_v22  ;;  %672 = vst.msk [vmem:[#allocation2 + $0x98] sm:$0xf] %vm654_vm1, %v606_v17  ;;  %v13274_v26 = vcombine.low %v13260_v13, %v13267_v22  ;;  %v968_v32 = vor.u32 %v967_v19, %v964_v18  ;;  %v972_v34 = vrot.slane %v970_v20, 4  ;;  %v608_v37 = vld [vmem:[%s13130_s24 + $0x4c] sm:$0xf] }
  0x47   : > { %2297 = vst.msk [vmem:[#allocation2 + $0x78] sm:$0xf] %vm654_vm1, %v634_v12  ;;  %v975_v35 = vrot.slane %v973_v21, 5  ;;  %673 = vst.msk [vmem:[#allocation2 + $0xa4] sm:$0xf] %vm654_vm1, %v607_v28  ;;  %1073 = vrot.lane.b32.xlu0 %v960_v23, %s12878_s28 }
  0x48   : > { %v978_v38 = vshrl.u32 %v13274_v26, 16  ;;  %v981_v41 = vshll.u32 %v13274_v26, 16  ;;  %v13285_v42 = vld [vmem:[#allocation2 + $0x84] sm:$0xf]  ;;  %v637_v43 = vld [vmem:[%s13141_s27 + $0x40] sm:$0xf]  ;;  %1075 = vrot.lane.b32.xlu1 %v968_v32, %s12878_s28 }
  0x49   : > { %674 = vst.msk [vmem:[#allocation2 + $0xa8] sm:$0xf] %vm654_vm1, %v608_v37  ;;  %v976_v46 = vor.u32 %v975_v35, %v972_v34  ;;  %v13289_v47 = vld [vmem:[#allocation2 + $0x88] sm:$0xf]  ;;  %2298 = vst.msk [vmem:[#allocation2 + $0x84] sm:$0xf] %vm654_vm1, %v635_v27 }
  0x4a   : > { %v609_v48 = vld [vmem:[%s13130_s24 + $0x50] sm:$0xf]  ;;  %v610_v49 = vld [vmem:[%s13130_s24 + $0x54] sm:$0xf]  ;;  %v980_v51 = vrot.slane %v978_v38, 4  ;;  %v983_v52 = vrot.slane %v981_v41, 5  ;;  %v13297_v53 = vcombine.low %v13285_v42, %v13289_v47 }
  0x4b   : > { %2299 = vst.msk [vmem:[#allocation2 + $0x88] sm:$0xf] %vm654_vm1, %v636_v36  ;;  %v638_v54 = vld [vmem:[%s13141_s27 + $0x44] sm:$0xf]  ;;  %v639_v55 = vld [vmem:[%s13141_s27 + $0x48] sm:$0xf]  ;;  %1077 = vrot.lane.b32.xlu0 %v976_v46, %s12878_s28 }
  0x4c   : > { %675 = vst.msk [vmem:[#allocation2 + $0xb4] sm:$0xf] %vm654_vm1, %v609_v48  ;;  %676 = vst.msk [vmem:[#allocation2 + $0xb8] sm:$0xf] %vm654_vm1, %v610_v49  ;;  %v640_v57 = vld [vmem:[%s13141_s27 + $0x4c] sm:$0xf]  ;;  %v984_v62 = vor.u32 %v983_v52, %v980_v51 }
  0x4d   : > { %v611_v60 = vld [vmem:[%s13130_s24 + $0x58] sm:$0xf]  ;;  %v612_v61 = vld [vmem:[%s13130_s24 + $0x5c] sm:$0xf]  ;;  %v986_v63 = vshrl.u32 %v13297_v53, 16  ;;  %v989_v0 = vshll.u32 %v13297_v53, 16 }
  0x4e   : > { %v13310_v3 = vld [vmem:[#allocation2 + $0x94] sm:$0xf]  ;;  %v13312_v4 = vld [vmem:[#allocation2 + $0x98] sm:$0xf]  ;;  %677 = vst.msk [vmem:[#allocation2 + $0xc4] sm:$0xf] %vm654_vm1, %v611_v60  ;;  %1079 = vrot.lane.b32.xlu1 %v984_v62, %s12878_s28 }
  0x4f   : > { %678 = vst.msk [vmem:[#allocation2 + $0xc8] sm:$0xf] %vm654_vm1, %v612_v61  ;;  %v13318_v5 = vcombine.low %v13310_v3, %v13312_v4  ;;  %2300 = vst.msk [vmem:[#allocation2 + $0x94] sm:$0xf] %vm654_vm1, %v637_v43  ;;  %v641_v8 = vld [vmem:[%s13141_s27 + $0x50] sm:$0xf] }
  0x50   : > { %2301 = vst.msk [vmem:[#allocation2 + $0x98] sm:$0xf] %vm654_vm1, %v638_v54  ;;  %v613_v9 = vld [vmem:[%s13130_s24 + $0x60] sm:$0xf]  ;;  %v614_v10 = vld [vmem:[%s13130_s24 + $0x64] sm:$0xf] }
  0x51   : > { %v988_v12 = vrot.slane %v986_v63, 4  ;;  %v991_v14 = vrot.slane %v989_v0, 5  ;;  %v13326_v15 = vld [vmem:[#allocation2 + $0xa4] sm:$0xf]  ;;  %v642_v16 = vld [vmem:[%s13141_s27 + $0x54] sm:$0xf] }
  0x52   : > { %679 = vst.msk [vmem:[#allocation2 + $0xd4] sm:$0xf] %vm654_vm1, %v613_v9  ;;  %680 = vst.msk [vmem:[#allocation2 + $0xd8] sm:$0xf] %vm654_vm1, %v614_v10  ;;  %v994_v17 = vshrl.u32 %v13318_v5, 16  ;;  %v997_v18 = vshll.u32 %v13318_v5, 16 }
  0x53   : > { %v13333_v19 = vld [vmem:[#allocation2 + $0xa8] sm:$0xf]  ;;  %2302 = vst.msk [vmem:[#allocation2 + $0xa4] sm:$0xf] %vm654_vm1, %v639_v55  ;;  %v643_v20 = vld [vmem:[%s13141_s27 + $0x58] sm:$0xf]  ;;  %v992_v21 = vor.u32 %v991_v14, %v988_v12 }
  0x54   : > { %v13339_v23 = vcombine.low %v13326_v15, %v13333_v19  ;;  %2303 = vst.msk [vmem:[#allocation2 + $0xa8] sm:$0xf] %vm654_vm1, %v640_v57  ;;  %v644_v27 = vld [vmem:[%s13141_s27 + $0x5c] sm:$0xf]  ;;  %v615_v28 = vld [vmem:[%s13130_s24 + $0x68] sm:$0xf] }
  0x55   : > { %v616_v32 = vld [vmem:[%s13130_s24 + $0x6c] sm:$0xf]  ;;  %v996_v34 = vrot.slane %v994_v17, 4  ;;  %v999_v35 = vrot.slane %v997_v18, 5  ;;  %v13345_v36 = vld [vmem:[#allocation2 + $0xb4] sm:$0xf]  ;;  %1081 = vrot.lane.b32.xlu0 %v992_v21, %s12878_s28 }
  0x56   : > { %v13347_v37 = vld [vmem:[#allocation2 + $0xb8] sm:$0xf]  ;;  %v645_v38 = vld [vmem:[%s13141_s27 + $0x60] sm:$0xf]  ;;  %681 = vst.msk [vmem:[#allocation2 + $0xe4] sm:$0xf] %vm654_vm1, %v615_v28 }
  0x57   : > { %682 = vst.msk [vmem:[#allocation2 + $0xe8] sm:$0xf] %vm654_vm1, %v616_v32  ;;  %v1002_v41 = vshrl.u32 %v13339_v23, 16  ;;  %v1005_v43 = vshll.u32 %v13339_v23, 16  ;;  %v13357_v46 = vcombine.low %v13345_v36, %v13347_v37  ;;  %2304 = vst.msk [vmem:[#allocation2 + $0xb4] sm:$0xf] %vm654_vm1, %v641_v8  ;;  %v1000_v51 = vor.u32 %v999_v35, %v996_v34 }
  0x58   : > { %2305 = vst.msk [vmem:[#allocation2 + $0xb8] sm:$0xf] %vm654_vm1, %v642_v16  ;;  %v646_v48 = vld [vmem:[%s13141_s27 + $0x64] sm:$0xf]  ;;  %v617_v49 = vld [vmem:[%s13130_s24 + $0x70] sm:$0xf] }
  0x59   : > { %v13363_v52 = vld [vmem:[#allocation2 + $0xc4] sm:$0xf]  ;;  %v13365_v54 = vld [vmem:[#allocation2 + $0xc8] sm:$0xf]  ;;  %v618_v55 = vld [vmem:[%s13130_s24 + $0x74] sm:$0xf]  ;;  %1083 = vrot.lane.b32.xlu1 %v1000_v51, %s12878_s28 }
  0x5a   : > { %683 = vst.msk [vmem:[#allocation2 + $0xf4] sm:$0xf] %vm654_vm1, %v617_v49  ;;  %v1004_v57 = vrot.slane %v1002_v41, 4  ;;  %v1007_v60 = vrot.slane %v1005_v43, 5  ;;  %v1010_v61 = vshrl.u32 %v13357_v46, 16  ;;  %v1013_v62 = vshll.u32 %v13357_v46, 16 }
  0x5b   : > { %2306 = vst.msk [vmem:[#allocation2 + $0xc4] sm:$0xf] %vm654_vm1, %v643_v20  ;;  %2307 = vst.msk [vmem:[#allocation2 + $0xc8] sm:$0xf] %vm654_vm1, %v644_v27  ;;  %v647_v63 = vld [vmem:[%s13141_s27 + $0x68] sm:$0xf]  ;;  %v13378_v0 = vcombine.low %v13363_v52, %v13365_v54 }
  0x5c   : > { %684 = vst.msk [vmem:[#allocation2 + $0xf8] sm:$0xf] %vm654_vm1, %v618_v55  ;;  %v13380_v8 = vld [vmem:[#allocation2 + $0xd4] sm:$0xf]  ;;  %v13382_v9 = vld [vmem:[#allocation2 + $0xd8] sm:$0xf]  ;;  %v1008_v12 = vor.u32 %v1007_v60, %v1004_v57 }
  0x5d   : > { %v648_v10 = vld [vmem:[%s13141_s27 + $0x6c] sm:$0xf]  ;;  %v1012_v14 = vrot.slane %v1010_v61, 4  ;;  %v1015_v16 = vrot.slane %v1013_v62, 5  ;;  %v13387_v17 = vcombine.low %v13380_v8, %v13382_v9  ;;  %2308 = vst.msk [vmem:[#allocation2 + $0xd4] sm:$0xf] %vm654_vm1, %v645_v38 }
  0x5e   : > { %2309 = vst.msk [vmem:[#allocation2 + $0xd8] sm:$0xf] %vm654_vm1, %v646_v48  ;;  %v619_v18 = vld [vmem:[%s13130_s24 + $0x78] sm:$0xf]  ;;  %v620_v20 = vld [vmem:[%s13130_s24 + $0x7c] sm:$0xf]  ;;  %1085 = vrot.lane.b32.xlu0 %v1008_v12, %s12878_s28 }
  0x5f   : > { %v1018_v21 = vshrl.u32 %v13378_v0, 16  ;;  %v1021_v27 = vshll.u32 %v13378_v0, 16  ;;  %v649_v28 = vld [vmem:[%s13141_s27 + $0x70] sm:$0xf]  ;;  %v650_v32 = vld [vmem:[%s13141_s27 + $0x74] sm:$0xf]  ;;  %v1016_v34 = vor.u32 %v1015_v16, %v1012_v14 }
  0x60   : > { %685 = vst.msk [vmem:[#allocation2 + $0x104] sm:$0xf] %vm654_vm1, %v619_v18  ;;  %686 = vst.msk [vmem:[#allocation2 + $0x108] sm:$0xf] %vm654_vm1, %v620_v20  ;;  %v1026_v35 = vshrl.u32 %v13387_v17, 16  ;;  %v1029_v38 = vshll.u32 %v13387_v17, 16 }
  0x61   : > { %v13402_v41 = vld [vmem:[#allocation2 + $0xe4] sm:$0xf]  ;;  %v13404_v43 = vld [vmem:[#allocation2 + $0xe8] sm:$0xf]  ;;  %v1020_v48 = vrot.slane %v1018_v21, 4  ;;  %v1023_v49 = vrot.slane %v1021_v27, 5  ;;  %1087 = vrot.lane.b32.xlu1 %v1016_v34, %s12878_s28 }
  0x62   : > { %v13408_v51 = vcombine.low %v13402_v41, %v13404_v43  ;;  %2310 = vst.msk [vmem:[#allocation2 + $0xe4] sm:$0xf] %vm654_vm1, %v647_v63  ;;  %2311 = vst.msk [vmem:[#allocation2 + $0xe8] sm:$0xf] %vm654_vm1, %v648_v10  ;;  %v739_v55 = vld [vmem:[#allocation2 + $0x114] sm:$0xf] }
  0x63   : > { %v740_v57 = vld [vmem:[#allocation2 + $0x118] sm:$0xf]  ;;  %v1028_v60 = vrot.slane %v1026_v35, 4  ;;  %v1031_v61 = vrot.slane %v1029_v38, 5  ;;  %v13413_v62 = vld [vmem:[#allocation2 + $0xf4] sm:$0xf]  ;;  %v1024_v14 = vor.u32 %v1023_v49, %v1020_v48 }
  0x64   : > { %v13415_v12 = vcombine.low %v739_v55, %v740_v57  ;;  %v1034_v16 = vshrl.u32 %v13408_v51, 16  ;;  %v1037_v18 = vshll.u32 %v13408_v51, 16  ;;  %v13419_v63 = vld [vmem:[#allocation2 + $0xf8] sm:$0xf]  ;;  %2312 = vst.msk [vmem:[#allocation2 + $0xf4] sm:$0xf] %vm654_vm1, %v649_v28 }
  0x65   : > { %v1032_v10 = vor.u32 %v1031_v61, %v1028_v60  ;;  %v13424_v20 = vcombine.low %v13413_v62, %v13419_v63  ;;  %2313 = vst.msk [vmem:[#allocation2 + $0xf8] sm:$0xf] %vm654_vm1, %v650_v32  ;;  %v651_v21 = vld [vmem:[%s13141_s27 + $0x78] sm:$0xf]  ;;  %v652_v27 = vld [vmem:[%s13141_s27 + $0x7c] sm:$0xf]  ;;  %1089 = vrot.lane.b32.xlu0 %v1024_v14, %s12878_s28 }
  0x66   : > { %v1058_v34 = vshrl.u32 %v13415_v12, 16  ;;  %v1061_v35 = vshll.u32 %v13415_v12, 16  ;;  %v1036_v38 = vrot.slane %v1034_v16, 4  ;;  %v1039_v48 = vrot.slane %v1037_v18, 5 }
  0x67   : > { %1091 = vrot.lane.b32.xlu1 %v1032_v10, %s12878_s28  ;;  %v1042_v28 = vshrl.u32 %v13424_v20, 16  ;;  %v1045_v49 = vshll.u32 %v13424_v20, 16  ;;  %v13435_v55 = vld [vmem:[#allocation2 + $0x104] sm:$0xf]  ;;  %v13437_v57 = vld [vmem:[#allocation2 + $0x108] sm:$0xf] }
  0x68   : > { %v1040_v32 = vor.u32 %v1039_v48, %v1036_v38  ;;  %v13441_v60 = vcombine.low %v13435_v55, %v13437_v57  ;;  %2314 = vst.msk [vmem:[#allocation2 + $0x104] sm:$0xf] %vm654_vm1, %v651_v21  ;;  %2315 = vst.msk [vmem:[#allocation2 + $0x108] sm:$0xf] %vm654_vm1, %v652_v27  ;;  %v1060_v16 = vrot.slane %v1058_v34, 4  ;;  %v1063_v18 = vrot.slane %v1061_v35, 5 }
  0x69   : > { %v1044_v61 = vrot.slane %v1042_v28, 4  ;;  %v1047_v14 = vrot.slane %v1045_v49, 5  ;;  %v12467_v13 = vld [vmem:[#allocation2 + $0xc] ss:$0 sps:$4 sm:$0x11]   ;;  %v1156_v34 = vrot.slane %v13145_v7, 5 }
  0x6a   : > { %1093 = vrot.lane.b32.xlu0 %v1040_v32, %s12878_s28  ;;  %v1050_v10 = vshrl.u32 %v13441_v60, 16  ;;  %v1053_v22 = vshll.u32 %v13441_v60, 16  ;;  %v1064_v2 = vor.u32 %v1063_v18, %v1060_v16  ;;  %v1157_v59 = vrot.slane %v12467_v13, 5  ;;  %v12468_v27 = vld [vmem:[#allocation2 + $0x1c] ss:$0 sps:$4 sm:$0x11]  }
  0x6b   : > { %v1048_v38 = vor.u32 %v1047_v14, %v1044_v61  ;;  %v1160_v28 = vrot.slane %v12468_v27, 5  ;;  %v12469_v49 = vld [vmem:[#allocation2 + $0x2c] ss:$0 sps:$4 sm:$0x11]   ;;  %v1162_v7 = vrot.slane %v13175_v29, 5  ;;  %v1168_v29 = vrot.slane %v13228_v58, 5 }
  0x6c   : > { %v1052_v48 = vrot.slane %v1050_v10, 4  ;;  %v1055_v6 = vrot.slane %v1053_v22, 5  ;;  %v1158_v35 = vsel %vm1155_vm2, %v1156_v34, %v1157_v59  ;;  %v1159_v22 = vrot.slane %v13187_v33, 5  ;;  %v12470_v32 = vld [vmem:[#allocation2 + $0x3c] ss:$0 sps:$4 sm:$0x11]  }
  0x6d   : > { %1095 = vrot.lane.b32.xlu1 %v1048_v38, %s12878_s28  ;;  %v1163_v13 = vrot.slane %v12469_v49, 5  ;;  %v12471_v61 = vld [vmem:[#allocation2 + $0x4c] ss:$0 sps:$4 sm:$0x11]   ;;  %v1165_v33 = vrot.slane %v13208_v44, 5  ;;  %v1171_v44 = vrot.slane %v13237_v1, 5 }
  0x6e   : > { %v1056_v21 = vor.u32 %v1055_v6, %v1052_v48  ;;  %v1161_v6 = vsel %vm1155_vm2, %v1159_v22, %v1160_v28  ;;  %v1169_v16 = vrot.slane %v12471_v61, 5  ;;  %v12472_v18 = vld [vmem:[#allocation2 + $0x5c] ss:$0 sps:$4 sm:$0x11]   ;;  %v1174_v58 = vrot.slane %v13256_v11, 5 }
  0x6f   : > { %v1164_v59 = vsel %vm1155_vm2, %v1162_v7, %v1163_v13  ;;  %v1172_v38 = vrot.slane %v12472_v18, 5  ;;  %v12473_v48 = vld [vmem:[#allocation2 + $0x6c] ss:$0 sps:$4 sm:$0x11]   ;;  %v1177_v1 = vrot.slane %v13274_v26, 5  ;;  %v1180_v11 = vrot.slane %v13297_v53, 5 }
  0x70   : > { %1097 = vrot.lane.b32.xlu0 %v1056_v21, %s12878_s28  ;;  %v1170_v10 = vsel %vm1155_vm2, %v1168_v29, %v1169_v16  ;;  %v1175_v27 = vrot.slane %v12473_v48, 5  ;;  %v12475_v49 = vld [vmem:[#allocation2 + $0x8c] ss:$0 sps:$4 sm:$0x11]   ;;  %v1183_v26 = vrot.slane %v13318_v5, 5  ;;  %v1186_v53 = vrot.slane %v13339_v23, 5 }
  0x71   : > { %1099 = vrot.lane.b32.xlu1 %v1064_v2, %s12878_s28  ;;  %v1166_v2 = vrot.slane %v12470_v32, 5  ;;  %v1173_v21 = vsel %vm1155_vm2, %v1171_v44, %v1172_v38  ;;  %v12476_v13 = vld [vmem:[#allocation2 + $0x9c] ss:$0 sps:$4 sm:$0x11]   ;;  %v1192_v5 = vrot.slane %v13378_v0, 5  ;;  %v1198_v0 = vrot.slane %v13408_v51, 5 }
  0x72   : > { %v12481_v48 = vld [vmem:[#allocation2 + $0xec] ss:$0 sps:$4 sm:$0x11]   ;;  %v2323_v23 = vld [vmem:[#allocation2 + $0x24] sm:$0xf] }
  0x73   : > { %v1167_v14 = vsel %vm1155_vm2, %v1165_v33, %v1166_v2  ;;  %vm1738_vm8 = vsmask.f32 4352 }
  0x74   : > { %1210 = vrot.lane.b32.xlu0 %v1156_v34, %s12879_s29  ;;  %v12474_v34 = vld [vmem:[#allocation2 + $0x7c] ss:$0 sps:$4 sm:$0x11]  }
  0x75   : > { %1212 = vrot.lane.b32.xlu1 %v1158_v35, %s12879_s29  ;;  %v1176_v35 = vsel %vm1155_vm2, %v1174_v58, %v1175_v27  ;;  %v1178_v28 = vrot.slane %v12474_v34, 5  ;;  %v2321_v27 = vld [vmem:[#allocation2 + $0x18] sm:$0xf]  ;;  %v2324_v34 = vld [vmem:[#allocation2 + $0x28] sm:$0xf] }
  0x78   : > { %1214 = vrot.lane.b32.xlu0 %v1159_v22, %s12879_s29  ;;  %v1179_v22 = vsel %vm1155_vm2, %v1177_v1, %v1178_v28  ;;  %v12484_v28 = vld [vmem:[#allocation2 + $0x11c] ss:$0 sps:$4 sm:$0x11]  }
  0x79   : > { %1216 = vrot.lane.b32.xlu1 %v1161_v6, %s12879_s29  ;;  %v1181_v6 = vrot.slane %v12475_v49, 5 }
  0x7b   : > { %v1182_v32 = vsel %vm1155_vm2, %v1180_v11, %v1181_v6  ;;  %v1201_v6 = vrot.slane %v13424_v20, 5 }
  0x7c   : > { %1218 = vrot.lane.b32.xlu0 %v1162_v7, %s12879_s29  ;;  %v1184_v7 = vrot.slane %v12476_v13, 5  ;;  %v13506_v13 = vcombine.low %v2323_v23, %v2324_v34  ;;  %v2330_v23 = vld [vmem:[#allocation2 + $0x48] sm:$0xf]  ;;  %v2332_v34 = vld [vmem:[#allocation2 + $0x54] sm:$0xf] }
  0x7d   : > { %1220 = vrot.lane.b32.xlu1 %v1164_v59, %s12879_s29  ;;  %v12477_v59 = vld [vmem:[#allocation2 + $0xac] ss:$0 sps:$4 sm:$0x11]  }
  0x7e   : > { %v1185_v2 = vsel %vm1155_vm2, %v1183_v26, %v1184_v7  ;;  %v1187_v61 = vrot.slane %v12477_v59, 5  ;;  %v1204_v7 = vrot.slane %v13441_v60, 5  ;;  %v1207_v59 = vrot.slane %v13415_v12, 5  ;;  %v2326_v12 = vld [vmem:[#allocation2 + $0x34] sm:$0xf] }
  0x7f   : > { %v2567_v20 = vshrl.u32 %v13506_v13, 16  ;;  %v2327_v60 = vld [vmem:[#allocation2 + $0x38] sm:$0xf] }
  0x80   : > { %1222 = vrot.lane.b32.xlu0 %v1165_v33, %s12879_s29  ;;  %v12478_v33 = vld [vmem:[#allocation2 + $0xbc] ss:$0 sps:$4 sm:$0x11]   ;;  %v1188_v16 = vsel %vm1155_vm2, %v1186_v53, %v1187_v61  ;;  %v2570_v61 = vshll.u32 %v13506_v13, 16 }
  0x81   : > { %1224 = vrot.lane.b32.xlu1 %v1167_v14, %s12879_s29  ;;  %v12479_v14 = vld [vmem:[#allocation2 + $0xcc] ss:$0 sps:$4 sm:$0x11]   ;;  %v1190_v18 = vrot.slane %v12478_v33, 5 }
  0x82   : > { %v1193_v38 = vrot.slane %v12479_v14, 5 }
  0x84   : > { %1226 = vrot.lane.b32.xlu0 %v1168_v29, %s12879_s29  ;;  %v1189_v29 = vrot.slane %v13357_v46, 5  ;;  %v1195_v46 = vrot.slane %v13387_v17, 5 }
  0x85   : > { %1228 = vrot.lane.b32.xlu1 %v1170_v10, %s12879_s29  ;;  %v12480_v10 = vld [vmem:[#allocation2 + $0xdc] ss:$0 sps:$4 sm:$0x11]  }
  0x88   : > { %1230 = vrot.lane.b32.xlu0 %v1171_v44, %s12879_s29  ;;  %v12482_v44 = vld [vmem:[#allocation2 + $0xfc] ss:$0 sps:$4 sm:$0x11]  }
  0x89   : > { %1232 = vrot.lane.b32.xlu1 %v1173_v21, %s12879_s29  ;;  %v2320_v21 = vld [vmem:[#allocation2 + $0x14] sm:$0xf] }
  0x8a   : > { %v13498_v49 = vcombine.low %v2320_v21, %v2321_v27  ;;  %v12488_v21 = vld [vmem:[#allocation2 + $0x1c] ss:$0 sps:$4 sm:$0x11]   ;;  %v2329_v27 = vld [vmem:[#allocation2 + $0x44] sm:$0xf] }
  0x8c   : > { %1234 = vrot.lane.b32.xlu0 %v1174_v58, %s12879_s29  ;;  %v1191_v58 = vsel %vm1155_vm2, %v1189_v29, %v1190_v18  ;;  %v2559_v17 = vshrl.u32 %v13498_v49, 16  ;;  %v2562_v51 = vshll.u32 %v13498_v49, 16 }
  0x8d   : > { %1236 = vrot.lane.b32.xlu1 %v1176_v35, %s12879_s29  ;;  %v12483_v35 = vld [vmem:[#allocation2 + $0x10c] ss:$0 sps:$4 sm:$0x11]  }
  0x8e   : > { %v2561_v18 = vrot.slane %v2559_v17, 4  ;;  %v12490_v17 = vld [vmem:[#allocation2 + $0x3c] ss:$0 sps:$4 sm:$0x11]  }
  0x90   : > { %1238 = vrot.lane.b32.xlu0 %v1177_v1, %s12879_s29  ;;  %v1194_v1 = vsel %vm1155_vm2, %v1192_v5, %v1193_v38 }
  0x91   : > { %1240 = vrot.lane.b32.xlu1 %v1179_v22, %s12879_s29  ;;  %v1196_v22 = vrot.slane %v12480_v10, 5  ;;  %v2569_v10 = vrot.slane %v2567_v20, 4 }
  0x93   : > { %v1197_v33 = vsel %vm1155_vm2, %v1195_v46, %v1196_v22 }
  0x94   : > { %1242 = vrot.lane.b32.xlu0 %v1180_v11, %s12879_s29  ;;  %v1199_v11 = vrot.slane %v12481_v48, 5 }
  0x95   : > { %1244 = vrot.lane.b32.xlu1 %v1182_v32, %s12879_s29  ;;  %v1202_v32 = vrot.slane %v12482_v44, 5 }
  0x97   : > { %v1203_v14 = vsel %vm1155_vm2, %v1201_v6, %v1202_v32  ;;  %v12489_v32 = vld [vmem:[#allocation2 + $0x2c] ss:$0 sps:$4 sm:$0x11]  }
  0x98   : > { %1246 = vrot.lane.b32.xlu0 %v1183_v26, %s12879_s29  ;;  %v1205_v26 = vrot.slane %v12483_v35, 5  ;;  %v2333_v35 = vld [vmem:[#allocation2 + $0x58] sm:$0xf] }
  0x99   : > { %1248 = vrot.lane.b32.xlu1 %v1185_v2, %s12879_s29  ;;  %v1208_v2 = vrot.slane %v12484_v28, 5  ;;  %v13534_v28 = vpop.permute.xlu0 %1065 }
  0x9a   : > { %v1206_v38 = vsel %vm1155_vm2, %v1204_v7, %v1205_v26  ;;  %18853 = vst [vmem:[#allocation8_spill] sm:$0xff] %v13534_v28 }
  0x9c   : > { %1250 = vrot.lane.b32.xlu0 %v1186_v53, %s12879_s29  ;;  %v1200_v53 = vsel %vm1155_vm2, %v1198_v0, %v1199_v11  ;;  %v2788_v11 = vrot.slane %v12488_v21, 5 }
  0x9d   : > { %1252 = vrot.lane.b32.xlu1 %v1188_v16, %s12879_s29  ;;  %v13523_v16 = vcombine.low %v2326_v12, %v2327_v60  ;;  %v2790_v12 = vrot.slane %v13506_v13, 5  ;;  %v2791_v60 = vrot.slane %v12489_v32, 5 }
  0x9f   : > { %v2575_v48 = vshrl.u32 %v13523_v16, 16  ;;  %v2578_v44 = vshll.u32 %v13523_v16, 16 }
  0xa0   : > { %1254 = vrot.lane.b32.xlu0 %v1189_v29, %s12879_s29  ;;  %v2564_v29 = vrot.slane %v2562_v51, 5 }
  0xa1   : > { %1256 = vrot.lane.b32.xlu1 %v1191_v58, %s12879_s29  ;;  %v1209_v58 = vsel %vm1155_vm2, %v1207_v59, %v1208_v2  ;;  %v2580_v26 = vrot.slane %v2578_v44, 5 }
  0xa2   : > { %v2565_v22 = vor.u32 %v2564_v29, %v2561_v18 }
  0xa4   : > { %1258 = vrot.lane.b32.xlu0 %v1192_v5, %s12879_s29  ;;  %v2572_v5 = vrot.slane %v2570_v61, 5 }
  0xa5   : > { %1260 = vrot.lane.b32.xlu1 %v1194_v1, %s12879_s29  ;;  %v11282_v1 = vcombine.low %v2329_v27, %v2330_v23  ;;  %v12493_v23 = vld [vmem:[#allocation2 + $0x4c] ss:$0 sps:$4 sm:$0x11]  }
  0xa7   : > { %v2583_v2 = vshrl.u32 %v11282_v1, 16  ;;  %v2586_v51 = vshll.u32 %v11282_v1, 16 }
  0xa8   : > { %1262 = vrot.lane.b32.xlu0 %v1195_v46, %s12879_s29  ;;  %v2787_v46 = vrot.slane %v13498_v49, 5 }
  0xa9   : > { %1264 = vrot.lane.b32.xlu1 %v1197_v33, %s12879_s29  ;;  %v2585_v18 = vrot.slane %v2583_v2, 4  ;;  %v2588_v29 = vrot.slane %v2586_v51, 5 }
  0xaa   : > { %v2789_v49 = vsel %vm1155_vm2, %v2787_v46, %v2788_v11 }
  0xab   : > { %v2589_v27 = vor.u32 %v2588_v29, %v2585_v18  ;;  %v2336_v18 = vld [vmem:[#allocation2 + $0x68] sm:$0xf] }
  0xac   : > { %1266 = vrot.lane.b32.xlu0 %v1198_v0, %s12879_s29  ;;  %v2573_v0 = vor.u32 %v2572_v5, %v2569_v10 }
  0xad   : > { %1268 = vrot.lane.b32.xlu1 %v1200_v53, %s12879_s29  ;;  %v2793_v53 = vrot.slane %v13523_v16, 5  ;;  %v2792_v16 = vsel %vm1155_vm2, %v2790_v12, %v2791_v60 }
  0xb0   : > { %1270 = vrot.lane.b32.xlu0 %v1201_v6, %s12879_s29  ;;  %v2577_v6 = vrot.slane %v2575_v48, 4 }
  0xb1   : > { %1272 = vrot.lane.b32.xlu1 %v1203_v14, %s12879_s29  ;;  %v2794_v14 = vrot.slane %v12490_v17, 5 }
  0xb2   : > { %v2581_v5 = vor.u32 %v2580_v26, %v2577_v6  ;;  %v2797_v6 = vrot.slane %v12493_v23, 5 }
  0xb4   : > { %1274 = vrot.lane.b32.xlu0 %v1204_v7, %s12879_s29  ;;  %v11283_v7 = vcombine.low %v2332_v34, %v2333_v35  ;;  %v13543_v33 = vpop.permute.xlu0 %1067  ;;  %v2796_v35 = vrot.slane %v11282_v1, 5 }
  0xb5   : > { %1276 = vrot.lane.b32.xlu1 %v1206_v38, %s12879_s29 }
  0xb6   : > { %v2591_v20 = vshrl.u32 %v11283_v7, 16  ;;  %v2594_v61 = vshll.u32 %v11283_v7, 16  ;;  %v2799_v32 = vrot.slane %v11283_v7, 5  ;;  %v2798_v17 = vsel %vm1155_vm2, %v2796_v35, %v2797_v6 }
  0xb8   : > { %1278 = vrot.lane.b32.xlu0 %v1207_v59, %s12879_s29  ;;  %v13539_v59 = vpop.permute.xlu1 %1069  ;;  %v2593_v38 = vrot.slane %v2591_v20, 4  ;;  %v2596_v48 = vrot.slane %v2594_v61, 5  ;;  %v2338_v61 = vld [vmem:[#allocation2 + $0x74] sm:$0xf] }
  0xb9   : > { %1280 = vrot.lane.b32.xlu1 %v1209_v58, %s12879_s29  ;;  %v13551_v44 = vpop.permute.xlu0 %1073  ;;  %v2795_v58 = vsel %vm1155_vm2, %v2793_v53, %v2794_v14  ;;  %v2335_v14 = vld [vmem:[#allocation2 + $0x64] sm:$0xf] }
  0xbc   : > { %2698 = vrot.lane.b32.xlu0 %v2573_v0, %s12878_s28  ;;  %v13548_v10 = vpop.permute.xlu1 %1071 }
  0xbd   : > { %2696 = vrot.lane.b32.xlu1 %v2565_v22, %s12878_s28  ;;  %v13558_v21 = vpop.permute.xlu0 %1077  ;;  %v2597_v22 = vor.u32 %v2596_v48, %v2593_v38  ;;  %v11284_v48 = vcombine.low %v2335_v14, %v2336_v18  ;;  %v2344_v14 = vld [vmem:[#allocation2 + $0x94] sm:$0xf]  ;;  %v2345_v18 = vld [vmem:[#allocation2 + $0x98] sm:$0xf] }
  0xbe   : > { %18854 = vst [vmem:[#allocation9_spill] sm:$0xff] %v13558_v21 }
  0xbf   : > { %v2599_v6 = vshrl.u32 %v11284_v48, 16 }
  0xc0   : > { %2844 = vrot.lane.b32.xlu0 %v2789_v49, %s12879_s29  ;;  %v13554_v13 = vpop.permute.xlu1 %1075 }
  0xc1   : > { %2842 = vrot.lane.b32.xlu1 %v2787_v46, %s12879_s29  ;;  %v12496_v46 = vld [vmem:[#allocation2 + $0x5c] ss:$0 sps:$4 sm:$0x11]  }
  0xc2   : > { %v2800_v26 = vrot.slane %v12496_v46, 5  ;;  %v11151_v46 = vcombine.low %v13181_v31, %v13181_v31 }
  0xc4   : > { %2846 = vrot.lane.b32.xlu0 %v2790_v12, %s12879_s29  ;;  %v13562_v34 = vpop.permute.xlu1 %1079  ;;  %v2801_v51 = vsel %vm1155_vm2, %v2799_v32, %v2800_v26  ;;  %v2339_v12 = vld [vmem:[#allocation2 + $0x78] sm:$0xf]  ;;  %v1292_v31 = vsel %vm1282_vm3, %v11151_v46, %v13543_v33  ;;  %v2342_v46 = vld [vmem:[#allocation2 + $0x88] sm:$0xf] }
  0xc5   : > { %2700 = vrot.lane.b32.xlu1 %v2581_v5, %s12878_s28  ;;  %18855 = vst [vmem:[#allocation10_spill] sm:$0xff] %v13562_v34  ;;  %v690_v5 = vld [vmem:[#allocation2 + $0x10] sm:$0x8] }
  0xc6   : > { %v11150_v23 = vcombine.low %v690_v5, %v13179_v30 }
  0xc7   : > { %v13566_v0 = vpop.permute.xlu0 %1081 }
  0xc8   : > { %2850 = vrot.lane.b32.xlu0 %v2793_v53, %s12879_s29  ;;  %v13590_v53 = vcombine.low %v2338_v61, %v2339_v12  ;;  %v1290_v12 = vsel %vm1282_vm3, %v11150_v23, %v13543_v33  ;;  %v2341_v33 = vld [vmem:[#allocation2 + $0x84] sm:$0xf] }
  0xc9   : > { %2848 = vrot.lane.b32.xlu1 %v2792_v16, %s12879_s29 }
  0xca   : > { %v2607_v16 = vshrl.u32 %v13590_v53, 16 }
  0xcb   : > { %v13569_v11 = vpop.permute.xlu1 %1083 }
  0xcc   : > { %2702 = vrot.lane.b32.xlu0 %v2589_v27, %s12878_s28  ;;  %v2610_v27 = vshll.u32 %v13590_v53, 16  ;;  %v2609_v26 = vrot.slane %v2607_v16, 4  ;;  %v2601_v16 = vrot.slane %v2599_v6, 4 }
  0xcd   : > { %2852 = vrot.lane.b32.xlu1 %v2795_v58, %s12879_s29 }
  0xd0   : > { %2854 = vrot.lane.b32.xlu0 %v2796_v35, %s12879_s29  ;;  %v13574_v1 = vpop.permute.xlu0 %1085  ;;  %v693_v35 = vld [vmem:[#allocation2 + $0x20] sm:$0x8] }
  0xd1   : > { %2704 = vrot.lane.b32.xlu1 %v2597_v22, %s12878_s28  ;;  %v11152_v61 = vcombine.low %v693_v35, %v13167_v24  ;;  %v13620_v35 = vcombine.low %v2344_v14, %v2345_v18 }
  0xd3   : > { %v13577_v2 = vpop.permute.xlu1 %1087 }
  0xd4   : > { %2858 = vrot.lane.b32.xlu0 %v2799_v32, %s12879_s29  ;;  %v2602_v32 = vshll.u32 %v11284_v48, 16 }
  0xd5   : > { %2856 = vrot.lane.b32.xlu1 %v2798_v17, %s12879_s29  ;;  %v2612_v17 = vrot.slane %v2610_v27, 5 }
  0xd6   : > { %v2604_v27 = vrot.slane %v2602_v32, 5 }
  0xd7   : > { %v13581_v49 = vpop.permute.xlu0 %1089  ;;  %v2613_v23 = vor.u32 %v2612_v17, %v2609_v26  ;;  %v11286_v26 = vcombine.low %v2341_v33, %v2342_v46  ;;  %v2623_v17 = vshrl.u32 %v13620_v35, 16 }
  0xd8   : > { %v2605_v32 = vor.u32 %v2604_v27, %v2601_v16 }
  0xd9   : > { %v13583_v20 = vpop.permute.xlu1 %1091  ;;  %2860 = vrot.lane.b32.xlu1 %v2801_v51, %s12879_s29  ;;  %v12499_v51 = vld [vmem:[#allocation2 + $0x6c] ss:$0 sps:$4 sm:$0x11]   ;;  %v2618_v16 = vshll.u32 %v11286_v26, 16  ;;  %v2625_v27 = vrot.slane %v2623_v17, 4  ;;  %v2808_v34 = vrot.slane %v11286_v26, 5 }
  0xda   : > { %v2803_v28 = vrot.slane %v12499_v51, 5  ;;  %v2805_v51 = vrot.slane %v13590_v53, 5  ;;  %v12504_v17 = vld [vmem:[#allocation2 + $0x9c] ss:$0 sps:$4 sm:$0x11]  }
  0xdb   : > { %v2620_v53 = vrot.slane %v2618_v16, 5  ;;  %v2812_v16 = vrot.slane %v12504_v17, 5  ;;  %v717_v17 = vld [vmem:[#allocation2 + $0xa0] sm:$0x8] }
  0xdc   : > { %v13586_v7 = vpop.permute.xlu0 %1093 }
  0xdf   : > { %v13588_v60 = vpop.permute.xlu1 %1095 }
  0xe2   : > { %v13592_v29 = vpop.permute.xlu0 %1097 }
  0xe3   : > { %v13594_v38 = vpop.permute.xlu1 %1099 }
  0xe6   : > { %v13599_v58 = vpop.permute.xlu0 %1210 }
  0xe7   : > { %18856 = vst [vmem:[#allocation11_spill] sm:$0xff] %v13599_v58  ;;  %v13603_v22 = vpop.permute.xlu1 %1212  ;;  %v2802_v58 = vrot.slane %v11284_v48, 5 }
  0xe8   : > { %18857 = vst [vmem:[#allocation12_spill] sm:$0xff] %v13603_v22 }
  0xe9   : > { %v2804_v48 = vsel %vm1155_vm2, %v2802_v58, %v2803_v28 }
  0xea   : > { %v1215_v30 = vpop.permute.xlu0 %1214 }
  0xeb   : > { %v13611_v5 = vsel %vm1373_vm4, %v1290_v12, %v1215_v30  ;;  %v1217_v22 = vpop.permute.xlu1 %1216  ;;  %v1295_v12 = vsel %vm1282_vm3, %v11152_v61, %v13539_v59  ;;  %v2626_v61 = vshll.u32 %v13620_v35, 16 }
  0xec   : > { %18858 = vst [vmem:[#allocation13_spill] sm:$0xff] %v13611_v5  ;;  %1478 = vrot.lane.b32.xlu0 %v13611_v5, %s12880_s30  ;;  %v13616_v24 = vsel %vm1373_vm4, %v1292_v31, %v1217_v22  ;;  %v12500_v5 = vld [vmem:[#allocation2 + $0x7c] ss:$0 sps:$4 sm:$0x11]  }
  0xed   : > { %18859 = vst [vmem:[#allocation14_spill] sm:$0xff] %v13616_v24  ;;  %1480 = vrot.lane.b32.xlu1 %v13616_v24, %s12880_s30  ;;  %v2806_v18 = vrot.slane %v12500_v5, 5 }
  0xee   : > { %v1219_v30 = vpop.permute.xlu0 %1218 }
  0xef   : > { %v13625_v22 = vsel %vm1373_vm4, %v1295_v12, %v1219_v30  ;;  %v13627_v6 = vpop.permute.xlu1 %1220  ;;  %v2615_v12 = vshrl.u32 %v11286_v26, 16  ;;  %v2807_v46 = vsel %vm1155_vm2, %v2805_v51, %v2806_v18  ;;  %v12503_v30 = vld [vmem:[#allocation2 + $0x8c] ss:$0 sps:$4 sm:$0x11]   ;;  %v12538_v26 = vld [vmem:[%s18662_s2 + $0x20] ss:$0 sps:$4 sm:$0xff]  }
  0xf0   : > { %18860 = vst [vmem:[#allocation15_spill] sm:$0xff] %v13625_v22  ;;  %1482 = vrot.lane.b32.xlu0 %v13625_v22, %s12880_s30  ;;  %12430 = vmatprep.subr.msk.bf16.mxu1 %vm2071_vm5, %v12538_v26 }
  0xf1   : > { %2708 = vrot.lane.b32.xlu1 %v2613_v23, %s12878_s28  ;;  %v2628_v23 = vrot.slane %v2626_v61, 5  ;;  %v2617_v28 = vrot.slane %v2615_v12, 4  ;;  %v2811_v12 = vrot.slane %v13620_v35, 5  ;;  %v2073_v35 = vsel %vm2071_vm5, %v12538_v26, 0  ;;  %12429 = vmatprep.subr.msk.bf16.mxu0 %vm2071_vm5, %v12538_v26 }
  0xf2   : > { %v13634_v14 = vpop.permute.xlu0 %1222  ;;  %12424 = vmatpush3.bf16.msra.mxu1 %v2073_v35  ;;  %12134 = vmatpush3.bf16.msra.mxu0 %v2073_v35 }
  0xf3   : > { %v13638_v31 = vpop.permute.xlu1 %1224  ;;  %v2629_v5 = vor.u32 %v2628_v23, %v2625_v27  ;;  %v2621_v18 = vor.u32 %v2620_v53, %v2617_v28  ;;  %v2813_v23 = vsel %vm1155_vm2, %v2811_v12, %v2812_v16  ;;  %v12540_v28 = vld [vmem:[%s18662_s2 + $0x18] sm:$0xff]   ;;  %v12542_v16 = vld [vmem:[%s18662_s2 + $0x10] sm:$0xff]  }
  0xf4   : > { %2706 = vrot.lane.b32.xlu0 %v2605_v32, %s12878_s28  ;;  %12420 = vmatprep.subr.bf16.mxu1 %v12540_v28 }
  0xf5   : > { %2864 = vrot.lane.b32.xlu1 %v2804_v48, %s12879_s29  ;;  %v2809_v48 = vrot.slane %v12503_v30, 5  ;;  %12135 = vmatprep.subr.bf16.mxu0 %v12540_v28 }
  0xf6   : > { %v13642_v33 = vpop.permute.xlu0 %1226  ;;  %12425 = vmatpush3.bf16.msra.mxu1 %v12540_v28  ;;  %12136 = vmatpush3.bf16.msra.mxu0 %v12540_v28 }
  0xf7   : > { %v13645_v24 = vpop.permute.xlu1 %1228  ;;  %12421 = vmatprep.subr.bf16.mxu1 %v12542_v16  ;;  %12137 = vmatprep.subr.bf16.mxu0 %v12542_v16 }
  0xf8   : > { %2862 = vrot.lane.b32.xlu0 %v2802_v58, %s12879_s29  ;;  %v2810_v58 = vsel %vm1155_vm2, %v2808_v34, %v2809_v48  ;;  %v11167_v48 = vcombine.low %v13312_v4, %v13312_v4  ;;  %v11168_v4 = vcombine.low %v717_v17, %v13326_v15  ;;  %v720_v17 = vld [vmem:[#allocation2 + $0xb0] sm:$0x8] }
  0xf9   : > { %2868 = vrot.lane.b32.xlu1 %v2807_v46, %s12879_s29  ;;  %v714_v46 = vld [vmem:[#allocation2 + $0x90] sm:$0x8] }
  0xfa   : > { %v13649_v32 = vpop.permute.xlu0 %1230  ;;  %v11166_v53 = vcombine.low %v714_v46, %v13310_v3  ;;  %v2351_v46 = vld [vmem:[#allocation2 + $0xb8] sm:$0xf]  ;;  %v1332_v35 = vsel %vm1282_vm3, %v11167_v48, %v13569_v11  ;;  %12426 = vmatpush3.bf16.msra.mxu1 %v12542_v16  ;;  %12138 = vmatpush3.bf16.msra.mxu0 %v12542_v16 }
  0xfb   : > { %v13651_v61 = vpop.permute.xlu1 %1232 }
  0xfc   : > { %18861 = vst [vmem:[#allocation16_spill] sm:$0xff] %v13651_v61  ;;  %2866 = vrot.lane.b32.xlu0 %v2805_v51, %s12879_s29  ;;  %v1330_v3 = vsel %vm1282_vm3, %v11166_v53, %v13569_v11  ;;  %v1335_v53 = vsel %vm1282_vm3, %v11168_v4, %v13574_v1  ;;  %v12508_v61 = vld [vmem:[#allocation2 + $0xbc] ss:$0 sps:$4 sm:$0x11]  }
  0xfd   : > { %2712 = vrot.lane.b32.xlu1 %v2629_v5, %s12878_s28 }
  0xfe   : > { %v13655_v21 = vpop.permute.xlu0 %1234 }
  0xff   : > { %18862 = vst [vmem:[#allocation17_spill] sm:$0xff] %v13655_v21  ;;  %v13659_v27 = vpop.permute.xlu1 %1236 }
 0x100   : > { %18863 = vst [vmem:[#allocation18_spill] sm:$0xff] %v13659_v27  ;;  %2710 = vrot.lane.b32.xlu0 %v2621_v18, %s12878_s28 }
 0x101   : > { %2872 = vrot.lane.b32.xlu1 %v2810_v58, %s12879_s29  ;;  %v2348_v58 = vld [vmem:[#allocation2 + $0xa8] sm:$0xf] }
 0x102   : > { %v13666_v51 = vpop.permute.xlu0 %1238 }
 0x103   : > { %18864 = vst [vmem:[#allocation19_spill] sm:$0xff] %v13666_v51  ;;  %v13669_v30 = vpop.permute.xlu1 %1240 }
 0x104   : > { %18865 = vst [vmem:[#allocation20_spill] sm:$0xff] %v13669_v30  ;;  %2870 = vrot.lane.b32.xlu0 %v2808_v34, %s12879_s29  ;;  %v2347_v34 = vld [vmem:[#allocation2 + $0xa4] sm:$0xf] }
 0x105   : > { %2876 = vrot.lane.b32.xlu1 %v2813_v23, %s12879_s29  ;;  %v2350_v23 = vld [vmem:[#allocation2 + $0xb4] sm:$0xf]  ;;  %v11288_v28 = vcombine.low %v2347_v34, %v2348_v58 }
 0x106   : > { %v13680_v5 = vpop.permute.xlu0 %1242  ;;  %v13707_v11 = vcombine.low %v2350_v23, %v2351_v46  ;;  %v12549_v23 = vld [vmem:[%s18662_s2] sm:$0xff]   ;;  %v11170_v46 = vcombine.low %v720_v17, %v13345_v36 }
 0x107   : > { %v13684_v18 = vpop.permute.xlu1 %1244  ;;  %v2631_v16 = vshrl.u32 %v11288_v28, 16 }
 0x108   : > { %2874 = vrot.lane.b32.xlu0 %v2811_v12, %s12879_s29  ;;  %v11169_v12 = vcombine.low %v13333_v19, %v13333_v19  ;;  %v12546_v19 = vld [vmem:[%s18662_s2 + $0x8] sm:$0xff]   ;;  %v2642_v4 = vshll.u32 %v13707_v11, 16 }
 0x109   : > { %12422 = vmatprep.subr.bf16.mxu1 %v12546_v19  ;;  %12139 = vmatprep.subr.bf16.mxu0 %v12546_v19 }
 0x10a   : > { %v1247_v26 = vpop.permute.xlu0 %1246  ;;  %12427 = vmatpush3.bf16.msra.mxu1 %v12546_v19  ;;  %12140 = vmatpush3.bf16.msra.mxu0 %v12546_v19  ;;  %v2644_v36 = vrot.slane %v2642_v4, 5  ;;  %v1340_v19 = vsel %vm1282_vm3, %v11170_v46, %v13577_v2 }
 0x10b   : > { %v13698_v30 = vsel %vm1373_vm4, %v1330_v3, %v1247_v26  ;;  %v1249_v51 = vpop.permute.xlu1 %1248  ;;  %v2634_v26 = vshll.u32 %v11288_v28, 16  ;;  %12423 = vmatprep.subr.bf16.mxu1 %v12549_v23  ;;  %12141 = vmatprep.subr.bf16.mxu0 %v12549_v23 }
 0x10c   : > { %1510 = vrot.lane.b32.xlu0 %v13698_v30, %s12880_s30  ;;  %v13703_v15 = vsel %vm1373_vm4, %v1332_v35, %v1249_v51  ;;  %v1337_v51 = vsel %vm1282_vm3, %v11169_v12, %v13574_v1  ;;  %v2639_v1 = vshrl.u32 %v13707_v11, 16  ;;  %v11171_v12 = vcombine.low %v13347_v37, %v13347_v37  ;;  %v12507_v37 = vld [vmem:[#allocation2 + $0xac] ss:$0 sps:$4 sm:$0x11]  }
 0x10d   : > { %1512 = vrot.lane.b32.xlu1 %v13703_v15, %s12880_s30 }
 0x10e   : > { %v1251_v48 = vpop.permute.xlu0 %1250  ;;  %12428 = vmatpush3.bf16.msra.mxu1 %v12549_v23  ;;  %12142 = vmatpush3.bf16.msra.mxu0 %v12549_v23  ;;  %v1342_v27 = vsel %vm1282_vm3, %v11171_v12, %v13577_v2  ;;  %v2815_v23 = vrot.slane %v12507_v37, 5  ;;  %v2814_v2 = vrot.slane %v11288_v28, 5  ;;  %v2818_v12 = vrot.slane %v12508_v61, 5  ;;  %v2353_v61 = vld [vmem:[#allocation2 + $0xc4] sm:$0xf] }
 0x10f   : > { %v13717_v34 = vsel %vm1373_vm4, %v1335_v53, %v1251_v48  ;;  %v1253_v58 = vpop.permute.xlu1 %1252  ;;  %v2633_v48 = vrot.slane %v2631_v16, 4  ;;  %v2354_v28 = vld [vmem:[#allocation2 + $0xc8] sm:$0xf] }
 0x110   : > { %1514 = vrot.lane.b32.xlu0 %v13717_v34, %s12880_s30  ;;  %v13722_v3 = vsel %vm1373_vm4, %v1337_v51, %v1253_v58  ;;  %v2636_v51 = vrot.slane %v2634_v26, 5  ;;  %v2641_v58 = vrot.slane %v2639_v1, 4 }
 0x111   : > { %18866 = vst [vmem:[#allocation21_spill] sm:$0xff] %v13722_v3  ;;  %1516 = vrot.lane.b32.xlu1 %v13722_v3, %s12880_s30 }
 0x112   : > { %v1255_v35 = vpop.permute.xlu0 %1254  ;;  %v2637_v1 = vor.u32 %v2636_v51, %v2633_v48  ;;  %v2645_v4 = vor.u32 %v2644_v36, %v2641_v58  ;;  %v723_v51 = vld [vmem:[#allocation2 + $0xc0] sm:$0x8] }
 0x113   : > { %v1257_v53 = vpop.permute.xlu1 %1256  ;;  %v13743_v21 = vsel %vm1373_vm4, %v1340_v19, %v1255_v35  ;;  %v2816_v35 = vsel %vm1155_vm2, %v2814_v2, %v2815_v23  ;;  %v11172_v36 = vcombine.low %v723_v51, %v13363_v52  ;;  %v11290_v23 = vcombine.low %v2353_v61, %v2354_v28 }
 0x114   : > { %1576 = vrot.lane.b32.xlu0 %v13717_v34, %s12881_s16  ;;  %18867 = vst [vmem:[#allocation22_spill] sm:$0xff] %v13743_v21  ;;  %v13748_v26 = vsel %vm1373_vm4, %v1342_v27, %v1257_v53  ;;  %v2817_v53 = vrot.slane %v13707_v11, 5  ;;  %v11173_v11 = vcombine.low %v13365_v54, %v13365_v54 }
 0x115   : > { %1578 = vrot.lane.b32.xlu1 %v13722_v3, %s12881_s16  ;;  %18868 = vst [vmem:[#allocation23_spill] sm:$0xff] %v13748_v26  ;;  %v1345_v52 = vsel %vm1282_vm3, %v11172_v36, %v13581_v49  ;;  %v2647_v61 = vshrl.u32 %v11290_v23, 16  ;;  %v2650_v28 = vshll.u32 %v11290_v23, 16 }
 0x116   : > { %v1259_v17 = vpop.permute.xlu0 %1258  ;;  %v2819_v48 = vsel %vm1155_vm2, %v2817_v53, %v2818_v12  ;;  %v1347_v12 = vsel %vm1282_vm3, %v11173_v11, %v13581_v49 }
 0x117   : > { %v1261_v16 = vpop.permute.xlu1 %1260  ;;  %v2652_v11 = vrot.slane %v2650_v28, 5 }
 0x118   : > { %1580 = vrot.lane.b32.xlu0 %v13743_v21, %s12881_s16  ;;  %v13786_v54 = vsel %vm1373_vm4, %v1347_v12, %v1261_v16  ;;  %v2649_v16 = vrot.slane %v2647_v61, 4 }
 0x119   : > { %1582 = vrot.lane.b32.xlu1 %v13748_v26, %s12881_s16  ;;  %18870 = vst [vmem:[#allocation25_spill] sm:$0xff] %v13786_v54 }
 0x11a   : > { %v1263_v46 = vpop.permute.xlu0 %1262  ;;  %v2653_v28 = vor.u32 %v2652_v11, %v2649_v16 }
 0x11b   : > { %v1265_v3 = vpop.permute.xlu1 %1264 }
 0x11c   : > { %2714 = vrot.lane.b32.xlu0 %v2637_v1, %s12878_s28  ;;  %v2356_v1 = vld [vmem:[#allocation2 + $0xd4] sm:$0xf] }
 0x11d   : > { %2716 = vrot.lane.b32.xlu1 %v2645_v4, %s12878_s28  ;;  %v2357_v4 = vld [vmem:[#allocation2 + $0xd8] sm:$0xf] }
 0x11e   : > { %v13757_v27 = vpop.permute.xlu0 %1266 }
 0x11f   : > { %v13755_v19 = vpop.permute.xlu1 %1268 }
 0x120   : > { %2878 = vrot.lane.b32.xlu0 %v2814_v2, %s12879_s29 }
 0x121   : > { %2880 = vrot.lane.b32.xlu1 %v2816_v35, %s12879_s29  ;;  %v11291_v35 = vcombine.low %v2356_v1, %v2357_v4 }
 0x122   : > { %v13768_v37 = vpop.permute.xlu0 %1270 }
 0x123   : > { %v13763_v58 = vpop.permute.xlu1 %1272  ;;  %v2655_v36 = vshrl.u32 %v11291_v35, 16  ;;  %v2658_v1 = vshll.u32 %v11291_v35, 16  ;;  %v2823_v16 = vrot.slane %v11291_v35, 5  ;;  %v2362_v35 = vld [vmem:[#allocation2 + $0xf4] sm:$0xf] }
 0x124   : > { %2882 = vrot.lane.b32.xlu0 %v2817_v53, %s12879_s29  ;;  %v726_v53 = vld [vmem:[#allocation2 + $0xd0] sm:$0x8] }
 0x125   : > { %2884 = vrot.lane.b32.xlu1 %v2819_v48, %s12879_s29  ;;  %v13783_v48 = vsel %vm1373_vm4, %v1345_v52, %v1259_v17  ;;  %v11174_v49 = vcombine.low %v726_v53, %v13380_v8  ;;  %v11175_v17 = vcombine.low %v13382_v9, %v13382_v9  ;;  %v2657_v52 = vrot.slane %v2655_v36, 4  ;;  %v12515_v8 = vld [vmem:[#allocation2 + $0xcc] ss:$0 sps:$4 sm:$0x11]  }
 0x126   : > { %18869 = vst [vmem:[#allocation24_spill] sm:$0xff] %v13783_v48  ;;  %v13788_v51 = vpop.permute.xlu0 %1274  ;;  %v2660_v12 = vrot.slane %v2658_v1, 5 }
 0x127   : > { %v13774_v2 = vpop.permute.xlu1 %1276  ;;  %v1352_v9 = vsel %vm1282_vm3, %v11175_v17, %v13583_v20 }
 0x128   : > { %1518 = vrot.lane.b32.xlu0 %v13743_v21, %s12880_s30  ;;  %v13815_v61 = vsel %vm1373_vm4, %v1352_v9, %v1265_v3  ;;  %v2661_v36 = vor.u32 %v2660_v12, %v2657_v52  ;;  %v729_v12 = vld [vmem:[#allocation2 + $0xe0] sm:$0x8]  ;;  %v2360_v9 = vld [vmem:[#allocation2 + $0xe8] sm:$0xf] }
 0x129   : > { %1520 = vrot.lane.b32.xlu1 %v13748_v26, %s12880_s30  ;;  %v1350_v26 = vsel %vm1282_vm3, %v11174_v49, %v13583_v20  ;;  %18872 = vst [vmem:[#allocation27_spill] sm:$0xff] %v13815_v61  ;;  %v2821_v49 = vrot.slane %v12515_v8, 5  ;;  %v12518_v20 = vld [vmem:[#allocation2 + $0xdc] ss:$0 sps:$4 sm:$0x11]  }
 0x12a   : > { %v13805_v21 = vpop.permute.xlu0 %1278  ;;  %v13810_v53 = vsel %vm1373_vm4, %v1350_v26, %v1263_v46  ;;  %v2820_v26 = vrot.slane %v11290_v23, 5  ;;  %v2824_v17 = vrot.slane %v12518_v20, 5  ;;  %v2359_v23 = vld [vmem:[#allocation2 + $0xe4] sm:$0xf]  ;;  %v11177_v20 = vcombine.low %v13404_v43, %v13404_v43 }
 0x12b   : > { %v13797_v4 = vpop.permute.xlu1 %1280  ;;  %18871 = vst [vmem:[#allocation26_spill] sm:$0xff] %v13810_v53 }
 0x12c   : > { %1522 = vrot.lane.b32.xlu0 %v13783_v48, %s12880_s30  ;;  %v2822_v3 = vsel %vm1155_vm2, %v2820_v26, %v2821_v49  ;;  %v2825_v52 = vsel %vm1155_vm2, %v2823_v16, %v2824_v17  ;;  %v2363_v49 = vld [vmem:[#allocation2 + $0xf8] sm:$0xf] }
 0x12d   : > { %1524 = vrot.lane.b32.xlu1 %v13786_v54, %s12880_s30  ;;  %v11293_v17 = vcombine.low %v2362_v35, %v2363_v49 }
 0x12e   : > { %v13821_v1 = vpop.permute.xlu0 %2698 }
 0x12f   : > { %v2674_v49 = vshll.u32 %v11293_v17, 16 }
 0x130   : > { %1584 = vrot.lane.b32.xlu0 %v13783_v48, %s12881_s16  ;;  %v13812_v48 = vpop.permute.xlu1 %2696 }
 0x131   : > { %1586 = vrot.lane.b32.xlu1 %v13786_v54, %s12881_s16 }
 0x132   : > { %v13829_v11 = vpop.permute.xlu0 %2844 }
 0x134   : > { %1588 = vrot.lane.b32.xlu0 %v13810_v53, %s12881_s16  ;;  %v13825_v46 = vpop.permute.xlu1 %2842 }
 0x135   : > { %1590 = vrot.lane.b32.xlu1 %v13815_v61, %s12881_s16 }
 0x138   : > { %2718 = vrot.lane.b32.xlu0 %v2653_v28, %s12878_s28  ;;  %v13833_v8 = vpop.permute.xlu1 %2700  ;;  %v11176_v28 = vcombine.low %v729_v12, %v13402_v41  ;;  %v732_v12 = vld [vmem:[#allocation2 + $0xf0] sm:$0x8] }
 0x139   : > { %2720 = vrot.lane.b32.xlu1 %v2661_v36, %s12878_s28  ;;  %v13838_v36 = vpop.permute.xlu0 %2846 }
 0x13a   : > { %v1355_v41 = vsel %vm1282_vm3, %v11176_v28, %v13586_v7 }
 0x13b   : > { %v13856_v43 = vsel %vm1373_vm4, %v1355_v41, %v13757_v27  ;;  %v11179_v27 = vcombine.low %v13419_v63, %v13419_v63 }
 0x13c   : > { %2886 = vrot.lane.b32.xlu0 %v2820_v26, %s12879_s29  ;;  %v11292_v26 = vcombine.low %v2359_v23, %v2360_v9 }
 0x13d   : > { %2888 = vrot.lane.b32.xlu1 %v2822_v3, %s12879_s29  ;;  %v13844_v3 = vpop.permute.xlu1 %2848 }
 0x13e   : > { %v2663_v9 = vshrl.u32 %v11292_v26, 16  ;;  %v2666_v35 = vshll.u32 %v11292_v26, 16 }
 0x140   : > { %2890 = vrot.lane.b32.xlu0 %v2823_v16, %s12879_s29  ;;  %v13850_v16 = vpop.permute.xlu0 %2850  ;;  %v2665_v41 = vrot.slane %v2663_v9, 4 }
 0x141   : > { %2892 = vrot.lane.b32.xlu1 %v2825_v52, %s12879_s29  ;;  %v1357_v52 = vsel %vm1282_vm3, %v11177_v20, %v13586_v7  ;;  %v13866_v28 = vpop.permute.xlu1 %2852  ;;  %v2671_v7 = vshrl.u32 %v11293_v17, 16  ;;  %v11178_v20 = vcombine.low %v732_v12, %v13413_v62  ;;  %v1362_v62 = vsel %vm1282_vm3, %v11179_v27, %v13588_v60 }
 0x142   : > { %v13860_v23 = vsel %vm1373_vm4, %v1357_v52, %v13755_v19  ;;  %18874 = vst [vmem:[#allocation29_spill] sm:$0xff] %v13866_v28  ;;  %v2668_v52 = vrot.slane %v2666_v35, 5  ;;  %v12525_v28 = vld [vmem:[#allocation2 + $0xec] ss:$0 sps:$4 sm:$0x11]   ;;  %v13889_v9 = vsel %vm1373_vm4, %v1362_v62, %v13763_v58 }
 0x143   : > { %18873 = vst [vmem:[#allocation28_spill] sm:$0xff] %v13860_v23  ;;  %v1360_v54 = vsel %vm1282_vm3, %v11178_v20, %v13588_v60  ;;  %18876 = vst [vmem:[#allocation31_spill] sm:$0xff] %v13889_v9  ;;  %v2827_v60 = vrot.slane %v12525_v28, 5  ;;  %v12526_v20 = vld [vmem:[#allocation2 + $0xfc] ss:$0 sps:$4 sm:$0x11]  }
 0x144   : > { %1526 = vrot.lane.b32.xlu0 %v13810_v53, %s12880_s30  ;;  %v13873_v19 = vpop.permute.xlu0 %2702  ;;  %v2676_v53 = vrot.slane %v2674_v49, 5  ;;  %v13883_v63 = vsel %vm1373_vm4, %v1360_v54, %v13768_v37  ;;  %v2669_v35 = vor.u32 %v2668_v52, %v2665_v41  ;;  %v2826_v37 = vrot.slane %v11292_v26, 5  ;;  %v735_v28 = vld [vmem:[#allocation2 + $0x100] sm:$0x8] }
 0x145   : > { %1528 = vrot.lane.b32.xlu1 %v13815_v61, %s12880_s30  ;;  %v2673_v61 = vrot.slane %v2671_v7, 4  ;;  %18875 = vst [vmem:[#allocation30_spill] sm:$0xff] %v13883_v63  ;;  %v13885_v12 = vpop.permute.xlu1 %2704  ;;  %v2830_v27 = vrot.slane %v12526_v20, 5  ;;  %v2829_v52 = vrot.slane %v11293_v17, 5  ;;  %v11153_v26 = vcombine.low %v13169_v25, %v13169_v25 }
 0x146   : > { %v2828_v58 = vsel %vm1155_vm2, %v2826_v37, %v2827_v60  ;;  %v11181_v60 = vcombine.low %v13437_v57, %v13437_v57 }
 0x147   : > { %v2677_v7 = vor.u32 %v2676_v53, %v2673_v61  ;;  %v2831_v53 = vsel %vm1155_vm2, %v2829_v52, %v2830_v27  ;;  %v1297_v17 = vsel %vm1282_vm3, %v11153_v26, %v13539_v59  ;;  %v2365_v27 = vld [vmem:[#allocation2 + $0x104] sm:$0xf] }
 0x148   : > { %1530 = vrot.lane.b32.xlu0 %v13856_v43, %s12880_s30  ;;  %v13895_v49 = vpop.permute.xlu0 %2854  ;;  %v1367_v57 = vsel %vm1282_vm3, %v11181_v60, %v13592_v29  ;;  %v13954_v26 = vld [vmem:[#allocation2 + $0x4] sm:$0xf]  ;;  %v2369_v60 = vld [vmem:[#allocation2 + $0x118] sm:$0xf] }
 0x149   : > { %1532 = vrot.lane.b32.xlu1 %v13860_v23, %s12880_s30  ;;  %v13898_v54 = vpop.permute.xlu1 %2856  ;;  %18878 = vst [vmem:[#allocation33_spill] sm:$0xff] %v13954_v26 }
 0x14c   : > { %1592 = vrot.lane.b32.xlu0 %v13856_v43, %s12881_s16  ;;  %v13903_v41 = vpop.permute.xlu0 %2858 }
 0x14d   : > { %1594 = vrot.lane.b32.xlu1 %v13860_v23, %s12881_s16  ;;  %v13907_v61 = vpop.permute.xlu1 %2860 }
 0x150   : > { %1596 = vrot.lane.b32.xlu0 %v13883_v63, %s12881_s16 }
 0x151   : > { %1598 = vrot.lane.b32.xlu1 %v13889_v9, %s12881_s16 }
 0x154   : > { %2722 = vrot.lane.b32.xlu0 %v2669_v35, %s12878_s28  ;;  %v11180_v35 = vcombine.low %v735_v28, %v13435_v55  ;;  %v13932_v55 = vsel %vm1373_vm4, %v1297_v17, %v13627_v6  ;;  %v1441_v6 = vsel %vm1373_vm4, %v1367_v57, %v13774_v2  ;;  %v696_v28 = vld [vmem:[#allocation2 + $0x30] sm:$0x8]  ;;  %v2368_v17 = vld [vmem:[#allocation2 + $0x114] sm:$0xf] }
 0x155   : > { %2724 = vrot.lane.b32.xlu1 %v2677_v7, %s12878_s28  ;;  %18877 = vst [vmem:[#allocation32_spill] sm:$0xff] %v13932_v55  ;;  %v738_v57 = vld [vmem:[#allocation2 + $0x110] sm:$0x8] }
 0x156   : > { %v1365_v25 = vsel %vm1282_vm3, %v11180_v35, %v13592_v29  ;;  %v2318_v29 = vld [vmem:[#allocation2 + $0x8] sm:$0xf] }
 0x158   : > { %2894 = vrot.lane.b32.xlu0 %v2826_v37, %s12879_s29 }
 0x159   : > { %2896 = vrot.lane.b32.xlu1 %v2828_v58, %s12879_s29  ;;  %v1439_v58 = vsel %vm1373_vm4, %v1365_v25, %v13788_v51  ;;  %v11154_v25 = vcombine.low %v696_v28, %v13198_v39  ;;  %v11155_v39 = vcombine.low %v13200_v40, %v13200_v40 }
 0x15c   : > { %2898 = vrot.lane.b32.xlu0 %v2829_v52, %s12879_s29  ;;  %v2366_v52 = vld [vmem:[#allocation2 + $0x108] sm:$0xf] }
 0x15d   : > { %2900 = vrot.lane.b32.xlu1 %v2831_v53, %s12879_s29  ;;  %v13952_v51 = vcombine.low %v2365_v27, %v2366_v52 }
 0x15e   : > { %v13913_v62 = vpop.permute.xlu0 %1478 }
 0x15f   : > { %v13916_v7 = vpop.permute.xlu1 %1480  ;;  %v2679_v27 = vshrl.u32 %v13952_v51, 16  ;;  %v2682_v52 = vshll.u32 %v13952_v51, 16 }
 0x160   : > { %1534 = vrot.lane.b32.xlu0 %v13883_v63, %s12880_s30  ;;  %v1300_v63 = vsel %vm1282_vm3, %v11154_v25, %v13548_v10 }
 0x161   : > { %1536 = vrot.lane.b32.xlu1 %v13889_v9, %s12880_s30  ;;  %v13964_v9 = vcombine.low %v13954_v26, %v2318_v29  ;;  %v2681_v40 = vrot.slane %v2679_v27, 4  ;;  %v2684_v26 = vrot.slane %v2682_v52, 5 }
 0x162   : > { %v13926_v20 = vpop.permute.xlu0 %1482 }
 0x163   : > { %v13934_v37 = vpop.permute.xlu1 %2708 }
 0x164   : > { %1484 = vrot.lane.b32.xlu0 %v13932_v55, %s12880_s30 }
 0x165   : > { %1538 = vrot.lane.b32.xlu1 %v1439_v58, %s12880_s30 }
 0x166   : > { %v13943_v59 = vpop.permute.xlu0 %2706 }
 0x167   : > { %v13947_v53 = vpop.permute.xlu1 %2864 }
 0x168   : > { %1540 = vrot.lane.b32.xlu0 %v1441_v6, %s12880_s30 }
 0x169   : > { %1544 = vrot.lane.b32.xlu1 %v13625_v22, %s12881_s16  ;;  %v13969_v22 = vcombine.low %v2368_v17, %v2369_v60  ;;  %v2551_v17 = vshrl.u32 %v13964_v9, 16  ;;  %v2554_v60 = vshll.u32 %v13964_v9, 16 }
 0x16a   : > { %v13956_v35 = vpop.permute.xlu0 %2862 }
 0x16b   : > { %v13959_v2 = vpop.permute.xlu1 %2868  ;;  %v2687_v25 = vshrl.u32 %v13969_v22, 16  ;;  %v2553_v52 = vrot.slane %v2551_v17, 4  ;;  %v2556_v23 = vrot.slane %v2554_v60, 5 }
 0x16c   : > { %18879 = vst [vmem:[#allocation34_spill] sm:$0xff] %v13959_v2  ;;  %1546 = vrot.lane.b32.xlu0 %v13932_v55, %s12881_s16  ;;  %v12755_v55 = vld [vmem:[#allocation2 + $0x114] sm:$0xf] }
 0x16d   : > { %1600 = vrot.lane.b32.xlu1 %v1439_v58, %s12881_s16  ;;  %v11182_v2 = vcombine.low %v738_v57, %v12755_v55  ;;  %v13981_v58 = vsel %vm1373_vm4, %v1300_v63, %v13634_v14  ;;  %v2690_v55 = vshll.u32 %v13969_v22, 16  ;;  %v1302_v57 = vsel %vm1282_vm3, %v11155_v39, %v13548_v10  ;;  %v12756_v14 = vld [vmem:[#allocation2 + $0x118] sm:$0xf] }
 0x16e   : > { %v13973_v28 = vpop.permute.xlu0 %2866  ;;  %v11183_v63 = vcombine.low %v12756_v14, %v12756_v14  ;;  %v2685_v39 = vor.u32 %v2684_v26, %v2681_v40  ;;  %v2689_v14 = vrot.slane %v2687_v25, 4  ;;  %v2557_v17 = vor.u32 %v2556_v23, %v2553_v52  ;;  %v12541_v40 = vld [vmem:[#allocation2 + $0xc] ss:$0 sps:$4 sm:$0x11]  }
 0x16f   : > { %18880 = vst [vmem:[#allocation35_spill] sm:$0xff] %v13973_v28  ;;  %v13977_v29 = vpop.permute.xlu1 %2712  ;;  %v13998_v28 = vsel %vm1373_vm4, %v1302_v57, %v13638_v31  ;;  %v12539_v57 = vld [vmem:[#allocation2 + $0x10c] ss:$0 sps:$4 sm:$0x11]   ;;  %v2785_v23 = vrot.slane %v12541_v40, 5 }
 0x170   : > { %18881 = vst [vmem:[#allocation36_spill] sm:$0xff] %v13977_v29  ;;  %1602 = vrot.lane.b32.xlu0 %v1441_v6, %s12881_s16  ;;  %v1370_v6 = vsel %vm1282_vm3, %v11182_v2, %v13594_v38  ;;  %v1372_v2 = vsel %vm1282_vm3, %v11183_v63, %v13594_v38  ;;  %v2833_v26 = vrot.slane %v12539_v57, 5  ;;  %v2832_v38 = vrot.slane %v13952_v51, 5 }
 0x171   : > { %1548 = vrot.lane.b32.xlu1 %v13981_v58, %s12881_s16  ;;  %v1443_v27 = vsel %vm1373_vm4, %v1370_v6, %v13805_v21  ;;  %v1445_v21 = vsel %vm1373_vm4, %v1372_v2, %v13797_v4 }
 0x172   : > { %v13992_v29 = vpop.permute.xlu0 %2710  ;;  %v2834_v63 = vsel %vm1155_vm2, %v2832_v38, %v2833_v26  ;;  %v699_v26 = vld [vmem:[#allocation2 + $0x40] sm:$0x8] }
 0x173   : > { %18882 = vst [vmem:[#allocation37_spill] sm:$0xff] %v13992_v29  ;;  %v14004_v10 = vpop.permute.xlu1 %2872  ;;  %v2692_v29 = vrot.slane %v2690_v55, 5  ;;  %v711_v55 = vld [vmem:[#allocation2 + $0x80] sm:$0x8] }
 0x174   : > { %1550 = vrot.lane.b32.xlu0 %v13998_v28, %s12881_s16 }
 0x175   : > { %1604 = vrot.lane.b32.xlu1 %v1443_v27, %s12881_s16  ;;  %v2693_v60 = vor.u32 %v2692_v29, %v2689_v14  ;;  %v12543_v27 = vld [vmem:[#allocation2 + $0x11c] ss:$0 sps:$4 sm:$0x11]   ;;  %v11164_v29 = vcombine.low %v711_v55, %v13285_v42  ;;  %v11165_v14 = vcombine.low %v13289_v47, %v13289_v47  ;;  %v2835_v42 = vrot.slane %v13969_v22, 5 }
 0x176   : > { %v14009_v31 = vpop.permute.xlu0 %2870  ;;  %v2836_v57 = vrot.slane %v12543_v27, 5 }
 0x177   : > { %v14017_v25 = vpop.permute.xlu1 %2876 }
 0x178   : > { %1606 = vrot.lane.b32.xlu0 %v1445_v21, %s12881_s16  ;;  %v2837_v55 = vsel %vm1155_vm2, %v2835_v42, %v2836_v57 }
 0x179   : > { %2726 = vrot.lane.b32.xlu1 %v2685_v39, %s12878_s28  ;;  %v2784_v39 = vrot.slane %v13964_v9, 5  ;;  %v1327_v9 = vsel %vm1282_vm3, %v11165_v14, %v13566_v0  ;;  %v11156_v14 = vcombine.low %v699_v26, %v13212_v45 }
 0x17a   : > { %v14015_v6 = vpop.permute.xlu0 %2874  ;;  %v14043_v40 = vsel %vm1373_vm4, %v1327_v9, %v13684_v18 }
 0x17b   : > { %v2786_v2 = vsel %vm1155_vm2, %v2784_v39, %v2785_v23  ;;  %v12757_v23 = vld [vmem:[#allocation2 + $0x14] sm:$0xf] }
 0x17c   : > { %2694 = vrot.lane.b32.xlu0 %v2557_v17, %s12878_s28  ;;  %v1325_v17 = vsel %vm1282_vm3, %v11164_v29, %v13566_v0 }
 0x17d   : > { %2728 = vrot.lane.b32.xlu1 %v2693_v60, %s12878_s28  ;;  %v14038_v47 = vsel %vm1373_vm4, %v1325_v17, %v13680_v5  ;;  %v2319_v60 = vld [vmem:[#allocation2 + $0x10] sm:$0x8] }
 0x17e   : > { %v1511_v4 = vpop.permute.xlu0 %1510  ;;  %v11244_v27 = vcombine.low %v2319_v60, %v12757_v23 }
 0x17f   : > { %v1513_v52 = vpop.permute.xlu1 %1512 }
 0x180   : > { %2902 = vrot.lane.b32.xlu0 %v2832_v38, %s12879_s29  ;;  %v1642_v38 = vsel %vm1608_vm7, %v14038_v47, %v1511_v4  ;;  %v1644_v0 = vsel %vm1608_vm7, %v14043_v40, %v1513_v52  ;;  %v12758_v4 = vld [vmem:[#allocation2 + $0x18] sm:$0xf] }
 0x181   : > { %2904 = vrot.lane.b32.xlu1 %v2834_v63, %s12879_s29 }
 0x182   : > { %v1515_v51 = vpop.permute.xlu0 %1514 }
 0x183   : > { %v1517_v21 = vpop.permute.xlu1 %1516  ;;  %v1646_v52 = vsel %vm1608_vm7, %v13698_v30, %v1515_v51 }
 0x184   : > { %2838 = vrot.lane.b32.xlu0 %v2784_v39, %s12879_s29 }
 0x185   : > { %2840 = vrot.lane.b32.xlu1 %v2786_v2, %s12879_s29  ;;  %v11245_v2 = vcombine.low %v12758_v4, %v12758_v4 }
 0x186   : > { %v1577_v22 = vpop.permute.xlu0 %1576 }
 0x187   : > { %v1707_v5 = vsel %vm1673_vm6, %v1642_v38, %v1577_v22  ;;  %v1579_v63 = vpop.permute.xlu1 %1578  ;;  %v2919_v23 = vsel %vm1282_vm3, %v11245_v2, %v13812_v48 }
 0x188   : > { %v1859_v29 = vshrl.u32 %v1707_v5, 16  ;;  %v1862_v39 = vshll.u32 %v1707_v5, 16  ;;  %2906 = vrot.lane.b32.xlu0 %v2835_v42, %s12879_s29  ;;  %v1709_v18 = vsel %vm1673_vm6, %v1644_v0, %v1579_v63  ;;  %v1648_v42 = vsel %vm1608_vm7, %v13703_v15, %v1517_v21 }
 0x189   : > { %v1866_v17 = vshrl.u32 %v1709_v18, 16  ;;  %v1869_v57 = vshll.u32 %v1709_v18, 16  ;;  %2908 = vrot.lane.b32.xlu1 %v2837_v55, %s12879_s29  ;;  %v2917_v5 = vsel %vm1282_vm3, %v11244_v27, %v13812_v48 }
 0x18a   : > { %v1861_v9 = vrot.slane %v1859_v29, 3  ;;  %v1864_v38 = vrot.slane %v1862_v39, 4  ;;  %v1581_v60 = vpop.permute.xlu0 %1580 }
 0x18b   : > { %v1868_v22 = vrot.slane %v1866_v17, 3  ;;  %v1871_v0 = vrot.slane %v1869_v57, 4  ;;  %v1711_v45 = vsel %vm1673_vm6, %v1646_v52, %v1581_v60  ;;  %v1583_v26 = vpop.permute.xlu1 %1582  ;;  %v11157_v57 = vcombine.low %v13216_v50, %v13216_v50 }
 0x18c   : > { %v1874_v63 = vshrl.u32 %v1711_v45, 16  ;;  %v1877_v55 = vshll.u32 %v1711_v45, 16  ;;  %1486 = vrot.lane.b32.xlu0 %v13981_v58, %s12880_s30  ;;  %v1713_v51 = vsel %vm1673_vm6, %v1648_v42, %v1583_v26  ;;  %v1865_v27 = vor.u32 %v1864_v38, %v1861_v9  ;;  %v2322_v38 = vld [vmem:[#allocation2 + $0x20] sm:$0x8] }
 0x18d   : > { %v1881_v29 = vshrl.u32 %v1713_v51, 16  ;;  %v1884_v21 = vshll.u32 %v1713_v51, 16  ;;  %1488 = vrot.lane.b32.xlu1 %v13998_v28, %s12880_s30  ;;  %v1872_v39 = vor.u32 %v1871_v0, %v1868_v22  ;;  %v14075_v52 = vsel %vm1373_vm4, %v2917_v5, %v13825_v46  ;;  %v12564_v46 = vld [vmem:[%s18666_s6 + $0x20] ss:$0 sps:$4 sm:$0xff]   ;;  %v12759_v51 = vld [vmem:[#allocation2 + $0x24] sm:$0xf] }
 0x18e   : > { %v1876_v18 = vrot.slane %v1874_v63, 3  ;;  %v1879_v4 = vrot.slane %v1877_v55, 4  ;;  %v14069_v17 = vpop.permute.xlu0 %2714  ;;  %v14081_v42 = vsel %vm1373_vm4, %v2919_v23, %v13829_v11  ;;  %v1305_v11 = vsel %vm1282_vm3, %v11156_v14, %v13551_v44  ;;  %12431 = vmatprep.subr.msk.bf16.mxu1 %vm2071_vm5, %v12564_v46 }
 0x18f   : > { %v1883_v48 = vrot.slane %v1881_v29, 3  ;;  %v1886_v2 = vrot.slane %v1884_v21, 4  ;;  %v14077_v60 = vpop.permute.xlu1 %2716  ;;  %v1873_v9 = vsel %vm1738_vm8, %v1865_v27, %v1872_v39  ;;  %v1307_v45 = vsel %vm1282_vm3, %v11157_v57, %v13551_v44  ;;  %v12760_v44 = vld [vmem:[#allocation2 + $0x28] sm:$0xf]  ;;  %v12565_v29 = vld [vmem:[%s18666_s6 + $0x18] sm:$0xff]  }
 0x190   : > { %3104 = vrot.lane.b32.xlu0 %v14075_v52, %s12880_s30  ;;  %v1880_v22 = vor.u32 %v1879_v4, %v1876_v18  ;;  %12159 = vmatprep.mubr.msk.bf16.mxu1 %vm2022_vm9, %v1873_v9  ;;  %v14100_v26 = vsel %vm1373_vm4, %v1305_v11, %v13642_v33  ;;  %v3694_v55 = vsel %vm2071_vm5, %v12564_v46, 0  ;;  %v14109_v14 = vsel %vm1373_vm4, %v1307_v45, %v13645_v24  ;;  %v12566_v4 = vld [vmem:[%s18666_s6 + $0x10] sm:$0xff]  }
 0x191   : > { %v1887_v50 = vor.u32 %v1886_v2, %v1883_v48  ;;  %3106 = vrot.lane.b32.xlu1 %v14081_v42, %s12880_s30  ;;  %v11246_v23 = vcombine.low %v2322_v38, %v12759_v51  ;;  %v11247_v33 = vcombine.low %v12760_v44, %v12760_v44  ;;  %v702_v57 = vld [vmem:[#allocation2 + $0x50] sm:$0x8]  ;;  %v12567_v38 = vld [vmem:[%s18666_s6 + $0x8] sm:$0xff]   ;;  %v12761_v11 = vld [vmem:[#allocation2 + $0x34] sm:$0xf] }
 0x192   : > { %v14094_v0 = vpop.permute.xlu0 %2878  ;;  %v2325_v9 = vld [vmem:[#allocation2 + $0x30] sm:$0x8] }
 0x193   : > { %v14102_v5 = vpop.permute.xlu1 %2880  ;;  %v1888_v63 = vsel %vm1738_vm8, %v1880_v22, %v1887_v50  ;;  %v2922_v39 = vsel %vm1282_vm3, %v11246_v23, %v13821_v1  ;;  %v2924_v18 = vsel %vm1282_vm3, %v11247_v33, %v13821_v1  ;;  %v18883_v22 = vld [vmem:[#allocation3_spill] sm:$0xff] }
 0x194   : > { %1490 = vrot.lane.b32.xlu0 %v14100_v26, %s12880_s30  ;;  %12160 = vmatmul.mubr.msk.bf16.vlgmr.msra.gmra.mxu1 %vm2022_vm9, %v1888_v63  ;;  %v14136_v48 = vsel %vm1373_vm4, %v2922_v39, %v13838_v36  ;;  %v14140_v1 = vsel %vm1373_vm4, %v2924_v18, %v13844_v3  ;;  %v11158_v36 = vcombine.low %v702_v57, %v13224_v56  ;;  %v12762_v63 = vld [vmem:[#allocation2 + $0x38] sm:$0xf]  ;;  %v12568_v56 = vld [vmem:[%s18666_s6] sm:$0xff]   ;;  %v18885_v18 = vld [vmem:[#allocation21_spill] sm:$0xff] }
 0x195   : > { %1492 = vrot.lane.b32.xlu1 %v14109_v14, %s12880_s30  ;;  %12176 = vmatpush3.bf16.msra.mxu1 %v3694_v55  ;;  %v11159_v50 = vcombine.low %v18883_v22, %v18883_v22  ;;  %v11248_v3 = vcombine.low %v2325_v9, %v12761_v11  ;;  %v11249_v55 = vcombine.low %v12762_v63, %v12762_v63  ;;  %v18889_v11 = vld [vmem:[#allocation22_spill] sm:$0xff] }
 0x196   : > { %v14119_v21 = vpop.permute.xlu0 %2882  ;;  %12177 = vmatprep.subr.bf16.mxu1 %v12565_v29  ;;  %v1310_v51 = vsel %vm1282_vm3, %v11158_v36, %v13554_v13 }
 0x197   : > { %v14121_v24 = vpop.permute.xlu1 %2884  ;;  %v1312_v23 = vsel %vm1282_vm3, %v11159_v50, %v13554_v13  ;;  %v2927_v39 = vsel %vm1282_vm3, %v11248_v3, %v13833_v8  ;;  %v2929_v36 = vsel %vm1282_vm3, %v11249_v55, %v13833_v8 }
 0x198   : > { %1552 = vrot.lane.b32.xlu0 %v14100_v26, %s12881_s16  ;;  %v14187_v50 = vsel %vm1373_vm4, %v2927_v39, %v13850_v16 }
 0x199   : > { %1554 = vrot.lane.b32.xlu1 %v14109_v14, %s12881_s16  ;;  %12178 = vmatpush3.bf16.msra.mxu1 %v12565_v29  ;;  %v14167_v29 = vsel %vm1373_vm4, %v1310_v51, %v13649_v32 }
 0x19a   : > { %v1519_v27 = vpop.permute.xlu0 %1518  ;;  %12179 = vmatprep.subr.bf16.mxu1 %v12566_v4  ;;  %18884 = vst [vmem:[#allocation3_spill] sm:$0xff] %v14167_v29 }
 0x19b   : > { %v1521_v2 = vpop.permute.xlu1 %1520  ;;  %v1650_v44 = vsel %vm1608_vm7, %v13717_v34, %v1519_v27 }
 0x19c   : > { %3108 = vrot.lane.b32.xlu0 %v14136_v48, %s12880_s30 }
 0x19d   : > { %3110 = vrot.lane.b32.xlu1 %v14140_v1, %s12880_s30  ;;  %12180 = vmatpush3.bf16.msra.mxu1 %v12566_v4  ;;  %v1652_v4 = vsel %vm1608_vm7, %v18885_v18, %v1521_v2 }
 0x19e   : > { %v1523_v46 = vpop.permute.xlu0 %1522  ;;  %12181 = vmatprep.subr.bf16.mxu1 %v12567_v38 }
 0x19f   : > { %v1525_v45 = vpop.permute.xlu1 %1524  ;;  %v1654_v3 = vsel %vm1608_vm7, %v18889_v11, %v1523_v46 }
 0x1a0   : > { %3170 = vrot.lane.b32.xlu0 %v14136_v48, %s12881_s16 }
 0x1a1   : > { %3172 = vrot.lane.b32.xlu1 %v14140_v1, %s12881_s16  ;;  %12182 = vmatpush3.bf16.msra.mxu1 %v12567_v38  ;;  %v18886_v38 = vld [vmem:[#allocation16_spill] sm:$0xff] }
 0x1a2   : > { %v1585_v33 = vpop.permute.xlu0 %1584  ;;  %12183 = vmatprep.subr.bf16.mxu1 %v12568_v56  ;;  %v14176_v13 = vsel %vm1373_vm4, %v1312_v23, %v18886_v38  ;;  %18888 = vst [vmem:[#allocation16_spill] sm:$0xff] %v14187_v50 }
 0x1a3   : > { %v1715_v57 = vsel %vm1673_vm6, %v1650_v44, %v1585_v33  ;;  %v1587_v9 = vpop.permute.xlu1 %1586  ;;  %18887 = vst [vmem:[#allocation21_spill] sm:$0xff] %v14176_v13  ;;  %v18890_v44 = vld [vmem:[#allocation23_spill] sm:$0xff] }
 0x1a4   : > { %v1889_v34 = vshrl.u32 %v1715_v57, 16  ;;  %v1892_v27 = vshll.u32 %v1715_v57, 16  ;;  %1556 = vrot.lane.b32.xlu0 %v14167_v29, %s12881_s16  ;;  %v1717_v32 = vsel %vm1673_vm6, %v1652_v4, %v1587_v9  ;;  %v1656_v33 = vsel %vm1608_vm7, %v18890_v44, %v1525_v45  ;;  %v18891_v57 = vld [vmem:[#allocation29_spill] sm:$0xff] }
 0x1a5   : > { %v1896_v22 = vshrl.u32 %v1717_v32, 16  ;;  %v1899_v2 = vshll.u32 %v1717_v32, 16  ;;  %1558 = vrot.lane.b32.xlu1 %v14176_v13, %s12881_s16  ;;  %12184 = vmatpush3.bf16.msra.mxu1 %v12568_v56  ;;  %v14196_v56 = vsel %vm1373_vm4, %v2929_v36, %v18891_v57  ;;  %v705_v36 = vld [vmem:[#allocation2 + $0x60] sm:$0x8] }
 0x1a6   : > { %v1891_v63 = vrot.slane %v1889_v34, 3  ;;  %v1894_v51 = vrot.slane %v1892_v27, 4  ;;  %v1589_v23 = vpop.permute.xlu0 %1588  ;;  %18892 = vst [vmem:[#allocation22_spill] sm:$0xff] %v14196_v56 }
 0x1a7   : > { %v1898_v8 = vrot.slane %v1896_v22, 3  ;;  %v1901_v55 = vrot.slane %v1899_v2, 4  ;;  %v1719_v18 = vsel %vm1673_vm6, %v1654_v3, %v1589_v23  ;;  %v1591_v4 = vpop.permute.xlu1 %1590 }
 0x1a8   : > { %v1904_v16 = vshrl.u32 %v1719_v18, 16  ;;  %v1907_v39 = vshll.u32 %v1719_v18, 16  ;;  %3174 = vrot.lane.b32.xlu0 %v14187_v50, %s12881_s16  ;;  %v1721_v46 = vsel %vm1673_vm6, %v1656_v33, %v1591_v4  ;;  %v1895_v45 = vor.u32 %v1894_v51, %v1891_v63  ;;  %v18893_v63 = vld [vmem:[#allocation4_spill] sm:$0xff] }
 0x1a9   : > { %v1902_v9 = vor.u32 %v1901_v55, %v1898_v8  ;;  %v1911_v38 = vshrl.u32 %v1721_v46, 16  ;;  %v1914_v34 = vshll.u32 %v1721_v46, 16  ;;  %3176 = vrot.lane.b32.xlu1 %v14196_v56, %s12881_s16  ;;  %v11160_v51 = vcombine.low %v705_v36, %v18893_v63  ;;  %v18894_v55 = vld [vmem:[#allocation5_spill] sm:$0xff] }
 0x1aa   : > { %v1906_v27 = vrot.slane %v1904_v16, 3  ;;  %v1909_v32 = vrot.slane %v1907_v39, 4  ;;  %v14203_v22 = vpop.permute.xlu0 %2718  ;;  %v11161_v18 = vcombine.low %v18894_v55, %v18894_v55  ;;  %v2328_v16 = vld [vmem:[#allocation2 + $0x40] sm:$0x8]  ;;  %v18895_v39 = vld [vmem:[#allocation9_spill] sm:$0xff] }
 0x1ab   : > { %v1913_v2 = vrot.slane %v1911_v38, 3  ;;  %v1916_v11 = vrot.slane %v1914_v34, 4  ;;  %v14205_v3 = vpop.permute.xlu1 %2720  ;;  %v1903_v23 = vsel %vm1738_vm8, %v1895_v45, %v1902_v9  ;;  %v1315_v46 = vsel %vm1282_vm3, %v11160_v51, %v18895_v39  ;;  %v18896_v34 = vld [vmem:[#allocation17_spill] sm:$0xff] }
 0x1ac   : > { %1494 = vrot.lane.b32.xlu0 %v14167_v29, %s12880_s30  ;;  %v1910_v44 = vor.u32 %v1909_v32, %v1906_v27  ;;  %12163 = vmatprep.mubr.msk.bf16.mxu1 %vm2022_vm9, %v1903_v23  ;;  %v1317_v38 = vsel %vm1282_vm3, %v11161_v18, %v18895_v39  ;;  %v14234_v45 = vsel %vm1373_vm4, %v1315_v46, %v18896_v34  ;;  %v18898_v32 = vld [vmem:[#allocation18_spill] sm:$0xff]  ;;  %v12764_v23 = vld [vmem:[#allocation2 + $0x48] sm:$0xf]  ;;  %v708_v51 = vld [vmem:[#allocation2 + $0x70] sm:$0x8] }
 0x1ad   : > { %v1917_v33 = vor.u32 %v1916_v11, %v1913_v2  ;;  %1496 = vrot.lane.b32.xlu1 %v14176_v13, %s12880_s30  ;;  %18897 = vst [vmem:[#allocation23_spill] sm:$0xff] %v14234_v45  ;;  %v14240_v36 = vsel %vm1373_vm4, %v1317_v38, %v18898_v32  ;;  %v12763_v2 = vld [vmem:[#allocation2 + $0x44] sm:$0xf] }
 0x1ae   : > { %v14214_v8 = vpop.permute.xlu0 %2886  ;;  %18899 = vst [vmem:[#allocation29_spill] sm:$0xff] %v14240_v36  ;;  %v11250_v11 = vcombine.low %v2328_v16, %v12763_v2  ;;  %v18900_v16 = vld [vmem:[#allocation6_spill] sm:$0xff]  ;;  %v18901_v46 = vld [vmem:[#allocation7_spill] sm:$0xff] }
 0x1af   : > { %v14218_v4 = vpop.permute.xlu1 %2888  ;;  %v1918_v57 = vsel %vm1738_vm8, %v1910_v44, %v1917_v33  ;;  %v11251_v44 = vcombine.low %v12764_v23, %v12764_v23  ;;  %v11162_v39 = vcombine.low %v708_v51, %v18900_v16  ;;  %v11163_v38 = vcombine.low %v18901_v46, %v18901_v46  ;;  %v18905_v51 = vld [vmem:[#allocation10_spill] sm:$0xff]  ;;  %v18906_v16 = vld [vmem:[#allocation25_spill] sm:$0xff] }
 0x1b0   : > { %3112 = vrot.lane.b32.xlu0 %v14187_v50, %s12880_s30  ;;  %12164 = vmatmul.mubr.msk.bf16.gmra.mxu1 %vm2022_vm9, %v1918_v57  ;;  %v2932_v55 = vsel %vm1282_vm3, %v11250_v11, %v13873_v19  ;;  %v18904_v11 = vld [vmem:[#allocation24_spill] sm:$0xff] }
 0x1b1   : > { %3114 = vrot.lane.b32.xlu1 %v14196_v56, %s12880_s30  ;;  %v2934_v18 = vsel %vm1282_vm3, %v11251_v44, %v13873_v19  ;;  %v14259_v34 = vsel %vm1373_vm4, %v2932_v55, %v13895_v49  ;;  %v2331_v19 = vld [vmem:[#allocation2 + $0x50] sm:$0x8]  ;;  %v1320_v49 = vsel %vm1282_vm3, %v11162_v39, %v18905_v51  ;;  %v1322_v55 = vsel %vm1282_vm3, %v11163_v38, %v18905_v51  ;;  %v12766_v38 = vld [vmem:[#allocation2 + $0x58] sm:$0xf] }
 0x1b2   : > { %v14228_v9 = vpop.permute.xlu0 %2890  ;;  %18902 = vst [vmem:[#allocation4_spill] sm:$0xff] %v14259_v34  ;;  %v14263_v2 = vsel %vm1373_vm4, %v2934_v18, %v13898_v54  ;;  %v11253_v51 = vcombine.low %v12766_v38, %v12766_v38 }
 0x1b3   : > { %v14236_v27 = vpop.permute.xlu1 %2892  ;;  %18903 = vst [vmem:[#allocation5_spill] sm:$0xff] %v14263_v2 }
 0x1b4   : > { %1498 = vrot.lane.b32.xlu0 %v14234_v45, %s12880_s30 }
 0x1b5   : > { %1500 = vrot.lane.b32.xlu1 %v14240_v36, %s12880_s30 }
 0x1b6   : > { %v1527_v33 = vpop.permute.xlu0 %1526 }
 0x1b7   : > { %v1529_v63 = vpop.permute.xlu1 %1528  ;;  %v1658_v23 = vsel %vm1608_vm7, %v18904_v11, %v1527_v33  ;;  %v18907_v11 = vld [vmem:[#allocation19_spill] sm:$0xff] }
 0x1b8   : > { %1560 = vrot.lane.b32.xlu0 %v14234_v45, %s12881_s16  ;;  %v1660_v54 = vsel %vm1608_vm7, %v18906_v16, %v1529_v63  ;;  %v14283_v39 = vsel %vm1373_vm4, %v1320_v49, %v18907_v11 }
 0x1b9   : > { %1562 = vrot.lane.b32.xlu1 %v14240_v36, %s12881_s16  ;;  %v12765_v36 = vld [vmem:[#allocation2 + $0x54] sm:$0xf] }
 0x1ba   : > { %v1531_v57 = vpop.permute.xlu0 %1530  ;;  %v11252_v45 = vcombine.low %v2331_v19, %v12765_v36  ;;  %v18909_v19 = vld [vmem:[#allocation26_spill] sm:$0xff] }
 0x1bb   : > { %v1533_v32 = vpop.permute.xlu1 %1532 }
 0x1bc   : > { %3116 = vrot.lane.b32.xlu0 %v14259_v34, %s12880_s30 }
 0x1bd   : > { %3118 = vrot.lane.b32.xlu1 %v14263_v2, %s12880_s30 }
 0x1be   : > { %v1593_v44 = vpop.permute.xlu0 %1592 }
 0x1bf   : > { %v1723_v18 = vsel %vm1673_vm6, %v1658_v23, %v1593_v44  ;;  %v1595_v46 = vpop.permute.xlu1 %1594  ;;  %v18908_v23 = vld [vmem:[#allocation20_spill] sm:$0xff]  ;;  %v1662_v44 = vsel %vm1608_vm7, %v18909_v19, %v1531_v57 }
 0x1c0   : > { %v1919_v56 = vshrl.u32 %v1723_v18, 16  ;;  %v1922_v50 = vshll.u32 %v1723_v18, 16  ;;  %3178 = vrot.lane.b32.xlu0 %v14259_v34, %s12881_s16  ;;  %v1725_v33 = vsel %vm1673_vm6, %v1660_v54, %v1595_v46  ;;  %v14289_v36 = vsel %vm1373_vm4, %v1322_v55, %v18908_v23  ;;  %v18910_v46 = vld [vmem:[#allocation27_spill] sm:$0xff] }
 0x1c1   : > { %v1926_v13 = vshrl.u32 %v1725_v33, 16  ;;  %v1929_v63 = vshll.u32 %v1725_v33, 16  ;;  %3180 = vrot.lane.b32.xlu1 %v14263_v2, %s12881_s16  ;;  %v1664_v49 = vsel %vm1608_vm7, %v18910_v46, %v1533_v32  ;;  %v2937_v2 = vsel %vm1282_vm3, %v11252_v45, %v13885_v12 }
 0x1c2   : > { %v1921_v16 = vrot.slane %v1919_v56, 3  ;;  %v1924_v54 = vrot.slane %v1922_v50, 4  ;;  %v1597_v18 = vpop.permute.xlu0 %1596  ;;  %v2939_v50 = vsel %vm1282_vm3, %v11253_v51, %v13885_v12 }
 0x1c3   : > { %v1928_v11 = vrot.slane %v1926_v13, 3  ;;  %v1931_v38 = vrot.slane %v1929_v63, 4  ;;  %v1727_v33 = vsel %vm1673_vm6, %v1662_v44, %v1597_v18  ;;  %v1599_v34 = vpop.permute.xlu1 %1598  ;;  %v14309_v44 = vsel %vm1373_vm4, %v2937_v2, %v13903_v41 }
 0x1c4   : > { %v1934_v29 = vshrl.u32 %v1727_v33, 16  ;;  %v1937_v55 = vshll.u32 %v1727_v33, 16  ;;  %1564 = vrot.lane.b32.xlu0 %v14283_v39, %s12881_s16  ;;  %v1729_v56 = vsel %vm1673_vm6, %v1664_v49, %v1599_v34  ;;  %v1925_v63 = vor.u32 %v1924_v54, %v1921_v16  ;;  %18911 = vst [vmem:[#allocation9_spill] sm:$0xff] %v14309_v44 }
 0x1c5   : > { %v1932_v57 = vor.u32 %v1931_v38, %v1928_v11  ;;  %v1941_v32 = vshrl.u32 %v1729_v56, 16  ;;  %v1944_v13 = vshll.u32 %v1729_v56, 16  ;;  %1566 = vrot.lane.b32.xlu1 %v14289_v36, %s12881_s16  ;;  %v14315_v12 = vsel %vm1373_vm4, %v2939_v50, %v13907_v61  ;;  %v2334_v11 = vld [vmem:[#allocation2 + $0x60] sm:$0x8]  ;;  %v12767_v56 = vld [vmem:[#allocation2 + $0x64] sm:$0xf] }
 0x1c6   : > { %v1936_v23 = vrot.slane %v1934_v29, 3  ;;  %v1939_v19 = vrot.slane %v1937_v55, 4  ;;  %v14305_v45 = vpop.permute.xlu0 %2722  ;;  %18912 = vst [vmem:[#allocation17_spill] sm:$0xff] %v14315_v12  ;;  %v687_v38 = vld [vmem:[#allocation2] sm:$0x8]  ;;  %v11254_v50 = vcombine.low %v2334_v11, %v12767_v56 }
 0x1c7   : > { %v1943_v18 = vrot.slane %v1941_v32, 3  ;;  %v1946_v34 = vrot.slane %v1944_v13, 4  ;;  %v14311_v46 = vpop.permute.xlu1 %2724  ;;  %v1933_v29 = vsel %vm1738_vm8, %v1925_v63, %v1932_v57  ;;  %v12768_v57 = vld [vmem:[#allocation2 + $0x4] sm:$0xf]  ;;  %v12769_v13 = vld [vmem:[#allocation2 + $0x68] sm:$0xf] }
 0x1c8   : > { %3182 = vrot.lane.b32.xlu0 %v14309_v44, %s12881_s16  ;;  %v1940_v51 = vor.u32 %v1939_v19, %v1936_v23  ;;  %12167 = vmatprep.mubr.msk.bf16.mxu1 %vm2022_vm9, %v1933_v29  ;;  %v11148_v32 = vcombine.low %v687_v38, %v12768_v57  ;;  %v11255_v63 = vcombine.low %v12769_v13, %v12769_v13  ;;  %v18914_v11 = vld [vmem:[#allocation11_spill] sm:$0xff]  ;;  %v2337_v56 = vld [vmem:[#allocation2 + $0x70] sm:$0x8] }
 0x1c9   : > { %v1947_v16 = vor.u32 %v1946_v34, %v1943_v18  ;;  %3184 = vrot.lane.b32.xlu1 %v14315_v12, %s12881_s16  ;;  %v12770_v18 = vld [vmem:[#allocation2 + $0x8] sm:$0xf]  ;;  %v2942_v29 = vsel %vm1282_vm3, %v11254_v50, %v13943_v59 }
 0x1ca   : > { %v14323_v41 = vpop.permute.xlu0 %2894  ;;  %v11149_v34 = vcombine.low %v12770_v18, %v12770_v18 }
 0x1cb   : > { %v14325_v2 = vpop.permute.xlu1 %2896  ;;  %v1948_v54 = vsel %vm1738_vm8, %v1940_v51, %v1947_v16  ;;  %v18913_v51 = vld [vmem:[#allocation8_spill] sm:$0xff] }
 0x1cc   : > { %1502 = vrot.lane.b32.xlu0 %v14283_v39, %s12880_s30  ;;  %12168 = vmatmul.mubr.msk.bf16.gmra.mxu1 %vm2022_vm9, %v1948_v54  ;;  %v1285_v16 = vsel %vm1282_vm3, %v11148_v32, %v18913_v51  ;;  %v2944_v54 = vsel %vm1282_vm3, %v11255_v63, %v13943_v59  ;;  %v14369_v32 = vld [vmem:[#allocation2 + $0x80] sm:$0x8]  ;;  %v1287_v59 = vsel %vm1282_vm3, %v11149_v34, %v18913_v51 }
 0x1cd   : > { %1504 = vrot.lane.b32.xlu1 %v14289_v36, %s12880_s30  ;;  %v1375_v38 = vsel %vm1373_vm4, %v1285_v16, %v18914_v11  ;;  %v14375_v18 = vsel %vm1373_vm4, %v2944_v54, %v13947_v53  ;;  %v18916_v16 = vld [vmem:[#allocation12_spill] sm:$0xff]  ;;  %v14386_v53 = vld [vmem:[#allocation2 + $0x84] sm:$0xf] }
 0x1ce   : > { %v14333_v61 = vpop.permute.xlu0 %2898  ;;  %v1610_v50 = vsel %vm1608_vm7, %v1375_v38, %v13913_v62 }
 0x1cf   : > { %v14335_v49 = vpop.permute.xlu1 %2900 }
 0x1d0   : > { %3120 = vrot.lane.b32.xlu0 %v14309_v44, %s12880_s30 }
 0x1d1   : > { %3122 = vrot.lane.b32.xlu1 %v14315_v12, %s12880_s30 }
 0x1d2   : > { %v1535_v33 = vpop.permute.xlu0 %1534 }
 0x1d3   : > { %v1537_v55 = vpop.permute.xlu1 %1536 }
 0x1d4   : > { %1506 = vrot.lane.b32.xlu0 %v14038_v47, %s12880_s30 }
 0x1d5   : > { %1508 = vrot.lane.b32.xlu1 %v14043_v40, %s12880_s30 }
 0x1d6   : > { %v14345_v23 = vpop.permute.xlu0 %1484 }
 0x1d7   : > { %v14347_v19 = vpop.permute.xlu1 %1538 }
 0x1d8   : > { %1568 = vrot.lane.b32.xlu0 %v14038_v47, %s12881_s16  ;;  %v14367_v47 = vsel %vm1373_vm4, %v2942_v29, %v13956_v35  ;;  %v1377_v35 = vsel %vm1373_vm4, %v1287_v59, %v18916_v16  ;;  %v12772_v29 = vld [vmem:[#allocation2 + $0x74] sm:$0xf] }
 0x1d9   : > { %1570 = vrot.lane.b32.xlu1 %v14043_v40, %s12881_s16  ;;  %18915 = vst [vmem:[#allocation18_spill] sm:$0xff] %v14367_v47  ;;  %v12771_v40 = vld [vmem:[#allocation2 + $0x78] sm:$0xf]  ;;  %v11256_v11 = vcombine.low %v2337_v56, %v12772_v29  ;;  %v1612_v34 = vsel %vm1608_vm7, %v1377_v35, %v13916_v7 }
 0x1da   : > { %v14361_v57 = vpop.permute.xlu0 %1540  ;;  %v11257_v63 = vcombine.low %v12771_v40, %v12771_v40 }
 0x1db   : > { %v1545_v13 = vpop.permute.xlu1 %1544  ;;  %v2947_v51 = vsel %vm1282_vm3, %v11256_v11, %v13934_v37 }
 0x1dc   : > { %3124 = vrot.lane.b32.xlu0 %v14367_v47, %s12880_s30  ;;  %v1675_v62 = vsel %vm1673_vm6, %v1610_v50, %v1545_v13  ;;  %v1666_v50 = vsel %vm1608_vm7, %v13856_v43, %v1535_v33  ;;  %v2949_v43 = vsel %vm1282_vm3, %v11257_v63, %v13934_v37 }
 0x1dd   : > { %v1739_v38 = vshrl.u32 %v1675_v62, 16  ;;  %v1742_v12 = vshll.u32 %v1675_v62, 16  ;;  %3126 = vrot.lane.b32.xlu1 %v14375_v18, %s12880_s30  ;;  %v18917_v62 = vld [vmem:[#allocation13_spill] sm:$0xff] }
 0x1de   : > { %v1547_v54 = vpop.permute.xlu0 %1546  ;;  %v1614_v16 = vsel %vm1608_vm7, %v18917_v62, %v13926_v20 }
 0x1df   : > { %v1741_v13 = vrot.slane %v1739_v38, 3  ;;  %v1744_v59 = vrot.slane %v1742_v12, 4  ;;  %v1677_v56 = vsel %vm1673_vm6, %v1612_v34, %v1547_v54  ;;  %v1601_v40 = vpop.permute.xlu1 %1600  ;;  %v18918_v38 = vld [vmem:[#allocation28_spill] sm:$0xff] }
 0x1e0   : > { %v1746_v29 = vshrl.u32 %v1677_v56, 16  ;;  %v1749_v7 = vshll.u32 %v1677_v56, 16  ;;  %3186 = vrot.lane.b32.xlu0 %v14367_v47, %s12881_s16  ;;  %v1731_v35 = vsel %vm1673_vm6, %v1666_v50, %v1601_v40  ;;  %v1668_v20 = vsel %vm1608_vm7, %v18918_v38, %v1537_v55  ;;  %v18919_v47 = vld [vmem:[#allocation34_spill] sm:$0xff] }
 0x1e1   : > { %v1949_v12 = vshrl.u32 %v1731_v35, 16  ;;  %v1952_v33 = vshll.u32 %v1731_v35, 16  ;;  %3188 = vrot.lane.b32.xlu1 %v14375_v18, %s12881_s16  ;;  %v1745_v62 = vor.u32 %v1744_v59, %v1741_v13  ;;  %v14409_v50 = vsel %vm1373_vm4, %v2949_v43, %v18919_v47  ;;  %v18921_v47 = vld [vmem:[#allocation14_spill] sm:$0xff] }
 0x1e2   : > { %v1748_v34 = vrot.slane %v1746_v29, 3  ;;  %v1751_v54 = vrot.slane %v1749_v7, 4  ;;  %v1603_v56 = vpop.permute.xlu0 %1602  ;;  %v18920_v7 = vld [vmem:[#allocation35_spill] sm:$0xff]  ;;  %v1616_v59 = vsel %vm1608_vm7, %v18921_v47, %v14345_v23 }
 0x1e3   : > { %v1951_v11 = vrot.slane %v1949_v12, 3  ;;  %v1954_v40 = vrot.slane %v1952_v33, 4  ;;  %v1733_v37 = vsel %vm1673_vm6, %v1668_v20, %v1603_v56  ;;  %v1549_v63 = vpop.permute.xlu1 %1548  ;;  %v14417_v13 = vsel %vm1373_vm4, %v2947_v51, %v18920_v7 }
 0x1e4   : > { %v1956_v35 = vshrl.u32 %v1733_v37, 16  ;;  %v1959_v44 = vshll.u32 %v1733_v37, 16  ;;  %1572 = vrot.lane.b32.xlu0 %v13698_v30, %s12881_s16  ;;  %v1679_v55 = vsel %vm1673_vm6, %v1614_v16, %v1549_v63  ;;  %v1752_v29 = vor.u32 %v1751_v54, %v1748_v34  ;;  %v18922_v34 = vld [vmem:[#allocation30_spill] sm:$0xff] }
 0x1e5   : > { %v1754_v43 = vshrl.u32 %v1679_v55, 16  ;;  %v1757_v12 = vshll.u32 %v1679_v55, 16  ;;  %1574 = vrot.lane.b32.xlu1 %v13703_v15, %s12881_s16  ;;  %v1955_v33 = vor.u32 %v1954_v40, %v1951_v11  ;;  %v1670_v51 = vsel %vm1608_vm7, %v18922_v34, %v14347_v19  ;;  %v18923_v40 = vld [vmem:[#allocation31_spill] sm:$0xff] }
 0x1e6   : > { %v1958_v38 = vrot.slane %v1956_v35, 3  ;;  %v1961_v20 = vrot.slane %v1959_v44, 4  ;;  %v1551_v30 = vpop.permute.xlu0 %1550  ;;  %v1753_v16 = vsel %vm1738_vm8, %v1745_v62, %v1752_v29  ;;  %v12774_v62 = vld [vmem:[#allocation2 + $0x88] sm:$0xf]  ;;  %v1672_v19 = vsel %vm1608_vm7, %v18923_v40, %v14361_v57  ;;  %v18924_v57 = vld [vmem:[#allocation37_spill] sm:$0xff] }
 0x1e7   : > { %v1756_v54 = vrot.slane %v1754_v43, 3  ;;  %v1759_v56 = vrot.slane %v1757_v12, 4  ;;  %v1681_v37 = vsel %vm1673_vm6, %v1616_v59, %v1551_v30  ;;  %12143 = vmatprep.mubr.msk.bf16.mxu0 %vm2022_vm9, %v1753_v16  ;;  %v1605_v23 = vpop.permute.xlu1 %1604  ;;  %v11259_v11 = vcombine.low %v12774_v62, %v12774_v62 }
 0x1e8   : > { %v1962_v63 = vor.u32 %v1961_v20, %v1958_v38  ;;  %v1761_v55 = vshrl.u32 %v1681_v37, 16  ;;  %v1764_v15 = vshll.u32 %v1681_v37, 16  ;;  %3190 = vrot.lane.b32.xlu0 %v14417_v13, %s12881_s16  ;;  %v1735_v44 = vsel %vm1673_vm6, %v1670_v51, %v1605_v23 }
 0x1e9   : > { %v1964_v35 = vshrl.u32 %v1735_v44, 16  ;;  %v1967_v29 = vshll.u32 %v1735_v44, 16  ;;  %3192 = vrot.lane.b32.xlu1 %v14409_v50, %s12881_s16  ;;  %v1760_v7 = vor.u32 %v1759_v56, %v1756_v54  ;;  %v18925_v34 = vcombine.low %v14369_v32, %v14386_v53  ;;  %v2343_v53 = vld [vmem:[#allocation2 + $0x90] sm:$0x8] }
 0x1ea   : > { %v1763_v47 = vrot.slane %v1761_v55, 3  ;;  %v1766_v59 = vrot.slane %v1764_v15, 4  ;;  %v1607_v43 = vpop.permute.xlu0 %1606  ;;  %v1963_v12 = vsel %vm1738_vm8, %v1955_v33, %v1962_v63  ;;  %v2954_v33 = vsel %vm1282_vm3, %v11259_v11, %v18924_v57 }
 0x1eb   : > { %v1966_v38 = vrot.slane %v1964_v35, 3  ;;  %v1969_v20 = vrot.slane %v1967_v29, 4  ;;  %v1737_v30 = vsel %vm1673_vm6, %v1672_v19, %v1607_v43  ;;  %12171 = vmatprep.mubr.msk.bf16.mxu1 %vm2022_vm9, %v1963_v12  ;;  %v14441_v16 = vpop.permute.xlu1 %2726  ;;  %v2952_v51 = vsel %vm1282_vm3, %v18925_v34, %v18924_v57  ;;  %v12775_v19 = vld [vmem:[#allocation2 + $0x94] sm:$0xf]  ;;  %v18926_v43 = vld [vmem:[#allocation36_spill] sm:$0xff] }
 0x1ec   : > { %v1767_v54 = vor.u32 %v1766_v59, %v1763_v47  ;;  %v1971_v56 = vshrl.u32 %v1737_v30, 16  ;;  %v1974_v37 = vshll.u32 %v1737_v30, 16  ;;  %3128 = vrot.lane.b32.xlu0 %v14417_v13, %s12880_s30  ;;  %v14459_v44 = vsel %vm1373_vm4, %v2952_v51, %v14009_v31  ;;  %v12777_v51 = vld [vmem:[#allocation2 + $0xa4] sm:$0xf] }
 0x1ed   : > { %3130 = vrot.lane.b32.xlu1 %v14409_v50, %s12880_s30  ;;  %v1970_v23 = vor.u32 %v1969_v20, %v1966_v38  ;;  %v14466_v11 = vsel %vm1373_vm4, %v2954_v33, %v14004_v10  ;;  %v11260_v35 = vcombine.low %v2343_v53, %v12775_v19  ;;  %v2346_v10 = vld [vmem:[#allocation2 + $0xa0] sm:$0x8]  ;;  %v12779_v19 = vld [vmem:[#allocation2 + $0xb4] sm:$0xf] }
 0x1ee   : > { %v1973_v63 = vrot.slane %v1971_v56, 3  ;;  %v1976_v55 = vrot.slane %v1974_v37, 4  ;;  %v14454_v15 = vpop.permute.xlu0 %2694  ;;  %v1768_v32 = vsel %vm1738_vm8, %v1760_v7, %v1767_v54  ;;  %v12776_v7 = vld [vmem:[#allocation2 + $0x98] sm:$0xf]  ;;  %v11262_v54 = vcombine.low %v2346_v10, %v12777_v51  ;;  %v12778_v37 = vld [vmem:[#allocation2 + $0xa8] sm:$0xf] }
 0x1ef   : > { %12144 = vmatmul.mubr.msk.bf16.vlgmr.msra.gmra.mxu0 %vm2022_vm9, %v1768_v32  ;;  %v14462_v62 = vpop.permute.xlu1 %2728  ;;  %v11261_v47 = vcombine.low %v12776_v7, %v12776_v7  ;;  %v2957_v12 = vsel %vm1282_vm3, %v11260_v35, %v18926_v43  ;;  %v11263_v33 = vcombine.low %v12778_v37, %v12778_v37 }
 0x1f0   : > { %v1977_v40 = vor.u32 %v1976_v55, %v1973_v63  ;;  %3132 = vrot.lane.b32.xlu0 %v14459_v44, %s12880_s30  ;;  %v14490_v30 = vsel %vm1373_vm4, %v2957_v12, %v14015_v6  ;;  %v2349_v55 = vld [vmem:[#allocation2 + $0xb0] sm:$0x8] }
 0x1f1   : > { %3134 = vrot.lane.b32.xlu1 %v14466_v11, %s12880_s30  ;;  %v2959_v20 = vsel %vm1282_vm3, %v11261_v47, %v18926_v43  ;;  %v2964_v63 = vsel %vm1282_vm3, %v11263_v33, %v14069_v17  ;;  %v11264_v35 = vcombine.low %v2349_v55, %v12779_v19  ;;  %v2316_v33 = vld [vmem:[#allocation2] sm:$0x8]  ;;  %v18932_v19 = vld [vmem:[#allocation33_spill] sm:$0xff] }
 0x1f2   : > { %v14472_v29 = vpop.permute.xlu0 %2902  ;;  %v1978_v31 = vsel %vm1738_vm8, %v1970_v23, %v1977_v40  ;;  %v14496_v34 = vsel %vm1373_vm4, %v2959_v20, %v14017_v25  ;;  %v2962_v23 = vsel %vm1282_vm3, %v11262_v54, %v14069_v17  ;;  %v14520_v40 = vsel %vm1373_vm4, %v2964_v63, %v14102_v5  ;;  %v12780_v17 = vld [vmem:[#allocation2 + $0xb8] sm:$0xf]  ;;  %v12781_v54 = vld [vmem:[#allocation2 + $0xc4] sm:$0xf]  ;;  %v12782_v63 = vld [vmem:[#allocation2 + $0xc8] sm:$0xf] }
 0x1f3   : > { %12172 = vmatmul.mubr.msk.bf16.gmra.mxu1 %vm2022_vm9, %v1978_v31  ;;  %v14476_v59 = vpop.permute.xlu1 %2904  ;;  %v14516_v32 = vsel %vm1373_vm4, %v2962_v23, %v14094_v0  ;;  %18928 = vst [vmem:[#allocation7_spill] sm:$0xff] %v14520_v40  ;;  %v11265_v7 = vcombine.low %v12780_v17, %v12780_v17  ;;  %v2352_v0 = vld [vmem:[#allocation2 + $0xc0] sm:$0x8]  ;;  %v2967_v5 = vsel %vm1282_vm3, %v11264_v35, %v14077_v60  ;;  %v18933_v17 = vld [vmem:[#allocation32_spill] sm:$0xff] }
 0x1f4   : > { %3194 = vrot.lane.b32.xlu0 %v14459_v44, %s12881_s16  ;;  %18927 = vst [vmem:[#allocation6_spill] sm:$0xff] %v14516_v32  ;;  %v14538_v12 = vsel %vm1373_vm4, %v2967_v5, %v14119_v21  ;;  %v11266_v37 = vcombine.low %v2352_v0, %v12781_v54  ;;  %v11267_v55 = vcombine.low %v12782_v63, %v12782_v63  ;;  %v12783_v63 = vld [vmem:[#allocation2 + $0x8] sm:$0xf] }
 0x1f5   : > { %3196 = vrot.lane.b32.xlu1 %v14466_v11, %s12881_s16  ;;  %v2969_v43 = vsel %vm1282_vm3, %v11265_v7, %v14077_v60  ;;  %18929 = vst [vmem:[#allocation24_spill] sm:$0xff] %v14538_v12  ;;  %v18931_v60 = vld [vmem:[#allocation15_spill] sm:$0xff]  ;;  %v11242_v35 = vcombine.low %v2316_v33, %v18932_v19 }
 0x1f6   : > { %v14484_v38 = vpop.permute.xlu0 %2838  ;;  %v14544_v51 = vsel %vm1373_vm4, %v2969_v43, %v14121_v24  ;;  %v2972_v5 = vsel %vm1282_vm3, %v11266_v37, %v14203_v22  ;;  %v2974_v37 = vsel %vm1282_vm3, %v11267_v55, %v14203_v22 }
 0x1f7   : > { %v14492_v57 = vpop.permute.xlu1 %2840  ;;  %18930 = vst [vmem:[#allocation10_spill] sm:$0xff] %v14544_v51 }
 0x1f8   : > { %3198 = vrot.lane.b32.xlu0 %v14490_v30, %s12881_s16 }
 0x1f9   : > { %3200 = vrot.lane.b32.xlu1 %v14496_v34, %s12881_s16 }
 0x1fa   : > { %v14502_v56 = vpop.permute.xlu0 %2906 }
 0x1fb   : > { %v14504_v6 = vpop.permute.xlu1 %2908 }
 0x1fc   : > { %3136 = vrot.lane.b32.xlu0 %v14490_v30, %s12880_s30 }
 0x1fd   : > { %3138 = vrot.lane.b32.xlu1 %v14496_v34, %s12880_s30 }
 0x1fe   : > { %v1487_v25 = vpop.permute.xlu0 %1486 }
 0x1ff   : > { %v1489_v53 = vpop.permute.xlu1 %1488  ;;  %v1618_v23 = vsel %vm1608_vm7, %v18931_v60, %v1487_v25  ;;  %v2355_v60 = vld [vmem:[#allocation2 + $0xd0] sm:$0x8] }
 0x200   : > { %3140 = vrot.lane.b32.xlu0 %v14516_v32, %s12880_s30  ;;  %v1620_v24 = vsel %vm1608_vm7, %v18933_v17, %v1489_v53  ;;  %v14567_v17 = vsel %vm1373_vm4, %v2972_v5, %v14214_v8  ;;  %v12786_v5 = vld [vmem:[#allocation2 + $0xe4] sm:$0xf] }
 0x201   : > { %3142 = vrot.lane.b32.xlu1 %v14520_v40, %s12880_s30 }
 0x202   : > { %v3105_v31 = vpop.permute.xlu0 %3104 }
 0x203   : > { %v3107_v47 = vpop.permute.xlu1 %3106 }
 0x204   : > { %3202 = vrot.lane.b32.xlu0 %v14516_v32, %s12881_s16  ;;  %v12785_v32 = vld [vmem:[#allocation2 + $0xd8] sm:$0xf] }
 0x205   : > { %3204 = vrot.lane.b32.xlu1 %v14520_v40, %s12881_s16  ;;  %v11243_v40 = vcombine.low %v12783_v63, %v12783_v63 }
 0x206   : > { %v14532_v10 = vpop.permute.xlu0 %1490 }
 0x207   : > { %v14540_v20 = vpop.permute.xlu1 %1492  ;;  %v2914_v22 = vsel %vm1282_vm3, %v11243_v40, %v14454_v15 }
 0x208   : > { %3206 = vrot.lane.b32.xlu0 %v14538_v12, %s12881_s16 }
 0x209   : > { %3208 = vrot.lane.b32.xlu1 %v14544_v51, %s12881_s16 }
 0x20a   : > { %v1553_v21 = vpop.permute.xlu0 %1552 }
 0x20b   : > { %v1683_v7 = vsel %vm1673_vm6, %v1618_v23, %v1553_v21  ;;  %v1555_v0 = vpop.permute.xlu1 %1554 }
 0x20c   : > { %v1769_v43 = vshrl.u32 %v1683_v7, 16  ;;  %v1772_v54 = vshll.u32 %v1683_v7, 16  ;;  %3144 = vrot.lane.b32.xlu0 %v14538_v12, %s12880_s30  ;;  %v1685_v25 = vsel %vm1673_vm6, %v1620_v24, %v1555_v0  ;;  %v12784_v12 = vld [vmem:[#allocation2 + $0xd4] sm:$0xf] }
 0x20d   : > { %v1776_v33 = vshrl.u32 %v1685_v25, 16  ;;  %v1779_v19 = vshll.u32 %v1685_v25, 16  ;;  %3146 = vrot.lane.b32.xlu1 %v14544_v51, %s12880_s30  ;;  %v11268_v63 = vcombine.low %v2355_v60, %v12784_v12  ;;  %v11269_v25 = vcombine.low %v12785_v32, %v12785_v32 }
 0x20e   : > { %v1771_v53 = vrot.slane %v1769_v43, 3  ;;  %v1774_v23 = vrot.slane %v1772_v54, 4  ;;  %v3109_v21 = vpop.permute.xlu0 %3108  ;;  %v14571_v51 = vsel %vm1373_vm4, %v2974_v37, %v14218_v4  ;;  %v2358_v43 = vld [vmem:[#allocation2 + $0xe0] sm:$0x8]  ;;  %v2912_v54 = vsel %vm1282_vm3, %v11242_v35, %v14454_v15 }
 0x20f   : > { %v1778_v7 = vrot.slane %v1776_v33, 3  ;;  %v1781_v24 = vrot.slane %v1779_v19, 4  ;;  %v3111_v0 = vpop.permute.xlu1 %3110  ;;  %v3001_v8 = vsel %vm1373_vm4, %v2912_v54, %v14484_v38  ;;  %v3003_v4 = vsel %vm1373_vm4, %v2914_v22, %v14492_v57  ;;  %v12787_v19 = vld [vmem:[#allocation2 + $0xe8] sm:$0xf] }
 0x210   : > { %3148 = vrot.lane.b32.xlu0 %v14567_v17, %s12880_s30  ;;  %v1775_v12 = vor.u32 %v1774_v23, %v1771_v53  ;;  %v3235_v32 = vsel %vm1608_vm7, %v3001_v8, %v3105_v31  ;;  %v11270_v60 = vcombine.low %v2358_v43, %v12786_v5  ;;  %v3237_v33 = vsel %vm1608_vm7, %v3003_v4, %v3107_v47 }
 0x211   : > { %v1782_v55 = vor.u32 %v1781_v24, %v1778_v7  ;;  %3150 = vrot.lane.b32.xlu1 %v14571_v51, %s12880_s30  ;;  %v11271_v53 = vcombine.low %v12787_v19, %v12787_v19  ;;  %v2977_v31 = vsel %vm1282_vm3, %v11268_v63, %v14205_v3  ;;  %v2979_v47 = vsel %vm1282_vm3, %v11269_v25, %v14205_v3 }
 0x212   : > { %v3171_v35 = vpop.permute.xlu0 %3170  ;;  %v14601_v43 = vsel %vm1373_vm4, %v2977_v31, %v14228_v9  ;;  %v1622_v54 = vsel %vm1608_vm7, %v13981_v58, %v14532_v10  ;;  %v1624_v3 = vsel %vm1608_vm7, %v13998_v28, %v14540_v20  ;;  %v14612_v9 = vsel %vm1373_vm4, %v2979_v47, %v14236_v27 }
 0x213   : > { %v3299_v15 = vsel %vm1673_vm6, %v3235_v32, %v3171_v35  ;;  %v3173_v40 = vpop.permute.xlu1 %3172  ;;  %v1783_v38 = vsel %vm1738_vm8, %v1775_v12, %v1782_v55  ;;  %v3239_v20 = vsel %vm1608_vm7, %v14075_v52, %v3109_v21  ;;  %v3241_v27 = vsel %vm1608_vm7, %v14081_v42, %v3111_v0 }
 0x214   : > { %v3362_v23 = vshrl.u32 %v3299_v15, 16  ;;  %v3365_v37 = vshll.u32 %v3299_v15, 16  ;;  %3210 = vrot.lane.b32.xlu0 %v14567_v17, %s12881_s16  ;;  %v3301_v57 = vsel %vm1673_vm6, %v3237_v33, %v3173_v40  ;;  %12147 = vmatprep.mubr.msk.bf16.mxu0 %vm2022_vm9, %v1783_v38  ;;  %v2982_v47 = vsel %vm1282_vm3, %v11270_v60, %v14305_v45 }
 0x215   : > { %v3369_v7 = vshrl.u32 %v3301_v57, 16  ;;  %v3372_v24 = vshll.u32 %v3301_v57, 16  ;;  %3212 = vrot.lane.b32.xlu1 %v14571_v51, %s12881_s16 }
 0x216   : > { %v3364_v22 = vrot.slane %v3362_v23, 3  ;;  %v3367_v8 = vrot.slane %v3365_v37, 4  ;;  %v1557_v12 = vpop.permute.xlu0 %1556 }
 0x217   : > { %v3371_v63 = vrot.slane %v3369_v7, 3  ;;  %v3374_v25 = vrot.slane %v3372_v24, 4  ;;  %v1687_v55 = vsel %vm1673_vm6, %v1622_v54, %v1557_v12  ;;  %v1559_v4 = vpop.permute.xlu1 %1558 }
 0x218   : > { %v1784_v32 = vshrl.u32 %v1687_v55, 16  ;;  %v1787_v35 = vshll.u32 %v1687_v55, 16  ;;  %3214 = vrot.lane.b32.xlu0 %v14601_v43, %s12881_s16  ;;  %v1689_v58 = vsel %vm1673_vm6, %v1624_v3, %v1559_v4  ;;  %v3368_v10 = vor.u32 %v3367_v8, %v3364_v22  ;;  %v2361_v3 = vld [vmem:[#allocation2 + $0xf0] sm:$0x8] }
 0x219   : > { %v3375_v5 = vor.u32 %v3374_v25, %v3371_v63  ;;  %v1791_v33 = vshrl.u32 %v1689_v58, 16  ;;  %v1794_v28 = vshll.u32 %v1689_v58, 16  ;;  %3216 = vrot.lane.b32.xlu1 %v14612_v9, %s12881_s16  ;;  %v2984_v22 = vsel %vm1282_vm3, %v11271_v53, %v14305_v45 }
 0x21a   : > { %v1786_v15 = vrot.slane %v1784_v32, 3  ;;  %v1789_v40 = vrot.slane %v1787_v35, 4  ;;  %v3175_v38 = vpop.permute.xlu0 %3174  ;;  %v14637_v63 = vsel %vm1373_vm4, %v2982_v47, %v14323_v41  ;;  %v14642_v35 = vsel %vm1373_vm4, %v2984_v22, %v14325_v2  ;;  %v12788_v41 = vld [vmem:[#allocation2 + $0xf4] sm:$0xf]  ;;  %v2367_v22 = vld [vmem:[#allocation2 + $0x110] sm:$0x8] }
 0x21b   : > { %v1793_v19 = vrot.slane %v1791_v33, 3  ;;  %v1796_v23 = vrot.slane %v1794_v28, 4  ;;  %v3303_v37 = vsel %vm1673_vm6, %v3239_v20, %v3175_v38  ;;  %v3177_v57 = vpop.permute.xlu1 %3176  ;;  %v3376_v31 = vsel %vm1738_vm8, %v3368_v10, %v3375_v5  ;;  %v12789_v5 = vld [vmem:[#allocation2 + $0xf8] sm:$0xf]  ;;  %v2364_v38 = vld [vmem:[#allocation2 + $0x100] sm:$0x8] }
 0x21c   : > { %v3377_v7 = vshrl.u32 %v3303_v37, 16  ;;  %v3380_v24 = vshll.u32 %v3303_v37, 16  ;;  %3152 = vrot.lane.b32.xlu0 %v14601_v43, %s12880_s30  ;;  %v3305_v52 = vsel %vm1673_vm6, %v3241_v27, %v3177_v57  ;;  %12185 = vmatprep.mubr.msk.bf16.mxu1 %vm2022_vm9, %v3376_v31  ;;  %v1790_v42 = vor.u32 %v1789_v40, %v1786_v15  ;;  %v12790_v37 = vld [vmem:[#allocation2 + $0x104] sm:$0xf] }
 0x21d   : > { %v1797_v21 = vor.u32 %v1796_v23, %v1793_v19  ;;  %v3384_v0 = vshrl.u32 %v3305_v52, 16  ;;  %v3387_v54 = vshll.u32 %v3305_v52, 16  ;;  %3154 = vrot.lane.b32.xlu1 %v14612_v9, %s12880_s30  ;;  %v11272_v58 = vcombine.low %v2361_v3, %v12788_v41  ;;  %v12793_v41 = vld [vmem:[#allocation2 + $0x118] sm:$0xf] }
 0x21e   : > { %v3379_v60 = vrot.slane %v3377_v7, 3  ;;  %v3382_v8 = vrot.slane %v3380_v24, 4  ;;  %v1495_v12 = vpop.permute.xlu0 %1494  ;;  %v11273_v33 = vcombine.low %v12789_v5, %v12789_v5  ;;  %v11274_v57 = vcombine.low %v2364_v38, %v12790_v37 }
 0x21f   : > { %v3386_v25 = vrot.slane %v3384_v0, 3  ;;  %v3389_v55 = vrot.slane %v3387_v54, 4  ;;  %v1497_v4 = vpop.permute.xlu1 %1496  ;;  %v1798_v32 = vsel %vm1738_vm8, %v1790_v42, %v1797_v21  ;;  %v2987_v2 = vsel %vm1282_vm3, %v11272_v58, %v14311_v46 }
 0x220   : > { %3156 = vrot.lane.b32.xlu0 %v14637_v63, %s12880_s30  ;;  %12148 = vmatmul.mubr.msk.bf16.gmra.mxu0 %vm2022_vm9, %v1798_v32  ;;  %v3383_v45 = vor.u32 %v3382_v8, %v3379_v60  ;;  %v2989_v15 = vsel %vm1282_vm3, %v11273_v33, %v14311_v46  ;;  %v14661_v40 = vsel %vm1373_vm4, %v2987_v2, %v14333_v61  ;;  %v12791_v61 = vld [vmem:[#allocation2 + $0x108] sm:$0xf] }
 0x221   : > { %v3390_v53 = vor.u32 %v3389_v55, %v3386_v25  ;;  %3158 = vrot.lane.b32.xlu1 %v14642_v35, %s12880_s30  ;;  %v14665_v23 = vsel %vm1373_vm4, %v2989_v15, %v14335_v49  ;;  %v1626_v46 = vsel %vm1608_vm7, %v14100_v26, %v1495_v12  ;;  %v11275_v47 = vcombine.low %v12791_v61, %v12791_v61 }
 0x222   : > { %v3113_v10 = vpop.permute.xlu0 %3112  ;;  %v1628_v7 = vsel %vm1608_vm7, %v14109_v14, %v1497_v4  ;;  %v2992_v26 = vsel %vm1282_vm3, %v11274_v57, %v14441_v16  ;;  %v11277_v58 = vcombine.low %v12793_v41, %v12793_v41 }
 0x223   : > { %v3115_v28 = vpop.permute.xlu1 %3114  ;;  %v3391_v20 = vsel %vm1738_vm8, %v3383_v45, %v3390_v53  ;;  %v2994_v12 = vsel %vm1282_vm3, %v11275_v47, %v14441_v16  ;;  %v3065_v3 = vsel %vm1373_vm4, %v2992_v26, %v14472_v29  ;;  %v12792_v45 = vld [vmem:[#allocation2 + $0x114] sm:$0xf]  ;;  %v3243_v16 = vsel %vm1608_vm7, %v14136_v48, %v3113_v10 }
 0x224   : > { %3218 = vrot.lane.b32.xlu0 %v14637_v63, %s12881_s16  ;;  %12186 = vmatmul.mubr.msk.bf16.vlgmr.msra.gmra.mxu1 %vm2022_vm9, %v3391_v20  ;;  %v3067_v32 = vsel %vm1373_vm4, %v2994_v12, %v14476_v59  ;;  %v11276_v53 = vcombine.low %v2367_v22, %v12792_v45  ;;  %v3245_v20 = vsel %vm1608_vm7, %v14140_v1, %v3115_v28 }
 0x225   : > { %3220 = vrot.lane.b32.xlu1 %v14642_v35, %s12881_s16  ;;  %v2999_v10 = vsel %vm1282_vm3, %v11277_v58, %v14462_v62 }
 0x226   : > { %v1499_v27 = vpop.permute.xlu0 %1498  ;;  %v2997_v48 = vsel %vm1282_vm3, %v11276_v53, %v14462_v62 }
 0x227   : > { %v1501_v19 = vpop.permute.xlu1 %1500 }
 0x228   : > { %3222 = vrot.lane.b32.xlu0 %v14661_v40, %s12881_s16 }
 0x229   : > { %3224 = vrot.lane.b32.xlu1 %v14665_v23, %s12881_s16 }
 0x22a   : > { %v1561_v31 = vpop.permute.xlu0 %1560 }
 0x22b   : > { %v1691_v49 = vsel %vm1673_vm6, %v1626_v46, %v1561_v31  ;;  %v1563_v24 = vpop.permute.xlu1 %1562  ;;  %v3069_v46 = vsel %vm1373_vm4, %v2997_v48, %v14502_v56  ;;  %v18934_v31 = vld [vmem:[#allocation3_spill] sm:$0xff] }
 0x22c   : > { %v1799_v52 = vshrl.u32 %v1691_v49, 16  ;;  %v1802_v42 = vshll.u32 %v1691_v49, 16  ;;  %3160 = vrot.lane.b32.xlu0 %v14661_v40, %s12880_s30  ;;  %v1693_v21 = vsel %vm1673_vm6, %v1628_v7, %v1563_v24  ;;  %v1630_v61 = vsel %vm1608_vm7, %v18934_v31, %v1499_v27  ;;  %v18935_v24 = vld [vmem:[#allocation21_spill] sm:$0xff] }
 0x22d   : > { %v1806_v0 = vshrl.u32 %v1693_v21, 16  ;;  %v1809_v54 = vshll.u32 %v1693_v21, 16  ;;  %3162 = vrot.lane.b32.xlu1 %v14665_v23, %s12880_s30 }
 0x22e   : > { %v1801_v14 = vrot.slane %v1799_v52, 3  ;;  %v1804_v60 = vrot.slane %v1802_v42, 4  ;;  %v3117_v8 = vpop.permute.xlu0 %3116  ;;  %v1632_v52 = vsel %vm1608_vm7, %v18935_v24, %v1501_v19  ;;  %v18936_v19 = vld [vmem:[#allocation16_spill] sm:$0xff]  ;;  %v18938_v24 = vld [vmem:[#allocation23_spill] sm:$0xff] }
 0x22f   : > { %v1808_v25 = vrot.slane %v1806_v0, 3  ;;  %v1811_v55 = vrot.slane %v1809_v54, 4  ;;  %v3119_v4 = vpop.permute.xlu1 %3118  ;;  %v3071_v54 = vsel %vm1373_vm4, %v2999_v10, %v14504_v6 }
 0x230   : > { %3164 = vrot.lane.b32.xlu0 %v3065_v3, %s12880_s30  ;;  %v1805_v5 = vor.u32 %v1804_v60, %v1801_v14 }
 0x231   : > { %v1812_v33 = vor.u32 %v1811_v55, %v1808_v25  ;;  %3166 = vrot.lane.b32.xlu1 %v3067_v32, %s12880_s30  ;;  %v18937_v25 = vld [vmem:[#allocation22_spill] sm:$0xff] }
 0x232   : > { %v3179_v29 = vpop.permute.xlu0 %3178  ;;  %v3249_v55 = vsel %vm1608_vm7, %v18937_v25, %v3119_v4 }
 0x233   : > { %v3307_v2 = vsel %vm1673_vm6, %v3243_v16, %v3179_v29  ;;  %v3181_v59 = vpop.permute.xlu1 %3180  ;;  %v1813_v15 = vsel %vm1738_vm8, %v1805_v5, %v1812_v33 }
 0x234   : > { %v3392_v38 = vshrl.u32 %v3307_v2, 16  ;;  %v3395_v37 = vshll.u32 %v3307_v2, 16  ;;  %3226 = vrot.lane.b32.xlu0 %v3065_v3, %s12881_s16  ;;  %v3309_v57 = vsel %vm1673_vm6, %v3245_v20, %v3181_v59  ;;  %12151 = vmatprep.mubr.msk.bf16.mxu0 %vm2022_vm9, %v1813_v15  ;;  %v3247_v3 = vsel %vm1608_vm7, %v18936_v19, %v3117_v8 }
 0x235   : > { %v3399_v1 = vshrl.u32 %v3309_v57, 16  ;;  %v3402_v28 = vshll.u32 %v3309_v57, 16  ;;  %3228 = vrot.lane.b32.xlu1 %v3067_v32, %s12881_s16 }
 0x236   : > { %v3394_v47 = vrot.slane %v3392_v38, 3  ;;  %v3397_v7 = vrot.slane %v3395_v37, 4  ;;  %v1565_v49 = vpop.permute.xlu0 %1564 }
 0x237   : > { %v3401_v42 = vrot.slane %v3399_v1, 3  ;;  %v3404_v21 = vrot.slane %v3402_v28, 4  ;;  %v1695_v62 = vsel %vm1673_vm6, %v1630_v61, %v1565_v49  ;;  %v1567_v0 = vpop.permute.xlu1 %1566 }
 0x238   : > { %v1814_v26 = vshrl.u32 %v1695_v62, 16  ;;  %v1817_v22 = vshll.u32 %v1695_v62, 16  ;;  %3230 = vrot.lane.b32.xlu0 %v3069_v46, %s12881_s16  ;;  %v1697_v56 = vsel %vm1673_vm6, %v1632_v52, %v1567_v0  ;;  %v3398_v27 = vor.u32 %v3397_v7, %v3394_v47 }
 0x239   : > { %v3405_v14 = vor.u32 %v3404_v21, %v3401_v42  ;;  %v1821_v60 = vshrl.u32 %v1697_v56, 16  ;;  %v1824_v12 = vshll.u32 %v1697_v56, 16  ;;  %3232 = vrot.lane.b32.xlu1 %v3071_v54, %s12881_s16  ;;  %v18939_v21 = vld [vmem:[#allocation29_spill] sm:$0xff] }
 0x23a   : > { %v1816_v32 = vrot.slane %v1814_v26, 3  ;;  %v1819_v6 = vrot.slane %v1817_v22, 4  ;;  %v3183_v45 = vpop.permute.xlu0 %3182 }
 0x23b   : > { %v1823_v53 = vrot.slane %v1821_v60, 3  ;;  %v1826_v41 = vrot.slane %v1824_v12, 4  ;;  %v3311_v58 = vsel %vm1673_vm6, %v3247_v3, %v3183_v45  ;;  %v3185_v5 = vpop.permute.xlu1 %3184  ;;  %v3406_v33 = vsel %vm1738_vm8, %v3398_v27, %v3405_v14  ;;  %v18940_v45 = vld [vmem:[#allocation4_spill] sm:$0xff] }
 0x23c   : > { %v3407_v16 = vshrl.u32 %v3311_v58, 16  ;;  %v3410_v29 = vshll.u32 %v3311_v58, 16  ;;  %v3313_v20 = vsel %vm1673_vm6, %v3249_v55, %v3185_v5  ;;  %12189 = vmatprep.mubr.msk.bf16.mxu1 %vm2022_vm9, %v3406_v33  ;;  %v1820_v8 = vor.u32 %v1819_v6, %v1816_v32  ;;  %v14740_v58 = vld [vmem:[%s18663_s3] ss:$0 sm:$0xff]  ;;  %v18941_v5 = vld [vmem:[#allocation5_spill] sm:$0xff] }
 0x23d   : > { %v1827_v2 = vor.u32 %v1826_v41, %v1823_v53  ;;  %v3414_v59 = vshrl.u32 %v3313_v20, 16  ;;  %v3417_v4 = vshll.u32 %v3313_v20, 16 }
 0x23e   : > { %v3409_v15 = vrot.slane %v3407_v16, 3  ;;  %v3412_v38 = vrot.slane %v3410_v29, 4  ;;  %v1503_v37 = vpop.permute.xlu0 %1502 }
 0x23f   : > { %v3416_v57 = vrot.slane %v3414_v59, 3  ;;  %v3419_v48 = vrot.slane %v3417_v4, 4  ;;  %v1505_v10 = vpop.permute.xlu1 %1504  ;;  %v1828_v1 = vsel %vm1738_vm8, %v1820_v8, %v1827_v2  ;;  %v1634_v52 = vsel %vm1608_vm7, %v18938_v24, %v1503_v37 }
 0x240   : > { %12152 = vmatmul.mubr.msk.bf16.gmra.mxu0 %vm2022_vm9, %v1828_v1  ;;  %v3413_v28 = vor.u32 %v3412_v38, %v3409_v15  ;;  %v1636_v62 = vsel %vm1608_vm7, %v18939_v21, %v1505_v10  ;;  %v18942_v10 = vld [vmem:[#allocation9_spill] sm:$0xff] }
 0x241   : > { %v3420_v46 = vor.u32 %v3419_v48, %v3416_v57 }
 0x242   : > { %v3121_v31 = vpop.permute.xlu0 %3120 }
 0x243   : > { %v3123_v61 = vpop.permute.xlu1 %3122  ;;  %v3421_v47 = vsel %vm1738_vm8, %v3413_v28, %v3420_v46  ;;  %v3251_v53 = vsel %vm1608_vm7, %v18940_v45, %v3121_v31  ;;  %v18943_v28 = vld [vmem:[#allocation17_spill] sm:$0xff] }
 0x244   : > { %12190 = vmatmul.mubr.msk.bf16.gmra.mxu1 %vm2022_vm9, %v3421_v47  ;;  %v3253_v33 = vsel %vm1608_vm7, %v18941_v5, %v3123_v61 }
 0x246   : > { %v1507_v7 = vpop.permute.xlu0 %1506 }
 0x247   : > { %v1509_v49 = vpop.permute.xlu1 %1508  ;;  %v1638_v15 = vsel %vm1608_vm7, %v14283_v39, %v1507_v7 }
 0x248   : > { %v1640_v48 = vsel %vm1608_vm7, %v14289_v36, %v1509_v49 }
 0x24a   : > { %v1569_v42 = vpop.permute.xlu0 %1568 }
 0x24b   : > { %v1699_v0 = vsel %vm1673_vm6, %v1634_v52, %v1569_v42  ;;  %v1571_v54 = vpop.permute.xlu1 %1570 }
 0x24c   : > { %v1829_v26 = vshrl.u32 %v1699_v0, 16  ;;  %v1832_v22 = vshll.u32 %v1699_v0, 16  ;;  %v1701_v56 = vsel %vm1673_vm6, %v1636_v62, %v1571_v54 }
 0x24d   : > { %v1836_v27 = vshrl.u32 %v1701_v56, 16  ;;  %v1839_v14 = vshll.u32 %v1701_v56, 16 }
 0x24e   : > { %v1831_v60 = vrot.slane %v1829_v26, 3  ;;  %v1834_v12 = vrot.slane %v1832_v22, 4  ;;  %v3125_v19 = vpop.permute.xlu0 %3124 }
 0x24f   : > { %v1838_v3 = vrot.slane %v1836_v27, 3  ;;  %v1841_v25 = vrot.slane %v1839_v14, 4  ;;  %v3127_v55 = vpop.permute.xlu1 %3126  ;;  %v3255_v1 = vsel %vm1608_vm7, %v18942_v10, %v3125_v19 }
 0x250   : > { %v1835_v32 = vor.u32 %v1834_v12, %v1831_v60  ;;  %v3257_v46 = vsel %vm1608_vm7, %v18943_v28, %v3127_v55 }
 0x251   : > { %v1842_v6 = vor.u32 %v1841_v25, %v1838_v3 }
 0x252   : > { %v3187_v41 = vpop.permute.xlu0 %3186 }
 0x253   : > { %v3315_v16 = vsel %vm1673_vm6, %v3251_v53, %v3187_v41  ;;  %v3189_v29 = vpop.permute.xlu1 %3188  ;;  %v1843_v20 = vsel %vm1738_vm8, %v1835_v32, %v1842_v6 }
 0x254   : > { %v3422_v8 = vshrl.u32 %v3315_v16, 16  ;;  %v3425_v2 = vshll.u32 %v3315_v16, 16  ;;  %v3317_v59 = vsel %vm1673_vm6, %v3253_v33, %v3189_v29  ;;  %12155 = vmatprep.mubr.msk.bf16.mxu0 %vm2022_vm9, %v1843_v20  ;;  %v12161_v4 = vpop.f32.mrf.mxu1 }
 0x255   : > { %v3429_v38 = vshrl.u32 %v3317_v59, 16  ;;  %v3432_v37 = vshll.u32 %v3317_v59, 16  ;;  %v2182_v57 = vadd.f32 %v12161_v4, %v14740_v58 }
 0x256   : > { %v3424_v31 = vrot.slane %v3422_v8, 3  ;;  %v1573_v61 = vpop.permute.xlu0 %1572  ;;  %v2173_v47 = vpop.f32.mrf.mxu1  ;;  %v3427_v21 = vrot.slane %v3425_v2, 4 }
 0x257   : > { %v3431_v24 = vrot.slane %v3429_v38, 3  ;;  %v3434_v52 = vrot.slane %v3432_v37, 4  ;;  %v1703_v39 = vsel %vm1673_vm6, %v1638_v15, %v1573_v61  ;;  %v2254_v7 = vmax.f32 %v2182_v57, 0.0  ;;  %v1575_v42 = vpop.permute.xlu1 %1574 }
 0x258   : > { %v1844_v62 = vshrl.u32 %v1703_v39, 16  ;;  %v1847_v0 = vshll.u32 %v1703_v39, 16  ;;  %v2174_v36 = vadd.f32 %v14740_v58, %v2173_v47  ;;  %v12162_v49 = vpop.f32.mrf.mxu1  ;;  %v1705_v22 = vsel %vm1673_vm6, %v1640_v48, %v1575_v42 }
 0x259   : > { %v3435_v54 = vor.u32 %v3434_v52, %v3431_v24  ;;  %v11880_v26 = vpack.c.bf16 %v2254_v7, %v2254_v7  ;;  %v2185_v56 = vadd.f32 %v12162_v49, %v14740_v58  ;;  %v1851_v12 = vshrl.u32 %v1705_v22, 16  ;;  %v18944_v7 = vld [vmem:[#allocation18_spill] sm:$0xff] }
 0x25a   : > { %v1846_v27 = vrot.slane %v1844_v62, 3  ;;  %v1849_v14 = vrot.slane %v1847_v0, 4  ;;  %v2252_v60 = vmax.f32 %v2174_v36, 0.0  ;;  %v3191_v19 = vpop.permute.xlu0 %3190  ;;  %v2176_v3 = vpop.f32.mrf.mxu1  ;;  %v1854_v25 = vshll.u32 %v1705_v22, 16 }
 0x25b   : > { %4035 = vst.msk [vmem:[#allocation2 + $0xa4] sm:$0xf] %vm516_vm0, %v11880_v26  ;;  %v3319_v55 = vsel %vm1673_vm6, %v3255_v1, %v3191_v19  ;;  %v2255_v32 = vmax.f32 %v2185_v56, 0.0  ;;  %v2177_v6 = vadd.f32 %v14740_v58, %v2176_v3  ;;  %v3193_v45 = vpop.permute.xlu1 %3192  ;;  %v3428_v53 = vor.u32 %v3427_v21, %v3424_v31 }
 0x25c   : > { %v11878_v41 = vpack.c.bf16 %v2252_v60, %v2252_v60  ;;  %v1853_v5 = vrot.slane %v1851_v12, 3  ;;  %v3437_v33 = vshrl.u32 %v3319_v55, 16  ;;  %v1856_v16 = vrot.slane %v1854_v25, 4 }
 0x25d   : > { %v3440_v29 = vshll.u32 %v3319_v55, 16  ;;  %v11881_v20 = vpack.c.bf16 %v2255_v32, %v2255_v32  ;;  %v2253_v8 = vmax.f32 %v2177_v6, 0.0  ;;  %v3321_v2 = vsel %vm1673_vm6, %v3257_v46, %v3193_v45 }
 0x25e   : > { %4033 = vst.msk [vmem:[#allocation2 + $0x94] sm:$0xf] %vm516_vm0, %v11878_v41  ;;  %v3129_v59 = vpop.permute.xlu0 %3128  ;;  %v3436_v4 = vsel %vm1738_vm8, %v3428_v53, %v3435_v54  ;;  %v1850_v15 = vor.u32 %v1849_v14, %v1846_v27  ;;  %v1857_v38 = vor.u32 %v1856_v16, %v1853_v5  ;;  %v3444_v57 = vshrl.u32 %v3321_v2, 16 }
 0x25f   : > { %4036 = vst.msk [vmem:[#allocation2 + $0xa8] sm:$0xf] %vm516_vm0, %v11881_v20  ;;  %v11879_v37 = vpack.c.bf16 %v2253_v8, %v2253_v8  ;;  %12193 = vmatprep.mubr.msk.bf16.mxu1 %vm2022_vm9, %v3436_v4  ;;  %v3131_v48 = vpop.permute.xlu1 %3130  ;;  %v3439_v10 = vrot.slane %v3437_v33, 3  ;;  %v3442_v1 = vrot.slane %v3440_v29, 4  ;;  %v3447_v28 = vshll.u32 %v3321_v2, 16 }
 0x260   : > { %v3446_v31 = vrot.slane %v3444_v57, 3  ;;  %v1858_v46 = vsel %vm1738_vm8, %v1850_v15, %v1857_v38  ;;  %v3259_v42 = vsel %vm1608_vm7, %v18944_v7, %v3129_v59  ;;  %v3261_v0 = vsel %vm1608_vm7, %v14375_v18, %v3131_v48 }
 0x261   : > { %4034 = vst.msk [vmem:[#allocation2 + $0x98] sm:$0xf] %vm516_vm0, %v11879_v37  ;;  %v3449_v61 = vrot.slane %v3447_v28, 4  ;;  %12156 = vmatmul.mubr.msk.bf16.gmra.mxu0 %vm2022_vm9, %v1858_v46  ;;  %v3443_v52 = vor.u32 %v3442_v1, %v3439_v10 }
 0x262   : > { %v3133_v47 = vpop.permute.xlu0 %3132 }
 0x263   : > { %v3135_v24 = vpop.permute.xlu1 %3134  ;;  %v3450_v39 = vor.u32 %v3449_v61, %v3446_v31  ;;  %v3263_v14 = vsel %vm1608_vm7, %v14417_v13, %v3133_v47 }
 0x264   : > { %v3265_v18 = vsel %vm1608_vm7, %v14409_v50, %v3135_v24 }
 0x265   : > { %v3451_v62 = vsel %vm1738_vm8, %v3443_v52, %v3450_v39 }
 0x266   : > { %v3195_v21 = vpop.permute.xlu0 %3194  ;;  %12194 = vmatmul.mubr.msk.bf16.gmra.mxu1 %vm2022_vm9, %v3451_v62 }
 0x267   : > { %v3323_v36 = vsel %vm1673_vm6, %v3259_v42, %v3195_v21  ;;  %v3197_v49 = vpop.permute.xlu1 %3196 }
 0x268   : > { %v3452_v54 = vshrl.u32 %v3323_v36, 16  ;;  %v3455_v26 = vshll.u32 %v3323_v36, 16  ;;  %v3325_v22 = vsel %vm1673_vm6, %v3261_v0, %v3197_v49 }
 0x269   : > { %v3459_v56 = vshrl.u32 %v3325_v22, 16  ;;  %v3462_v27 = vshll.u32 %v3325_v22, 16 }
 0x26a   : > { %v3454_v60 = vrot.slane %v3452_v54, 3  ;;  %v3457_v12 = vrot.slane %v3455_v26, 4  ;;  %v3199_v19 = vpop.permute.xlu0 %3198 }
 0x26b   : > { %v3461_v3 = vrot.slane %v3459_v56, 3  ;;  %v3464_v25 = vrot.slane %v3462_v27, 4  ;;  %v3327_v55 = vsel %vm1673_vm6, %v3263_v14, %v3199_v19  ;;  %v3201_v32 = vpop.permute.xlu1 %3200 }
 0x26c   : > { %v3467_v6 = vshrl.u32 %v3327_v55, 16  ;;  %v3470_v45 = vshll.u32 %v3327_v55, 16  ;;  %v3329_v53 = vsel %vm1673_vm6, %v3265_v18, %v3201_v32  ;;  %v3458_v41 = vor.u32 %v3457_v12, %v3454_v60 }
 0x26d   : > { %v3465_v5 = vor.u32 %v3464_v25, %v3461_v3  ;;  %v3474_v33 = vshrl.u32 %v3329_v53, 16  ;;  %v3477_v16 = vshll.u32 %v3329_v53, 16 }
 0x26e   : > { %v3469_v13 = vrot.slane %v3467_v6, 3  ;;  %v3472_v29 = vrot.slane %v3470_v45, 4  ;;  %v3137_v20 = vpop.permute.xlu0 %3136 }
 0x26f   : > { %v3476_v8 = vrot.slane %v3474_v33, 3  ;;  %v3479_v2 = vrot.slane %v3477_v16, 4  ;;  %v3139_v59 = vpop.permute.xlu1 %3138  ;;  %v3466_v50 = vsel %vm1738_vm8, %v3458_v41, %v3465_v5  ;;  %v3267_v52 = vsel %vm1608_vm7, %v14459_v44, %v3137_v20 }
 0x270   : > { %v12165_v4 = vpop.f32.mrf.mxu1  ;;  %12197 = vmatprep.mubr.msk.bf16.mxu1 %vm2022_vm9, %v3466_v50  ;;  %v3473_v15 = vor.u32 %v3472_v29, %v3469_v13  ;;  %v3269_v39 = vsel %vm1608_vm7, %v14466_v11, %v3139_v59 }
 0x271   : > { %v3480_v38 = vor.u32 %v3479_v2, %v3476_v8  ;;  %v2198_v37 = vadd.f32 %v12165_v4, %v14740_v58 }
 0x272   : > { %v3141_v57 = vpop.permute.xlu0 %3140  ;;  %v2189_v48 = vpop.f32.mrf.mxu1 }
 0x273   : > { %v2258_v10 = vmax.f32 %v2198_v37, 0.0  ;;  %v2190_v1 = vadd.f32 %v14740_v58, %v2189_v48  ;;  %v3143_v28 = vpop.permute.xlu1 %3142  ;;  %v3481_v31 = vsel %vm1738_vm8, %v3473_v15, %v3480_v38  ;;  %v3271_v14 = vsel %vm1608_vm7, %v14490_v30, %v3141_v57  ;;  %v18945_v57 = vld [vmem:[#allocation6_spill] sm:$0xff] }
 0x274   : > { %v12166_v46 = vpop.f32.mrf.mxu1  ;;  %12198 = vmatmul.mubr.msk.bf16.gmra.mxu1 %vm2022_vm9, %v3481_v31  ;;  %v3273_v60 = vsel %vm1608_vm7, %v14496_v34, %v3143_v28 }
 0x275   : > { %v11884_v61 = vpack.c.bf16 %v2258_v10, %v2258_v10  ;;  %v2256_v47 = vmax.f32 %v2190_v1, 0.0  ;;  %v2201_v24 = vadd.f32 %v12166_v46, %v14740_v58  ;;  %v18946_v1 = vld [vmem:[#allocation7_spill] sm:$0xff] }
 0x276   : > { %v3203_v7 = vpop.permute.xlu0 %3202  ;;  %v2192_v42 = vpop.f32.mrf.mxu1 }
 0x277   : > { %4039 = vst.msk [vmem:[#allocation2 + $0xc4] sm:$0xf] %vm516_vm0, %v11884_v61  ;;  %v11882_v21 = vpack.c.bf16 %v2256_v47, %v2256_v47  ;;  %v3331_v62 = vsel %vm1673_vm6, %v3267_v52, %v3203_v7  ;;  %v2259_v0 = vmax.f32 %v2201_v24, 0.0  ;;  %v2193_v36 = vadd.f32 %v14740_v58, %v2192_v42  ;;  %v3205_v49 = vpop.permute.xlu1 %3204  ;;  %v18947_v7 = vld [vmem:[#allocation24_spill] sm:$0xff] }
 0x278   : > { %v3482_v54 = vshrl.u32 %v3331_v62, 16  ;;  %v3485_v26 = vshll.u32 %v3331_v62, 16  ;;  %v3333_v22 = vsel %vm1673_vm6, %v3269_v39, %v3205_v49 }
 0x279   : > { %4037 = vst.msk [vmem:[#allocation2 + $0xb4] sm:$0xf] %vm516_vm0, %v11882_v21  ;;  %v11885_v44 = vpack.c.bf16 %v2259_v0, %v2259_v0  ;;  %v2257_v56 = vmax.f32 %v2193_v36, 0.0  ;;  %v3489_v11 = vshrl.u32 %v3333_v22, 16  ;;  %v3492_v27 = vshll.u32 %v3333_v22, 16  ;;  %v18948_v36 = vld [vmem:[#allocation10_spill] sm:$0xff] }
 0x27a   : > { %v3484_v12 = vrot.slane %v3482_v54, 3  ;;  %v3487_v19 = vrot.slane %v3485_v26, 4  ;;  %v3207_v18 = vpop.permute.xlu0 %3206 }
 0x27b   : > { %4040 = vst.msk [vmem:[#allocation2 + $0xc8] sm:$0xf] %vm516_vm0, %v11885_v44  ;;  %v11883_v3 = vpack.c.bf16 %v2257_v56, %v2257_v56  ;;  %v3491_v25 = vrot.slane %v3489_v11, 3  ;;  %v3494_v55 = vrot.slane %v3492_v27, 4  ;;  %v3335_v32 = vsel %vm1673_vm6, %v3271_v14, %v3207_v18  ;;  %v3209_v6 = vpop.permute.xlu1 %3208 }
 0x27c   : > { %v3497_v45 = vshrl.u32 %v3335_v32, 16  ;;  %v3500_v53 = vshll.u32 %v3335_v32, 16  ;;  %v3337_v41 = vsel %vm1673_vm6, %v3273_v60, %v3209_v6  ;;  %v3488_v5 = vor.u32 %v3487_v19, %v3484_v12 }
 0x27d   : > { %4038 = vst.msk [vmem:[#allocation2 + $0xb8] sm:$0xf] %vm516_vm0, %v11883_v3  ;;  %v3495_v30 = vor.u32 %v3494_v55, %v3491_v25  ;;  %v3504_v34 = vshrl.u32 %v3337_v41, 16  ;;  %v3507_v33 = vshll.u32 %v3337_v41, 16 }
 0x27e   : > { %v3499_v16 = vrot.slane %v3497_v45, 3  ;;  %v3502_v13 = vrot.slane %v3500_v53, 4  ;;  %v3145_v29 = vpop.permute.xlu0 %3144 }
 0x27f   : > { %v3506_v20 = vrot.slane %v3504_v34, 3  ;;  %v3509_v8 = vrot.slane %v3507_v33, 4  ;;  %v3147_v2 = vpop.permute.xlu1 %3146  ;;  %v3496_v59 = vsel %vm1738_vm8, %v3488_v5, %v3495_v30  ;;  %v3275_v48 = vsel %vm1608_vm7, %v18945_v57, %v3145_v29 }
 0x280   : > { %12201 = vmatprep.mubr.msk.bf16.mxu1 %vm2022_vm9, %v3496_v59  ;;  %v3503_v50 = vor.u32 %v3502_v13, %v3499_v16  ;;  %v3277_v28 = vsel %vm1608_vm7, %v18946_v1, %v3147_v2 }
 0x281   : > { %v3510_v4 = vor.u32 %v3509_v8, %v3506_v20 }
 0x282   : > { %v3149_v15 = vpop.permute.xlu0 %3148 }
 0x283   : > { %v3151_v38 = vpop.permute.xlu1 %3150  ;;  %v3511_v37 = vsel %vm1738_vm8, %v3503_v50, %v3510_v4  ;;  %v3279_v42 = vsel %vm1608_vm7, %v18947_v7, %v3149_v15 }
 0x284   : > { %12202 = vmatmul.mubr.msk.bf16.gmra.mxu1 %vm2022_vm9, %v3511_v37  ;;  %v3281_v49 = vsel %vm1608_vm7, %v18948_v36, %v3151_v38 }
 0x286   : > { %v3211_v10 = vpop.permute.xlu0 %3210 }
 0x287   : > { %v3339_v31 = vsel %vm1673_vm6, %v3275_v48, %v3211_v10  ;;  %v3213_v46 = vpop.permute.xlu1 %3212 }
 0x288   : > { %v3512_v61 = vshrl.u32 %v3339_v31, 16  ;;  %v3515_v47 = vshll.u32 %v3339_v31, 16  ;;  %v3341_v24 = vsel %vm1673_vm6, %v3277_v28, %v3213_v46 }
 0x289   : > { %v3519_v52 = vshrl.u32 %v3341_v24, 16  ;;  %v3522_v39 = vshll.u32 %v3341_v24, 16 }
 0x28a   : > { %v3514_v21 = vrot.slane %v3512_v61, 3  ;;  %v3517_v62 = vrot.slane %v3515_v47, 4  ;;  %v3215_v0 = vpop.permute.xlu0 %3214 }
 0x28b   : > { %v3521_v54 = vrot.slane %v3519_v52, 3  ;;  %v3524_v26 = vrot.slane %v3522_v39, 4  ;;  %v3343_v22 = vsel %vm1673_vm6, %v3279_v42, %v3215_v0  ;;  %v3217_v44 = vpop.permute.xlu1 %3216 }
 0x28c   : > { %v3527_v56 = vshrl.u32 %v3343_v22, 16  ;;  %v3530_v11 = vshll.u32 %v3343_v22, 16  ;;  %v3345_v27 = vsel %vm1673_vm6, %v3281_v49, %v3217_v44  ;;  %v12169_v14 = vpop.f32.mrf.mxu1  ;;  %v3518_v3 = vor.u32 %v3517_v62, %v3514_v21 }
 0x28d   : > { %v3525_v60 = vor.u32 %v3524_v26, %v3521_v54  ;;  %v3534_v12 = vshrl.u32 %v3345_v27, 16  ;;  %v3537_v19 = vshll.u32 %v3345_v27, 16  ;;  %v2214_v18 = vadd.f32 %v12169_v14, %v14740_v58 }
 0x28e   : > { %v3529_v25 = vrot.slane %v3527_v56, 3  ;;  %v3532_v55 = vrot.slane %v3530_v11, 4  ;;  %v3153_v32 = vpop.permute.xlu0 %3152  ;;  %v2205_v6 = vpop.f32.mrf.mxu1 }
 0x28f   : > { %v3536_v45 = vrot.slane %v3534_v12, 3  ;;  %v3539_v53 = vrot.slane %v3537_v19, 4  ;;  %v2262_v41 = vmax.f32 %v2214_v18, 0.0  ;;  %v3155_v5 = vpop.permute.xlu1 %3154  ;;  %v2206_v30 = vadd.f32 %v14740_v58, %v2205_v6 }
 0x290   : > { %v12170_v34 = vpop.f32.mrf.mxu1  ;;  %v3526_v33 = vsel %vm1738_vm8, %v3518_v3, %v3525_v60  ;;  %v3533_v16 = vor.u32 %v3532_v55, %v3529_v25  ;;  %v3283_v10 = vsel %vm1608_vm7, %v14567_v17, %v3153_v32  ;;  %v3285_v28 = vsel %vm1608_vm7, %v14571_v51, %v3155_v5 }
 0x291   : > { %v3540_v13 = vor.u32 %v3539_v53, %v3536_v45  ;;  %v11888_v29 = vpack.c.bf16 %v2262_v41, %v2262_v41  ;;  %v2217_v20 = vadd.f32 %v12170_v34, %v14740_v58  ;;  %12205 = vmatprep.mubr.msk.bf16.mxu1 %vm2022_vm9, %v3526_v33  ;;  %v2260_v8 = vmax.f32 %v2206_v30, 0.0 }
 0x292   : > { %v3157_v2 = vpop.permute.xlu0 %3156  ;;  %v2208_v59 = vpop.f32.mrf.mxu1 }
 0x293   : > { %4043 = vst.msk [vmem:[#allocation2 + $0xe4] sm:$0xf] %vm516_vm0, %v11888_v29  ;;  %v2263_v50 = vmax.f32 %v2217_v20, 0.0  ;;  %v2209_v4 = vadd.f32 %v14740_v58, %v2208_v59  ;;  %v3159_v15 = vpop.permute.xlu1 %3158  ;;  %v3541_v38 = vsel %vm1738_vm8, %v3533_v16, %v3540_v13  ;;  %v11886_v37 = vpack.c.bf16 %v2260_v8, %v2260_v8 }
 0x294   : > { %12206 = vmatmul.mubr.msk.bf16.gmra.mxu1 %vm2022_vm9, %v3541_v38  ;;  %v3287_v7 = vsel %vm1608_vm7, %v14601_v43, %v3157_v2  ;;  %v3289_v62 = vsel %vm1608_vm7, %v14612_v9, %v3159_v15 }
 0x295   : > { %v11889_v57 = vpack.c.bf16 %v2263_v50, %v2263_v50  ;;  %v2261_v48 = vmax.f32 %v2209_v4, 0.0  ;;  %4041 = vst.msk [vmem:[#allocation2 + $0xd4] sm:$0xf] %vm516_vm0, %v11886_v37 }
 0x296   : > { %v3219_v1 = vpop.permute.xlu0 %3218 }
 0x297   : > { %4044 = vst.msk [vmem:[#allocation2 + $0xe8] sm:$0xf] %vm516_vm0, %v11889_v57  ;;  %v11887_v31 = vpack.c.bf16 %v2261_v48, %v2261_v48  ;;  %v3347_v46 = vsel %vm1673_vm6, %v3283_v10, %v3219_v1  ;;  %v3221_v61 = vpop.permute.xlu1 %3220 }
 0x298   : > { %v3542_v47 = vshrl.u32 %v3347_v46, 16  ;;  %v3545_v24 = vshll.u32 %v3347_v46, 16  ;;  %v3349_v52 = vsel %vm1673_vm6, %v3285_v28, %v3221_v61 }
 0x299   : > { %4042 = vst.msk [vmem:[#allocation2 + $0xd8] sm:$0xf] %vm516_vm0, %v11887_v31  ;;  %v3549_v39 = vshrl.u32 %v3349_v52, 16  ;;  %v3552_v17 = vshll.u32 %v3349_v52, 16 }
 0x29a   : > { %v3544_v42 = vrot.slane %v3542_v47, 3  ;;  %v3547_v21 = vrot.slane %v3545_v24, 4  ;;  %v3223_v51 = vpop.permute.xlu0 %3222 }
 0x29b   : > { %v3551_v0 = vrot.slane %v3549_v39, 3  ;;  %v3554_v36 = vrot.slane %v3552_v17, 4  ;;  %v3351_v49 = vsel %vm1673_vm6, %v3287_v7, %v3223_v51  ;;  %v3225_v54 = vpop.permute.xlu1 %3224 }
 0x29c   : > { %v3557_v26 = vshrl.u32 %v3351_v49, 16  ;;  %v3560_v22 = vshll.u32 %v3351_v49, 16  ;;  %v3353_v44 = vsel %vm1673_vm6, %v3289_v62, %v3225_v54  ;;  %v3548_v56 = vor.u32 %v3547_v21, %v3544_v42 }
 0x29d   : > { %v3555_v11 = vor.u32 %v3554_v36, %v3551_v0  ;;  %v3564_v27 = vshrl.u32 %v3353_v44, 16  ;;  %v3567_v14 = vshll.u32 %v3353_v44, 16 }
 0x29e   : > { %v3559_v43 = vrot.slane %v3557_v26, 3  ;;  %v3562_v60 = vrot.slane %v3560_v22, 4  ;;  %v3161_v12 = vpop.permute.xlu0 %3160 }
 0x29f   : > { %v3566_v19 = vrot.slane %v3564_v27, 3  ;;  %v3569_v18 = vrot.slane %v3567_v14, 4  ;;  %v3163_v3 = vpop.permute.xlu1 %3162  ;;  %v3556_v9 = vsel %vm1738_vm8, %v3548_v56, %v3555_v11  ;;  %v3291_v53 = vsel %vm1608_vm7, %v14637_v63, %v3161_v12 }
 0x2a0   : > { %12209 = vmatprep.mubr.msk.bf16.mxu1 %vm2022_vm9, %v3556_v9  ;;  %v3563_v25 = vor.u32 %v3562_v60, %v3559_v43  ;;  %v3293_v5 = vsel %vm1608_vm7, %v14642_v35, %v3163_v3 }
 0x2a1   : > { %v3570_v55 = vor.u32 %v3569_v18, %v3566_v19 }
 0x2a2   : > { %v3165_v32 = vpop.permute.xlu0 %3164 }
 0x2a3   : > { %v3167_v6 = vpop.permute.xlu1 %3166  ;;  %v3571_v45 = vsel %vm1738_vm8, %v3563_v25, %v3570_v55  ;;  %v3295_v8 = vsel %vm1608_vm7, %v14661_v40, %v3165_v32 }
 0x2a4   : > { %12210 = vmatmul.mubr.msk.bf16.gmra.mxu1 %vm2022_vm9, %v3571_v45  ;;  %v3297_v63 = vsel %vm1608_vm7, %v14665_v23, %v3167_v6 }
 0x2a6   : > { %v3227_v41 = vpop.permute.xlu0 %3226 }
 0x2a7   : > { %v3355_v30 = vsel %vm1673_vm6, %v3291_v53, %v3227_v41  ;;  %v3229_v34 = vpop.permute.xlu1 %3228 }
 0x2a8   : > { %v3572_v33 = vshrl.u32 %v3355_v30, 16  ;;  %v3575_v16 = vshll.u32 %v3355_v30, 16  ;;  %v3357_v13 = vsel %vm1673_vm6, %v3293_v5, %v3229_v34  ;;  %v12570_v30 = vld [vmem:[#allocation2 + $0x2c] ss:$0 sps:$4 sm:$0x11]  }
 0x2a9   : > { %v3579_v29 = vshrl.u32 %v3357_v13, 16  ;;  %v3582_v20 = vshll.u32 %v3357_v13, 16  ;;  %v12572_v34 = vld [vmem:[#allocation2 + $0x1c] ss:$0 sps:$4 sm:$0x11]  }
 0x2aa   : > { %v3574_v2 = vrot.slane %v3572_v33, 3  ;;  %v3577_v59 = vrot.slane %v3575_v16, 4  ;;  %v3231_v50 = vpop.permute.xlu0 %3230 }
 0x2ab   : > { %v3581_v4 = vrot.slane %v3579_v29, 3  ;;  %v3584_v35 = vrot.slane %v3582_v20, 4  ;;  %v3359_v15 = vsel %vm1673_vm6, %v3295_v8, %v3231_v50  ;;  %v3233_v38 = vpop.permute.xlu1 %3232  ;;  %v4524_v29 = vrot.slane %v12570_v30, 5 }
 0x2ac   : > { %v3587_v37 = vshrl.u32 %v3359_v15, 16  ;;  %v3590_v57 = vshll.u32 %v3359_v15, 16  ;;  %v3361_v48 = vsel %vm1673_vm6, %v3297_v63, %v3233_v38  ;;  %v3578_v10 = vor.u32 %v3577_v59, %v3574_v2 }
 0x2ad   : > { %v3585_v1 = vor.u32 %v3584_v35, %v3581_v4  ;;  %v3594_v28 = vshrl.u32 %v3361_v48, 16  ;;  %v3597_v31 = vshll.u32 %v3361_v48, 16  ;;  %v4521_v2 = vrot.slane %v12572_v34, 5 }
 0x2ae   : > { %v3589_v40 = vrot.slane %v3587_v37, 3  ;;  %v3592_v46 = vrot.slane %v3590_v57, 4 }
 0x2af   : > { %v3596_v61 = vrot.slane %v3594_v28, 3  ;;  %v3599_v47 = vrot.slane %v3597_v31, 4  ;;  %v12145_v24 = vpop.f32.mrf.mxu0  ;;  %v3586_v23 = vsel %vm1738_vm8, %v3578_v10, %v3585_v1 }
 0x2b0   : > { %v2118_v52 = vadd.f32 %v12145_v24, %v14740_v58  ;;  %12213 = vmatprep.mubr.msk.bf16.mxu1 %vm2022_vm9, %v3586_v23  ;;  %v3593_v39 = vor.u32 %v3592_v46, %v3589_v40  ;;  %v14910_v24 = vld [vmem:[%s18667_s7] ss:$0 sm:$0xff] }
 0x2b1   : > { %v3600_v17 = vor.u32 %v3599_v47, %v3596_v61  ;;  %v2109_v7 = vpop.f32.mrf.mxu0 }
 0x2b2   : > { %v2238_v42 = vmax.f32 %v2118_v52, 0.0  ;;  %v2110_v21 = vadd.f32 %v14740_v58, %v2109_v7 }
 0x2b3   : > { %v12146_v51 = vpop.f32.mrf.mxu0  ;;  %v12173_v62 = vpop.f32.mrf.mxu1  ;;  %v3601_v0 = vsel %vm1738_vm8, %v3593_v39, %v3600_v17 }
 0x2b4   : > { %v11864_v36 = vpack.c.bf16 %v2238_v42, %v2238_v42  ;;  %v2236_v49 = vmax.f32 %v2110_v21, 0.0  ;;  %v2121_v54 = vadd.f32 %v12146_v51, %v14740_v58  ;;  %v2230_v26 = vadd.f32 %v12173_v62, %v14740_v58  ;;  %12214 = vmatmul.mubr.msk.bf16.gmra.mxu1 %vm2022_vm9, %v3601_v0 }
 0x2b5   : > { %v2112_v22 = vpop.f32.mrf.mxu0  ;;  %v2221_v44 = vpop.f32.mrf.mxu1 }
 0x2b6   : > { %4019 = vst.msk [vmem:[#allocation2 + $0x24] sm:$0xf] %vm516_vm0, %v11864_v36  ;;  %v11862_v56 = vpack.c.bf16 %v2236_v49, %v2236_v49  ;;  %v2239_v11 = vmax.f32 %v2121_v54, 0.0  ;;  %v2266_v27 = vmax.f32 %v2230_v26, 0.0  ;;  %v2113_v14 = vadd.f32 %v14740_v58, %v2112_v22 }
 0x2b7   : > { %v2222_v43 = vadd.f32 %v14740_v58, %v2221_v44  ;;  %v12174_v60 = vpop.f32.mrf.mxu1 }
 0x2b8   : > { %4017 = vst.msk [vmem:[#allocation2 + $0x14] sm:$0xf] %vm516_vm0, %v11862_v56  ;;  %v11865_v12 = vpack.c.bf16 %v2239_v11, %v2239_v11  ;;  %v11892_v19 = vpack.c.bf16 %v2266_v27, %v2266_v27  ;;  %v2237_v18 = vmax.f32 %v2113_v14, 0.0  ;;  %v2233_v3 = vadd.f32 %v12174_v60, %v14740_v58 }
 0x2b9   : > { %v2264_v9 = vmax.f32 %v2222_v43, 0.0  ;;  %v2224_v25 = vpop.f32.mrf.mxu1 }
 0x2ba   : > { %4020 = vst.msk [vmem:[#allocation2 + $0x28] sm:$0xf] %vm516_vm0, %v11865_v12  ;;  %4047 = vst.msk [vmem:[#allocation2 + $0x104] sm:$0xf] %vm516_vm0, %v11892_v19  ;;  %v11863_v55 = vpack.c.bf16 %v2237_v18, %v2237_v18  ;;  %v2267_v32 = vmax.f32 %v2233_v3, 0.0  ;;  %v2225_v6 = vadd.f32 %v14740_v58, %v2224_v25 }
 0x2bb   : > { %v11890_v45 = vpack.c.bf16 %v2264_v9, %v2264_v9 }
 0x2bc   : > { %4018 = vst.msk [vmem:[#allocation2 + $0x18] sm:$0xf] %vm516_vm0, %v11863_v55  ;;  %v11893_v53 = vpack.c.bf16 %v2267_v32, %v2267_v32  ;;  %v2265_v41 = vmax.f32 %v2225_v6, 0.0  ;;  %v12575_v32 = vld [vmem:[#allocation2 + $0x3c] ss:$0 sps:$4 sm:$0x11]  }
 0x2bd   : > { %4045 = vst.msk [vmem:[#allocation2 + $0xf4] sm:$0xf] %vm516_vm0, %v11890_v45  ;;  %v14886_v33 = vld [vmem:[#allocation2 + $0x24] sm:$0xf]  ;;  %v4527_v30 = vrot.slane %v12575_v32, 5 }
 0x2be   : > { %4048 = vst.msk [vmem:[#allocation2 + $0x108] sm:$0xf] %vm516_vm0, %v11893_v53  ;;  %v11891_v5 = vpack.c.bf16 %v2265_v41, %v2265_v41 }
 0x2bf   : > { %v14892_v20 = vld [vmem:[#allocation2 + $0x14] sm:$0xf] }
 0x2c0   : > { %4046 = vst.msk [vmem:[#allocation2 + $0xf8] sm:$0xf] %vm516_vm0, %v11891_v5 }
 0x2c1   : > { %v14888_v16 = vld [vmem:[#allocation2 + $0x28] sm:$0xf] }
 0x2c2   : > { %v11406_v13 = vcombine.low %v14886_v33, %v14888_v16 }
 0x2c3   : > { %v14894_v8 = vld [vmem:[#allocation2 + $0x18] sm:$0xf] }
 0x2c4   : > { %v4523_v59 = vrot.slane %v11406_v13, 5  ;;  %v11405_v50 = vcombine.low %v14892_v20, %v14894_v8  ;;  %v4300_v63 = vshrl.u32 %v11406_v13, 16  ;;  %v4303_v4 = vshll.u32 %v11406_v13, 16 }
 0x2c6   : > { %4579 = vrot.lane.b32.xlu1 %v4523_v59, %s12879_s29  ;;  %v4525_v35 = vsel %vm1155_vm2, %v4523_v59, %v4524_v29  ;;  %v4520_v15 = vrot.slane %v11405_v50, 5  ;;  %v4292_v38 = vshrl.u32 %v11405_v50, 16  ;;  %v4295_v37 = vshll.u32 %v11405_v50, 16 }
 0x2c7   : > { %4581 = vrot.lane.b32.xlu0 %v4525_v35, %s12879_s29  ;;  %v4302_v48 = vrot.slane %v4300_v63, 4  ;;  %v4305_v10 = vrot.slane %v4303_v4, 5 }
 0x2c8   : > { %v4522_v57 = vsel %vm1155_vm2, %v4520_v15, %v4521_v2  ;;  %v4294_v1 = vrot.slane %v4292_v38, 4  ;;  %v4297_v28 = vrot.slane %v4295_v37, 5 }
 0x2c9   : > { %v4306_v31 = vor.u32 %v4305_v10, %v4302_v48  ;;  %v12576_v48 = vld [vmem:[#allocation2 + $0x4c] ss:$0 sps:$4 sm:$0x11]  }
 0x2ca   : > { %4577 = vrot.lane.b32.xlu1 %v4522_v57, %s12879_s29  ;;  %v4298_v40 = vor.u32 %v4297_v28, %v4294_v1  ;;  %v4530_v28 = vrot.slane %v12576_v48, 5 }
 0x2cb   : > { %4575 = vrot.lane.b32.xlu0 %v4520_v15, %s12879_s29 }
 0x2ce   : > { %4431 = vrot.lane.b32.xlu1 %v4306_v31, %s12878_s28 }
 0x2cf   : > { %4429 = vrot.lane.b32.xlu0 %v4298_v40, %s12878_s28 }
 0x2e0   : > { %v12149_v46 = vpop.f32.mrf.mxu0 }
 0x2e1   : > { %v2134_v61 = vadd.f32 %v12149_v46, %v14740_v58 }
 0x2e2   : > { %v2125_v47 = vpop.f32.mrf.mxu0 }
 0x2e3   : > { %v2242_v23 = vmax.f32 %v2134_v61, 0.0  ;;  %v2126_v52 = vadd.f32 %v14740_v58, %v2125_v47 }
 0x2e4   : > { %v12150_v39 = vpop.f32.mrf.mxu0  ;;  %v12187_v17 = vpop.f32.mrf.mxu1 }
 0x2e5   : > { %v11868_v7 = vpack.c.bf16 %v2242_v23, %v2242_v23  ;;  %v2240_v42 = vmax.f32 %v2126_v52, 0.0  ;;  %v2137_v21 = vadd.f32 %v12150_v39, %v14740_v58  ;;  %v3739_v51 = vadd.f32 %v12187_v17, %v14910_v24 }
 0x2e6   : > { %v2128_v62 = vpop.f32.mrf.mxu0  ;;  %v3730_v0 = vpop.f32.mrf.mxu1 }
 0x2e7   : > { %4023 = vst.msk [vmem:[#allocation2 + $0x44] sm:$0xf] %vm516_vm0, %v11868_v7  ;;  %v11866_v36 = vpack.c.bf16 %v2240_v42, %v2240_v42  ;;  %v2243_v49 = vmax.f32 %v2137_v21, 0.0  ;;  %v3859_v54 = vmax.f32 %v3739_v51, 0.0  ;;  %v2129_v26 = vadd.f32 %v14740_v58, %v2128_v62 }
 0x2e8   : > { %v3731_v22 = vadd.f32 %v14910_v24, %v3730_v0  ;;  %v12188_v44 = vpop.f32.mrf.mxu1 }
 0x2e9   : > { %4021 = vst.msk [vmem:[#allocation2 + $0x34] sm:$0xf] %vm516_vm0, %v11866_v36  ;;  %v11869_v56 = vpack.c.bf16 %v2243_v49, %v2243_v49  ;;  %v11896_v11 = vpack.c.bf16 %v3859_v54, %v3859_v54  ;;  %v2241_v27 = vmax.f32 %v2129_v26, 0.0  ;;  %v3742_v14 = vadd.f32 %v12188_v44, %v14910_v24 }
 0x2ea   : > { %v3857_v43 = vmax.f32 %v3731_v22, 0.0  ;;  %v3733_v60 = vpop.f32.mrf.mxu1 }
 0x2eb   : > { %4024 = vst.msk [vmem:[#allocation2 + $0x48] sm:$0xf] %vm516_vm0, %v11869_v56  ;;  %5752 = vst.msk [vmem:[#allocation2 + $0x24] sm:$0xf] %vm516_vm0, %v11896_v11  ;;  %v11867_v12 = vpack.c.bf16 %v2241_v27, %v2241_v27  ;;  %v3860_v19 = vmax.f32 %v3742_v14, 0.0  ;;  %v3734_v18 = vadd.f32 %v14910_v24, %v3733_v60 }
 0x2ec   : > { %v11894_v3 = vpack.c.bf16 %v3857_v43, %v3857_v43 }
 0x2ed   : > { %4022 = vst.msk [vmem:[#allocation2 + $0x38] sm:$0xf] %vm516_vm0, %v11867_v12  ;;  %v11897_v9 = vpack.c.bf16 %v3860_v19, %v3860_v19  ;;  %v3858_v25 = vmax.f32 %v3734_v18, 0.0 }
 0x2ee   : > { %5750 = vst.msk [vmem:[#allocation2 + $0x14] sm:$0xf] %vm516_vm0, %v11894_v3  ;;  %v14927_v6 = vld [vmem:[#allocation2 + $0x44] sm:$0xf] }
 0x2ef   : > { %5753 = vst.msk [vmem:[#allocation2 + $0x28] sm:$0xf] %vm516_vm0, %v11897_v9  ;;  %v11895_v55 = vpack.c.bf16 %v3858_v25, %v3858_v25  ;;  %v12578_v9 = vld [vmem:[#allocation2 + $0x5c] ss:$0 sps:$4 sm:$0x11]  }
 0x2f0   : > { %v14933_v41 = vld [vmem:[#allocation2 + $0x34] sm:$0xf] }
 0x2f1   : > { %5751 = vst.msk [vmem:[#allocation2 + $0x18] sm:$0xf] %vm516_vm0, %v11895_v55  ;;  %v12580_v55 = vld [vmem:[#allocation2 + $0x2c] ss:$0 sps:$4 sm:$0x11]  }
 0x2f2   : > { %v14929_v45 = vld [vmem:[#allocation2 + $0x48] sm:$0xf] }
 0x2f3   : > { %v11408_v53 = vcombine.low %v14927_v6, %v14929_v45 }
 0x2f4   : > { %v14935_v5 = vld [vmem:[#allocation2 + $0x38] sm:$0xf] }
 0x2f5   : > { %v4529_v34 = vrot.slane %v11408_v53, 5  ;;  %v11407_v13 = vcombine.low %v14933_v41, %v14935_v5  ;;  %v4316_v29 = vshrl.u32 %v11408_v53, 16  ;;  %v4319_v2 = vshll.u32 %v11408_v53, 16 }
 0x2f6   : > { %v5790_v25 = vld [vmem:[#allocation2 + $0x28] sm:$0xf] }
 0x2f7   : > { %4587 = vrot.lane.b32.xlu1 %v4529_v34, %s12879_s29  ;;  %v4526_v59 = vrot.slane %v11407_v13, 5  ;;  %v4318_v50 = vrot.slane %v4316_v29, 4  ;;  %v4321_v63 = vrot.slane %v4319_v2, 5  ;;  %v4308_v4 = vshrl.u32 %v11407_v13, 16 }
 0x2f8   : > { %v4311_v35 = vshll.u32 %v11407_v13, 16  ;;  %v4531_v52 = vsel %vm1155_vm2, %v4529_v34, %v4530_v28  ;;  %v4533_v13 = vrot.slane %v12578_v9, 5  ;;  %v5787_v2 = vld [vmem:[#allocation2 + $0x18] sm:$0xf] }
 0x2f9   : > { %v4528_v15 = vsel %vm1155_vm2, %v4526_v59, %v4527_v30  ;;  %v4322_v38 = vor.u32 %v4321_v63, %v4318_v50  ;;  %v4310_v37 = vrot.slane %v4308_v4, 4  ;;  %v5789_v30 = vld [vmem:[#allocation2 + $0x24] sm:$0xf]  ;;  %v5786_v4 = vld [vmem:[#allocation2 + $0x14] sm:$0xf] }
 0x2fa   : > { %4585 = vrot.lane.b32.xlu0 %v4528_v15, %s12879_s29  ;;  %v4313_v57 = vrot.slane %v4311_v35, 5  ;;  %v11532_v29 = vcombine.low %v5789_v30, %v5790_v25  ;;  %v6257_v35 = vrot.slane %v12580_v55, 5  ;;  %v11531_v15 = vcombine.low %v5786_v4, %v5787_v2  ;;  %v12584_v4 = vld [vmem:[#allocation2 + $0x3c] ss:$0 sps:$4 sm:$0x11]  }
 0x2fb   : > { %4583 = vrot.lane.b32.xlu1 %v4526_v59, %s12879_s29 }
 0x2fc   : > { %v4314_v1 = vor.u32 %v4313_v57, %v4310_v37  ;;  %v6256_v48 = vrot.slane %v11532_v29, 5 }
 0x2fe   : > { %4435 = vrot.lane.b32.xlu0 %v4322_v38, %s12878_s28 }
 0x300   : > { %v12153_v10 = vpop.f32.mrf.mxu0 }
 0x301   : > { %v2150_v31 = vadd.f32 %v12153_v10, %v14740_v58  ;;  %v12582_v10 = vld [vmem:[#allocation2 + $0x1c] ss:$0 sps:$4 sm:$0x11]  }
 0x302   : > { %4433 = vrot.lane.b32.xlu0 %v4314_v1, %s12878_s28  ;;  %v2141_v40 = vpop.f32.mrf.mxu0 }
 0x303   : > { %v2246_v46 = vmax.f32 %v2150_v31, 0.0  ;;  %v2142_v61 = vadd.f32 %v14740_v58, %v2141_v40  ;;  %v6033_v31 = vshrl.u32 %v11532_v29, 16  ;;  %v6036_v40 = vshll.u32 %v11532_v29, 16 }
 0x304   : > { %v12154_v47 = vpop.f32.mrf.mxu0  ;;  %v12191_v23 = vpop.f32.mrf.mxu1 }
 0x305   : > { %v11872_v39 = vpack.c.bf16 %v2246_v46, %v2246_v46  ;;  %v2244_v17 = vmax.f32 %v2142_v61, 0.0  ;;  %v2153_v7 = vadd.f32 %v12154_v47, %v14740_v58  ;;  %v3755_v42 = vadd.f32 %v12191_v23, %v14910_v24 }
 0x306   : > { %4589 = vrot.lane.b32.xlu0 %v4531_v52, %s12879_s29  ;;  %v2144_v21 = vpop.f32.mrf.mxu0  ;;  %v3746_v51 = vpop.f32.mrf.mxu1  ;;  %v6258_v46 = vsel %vm1155_vm2, %v6256_v48, %v6257_v35  ;;  %v6253_v61 = vrot.slane %v11531_v15, 5  ;;  %v6254_v47 = vrot.slane %v12582_v10, 5 }
 0x307   : > { %4027 = vst.msk [vmem:[#allocation2 + $0x64] sm:$0xf] %vm516_vm0, %v11872_v39  ;;  %v11870_v62 = vpack.c.bf16 %v2244_v17, %v2244_v17  ;;  %v2247_v0 = vmax.f32 %v2153_v7, 0.0  ;;  %v3863_v36 = vmax.f32 %v3755_v42, 0.0  ;;  %v2145_v49 = vadd.f32 %v14740_v58, %v2144_v21 }
 0x308   : > { %v3747_v54 = vadd.f32 %v14910_v24, %v3746_v51  ;;  %v12192_v26 = vpop.f32.mrf.mxu1  ;;  %v6035_v39 = vrot.slane %v6033_v31, 4  ;;  %v6038_v17 = vrot.slane %v6036_v40, 5  ;;  %v6025_v7 = vshrl.u32 %v11531_v15, 16 }
 0x309   : > { %4025 = vst.msk [vmem:[#allocation2 + $0x54] sm:$0xf] %vm516_vm0, %v11870_v62  ;;  %v11873_v22 = vpack.c.bf16 %v2247_v0, %v2247_v0  ;;  %v11900_v44 = vpack.c.bf16 %v3863_v36, %v3863_v36  ;;  %v2245_v56 = vmax.f32 %v2145_v49, 0.0  ;;  %v3758_v11 = vadd.f32 %v12192_v26, %v14910_v24  ;;  %v12794_v36 = vld [vmem:[%s18663_s3] ss:$0 sm:$0xff] }
 0x30a   : > { %v3861_v27 = vmax.f32 %v3747_v54, 0.0  ;;  %v3749_v14 = vpop.f32.mrf.mxu1  ;;  %v6028_v42 = vshll.u32 %v11531_v15, 16  ;;  %v6255_v21 = vsel %vm1155_vm2, %v6253_v61, %v6254_v47  ;;  %v6039_v26 = vor.u32 %v6038_v17, %v6035_v39 }
 0x30b   : > { %4028 = vst.msk [vmem:[#allocation2 + $0x68] sm:$0xf] %vm516_vm0, %v11873_v22  ;;  %5756 = vst.msk [vmem:[#allocation2 + $0x44] sm:$0xf] %vm516_vm0, %v11900_v44  ;;  %v11871_v43 = vpack.c.bf16 %v2245_v56, %v2245_v56  ;;  %v3864_v60 = vmax.f32 %v3758_v11, 0.0  ;;  %v3750_v58 = vadd.f32 %v14910_v24, %v3749_v14  ;;  %v6027_v22 = vrot.slane %v6025_v7, 4 }
 0x30c   : > { %v11898_v12 = vpack.c.bf16 %v3861_v27, %v3861_v27  ;;  %v6030_v44 = vrot.slane %v6028_v42, 5  ;;  %v6260_v7 = vrot.slane %v12584_v4, 5 }
 0x30d   : > { %4026 = vst.msk [vmem:[#allocation2 + $0x58] sm:$0xf] %vm516_vm0, %v11871_v43  ;;  %v11901_v19 = vpack.c.bf16 %v3864_v60, %v3864_v60  ;;  %v3862_v18 = vmax.f32 %v3750_v58, 0.0 }
 0x30e   : > { %5754 = vst.msk [vmem:[#allocation2 + $0x34] sm:$0xf] %vm516_vm0, %v11898_v12  ;;  %v14975_v23 = vld [vmem:[#allocation2 + $0x64] sm:$0xf] }
 0x30f   : > { %5757 = vst.msk [vmem:[#allocation2 + $0x48] sm:$0xf] %vm516_vm0, %v11901_v19  ;;  %v11899_v3 = vpack.c.bf16 %v3862_v18, %v3862_v18 }
 0x310   : > { %v14963_v32 = vld [vmem:[#allocation2 + $0x54] sm:$0xf] }
 0x311   : > { %5755 = vst.msk [vmem:[#allocation2 + $0x38] sm:$0xf] %vm516_vm0, %v11899_v3 }
 0x312   : > { %v14971_v28 = vld [vmem:[#allocation2 + $0x68] sm:$0xf]  ;;  %v5795_v12 = vld [vmem:[#allocation2 + $0x44] sm:$0xf] }
 0x313   : > { %v14980_v52 = vcombine.low %v14975_v23, %v14971_v28 }
 0x314   : > { %v14965_v53 = vld [vmem:[#allocation2 + $0x58] sm:$0xf] }
 0x315   : > { %v11409_v34 = vcombine.low %v14963_v32, %v14965_v53  ;;  %v4332_v62 = vshrl.u32 %v14980_v52, 16  ;;  %v4335_v0 = vshll.u32 %v14980_v52, 16 }
 0x316   : > { %v5796_v56 = vld [vmem:[#allocation2 + $0x48] sm:$0xf] }
 0x317   : > { %v4532_v59 = vrot.slane %v11409_v34, 5  ;;  %v4324_v50 = vshrl.u32 %v11409_v34, 16  ;;  %v4327_v63 = vshll.u32 %v11409_v34, 16  ;;  %v4334_v43 = vrot.slane %v4332_v62, 4 }
 0x318   : > { %v4337_v60 = vrot.slane %v4335_v0, 5  ;;  %v5793_v58 = vld [vmem:[#allocation2 + $0x38] sm:$0xf]  ;;  %v14992_v25 = vcombine.low %v5795_v12, %v5796_v56  ;;  %v6031_v34 = vor.u32 %v6030_v44, %v6027_v22 }
 0x319   : > { %v4534_v38 = vsel %vm1155_vm2, %v4532_v59, %v4533_v13  ;;  %v4326_v37 = vrot.slane %v4324_v50, 4  ;;  %v4329_v57 = vrot.slane %v4327_v63, 5  ;;  %v5792_v13 = vld [vmem:[#allocation2 + $0x34] sm:$0xf] }
 0x31a   : > { %4593 = vrot.lane.b32.xlu1 %v4534_v38, %s12879_s29  ;;  %v11533_v63 = vcombine.low %v5792_v13, %v5793_v58  ;;  %v4535_v38 = vrot.slane %v14980_v52, 5  ;;  %v4338_v10 = vor.u32 %v4337_v60, %v4334_v43  ;;  %v12586_v43 = vld [vmem:[#allocation2 + $0x4c] ss:$0 sps:$4 sm:$0x11]  }
 0x31b   : > { %v4330_v1 = vor.u32 %v4329_v57, %v4326_v37  ;;  %v6263_v13 = vrot.slane %v12586_v43, 5 }
 0x31c   : > { %v6259_v17 = vrot.slane %v11533_v63, 5  ;;  %v6041_v62 = vshrl.u32 %v11533_v63, 16  ;;  %v6044_v0 = vshll.u32 %v11533_v63, 16 }
 0x31d   : > { %4437 = vrot.lane.b32.xlu0 %v4330_v1, %s12878_s28  ;;  %v6049_v1 = vshrl.u32 %v14992_v25, 16 }
 0x31e   : > { %6314 = vrot.lane.b32.xlu1 %v6258_v46, %s12879_s29  ;;  %v6261_v22 = vsel %vm1155_vm2, %v6259_v17, %v6260_v7 }
 0x321   : > { %4591 = vrot.lane.b32.xlu0 %v4532_v59, %s12879_s29  ;;  %v12157_v51 = vpop.f32.mrf.mxu0 }
 0x322   : > { %6310 = vrot.lane.b32.xlu1 %v6255_v21, %s12879_s29  ;;  %v2166_v49 = vadd.f32 %v12794_v36, %v12157_v51 }
 0x323   : > { %v2157_v54 = vpop.f32.mrf.mxu0 }
 0x324   : > { %v2250_v11 = vmax.f32 %v2166_v49, 0.0  ;;  %v2158_v27 = vadd.f32 %v12794_v36, %v2157_v54  ;;  %v6051_v54 = vrot.slane %v6049_v1, 4 }
 0x325   : > { %6312 = vrot.lane.b32.xlu0 %v6256_v48, %s12879_s29  ;;  %v12158_v14 = vpop.f32.mrf.mxu0 }
 0x326   : > { %6164 = vrot.lane.b32.xlu1 %v6039_v26, %s12878_s28  ;;  %v11876_v19 = vpack.c.bf16 %v2250_v11, %v2250_v11  ;;  %v2248_v18 = vmax.f32 %v2158_v27, 0.0  ;;  %v2169_v3 = vadd.f32 %v12794_v36, %v12158_v14  ;;  %v12195_v9 = vpop.f32.mrf.mxu1  ;;  %v6043_v27 = vrot.slane %v6041_v62, 4  ;;  %v12589_v62 = vld [vmem:[#allocation2 + $0x7c] ss:$0 sps:$4 sm:$0x11]  }
 0x327   : > { %v3771_v55 = vadd.f32 %v12195_v9, %v14910_v24  ;;  %v2160_v30 = vpop.f32.mrf.mxu0  ;;  %v6046_v14 = vrot.slane %v6044_v0, 5 }
 0x328   : > { %4031 = vst.msk [vmem:[#allocation2 + $0x84] sm:$0xf] %vm516_vm0, %v11876_v19  ;;  %v11874_v29 = vpack.c.bf16 %v2248_v18, %v2248_v18  ;;  %v2251_v2 = vmax.f32 %v2169_v3, 0.0  ;;  %v2161_v59 = vadd.f32 %v12794_v36, %v2160_v30  ;;  %v3762_v50 = vpop.f32.mrf.mxu1 }
 0x329   : > { %6308 = vrot.lane.b32.xlu0 %v6253_v61, %s12879_s29  ;;  %v3867_v35 = vmax.f32 %v3771_v55, 0.0  ;;  %v3763_v15 = vadd.f32 %v14910_v24, %v3762_v50  ;;  %v6052_v61 = vshll.u32 %v14992_v25, 16  ;;  %v6047_v30 = vor.u32 %v6046_v14, %v6043_v27 }
 0x32a   : > { %6162 = vrot.lane.b32.xlu1 %v6031_v34, %s12878_s28  ;;  %4029 = vst.msk [vmem:[#allocation2 + $0x74] sm:$0xf] %vm516_vm0, %v11874_v29  ;;  %v11877_v37 = vpack.c.bf16 %v2251_v2, %v2251_v2  ;;  %v2249_v57 = vmax.f32 %v2161_v59, 0.0  ;;  %v12196_v48 = vpop.f32.mrf.mxu1  ;;  %v6262_v34 = vrot.slane %v14992_v25, 5  ;;  %v4539_v27 = vrot.slane %v12589_v62, 5 }
 0x32b   : > { %v11904_v31 = vpack.c.bf16 %v3867_v35, %v3867_v35  ;;  %v3865_v40 = vmax.f32 %v3763_v15, 0.0  ;;  %v3774_v46 = vadd.f32 %v12196_v48, %v14910_v24  ;;  %v6054_v26 = vrot.slane %v6052_v61, 5  ;;  %v12587_v15 = vld [vmem:[#allocation2 + $0x6c] ss:$0 sps:$4 sm:$0x11]  }
 0x32c   : > { %4032 = vst.msk [vmem:[#allocation2 + $0x88] sm:$0xf] %vm516_vm0, %v11877_v37  ;;  %v11875_v47 = vpack.c.bf16 %v2249_v57, %v2249_v57  ;;  %v3765_v39 = vpop.f32.mrf.mxu1  ;;  %v15093_v62 = vld [vmem:[#allocation2 + $0xa8] sm:$0xf] }
 0x32d   : > { %4439 = vrot.lane.b32.xlu0 %v4338_v10, %s12878_s28  ;;  %5760 = vst.msk [vmem:[#allocation2 + $0x64] sm:$0xf] %vm516_vm0, %v11904_v31  ;;  %v11902_v42 = vpack.c.bf16 %v3865_v40, %v3865_v40  ;;  %v3868_v21 = vmax.f32 %v3774_v46, 0.0  ;;  %v3766_v51 = vadd.f32 %v14910_v24, %v3765_v39  ;;  %v6055_v11 = vor.u32 %v6054_v26, %v6051_v54 }
 0x32e   : > { %4595 = vrot.lane.b32.xlu1 %v4535_v38, %s12879_s29  ;;  %4030 = vst.msk [vmem:[#allocation2 + $0x78] sm:$0xf] %vm516_vm0, %v11875_v47  ;;  %v6264_v47 = vsel %vm1155_vm2, %v6262_v34, %v6263_v13  ;;  %v15069_v13 = vld [vmem:[#allocation2 + $0x94] sm:$0xf]  ;;  %18956 = vst [vmem:[#allocation12_spill] sm:$0xff] %v15093_v62 }
 0x32f   : > { %5758 = vst.msk [vmem:[#allocation2 + $0x54] sm:$0xf] %vm516_vm0, %v11902_v42  ;;  %v11905_v36 = vpack.c.bf16 %v3868_v21, %v3868_v21  ;;  %v3866_v49 = vmax.f32 %v3766_v51, 0.0  ;;  %v15032_v63 = vld [vmem:[#allocation2 + $0x84] sm:$0xf]  ;;  %v4536_v51 = vrot.slane %v12587_v15, 5 }
 0x330   : > { %18951 = vst [vmem:[#allocation20_spill] sm:$0xff] %v15032_v63  ;;  %18954 = vst [vmem:[#allocation8_spill] sm:$0xff] %v15069_v13 }
 0x331   : > { %6316 = vrot.lane.b32.xlu0 %v6259_v17, %s12879_s29  ;;  %5761 = vst.msk [vmem:[#allocation2 + $0x68] sm:$0xf] %vm516_vm0, %v11905_v36  ;;  %v11903_v44 = vpack.c.bf16 %v3866_v49, %v3866_v49  ;;  %v15020_v12 = vld [vmem:[#allocation2 + $0x74] sm:$0xf] }
 0x332   : > { %6318 = vrot.lane.b32.xlu1 %v6261_v22, %s12879_s29  ;;  %18949 = vst [vmem:[#allocation25_spill] sm:$0xff] %v15020_v12  ;;  %v12590_v22 = vld [vmem:[#allocation2 + $0x5c] ss:$0 sps:$4 sm:$0x11]  }
 0x333   : > { %5759 = vst.msk [vmem:[#allocation2 + $0x58] sm:$0xf] %vm516_vm0, %v11903_v44  ;;  %v15042_v39 = vld [vmem:[#allocation2 + $0x88] sm:$0xf]  ;;  %v6266_v52 = vrot.slane %v12590_v22, 5 }
 0x334   : > { %v12199_v56 = vpop.f32.mrf.mxu1  ;;  %18952 = vst [vmem:[#allocation26_spill] sm:$0xff] %v15042_v39  ;;  %v5801_v54 = vld [vmem:[#allocation2 + $0x64] sm:$0xf] }
 0x335   : > { %v3787_v60 = vadd.f32 %v12199_v56, %v14910_v24  ;;  %v15022_v19 = vld [vmem:[#allocation2 + $0x78] sm:$0xf]  ;;  %v4537_v56 = vsel %vm1155_vm2, %v4535_v38, %v4536_v51 }
 0x336   : > { %6168 = vrot.lane.b32.xlu1 %v6055_v11, %s12878_s28  ;;  %v3778_v58 = vpop.f32.mrf.mxu1  ;;  %18950 = vst [vmem:[#allocation19_spill] sm:$0xff] %v15022_v19  ;;  %v15027_v9 = vcombine.low %v15020_v12, %v15022_v19  ;;  %v5798_v10 = vld [vmem:[#allocation2 + $0x54] sm:$0xf] }
 0x337   : > { %v3871_v18 = vmax.f32 %v3787_v60, 0.0  ;;  %v3779_v3 = vadd.f32 %v14910_v24, %v3778_v58  ;;  %v15059_v60 = vld [vmem:[#allocation2 + $0x98] sm:$0xf]  ;;  %v15063_v58 = vcombine.low %v15032_v63, %v15042_v39  ;;  %v12618_v63 = vld [vmem:[#allocation2 + $0x10c] ss:$0 sps:$4 sm:$0x11]  }
 0x338   : > { %v12200_v55 = vpop.f32.mrf.mxu1  ;;  %v4340_v50 = vshrl.u32 %v15027_v9, 16  ;;  %v4343_v35 = vshll.u32 %v15027_v9, 16  ;;  %v5802_v0 = vld [vmem:[#allocation2 + $0x68] sm:$0xf]  ;;  %v4538_v11 = vrot.slane %v15027_v9, 5  ;;  %18953 = vst [vmem:[#allocation27_spill] sm:$0xff] %v15059_v60 }
 0x339   : > { %v11908_v29 = vpack.c.bf16 %v3871_v18, %v3871_v18  ;;  %v3869_v2 = vmax.f32 %v3779_v3, 0.0  ;;  %v3790_v59 = vadd.f32 %v12200_v55, %v14910_v24  ;;  %v15050_v44 = vcombine.low %v5801_v54, %v5802_v0 }
 0x33a   : > { %6166 = vrot.lane.b32.xlu1 %v6047_v30, %s12878_s28  ;;  %v3781_v4 = vpop.f32.mrf.mxu1  ;;  %v4342_v48 = vrot.slane %v4340_v50, 4  ;;  %v5799_v1 = vld [vmem:[#allocation2 + $0x58] sm:$0xf]  ;;  %v4345_v31 = vrot.slane %v4343_v35, 5  ;;  %v4540_v55 = vsel %vm1155_vm2, %v4538_v11, %v4539_v27  ;;  %v4541_v27 = vrot.slane %v15063_v58, 5 }
 0x33b   : > { %5764 = vst.msk [vmem:[#allocation2 + $0x84] sm:$0xf] %vm516_vm0, %v11908_v29  ;;  %v11906_v37 = vpack.c.bf16 %v3869_v2, %v3869_v2  ;;  %v3872_v57 = vmax.f32 %v3790_v59, 0.0  ;;  %v3782_v25 = vadd.f32 %v14910_v24, %v3781_v4  ;;  %v15038_v40 = vcombine.low %v5798_v10, %v5799_v1 }
 0x33c   : > { %v4346_v17 = vor.u32 %v4345_v31, %v4342_v48  ;;  %v6065_v38 = vshrl.u32 %v15050_v44, 16  ;;  %v6068_v3 = vshll.u32 %v15050_v44, 16  ;;  %v15076_v59 = vcombine.low %v15069_v13, %v15059_v60 }
 0x33d   : > { %5762 = vst.msk [vmem:[#allocation2 + $0x74] sm:$0xf] %vm516_vm0, %v11906_v37  ;;  %v11909_v46 = vpack.c.bf16 %v3872_v57, %v3872_v57  ;;  %v3870_v61 = vmax.f32 %v3782_v25, 0.0  ;;  %v6057_v7 = vshrl.u32 %v15038_v40, 16  ;;  %v6060_v42 = vshll.u32 %v15038_v40, 16 }
 0x33e   : > { %6322 = vrot.lane.b32.xlu1 %v6264_v47, %s12879_s29  ;;  %4441 = vrot.lane.b32.xlu0 %v4346_v17, %s12878_s28  ;;  %v6265_v29 = vrot.slane %v15038_v40, 5  ;;  %v4348_v37 = vshrl.u32 %v15063_v58, 16  ;;  %v15080_v25 = vld [vmem:[#allocation2 + $0xa4] sm:$0xf]  ;;  %v6067_v10 = vrot.slane %v6065_v38, 4  ;;  %v4351_v1 = vshll.u32 %v15063_v58, 16 }
 0x33f   : > { %5765 = vst.msk [vmem:[#allocation2 + $0x88] sm:$0xf] %vm516_vm0, %v11909_v46  ;;  %v11907_v21 = vpack.c.bf16 %v3870_v61, %v3870_v61  ;;  %v6059_v36 = vrot.slane %v6057_v7, 4  ;;  %v6062_v49 = vrot.slane %v6060_v42, 5  ;;  %18955 = vst [vmem:[#allocation11_spill] sm:$0xff] %v15080_v25  ;;  %v4356_v17 = vshrl.u32 %v15076_v59, 16 }
 0x340   : > { %v6267_v61 = vsel %vm1155_vm2, %v6265_v29, %v6266_v52  ;;  %v4359_v51 = vshll.u32 %v15076_v59, 16  ;;  %v12594_v52 = vld [vmem:[#allocation2 + $0x6c] ss:$0 sps:$4 sm:$0x11]   ;;  %v6268_v58 = vrot.slane %v15050_v44, 5 }
 0x341   : > { %5763 = vst.msk [vmem:[#allocation2 + $0x78] sm:$0xf] %vm516_vm0, %v11907_v21  ;;  %v6063_v26 = vor.u32 %v6062_v49, %v6059_v36  ;;  %v4350_v21 = vrot.slane %v4348_v37, 4  ;;  %v4353_v36 = vrot.slane %v4351_v1, 5  ;;  %v4358_v22 = vrot.slane %v4356_v17, 4 }
 0x342   : > { %4597 = vrot.lane.b32.xlu0 %v4537_v56, %s12879_s29  ;;  %v4361_v56 = vrot.slane %v4359_v51, 5  ;;  %v15110_v1 = vld [vmem:[#allocation2 + $0xc4] sm:$0xf]  ;;  %v12596_v51 = vld [vmem:[#allocation2 + $0x7c] ss:$0 sps:$4 sm:$0x11]  }
 0x343   : > { %6170 = vrot.lane.b32.xlu1 %v6063_v26, %s12878_s28  ;;  %18957 = vst [vmem:[#allocation13_spill] sm:$0xff] %v15110_v1 }
 0x344   : > { %v12203_v14 = vpop.f32.mrf.mxu1  ;;  %v5804_v57 = vld [vmem:[#allocation2 + $0x74] sm:$0xf] }
 0x345   : > { %v3803_v43 = vadd.f32 %v12203_v14, %v14910_v24 }
 0x346   : > { %v3794_v18 = vpop.f32.mrf.mxu1  ;;  %6320 = vrot.lane.b32.xlu0 %v6262_v34, %s12879_s29  ;;  %v6070_v34 = vrot.slane %v6068_v3, 5 }
 0x347   : > { %v3875_v9 = vmax.f32 %v3803_v43, 0.0  ;;  %v3795_v30 = vadd.f32 %v14910_v24, %v3794_v18  ;;  %4601 = vrot.lane.b32.xlu1 %v4540_v55, %s12879_s29  ;;  %v12593_v18 = vld [vmem:[#allocation2 + $0x8c] ss:$0 sps:$4 sm:$0x11]  }
 0x348   : > { %v12204_v2 = vpop.f32.mrf.mxu1  ;;  %v5805_v50 = vld [vmem:[#allocation2 + $0x78] sm:$0xf]  ;;  %v6071_v0 = vor.u32 %v6070_v34, %v6067_v10  ;;  %v5807_v34 = vld [vmem:[#allocation2 + $0x84] sm:$0xf] }
 0x349   : > { %v11912_v4 = vpack.c.bf16 %v3875_v9, %v3875_v9  ;;  %v3873_v35 = vmax.f32 %v3795_v30, 0.0  ;;  %v3806_v15 = vadd.f32 %v12204_v2, %v14910_v24  ;;  %v15083_v31 = vcombine.low %v5804_v57, %v5805_v50  ;;  %v12595_v2 = vld [vmem:[#allocation2 + $0x9c] ss:$0 sps:$4 sm:$0x11]  }
 0x34a   : > { %v3797_v48 = vpop.f32.mrf.mxu1  ;;  %4599 = vrot.lane.b32.xlu0 %v4538_v11, %s12879_s29  ;;  %v4354_v11 = vor.u32 %v4353_v36, %v4350_v21  ;;  %v4362_v9 = vor.u32 %v4361_v56, %v4358_v22  ;;  %v4545_v44 = vrot.slane %v12595_v2, 5 }
 0x34b   : > { %5768 = vst.msk [vmem:[#allocation2 + $0xa4] sm:$0xf] %vm516_vm0, %v11912_v4  ;;  %v11910_v40 = vpack.c.bf16 %v3873_v35, %v3873_v35  ;;  %v3876_v46 = vmax.f32 %v3806_v15, 0.0  ;;  %v3798_v47 = vadd.f32 %v14910_v24, %v3797_v48  ;;  %6326 = vrot.lane.b32.xlu1 %v6267_v61, %s12879_s29  ;;  %v6073_v49 = vshrl.u32 %v15083_v31, 16  ;;  %v5808_v15 = vld [vmem:[#allocation2 + $0x88] sm:$0xf] }
 0x34c   : > { %v6076_v54 = vshll.u32 %v15083_v31, 16  ;;  %v6269_v35 = vrot.slane %v12594_v52, 5  ;;  %v4544_v61 = vrot.slane %v15076_v59, 5 }
 0x34d   : > { %5766 = vst.msk [vmem:[#allocation2 + $0x94] sm:$0xf] %vm516_vm0, %v11910_v40  ;;  %v11913_v7 = vpack.c.bf16 %v3876_v46, %v3876_v46  ;;  %v3874_v42 = vmax.f32 %v3798_v47, 0.0  ;;  %v6075_v14 = vrot.slane %v6073_v49, 4  ;;  %v15114_v47 = vcombine.low %v5807_v34, %v5808_v15 }
 0x34e   : > { %6324 = vrot.lane.b32.xlu0 %v6265_v29, %s12879_s29  ;;  %v6078_v43 = vrot.slane %v6076_v54, 5  ;;  %v4542_v29 = vrot.slane %v12593_v18, 5  ;;  %v15126_v49 = vcombine.low %v15080_v25, %v15093_v62  ;;  %v15128_v54 = vld [vmem:[#allocation2 + $0xc8] sm:$0xf] }
 0x34f   : > { %5769 = vst.msk [vmem:[#allocation2 + $0xa8] sm:$0xf] %vm516_vm0, %v11913_v7  ;;  %v11911_v26 = vpack.c.bf16 %v3874_v42, %v3874_v42  ;;  %6172 = vrot.lane.b32.xlu1 %v6071_v0, %s12878_s28  ;;  %v6270_v42 = vsel %vm1155_vm2, %v6268_v58, %v6269_v35  ;;  %v15119_v0 = vld [vmem:[#allocation2 + $0xb4] sm:$0xf]  ;;  %18959 = vst [vmem:[#allocation34_spill] sm:$0xff] %v15128_v54  ;;  %v6081_v22 = vshrl.u32 %v15114_v47, 16 }
 0x350   : > { %v6079_v55 = vor.u32 %v6078_v43, %v6075_v14  ;;  %v4543_v40 = vsel %vm1155_vm2, %v4541_v27, %v4542_v29  ;;  %18958 = vst [vmem:[#allocation28_spill] sm:$0xff] %v15119_v0  ;;  %v6084_v56 = vshll.u32 %v15114_v47, 16  ;;  %v6271_v14 = vrot.slane %v15083_v31, 5 }
 0x351   : > { %5767 = vst.msk [vmem:[#allocation2 + $0x98] sm:$0xf] %vm516_vm0, %v11911_v26  ;;  %v15130_v26 = vld [vmem:[#allocation2 + $0xb8] sm:$0xf]  ;;  %v6272_v43 = vrot.slane %v12596_v51, 5  ;;  %v4364_v52 = vshrl.u32 %v15126_v49, 16  ;;  %v15161_v51 = vpop.permute.xlu0 %4581 }
 0x352   : > { %4443 = vrot.lane.b32.xlu0 %v4354_v11, %s12878_s28  ;;  %18960 = vst [vmem:[#allocation35_spill] sm:$0xff] %v15130_v26 }
 0x353   : > { %4603 = vrot.lane.b32.xlu1 %v4541_v27, %s12879_s29  ;;  %v4546_v27 = vsel %vm1155_vm2, %v4544_v61, %v4545_v44  ;;  %v6273_v29 = vsel %vm1155_vm2, %v6271_v14, %v6272_v43 }
 0x354   : > { %v12207_v38 = vpop.f32.mrf.mxu1 }
 0x355   : > { %v3819_v3 = vadd.f32 %v12207_v38, %v14910_v24  ;;  %v4367_v38 = vshll.u32 %v15126_v49, 16 }
 0x356   : > { %v3810_v30 = vpop.f32.mrf.mxu1  ;;  %4445 = vrot.lane.b32.xlu0 %v4362_v9, %s12878_s28  ;;  %v5810_v9 = vld [vmem:[#allocation2 + $0x94] sm:$0xf] }
 0x357   : > { %v3879_v50 = vmax.f32 %v3819_v3, 0.0  ;;  %v3811_v4 = vadd.f32 %v14910_v24, %v3810_v30  ;;  %6174 = vrot.lane.b32.xlu1 %v6079_v55, %s12878_s28  ;;  %v15144_v3 = vcombine.low %v15119_v0, %v15130_v26  ;;  %v6083_v55 = vrot.slane %v6081_v22, 4  ;;  %v12613_v0 = vld [vmem:[#allocation2 + $0xfc] ss:$0 sps:$4 sm:$0x11]  }
 0x358   : > { %v12208_v37 = vpop.f32.mrf.mxu1  ;;  %v5811_v18 = vld [vmem:[#allocation2 + $0x98] sm:$0xf]  ;;  %v6086_v30 = vrot.slane %v6084_v56, 5 }
 0x359   : > { %v11916_v57 = vpack.c.bf16 %v3879_v50, %v3879_v50  ;;  %v3877_v48 = vmax.f32 %v3811_v4, 0.0  ;;  %v3822_v10 = vadd.f32 %v12208_v37, %v14910_v24  ;;  %v15146_v31 = vcombine.low %v5810_v9, %v5811_v18  ;;  %v12600_v18 = vld [vmem:[#allocation2 + $0x8c] ss:$0 sps:$4 sm:$0x11]  }
 0x35a   : > { %v3813_v46 = vpop.f32.mrf.mxu1  ;;  %4605 = vrot.lane.b32.xlu0 %v4543_v40, %s12879_s29  ;;  %v4366_v4 = vrot.slane %v4364_v52, 4  ;;  %v4372_v35 = vshrl.u32 %v15144_v3, 16  ;;  %v6087_v15 = vor.u32 %v6086_v30, %v6083_v55  ;;  %v15167_v52 = vld [vmem:[#allocation2 + $0xd4] sm:$0xf]  ;;  %v15172_v55 = vld [vmem:[#allocation2 + $0xe8] sm:$0xf] }
 0x35b   : > { %5772 = vst.msk [vmem:[#allocation2 + $0xc4] sm:$0xf] %vm516_vm0, %v11916_v57  ;;  %v11914_v17 = vpack.c.bf16 %v3877_v48, %v3877_v48  ;;  %v3880_v7 = vmax.f32 %v3822_v10, 0.0  ;;  %v3814_v21 = vadd.f32 %v14910_v24, %v3813_v46  ;;  %6330 = vrot.lane.b32.xlu1 %v6270_v42, %s12879_s29  ;;  %v4375_v57 = vshll.u32 %v15144_v3, 16  ;;  %18962 = vst [vmem:[#allocation30_spill] sm:$0xff] %v15167_v52 }
 0x35c   : > { %v6089_v48 = vshrl.u32 %v15146_v31, 16  ;;  %v6092_v10 = vshll.u32 %v15146_v31, 16  ;;  %v4374_v22 = vrot.slane %v4372_v35, 4  ;;  %18963 = vst [vmem:[#allocation31_spill] sm:$0xff] %v15172_v55  ;;  %v6275_v35 = vrot.slane %v12600_v18, 5 }
 0x35d   : > { %5770 = vst.msk [vmem:[#allocation2 + $0xb4] sm:$0xf] %vm516_vm0, %v11914_v17  ;;  %v11917_v59 = vpack.c.bf16 %v3880_v7, %v3880_v7  ;;  %v3878_v36 = vmax.f32 %v3814_v21, 0.0  ;;  %v12599_v21 = vld [vmem:[#allocation2 + $0xac] ss:$0 sps:$4 sm:$0x11]  }
 0x35e   : > { %6328 = vrot.lane.b32.xlu0 %v6268_v58, %s12879_s29  ;;  %v4369_v58 = vrot.slane %v4367_v38, 5  ;;  %v4377_v56 = vrot.slane %v4375_v57, 5  ;;  %v15178_v57 = vld [vmem:[#allocation2 + $0xd8] sm:$0xf] }
 0x35f   : > { %5773 = vst.msk [vmem:[#allocation2 + $0xc8] sm:$0xf] %vm516_vm0, %v11917_v59  ;;  %v11915_v11 = vpack.c.bf16 %v3878_v36, %v3878_v36  ;;  %4609 = vrot.lane.b32.xlu1 %v4546_v27, %s12879_s29  ;;  %v15163_v59 = vld [vmem:[#allocation2 + $0xe4] sm:$0xf]  ;;  %v6094_v27 = vrot.slane %v6092_v10, 5  ;;  %18964 = vst [vmem:[#allocation37_spill] sm:$0xff] %v15178_v57  ;;  %v15183_v10 = vpop.permute.xlu1 %4579 }
 0x360   : > { %v4370_v42 = vor.u32 %v4369_v58, %v4366_v4  ;;  %18961 = vst [vmem:[#allocation14_spill] sm:$0xff] %v15163_v59  ;;  %v4378_v30 = vor.u32 %v4377_v56, %v4374_v22  ;;  %v4548_v4 = vrot.slane %v12599_v21, 5  ;;  %v6274_v58 = vrot.slane %v15114_v47, 5 }
 0x361   : > { %5771 = vst.msk [vmem:[#allocation2 + $0xb8] sm:$0xf] %vm516_vm0, %v11915_v11  ;;  %v6091_v11 = vrot.slane %v6089_v48, 4  ;;  %v5813_v48 = vld [vmem:[#allocation2 + $0xa4] sm:$0xf] }
 0x362   : > { %4607 = vrot.lane.b32.xlu0 %v4544_v61, %s12879_s29  ;;  %v4547_v61 = vrot.slane %v15126_v49, 5 }
 0x363   : > { %6334 = vrot.lane.b32.xlu1 %v6273_v29, %s12879_s29  ;;  %v6095_v29 = vor.u32 %v6094_v27, %v6091_v11  ;;  %v15204_v18 = vpop.permute.xlu1 %4577 }
 0x364   : > { %v12211_v2 = vpop.f32.mrf.mxu1  ;;  %v4549_v47 = vsel %vm1155_vm2, %v4547_v61, %v4548_v4  ;;  %v5816_v4 = vld [vmem:[#allocation2 + $0xb4] sm:$0xf] }
 0x365   : > { %v3835_v50 = vadd.f32 %v12211_v2, %v14910_v24  ;;  %v12601_v2 = vld [vmem:[#allocation2 + $0xbc] ss:$0 sps:$4 sm:$0x11]  }
 0x366   : > { %v3826_v37 = vpop.f32.mrf.mxu1  ;;  %6332 = vrot.lane.b32.xlu0 %v6271_v14, %s12879_s29 }
 0x367   : > { %v3883_v34 = vmax.f32 %v3835_v50, 0.0  ;;  %v3827_v40 = vadd.f32 %v14910_v24, %v3826_v37  ;;  %6176 = vrot.lane.b32.xlu1 %v6087_v15, %s12878_s28  ;;  %v5814_v15 = vld [vmem:[#allocation2 + $0xa8] sm:$0xf]  ;;  %v15176_v37 = vpop.permute.xlu0 %4575 }
 0x368   : > { %v12212_v46 = vpop.f32.mrf.mxu1 }
 0x369   : > { %v11920_v44 = vpack.c.bf16 %v3883_v34, %v3883_v34  ;;  %v3881_v17 = vmax.f32 %v3827_v40, 0.0  ;;  %v3838_v7 = vadd.f32 %v12212_v46, %v14910_v24  ;;  %v4550_v34 = vrot.slane %v15144_v3, 5 }
 0x36a   : > { %v3829_v36 = vpop.f32.mrf.mxu1  ;;  %4447 = vrot.lane.b32.xlu0 %v4370_v42, %s12878_s28  ;;  %v4551_v40 = vrot.slane %v12601_v2, 5  ;;  %v15186_v46 = vcombine.low %v5813_v48, %v5814_v15  ;;  %v15194_v42 = vcombine.low %v15110_v1, %v15128_v54  ;;  %v15217_v15 = vld [vmem:[#allocation2 + $0x104] sm:$0xf]  ;;  %v12611_v1 = vld [vmem:[#allocation2 + $0xec] ss:$0 sps:$4 sm:$0x11]  }
 0x36b   : > { %5776 = vst.msk [vmem:[#allocation2 + $0xe4] sm:$0xf] %vm516_vm0, %v11920_v44  ;;  %v11918_v14 = vpack.c.bf16 %v3881_v17, %v3881_v17  ;;  %v3884_v43 = vmax.f32 %v3838_v7, 0.0  ;;  %v3830_v49 = vadd.f32 %v14910_v24, %v3829_v36  ;;  %4611 = vrot.lane.b32.xlu1 %v4547_v61, %s12879_s29  ;;  %v6276_v44 = vsel %vm1155_vm2, %v6274_v58, %v6275_v35  ;;  %v12602_v17 = vld [vmem:[#allocation2 + $0x9c] ss:$0 sps:$4 sm:$0x11]   ;;  %v15197_v3 = vpop.permute.xlu0 %4429 }
 0x36c   : > { %v4552_v36 = vsel %vm1155_vm2, %v4550_v34, %v4551_v40  ;;  %v6097_v61 = vshrl.u32 %v15186_v46, 16  ;;  %v6100_v56 = vshll.u32 %v15186_v46, 16  ;;  %18965 = vst [vmem:[#allocation36_spill] sm:$0xff] %v15217_v15  ;;  %v4560_v26 = vrot.slane %v12611_v1, 5 }
 0x36d   : > { %5774 = vst.msk [vmem:[#allocation2 + $0xd4] sm:$0xf] %vm516_vm0, %v11918_v14  ;;  %v11921_v38 = vpack.c.bf16 %v3884_v43, %v3884_v43  ;;  %v3882_v9 = vmax.f32 %v3830_v49, 0.0  ;;  %v6277_v14 = vrot.slane %v15146_v31, 5  ;;  %v6278_v43 = vrot.slane %v12602_v17, 5 }
 0x36e   : > { %4449 = vrot.lane.b32.xlu0 %v4378_v30, %s12878_s28  ;;  %v5817_v49 = vld [vmem:[#allocation2 + $0xb8] sm:$0xf]  ;;  %v4383_v30 = vshll.u32 %v15194_v42, 16  ;;  %v15213_v31 = vcombine.low %v15167_v52, %v15178_v57  ;;  %v6099_v48 = vrot.slane %v6097_v61, 4  ;;  %v6102_v40 = vrot.slane %v6100_v56, 5 }
 0x36f   : > { %5777 = vst.msk [vmem:[#allocation2 + $0xe8] sm:$0xf] %vm516_vm0, %v11921_v38  ;;  %v11919_v50 = vpack.c.bf16 %v3882_v9, %v3882_v9  ;;  %6178 = vrot.lane.b32.xlu1 %v6095_v29, %s12878_s28  ;;  %v4380_v9 = vshrl.u32 %v15194_v42, 16  ;;  %v15215_v35 = vpop.permute.xlu0 %4585 }
 0x371   : > { %5775 = vst.msk [vmem:[#allocation2 + $0xd8] sm:$0xf] %vm516_vm0, %v11919_v50 }
 0x372   : > { %4613 = vrot.lane.b32.xlu0 %v4549_v47, %s12879_s29  ;;  %v15219_v47 = vcombine.low %v5816_v4, %v5817_v49  ;;  %v15230_v49 = vpop.permute.xlu1 %4431  ;;  %v4553_v4 = vrot.slane %v15194_v42, 5  ;;  %v6280_v42 = vrot.slane %v15186_v46, 5 }
 0x373   : > { %6338 = vrot.lane.b32.xlu1 %v6276_v44, %s12879_s29 }
 0x374   : > { %v12215_v7 = vpop.f32.mrf.mxu1 }
 0x375   : > { %v3851_v21 = vadd.f32 %v12215_v7, %v14910_v24  ;;  %v6279_v7 = vsel %vm1155_vm2, %v6277_v14, %v6278_v43  ;;  %v6103_v43 = vor.u32 %v6102_v40, %v6099_v48 }
 0x376   : > { %v3842_v22 = vpop.f32.mrf.mxu1  ;;  %6336 = vrot.lane.b32.xlu0 %v6274_v58, %s12879_s29 }
 0x377   : > { %v3887_v11 = vmax.f32 %v3851_v21, 0.0  ;;  %v3843_v27 = vadd.f32 %v14910_v24, %v3842_v22  ;;  %4617 = vrot.lane.b32.xlu1 %v4552_v36, %s12879_s29  ;;  %v15224_v36 = vld [vmem:[#allocation2 + $0xf4] sm:$0xf]  ;;  %v4382_v22 = vrot.slane %v4380_v9, 4 }
 0x378   : > { %v12216_v38 = vpop.f32.mrf.mxu1  ;;  %18966 = vst [vmem:[#allocation15_spill] sm:$0xff] %v15224_v36 }
 0x379   : > { %v11924_v29 = vpack.c.bf16 %v3887_v11, %v3887_v11  ;;  %v3885_v2 = vmax.f32 %v3843_v27, 0.0  ;;  %v3854_v50 = vadd.f32 %v12216_v38, %v14910_v24  ;;  %v4385_v11 = vrot.slane %v4383_v30, 5  ;;  %v15232_v38 = vld [vmem:[#allocation2 + $0x108] sm:$0xf] }
 0x37a   : > { %v3845_v58 = vpop.f32.mrf.mxu1  ;;  %4615 = vrot.lane.b32.xlu0 %v4550_v34, %s12879_s29  ;;  %v4388_v27 = vshrl.u32 %v15213_v31, 16  ;;  %18967 = vst [vmem:[#allocation33_spill] sm:$0xff] %v15232_v38  ;;  %v6108_v34 = vshll.u32 %v15219_v47, 16 }
 0x37b   : > { %5780 = vst.msk [vmem:[#allocation2 + $0x104] sm:$0xf] %vm516_vm0, %v11924_v29  ;;  %v11922_v44 = vpack.c.bf16 %v3885_v2, %v3885_v2  ;;  %v3888_v17 = vmax.f32 %v3854_v50, 0.0  ;;  %v3846_v21 = vadd.f32 %v14910_v24, %v3845_v58  ;;  %6342 = vrot.lane.b32.xlu1 %v6279_v7, %s12879_s29  ;;  %v4391_v24 = vshll.u32 %v15213_v31, 16  ;;  %v15238_v2 = vpop.permute.xlu0 %4435  ;;  %v15240_v50 = vld [vmem:[#allocation2 + $0xf8] sm:$0xf]  ;;  %v15246_v58 = vpop.permute.xlu1 %4587 }
 0x37c   : > { %v6105_v29 = vshrl.u32 %v15219_v47, 16  ;;  %18968 = vst [vmem:[#allocation32_spill] sm:$0xff] %v15240_v50  ;;  %v4386_v30 = vor.u32 %v4385_v11, %v4382_v22  ;;  %v4390_v48 = vrot.slane %v4388_v27, 4  ;;  %v12605_v7 = vld [vmem:[#allocation2 + $0xcc] ss:$0 sps:$4 sm:$0x11]  }
 0x37d   : > { %5778 = vst.msk [vmem:[#allocation2 + $0xf4] sm:$0xf] %vm516_vm0, %v11922_v44  ;;  %v11925_v61 = vpack.c.bf16 %v3888_v17, %v3888_v17  ;;  %v3886_v56 = vmax.f32 %v3846_v21, 0.0  ;;  %v4393_v40 = vrot.slane %v4391_v24, 5  ;;  %v6110_v17 = vrot.slane %v6108_v34, 5 }
 0x37e   : > { %6340 = vrot.lane.b32.xlu0 %v6277_v14, %s12879_s29  ;;  %v6107_v44 = vrot.slane %v6105_v29, 4  ;;  %v12606_v21 = vld [vmem:[#allocation2 + $0xac] ss:$0 sps:$4 sm:$0x11]   ;;  %v4554_v22 = vrot.slane %v12605_v7, 5  ;;  %v11418_v7 = vcombine.low %v15163_v59, %v15172_v55 }
 0x37f   : > { %5781 = vst.msk [vmem:[#allocation2 + $0x108] sm:$0xf] %vm516_vm0, %v11925_v61  ;;  %v11923_v9 = vpack.c.bf16 %v3886_v56, %v3886_v56  ;;  %6180 = vrot.lane.b32.xlu1 %v6103_v43, %s12878_s28  ;;  %v15250_v14 = vpop.permute.xlu0 %4433  ;;  %v4394_v61 = vor.u32 %v4393_v40, %v4390_v48  ;;  %v12607_v43 = vld [vmem:[#allocation2 + $0xdc] ss:$0 sps:$4 sm:$0x11]   ;;  %v6281_v11 = vrot.slane %v12606_v21, 5  ;;  %v15253_v27 = vpop.permute.xlu1 %4583 }
 0x380   : > { %v6111_v56 = vor.u32 %v6110_v17, %v6107_v44  ;;  %v5819_v24 = vld [vmem:[#allocation2 + $0xc4] sm:$0xf]  ;;  %v4555_v34 = vsel %vm1155_vm2, %v4553_v4, %v4554_v22  ;;  %v4556_v48 = vrot.slane %v15213_v31, 5  ;;  %v4557_v40 = vrot.slane %v12607_v43, 5  ;;  %v5823_v43 = vld [vmem:[#allocation2 + $0xd8] sm:$0xf] }
 0x381   : > { %5779 = vst.msk [vmem:[#allocation2 + $0xf8] sm:$0xf] %vm516_vm0, %v11923_v9  ;;  %v5820_v9 = vld [vmem:[#allocation2 + $0xc8] sm:$0xf]  ;;  %v6283_v31 = vrot.slane %v15219_v47, 5 }
 0x382   : > { %4451 = vrot.lane.b32.xlu0 %v4386_v30, %s12878_s28  ;;  %v15257_v29 = vcombine.low %v5819_v24, %v5820_v9  ;;  %v6282_v30 = vsel %vm1155_vm2, %v6280_v42, %v6281_v11  ;;  %v12608_v44 = vld [vmem:[#allocation2 + $0xbc] ss:$0 sps:$4 sm:$0x11]   ;;  %v4396_v9 = vshrl.u32 %v11418_v7, 16  ;;  %v4399_v24 = vshll.u32 %v11418_v7, 16 }
 0x383   : > { %4619 = vrot.lane.b32.xlu1 %v4553_v4, %s12879_s29  ;;  %v15262_v46 = vpop.permute.xlu0 %4589 }
 0x384   : > { %v6113_v21 = vshrl.u32 %v15257_v29, 16  ;;  %v6116_v4 = vshll.u32 %v15257_v29, 16  ;;  %v4401_v55 = vrot.slane %v4399_v24, 5 }
 0x386   : > { %4453 = vrot.lane.b32.xlu0 %v4394_v61, %s12878_s28  ;;  %v4558_v61 = vsel %vm1155_vm2, %v4556_v48, %v4557_v40  ;;  %v6115_v40 = vrot.slane %v6113_v21, 4  ;;  %v6118_v59 = vrot.slane %v6116_v4, 5 }
 0x387   : > { %6182 = vrot.lane.b32.xlu1 %v6111_v56, %s12878_s28  ;;  %v6284_v56 = vrot.slane %v12608_v44, 5 }
 0x388   : > { %v5829_v39 = vld [vmem:[#allocation2 + $0xf8] sm:$0xf] }
 0x389   : > { %v6285_v44 = vsel %vm1155_vm2, %v6283_v31, %v6284_v56 }
 0x38a   : > { %4621 = vrot.lane.b32.xlu0 %v4555_v34, %s12879_s29  ;;  %v15282_v34 = vcombine.low %v15224_v36, %v15240_v50  ;;  %v6119_v36 = vor.u32 %v6118_v59, %v6115_v40  ;;  %v12612_v59 = vld [vmem:[#allocation2 + $0xcc] ss:$0 sps:$4 sm:$0x11]  }
 0x38b   : > { %6346 = vrot.lane.b32.xlu1 %v6282_v30, %s12879_s29  ;;  %v5822_v30 = vld [vmem:[#allocation2 + $0xd4] sm:$0xf] }
 0x38c   : > { %v15266_v17 = vpop.permute.xlu1 %4593  ;;  %v15284_v47 = vcombine.low %v5822_v30, %v5823_v43  ;;  %v4404_v52 = vshrl.u32 %v15282_v34, 16  ;;  %v4407_v21 = vshll.u32 %v15282_v34, 16 }
 0x38e   : > { %6344 = vrot.lane.b32.xlu0 %v6280_v42, %s12879_s29  ;;  %v6121_v4 = vshrl.u32 %v15284_v47, 16  ;;  %v6124_v43 = vshll.u32 %v15284_v47, 16  ;;  %v4406_v24 = vrot.slane %v4404_v52, 4  ;;  %v4409_v30 = vrot.slane %v4407_v21, 5  ;;  %v5825_v21 = vld [vmem:[#allocation2 + $0xe4] sm:$0xf] }
 0x38f   : > { %4625 = vrot.lane.b32.xlu1 %v4558_v61, %s12879_s29  ;;  %v15276_v22 = vpop.permute.xlu0 %4437  ;;  %v4398_v61 = vrot.slane %v4396_v9, 4  ;;  %v4559_v9 = vrot.slane %v11418_v7, 5  ;;  %v6287_v52 = vrot.slane %v12612_v59, 5  ;;  %v5826_v7 = vld [vmem:[#allocation2 + $0xe8] sm:$0xf] }
 0x390   : > { %v15278_v11 = vpop.permute.xlu1 %6314  ;;  %v6126_v50 = vrot.slane %v6124_v43, 5  ;;  %v4102_v43 = vld [vmem:[#allocation2 + $0x118] sm:$0xf]  ;;  %v15314_v25 = vcombine.low %v5825_v21, %v5826_v7 }
 0x391   : > { %v4402_v56 = vor.u32 %v4401_v55, %v4398_v61  ;;  %v6286_v55 = vrot.slane %v15257_v29, 5  ;;  %v4562_v29 = vrot.slane %v15282_v34, 5 }
 0x392   : > { %4623 = vrot.lane.b32.xlu0 %v4556_v48, %s12879_s29 }
 0x393   : > { %6350 = vrot.lane.b32.xlu1 %v6285_v44, %s12879_s29  ;;  %v15292_v57 = vpop.permute.xlu0 %4591  ;;  %v6123_v44 = vrot.slane %v6121_v4, 4  ;;  %v4101_v4 = vld [vmem:[#allocation2 + $0x114] sm:$0xf]  ;;  %v6288_v1 = vsel %vm1155_vm2, %v6286_v55, %v6287_v52  ;;  %v6289_v52 = vrot.slane %v15284_v47, 5 }
 0x394   : > { %v15289_v42 = vpop.permute.xlu1 %6310  ;;  %v15323_v59 = vcombine.low %v4101_v4, %v4102_v43 }
 0x396   : > { %6348 = vrot.lane.b32.xlu0 %v6283_v31, %s12879_s29  ;;  %v4410_v31 = vor.u32 %v4409_v30, %v4406_v24  ;;  %v4563_v24 = vrot.slane %v12613_v0, 5  ;;  %v12614_v30 = vld [vmem:[#allocation2 + $0xdc] ss:$0 sps:$4 sm:$0x11]   ;;  %v11420_v0 = vcombine.low %v15217_v15, %v15232_v38  ;;  %v4420_v43 = vshrl.u32 %v15323_v59, 16 }
 0x397   : > { %6184 = vrot.lane.b32.xlu1 %v6119_v36, %s12878_s28  ;;  %v15301_v40 = vpop.permute.xlu0 %6312  ;;  %v6127_v36 = vor.u32 %v6126_v50, %v6123_v44  ;;  %v4561_v50 = vsel %vm1155_vm2, %v4559_v9, %v4560_v26  ;;  %v6129_v26 = vshrl.u32 %v15314_v25, 16  ;;  %v6290_v7 = vrot.slane %v12614_v30, 5 }
 0x398   : > { %v15299_v48 = vpop.permute.xlu1 %6164  ;;  %v4564_v34 = vsel %vm1155_vm2, %v4562_v29, %v4563_v24  ;;  %v4412_v47 = vshrl.u32 %v11420_v0, 16  ;;  %v4415_v30 = vshll.u32 %v11420_v0, 16 }
 0x399   : > { %v6131_v24 = vrot.slane %v6129_v26, 4  ;;  %v6291_v38 = vsel %vm1155_vm2, %v6289_v52, %v6290_v7 }
 0x39a   : > { %4455 = vrot.lane.b32.xlu0 %v4402_v56, %s12878_s28 }
 0x39b   : > { %4627 = vrot.lane.b32.xlu1 %v4559_v9, %s12879_s29  ;;  %v15312_v56 = vpop.permute.xlu0 %6308  ;;  %v6132_v9 = vshll.u32 %v15314_v25, 16 }
 0x39c   : > { %v15305_v54 = vpop.permute.xlu1 %6162 }
 0x39d   : > { %v6134_v15 = vrot.slane %v6132_v9, 5  ;;  %v4414_v9 = vrot.slane %v4412_v47, 4 }
 0x39e   : > { %4457 = vrot.lane.b32.xlu0 %v4410_v31, %s12878_s28  ;;  %v15325_v31 = vld [vmem:[#allocation2 + $0x4] sm:$0xf] }
 0x39f   : > { %6186 = vrot.lane.b32.xlu1 %v6127_v36, %s12878_s28  ;;  %18969 = vst [vmem:[#allocation3_spill] sm:$0xff] %v15325_v31  ;;  %v15327_v36 = vld [vmem:[#allocation2 + $0x8] sm:$0xf]  ;;  %v15335_v21 = vpop.permute.xlu0 %4439  ;;  %v6135_v26 = vor.u32 %v6134_v15, %v6131_v24  ;;  %v4565_v15 = vrot.slane %v11420_v0, 5  ;;  %v4566_v24 = vrot.slane %v12618_v63, 5 }
 0x3a0   : > { %v15310_v61 = vpop.permute.xlu1 %4595  ;;  %18970 = vst [vmem:[#allocation21_spill] sm:$0xff] %v15327_v36 }
 0x3a2   : > { %4629 = vrot.lane.b32.xlu0 %v4561_v50, %s12879_s29  ;;  %v4423_v50 = vshll.u32 %v15323_v59, 16 }
 0x3a3   : > { %6354 = vrot.lane.b32.xlu1 %v6288_v1, %s12879_s29  ;;  %v15345_v1 = vcombine.low %v15325_v31, %v15327_v36  ;;  %v15354_v36 = vpop.permute.xlu0 %6316  ;;  %v4417_v31 = vrot.slane %v4415_v30, 5 }
 0x3a4   : > { %v15321_v44 = vpop.permute.xlu1 %6318  ;;  %v4425_v62 = vrot.slane %v4423_v50, 5  ;;  %v5828_v50 = vld [vmem:[#allocation2 + $0xf4] sm:$0xf] }
 0x3a5   : > { %v4284_v13 = vshrl.u32 %v15345_v1, 16  ;;  %v4287_v60 = vshll.u32 %v15345_v1, 16  ;;  %v4418_v19 = vor.u32 %v4417_v31, %v4414_v9  ;;  %v12621_v9 = vld [vmem:[#allocation2 + $0xc] ss:$0 sps:$4 sm:$0x11]  }
 0x3a6   : > { %6352 = vrot.lane.b32.xlu0 %v6286_v55, %s12879_s29 }
 0x3a7   : > { %4633 = vrot.lane.b32.xlu1 %v4564_v34, %s12879_s29  ;;  %v4422_v34 = vrot.slane %v4420_v43, 4  ;;  %v4286_v7 = vrot.slane %v4284_v13, 4  ;;  %v4289_v43 = vrot.slane %v4287_v60, 5 }
 0x3a8   : > { %v15339_v4 = vpop.permute.xlu1 %6168 }
 0x3a9   : > { %18971 = vst [vmem:[#allocation16_spill] sm:$0xff] %v15339_v4  ;;  %v15362_v4 = vcombine.low %v5828_v50, %v5829_v39  ;;  %v6292_v39 = vrot.slane %v15314_v25, 5  ;;  %v4568_v25 = vrot.slane %v15323_v59, 5 }
 0x3aa   : > { %4631 = vrot.lane.b32.xlu0 %v4562_v29, %s12879_s29  ;;  %v4426_v29 = vor.u32 %v4425_v62, %v4422_v34  ;;  %v4567_v62 = vsel %vm1155_vm2, %v4565_v15, %v4566_v24  ;;  %v12620_v34 = vld [vmem:[#allocation2 + $0xec] ss:$0 sps:$4 sm:$0x11]   ;;  %v4518_v24 = vrot.slane %v12621_v9, 5 }
 0x3ab   : > { %6358 = vrot.lane.b32.xlu1 %v6291_v38, %s12879_s29  ;;  %v6137_v13 = vshrl.u32 %v15362_v4, 16  ;;  %v6140_v60 = vshll.u32 %v15362_v4, 16  ;;  %v6293_v50 = vrot.slane %v12620_v34, 5 }
 0x3ac   : > { %v15350_v55 = vpop.permute.xlu1 %6166 }
 0x3ad   : > { %v6139_v31 = vrot.slane %v6137_v13, 4  ;;  %v6142_v0 = vrot.slane %v6140_v60, 5  ;;  %v6294_v60 = vsel %vm1155_vm2, %v6292_v39, %v6293_v50 }
 0x3ae   : > { %6356 = vrot.lane.b32.xlu0 %v6289_v52, %s12879_s29  ;;  %v4290_v52 = vor.u32 %v4289_v43, %v4286_v7 }
 0x3af   : > { %6188 = vrot.lane.b32.xlu1 %v6135_v26, %s12878_s28  ;;  %v4517_v26 = vrot.slane %v15345_v1, 5  ;;  %v6143_v43 = vor.u32 %v6142_v0, %v6139_v31  ;;  %v4052_v1 = vld [vmem:[#allocation2 + $0x10] sm:$0x8]  ;;  %v4055_v0 = vld [vmem:[#allocation2 + $0x20] sm:$0x8] }
 0x3b0   : > { %v15358_v38 = vpop.permute.xlu1 %6322  ;;  %v15360_v12 = vpop.permute.xlu0 %4441  ;;  %v11370_v34 = vcombine.low %v4052_v1, %v14892_v20 }
 0x3b2   : > { %4459 = vrot.lane.b32.xlu0 %v4418_v19, %s12878_s28  ;;  %v4650_v50 = vsel %vm1282_vm3, %v11370_v34, %v15197_v3 }
 0x3b3   : > { %4461 = vrot.lane.b32.xlu1 %v4426_v29, %s12878_s28 }
 0x3b4   : > { %v15366_v47 = vpop.permute.xlu0 %4597 }
 0x3b5   : > { %v15368_v30 = vpop.permute.xlu1 %6170 }
 0x3b6   : > { %4427 = vrot.lane.b32.xlu0 %v4290_v52, %s12878_s28  ;;  %v12622_v52 = vld [vmem:[#allocation2 + $0x11c] ss:$0 sps:$4 sm:$0x11]  }
 0x3b7   : > { %4637 = vrot.lane.b32.xlu1 %v4567_v62, %s12879_s29  ;;  %v4519_v62 = vsel %vm1155_vm2, %v4517_v26, %v4518_v24  ;;  %v4569_v31 = vrot.slane %v12622_v52, 5  ;;  %v15420_v52 = vsel %vm1373_vm4, %v4650_v50, %v15176_v37  ;;  %v5835_v37 = vld [vmem:[#allocation2 + $0x118] sm:$0xf] }
 0x3b8   : > { %v15375_v63 = vpop.permute.xlu0 %6320  ;;  %18974 = vst [vmem:[#allocation29_spill] sm:$0xff] %v15420_v52 }
 0x3b9   : > { %v15377_v19 = vpop.permute.xlu1 %4601  ;;  %v4570_v20 = vsel %vm1155_vm2, %v4568_v25, %v4569_v31  ;;  %v5831_v31 = vld [vmem:[#allocation2 + $0x104] sm:$0xf] }
 0x3ba   : > { %4635 = vrot.lane.b32.xlu0 %v4565_v15, %s12879_s29 }
 0x3bb   : > { %6360 = vrot.lane.b32.xlu1 %v6292_v39, %s12879_s29  ;;  %v12646_v39 = vld [vmem:[%s18664_s4 + $0x20] ss:$0 sps:$4 sm:$0xff]  }
 0x3bc   : > { %v15383_v29 = vpop.permute.xlu0 %4599  ;;  %12432 = vmatprep.subr.msk.bf16.mxu0 %vm2071_vm5, %v12646_v39 }
 0x3bd   : > { %v15385_v7 = vpop.permute.xlu1 %6326 }
 0x3be   : > { %6190 = vrot.lane.b32.xlu0 %v6143_v43, %s12878_s28  ;;  %v6295_v43 = vrot.slane %v15362_v4, 5 }
 0x3bf   : > { %4571 = vrot.lane.b32.xlu1 %v4517_v26, %s12879_s29  ;;  %v11372_v26 = vcombine.low %v4055_v0, %v14886_v33  ;;  %v5427_v33 = vsel %vm2071_vm5, %v12646_v39, 0  ;;  %v5834_v0 = vld [vmem:[#allocation2 + $0x114] sm:$0xf] }
 0x3c0   : > { %v15390_v15 = vpop.permute.xlu0 %6324  ;;  %12218 = vmatpush3.bf16.msra.mxu0 %v5427_v33 }
 0x3c1   : > { %v15392_v13 = vpop.permute.xlu1 %6172 }
 0x3c2   : > { %18972 = vst [vmem:[#allocation22_spill] sm:$0xff] %v15392_v13  ;;  %6362 = vrot.lane.b32.xlu0 %v6294_v60, %s12879_s29  ;;  %v12623_v13 = vld [vmem:[#allocation2 + $0xfc] ss:$0 sps:$4 sm:$0x11]   ;;  %v5832_v60 = vld [vmem:[#allocation2 + $0x108] sm:$0xf] }
 0x3c3   : > { %4639 = vrot.lane.b32.xlu1 %v4568_v25, %s12879_s29  ;;  %v6296_v1 = vrot.slane %v12623_v13, 5  ;;  %v12647_v25 = vld [vmem:[%s18664_s4 + $0x18] sm:$0xff]   ;;  %v11371_v13 = vcombine.low %v14894_v8, %v14894_v8  ;;  %v15449_v8 = vcombine.low %v5834_v0, %v5835_v37 }
 0x3c4   : > { %v15399_v59 = vpop.permute.xlu0 %4443  ;;  %12219 = vmatprep.subr.bf16.mxu0 %v12647_v25 }
 0x3c5   : > { %v15401_v9 = vpop.permute.xlu1 %4603  ;;  %v6297_v39 = vsel %vm1155_vm2, %v6295_v43, %v6296_v1  ;;  %v4652_v33 = vsel %vm1282_vm3, %v11371_v13, %v15197_v3  ;;  %12220 = vmatpush3.bf16.msra.mxu0 %v12647_v25  ;;  %v6156_v37 = vshll.u32 %v15449_v8, 16 }
 0x3c6   : > { %4573 = vrot.lane.b32.xlu0 %v4519_v62, %s12879_s29  ;;  %v4655_v62 = vsel %vm1282_vm3, %v11372_v26, %v15230_v49  ;;  %v4058_v26 = vld [vmem:[#allocation2 + $0x30] sm:$0x8] }
 0x3c7   : > { %6364 = vrot.lane.b32.xlu1 %v6295_v43, %s12879_s29  ;;  %v15455_v43 = vld [vmem:[#allocation2 + $0x8] sm:$0xf] }
 0x3c8   : > { %v15414_v24 = vpop.permute.xlu0 %4445  ;;  %18977 = vst [vmem:[#allocation9_spill] sm:$0xff] %v15455_v43 }
 0x3c9   : > { %v15416_v4 = vpop.permute.xlu1 %6174 }
 0x3ca   : > { %18973 = vst [vmem:[#allocation23_spill] sm:$0xff] %v15416_v4  ;;  %4641 = vrot.lane.b32.xlu0 %v4570_v20, %s12879_s29  ;;  %v15437_v20 = vcombine.low %v5831_v31, %v5832_v60  ;;  %v11373_v60 = vcombine.low %v14888_v16, %v14888_v16  ;;  %v15453_v31 = vld [vmem:[#allocation2 + $0x4] sm:$0xf]  ;;  %v15468_v16 = vsel %vm1373_vm4, %v4652_v33, %v15204_v18  ;;  %v12648_v18 = vld [vmem:[%s18664_s4 + $0x10] sm:$0xff]  }
 0x3cb   : > { %4837 = vrot.lane.b32.xlu1 %v15420_v52, %s12880_s30  ;;  %v15442_v52 = vsel %vm1373_vm4, %v4655_v62, %v15183_v10  ;;  %18976 = vst [vmem:[#allocation5_spill] sm:$0xff] %v15453_v31  ;;  %v11374_v10 = vcombine.low %v4058_v26, %v14933_v41  ;;  %18978 = vst [vmem:[#allocation17_spill] sm:$0xff] %v15468_v16  ;;  %v6153_v41 = vshrl.u32 %v15449_v8, 16  ;;  %12221 = vmatprep.subr.bf16.mxu0 %v12648_v18 }
 0x3cc   : > { %v15433_v34 = vpop.permute.xlu0 %4605  ;;  %18975 = vst [vmem:[#allocation4_spill] sm:$0xff] %v15442_v52  ;;  %v6145_v62 = vshrl.u32 %v15437_v20, 16  ;;  %v6148_v13 = vshll.u32 %v15437_v20, 16  ;;  %v4657_v0 = vsel %vm1282_vm3, %v11373_v60, %v15230_v49  ;;  %v11530_v49 = vcombine.low %v15453_v31, %v15455_v43  ;;  %12222 = vmatpush3.bf16.msra.mxu0 %v12648_v18 }
 0x3cd   : > { %v15435_v50 = vpop.permute.xlu1 %6330  ;;  %v4660_v25 = vsel %vm1282_vm3, %v11374_v10, %v15250_v14  ;;  %v15489_v10 = vsel %vm1373_vm4, %v4657_v0, %v15161_v51  ;;  %v6155_v31 = vrot.slane %v6153_v41, 4  ;;  %v6158_v43 = vrot.slane %v6156_v37, 5  ;;  %v12651_v51 = vld [vmem:[%s18664_s4 + $0x8] sm:$0xff]  }
 0x3ce   : > { %6366 = vrot.lane.b32.xlu0 %v6297_v39, %s12879_s29  ;;  %v6147_v33 = vrot.slane %v6145_v62, 4  ;;  %v6150_v60 = vrot.slane %v6148_v13, 5  ;;  %v6017_v62 = vshrl.u32 %v11530_v49, 16  ;;  %v6020_v13 = vshll.u32 %v11530_v49, 16  ;;  %12223 = vmatprep.subr.bf16.mxu0 %v12651_v51 }
 0x3cf   : > { %4841 = vrot.lane.b32.xlu1 %v15442_v52, %s12880_s30  ;;  %v11375_v0 = vcombine.low %v14935_v5, %v14935_v5  ;;  %v12627_v41 = vld [vmem:[#allocation2 + $0x10c] ss:$0 sps:$4 sm:$0x11]  }
 0x3d0   : > { %v15458_v1 = vpop.permute.xlu0 %6328  ;;  %12224 = vmatpush3.bf16.msra.mxu0 %v12651_v51  ;;  %v6022_v4 = vrot.slane %v6020_v13, 5  ;;  %v12628_v5 = vld [vmem:[#allocation2 + $0xc] ss:$0 sps:$4 sm:$0x11]  }
 0x3d1   : > { %v15460_v3 = vpop.permute.xlu1 %4609  ;;  %v4662_v37 = vsel %vm1282_vm3, %v11375_v0, %v15250_v14  ;;  %v6298_v14 = vrot.slane %v15437_v20, 5 }
 0x3d2   : > { %4839 = vrot.lane.b32.xlu0 %v15468_v16, %s12880_s30  ;;  %v6151_v16 = vor.u32 %v6150_v60, %v6147_v33  ;;  %v15522_v33 = vsel %vm1373_vm4, %v4662_v37, %v15215_v35  ;;  %v6299_v60 = vrot.slane %v12627_v41, 5 }
 0x3d3   : > { %4903 = vrot.lane.b32.xlu1 %v15442_v52, %s12881_s16  ;;  %v15493_v52 = vsel %vm1373_vm4, %v4660_v25, %v15253_v27  ;;  %v12656_v27 = vld [vmem:[%s18664_s4] sm:$0xff]  }
 0x3d4   : > { %v15483_v26 = vpop.permute.xlu0 %4607  ;;  %12225 = vmatprep.subr.bf16.mxu0 %v12656_v27  ;;  %v6300_v35 = vsel %vm1155_vm2, %v6298_v14, %v6299_v60 }
 0x3d5   : > { %18979 = vst [vmem:[#allocation18_spill] sm:$0xff] %v15483_v26  ;;  %v15485_v39 = vpop.permute.xlu1 %6334  ;;  %v6019_v26 = vrot.slane %v6017_v62, 4  ;;  %12226 = vmatpush3.bf16.msra.mxu0 %v12656_v27  ;;  %v12629_v62 = vld [vmem:[#allocation2 + $0x11c] ss:$0 sps:$4 sm:$0x11]   ;;  %v6301_v27 = vrot.slane %v15449_v8, 5 }
 0x3d6   : > { %18980 = vst [vmem:[#allocation6_spill] sm:$0xff] %v15485_v39  ;;  %4843 = vrot.lane.b32.xlu0 %v15489_v10, %s12880_s30  ;;  %v6159_v39 = vor.u32 %v6158_v43, %v6155_v31  ;;  %v6250_v43 = vrot.slane %v11530_v49, 5  ;;  %v6302_v0 = vrot.slane %v12629_v62, 5  ;;  %v12795_v8 = vld [vmem:[#allocation2 + $0x18] sm:$0xf] }
 0x3d7   : > { %4907 = vrot.lane.b32.xlu1 %v15493_v52, %s12881_s16  ;;  %v6023_v31 = vor.u32 %v6022_v4, %v6019_v26  ;;  %v11497_v37 = vcombine.low %v12795_v8, %v12795_v8 }
 0x3d8   : > { %v15507_v25 = vpop.permute.xlu0 %6332  ;;  %v6303_v49 = vsel %vm1155_vm2, %v6301_v27, %v6302_v0 }
 0x3d9   : > { %18981 = vst [vmem:[#allocation7_spill] sm:$0xff] %v15507_v25  ;;  %v15509_v18 = vpop.permute.xlu1 %6176 }
 0x3da   : > { %18982 = vst [vmem:[#allocation24_spill] sm:$0xff] %v15509_v18  ;;  %4905 = vrot.lane.b32.xlu0 %v15489_v10, %s12881_s16 }
 0x3db   : > { %6192 = vrot.lane.b32.xlu1 %v6151_v16, %s12878_s28  ;;  %v6251_v16 = vrot.slane %v12628_v5, 5 }
 0x3dc   : > { %v15516_v25 = vpop.permute.xlu0 %4447 }
 0x3dd   : > { %v15518_v18 = vpop.permute.xlu1 %4611  ;;  %v6252_v20 = vsel %vm1155_vm2, %v6250_v43, %v6251_v16  ;;  %v12796_v16 = vld [vmem:[#allocation2 + $0x14] sm:$0xf] }
 0x3de   : > { %4909 = vrot.lane.b32.xlu0 %v15522_v33, %s12881_s16 }
 0x3df   : > { %6194 = vrot.lane.b32.xlu1 %v6159_v39, %s12878_s28 }
 0x3e0   : > { %v15528_v13 = vpop.permute.xlu0 %4449 }
 0x3e1   : > { %v15530_v51 = vpop.permute.xlu1 %6178 }
 0x3e2   : > { %6160 = vrot.lane.b32.xlu0 %v6023_v31, %s12878_s28  ;;  %v5785_v31 = vld [vmem:[#allocation2 + $0x10] sm:$0x8] }
 0x3e3   : > { %6370 = vrot.lane.b32.xlu1 %v6300_v35, %s12879_s29  ;;  %v11496_v62 = vcombine.low %v5785_v31, %v12796_v16  ;;  %v12797_v16 = vld [vmem:[#allocation2 + $0x28] sm:$0xf] }
 0x3e4   : > { %v15537_v39 = vpop.permute.xlu0 %4613 }
 0x3e5   : > { %v15539_v4 = vpop.permute.xlu1 %6338 }
 0x3e6   : > { %6368 = vrot.lane.b32.xlu0 %v6298_v14, %s12879_s29  ;;  %v6385_v14 = vsel %vm1282_vm3, %v11497_v37, %v15305_v54 }
 0x3e7   : > { %6306 = vrot.lane.b32.xlu1 %v6252_v20, %s12879_s29  ;;  %v4061_v20 = vld [vmem:[#allocation2 + $0x40] sm:$0x8]  ;;  %v15565_v0 = vsel %vm1373_vm4, %v6385_v14, %v15289_v42 }
 0x3e8   : > { %v15544_v26 = vpop.permute.xlu0 %6336  ;;  %v11376_v8 = vcombine.low %v4061_v20, %v14927_v6  ;;  %v12657_v6 = vld [vmem:[%s18668_s8 + $0x20] ss:$0 sps:$4 sm:$0xff]  }
 0x3e9   : > { %v15546_v41 = vpop.permute.xlu1 %4617  ;;  %12433 = vmatprep.subr.msk.bf16.mxu1 %vm2071_vm5, %v12657_v6 }
 0x3ea   : > { %6304 = vrot.lane.b32.xlu0 %v6250_v43, %s12879_s29  ;;  %v4665_v14 = vsel %vm1282_vm3, %v11376_v8, %v15238_v2  ;;  %v12798_v8 = vld [vmem:[#allocation2 + $0x24] sm:$0xf] }
 0x3eb   : > { %6374 = vrot.lane.b32.xlu1 %v6303_v49, %s12879_s29  ;;  %v11377_v49 = vcombine.low %v14929_v45, %v14929_v45 }
 0x3ec   : > { %v15550_v5 = vpop.permute.xlu0 %4615 }
 0x3ed   : > { %v15552_v60 = vpop.permute.xlu1 %6342  ;;  %v4667_v37 = vsel %vm1282_vm3, %v11377_v49, %v15238_v2  ;;  %v15606_v2 = vsel %vm1373_vm4, %v4665_v14, %v15246_v58 }
 0x3ee   : > { %6372 = vrot.lane.b32.xlu0 %v6301_v27, %s12879_s29  ;;  %v6383_v27 = vsel %vm1282_vm3, %v11496_v62, %v15305_v54  ;;  %v15584_v45 = vsel %vm1373_vm4, %v4667_v37, %v15262_v46  ;;  %v11499_v46 = vcombine.low %v12797_v16, %v12797_v16  ;;  %18985 = vst [vmem:[#allocation39_spill] sm:$0xff] %v15606_v2 }
 0x3ef   : > { %4847 = vrot.lane.b32.xlu1 %v15522_v33, %s12880_s30  ;;  %18983 = vst [vmem:[#allocation10_spill] sm:$0xff] %v15584_v45  ;;  %v15588_v54 = vsel %vm1373_vm4, %v6383_v27, %v15312_v56  ;;  %v5788_v56 = vld [vmem:[#allocation2 + $0x20] sm:$0x8]  ;;  %v7160_v27 = vsel %vm2071_vm5, %v12657_v6, 0  ;;  %v12658_v6 = vld [vmem:[%s18668_s8 + $0x18] sm:$0xff]  }
 0x3f0   : > { %v15559_v43 = vpop.permute.xlu0 %6340  ;;  %v6390_v49 = vsel %vm1282_vm3, %v11499_v46, %v15299_v48  ;;  %12260 = vmatpush3.bf16.msra.mxu1 %v7160_v27  ;;  %v11498_v37 = vcombine.low %v5788_v56, %v12798_v8  ;;  %v11379_v46 = vcombine.low %v14965_v53, %v14965_v53  ;;  %v12659_v53 = vld [vmem:[%s18668_s8 + $0x10] sm:$0xff]   ;;  %v12799_v8 = vld [vmem:[#allocation2 + $0x38] sm:$0xf] }
 0x3f1   : > { %v15561_v35 = vpop.permute.xlu1 %6180  ;;  %v15621_v58 = vsel %vm1373_vm4, %v6390_v49, %v15278_v11  ;;  %12261 = vmatprep.subr.bf16.mxu1 %v12658_v6  ;;  %v4064_v27 = vld [vmem:[#allocation2 + $0x50] sm:$0x8] }
 0x3f2   : > { %4845 = vrot.lane.b32.xlu0 %v15493_v52, %s12880_s30  ;;  %18986 = vst [vmem:[#allocation40_spill] sm:$0xff] %v15621_v58  ;;  %v6388_v14 = vsel %vm1282_vm3, %v11498_v37, %v15299_v48  ;;  %v4672_v49 = vsel %vm1282_vm3, %v11379_v46, %v15276_v22  ;;  %v11501_v37 = vcombine.low %v12799_v8, %v12799_v8  ;;  %v12660_v8 = vld [vmem:[%s18668_s8 + $0x8] sm:$0xff]  }
 0x3f3   : > { %6572 = vrot.lane.b32.xlu1 %v15565_v0, %s12880_s30  ;;  %v15640_v48 = vsel %vm1373_vm4, %v6388_v14, %v15301_v40  ;;  %v5791_v14 = vld [vmem:[#allocation2 + $0x30] sm:$0x8]  ;;  %v11378_v46 = vcombine.low %v4064_v27, %v14963_v32 }
 0x3f4   : > { %v15578_v31 = vpop.permute.xlu0 %4451  ;;  %18987 = vst [vmem:[#allocation41_spill] sm:$0xff] %v15640_v48  ;;  %12262 = vmatpush3.bf16.msra.mxu1 %v12658_v6  ;;  %v15657_v6 = vsel %vm1373_vm4, %v4672_v49, %v15266_v17  ;;  %v12661_v17 = vld [vmem:[%s18668_s8] sm:$0xff]   ;;  %v12800_v49 = vld [vmem:[#allocation2 + $0x34] sm:$0xf] }
 0x3f5   : > { %v15580_v42 = vpop.permute.xlu1 %4619  ;;  %12263 = vmatprep.subr.bf16.mxu1 %v12659_v53  ;;  %v4670_v32 = vsel %vm1282_vm3, %v11378_v46, %v15276_v22  ;;  %v11381_v46 = vcombine.low %v14971_v28, %v14971_v28 }
 0x3f6   : > { %6570 = vrot.lane.b32.xlu0 %v15588_v54, %s12880_s30 }
 0x3f7   : > { %4851 = vrot.lane.b32.xlu1 %v15584_v45, %s12880_s30 }
 0x3f8   : > { %v15599_v62 = vpop.permute.xlu0 %4453  ;;  %12264 = vmatpush3.bf16.msra.mxu1 %v12659_v53  ;;  %v11500_v53 = vcombine.low %v5791_v14, %v12800_v49 }
 0x3f9   : > { %v15601_v20 = vpop.permute.xlu1 %6182  ;;  %12265 = vmatprep.subr.bf16.mxu1 %v12660_v8 }
 0x3fa   : > { %18984 = vst [vmem:[#allocation38_spill] sm:$0xff] %v15601_v20  ;;  %4849 = vrot.lane.b32.xlu0 %v15606_v2, %s12880_s30 }
 0x3fb   : > { %4913 = vrot.lane.b32.xlu1 %v15584_v45, %s12881_s16 }
 0x3fc   : > { %v15615_v16 = vpop.permute.xlu0 %4621  ;;  %12266 = vmatpush3.bf16.msra.mxu1 %v12660_v8 }
 0x3fd   : > { %v15617_v20 = vpop.permute.xlu1 %6346  ;;  %12267 = vmatprep.subr.bf16.mxu1 %v12661_v17 }
 0x3fe   : > { %4911 = vrot.lane.b32.xlu0 %v15606_v2, %s12881_s16 }
 0x3ff   : > { %6576 = vrot.lane.b32.xlu1 %v15621_v58, %s12880_s30 }
 0x400   : > { %v15634_v56 = vpop.permute.xlu0 %6344  ;;  %12268 = vmatpush3.bf16.msra.mxu1 %v12661_v17 }
 0x401   : > { %v15636_v11 = vpop.permute.xlu1 %4625 }
 0x402   : > { %6574 = vrot.lane.b32.xlu0 %v15640_v48, %s12880_s30 }
 0x403   : > { %6638 = vrot.lane.b32.xlu1 %v15621_v58, %s12881_s16  ;;  %v6395_v58 = vsel %vm1282_vm3, %v11501_v37, %v15350_v55 }
 0x404   : > { %v15651_v2 = vpop.permute.xlu0 %4623  ;;  %v15684_v45 = vsel %vm1373_vm4, %v6395_v58, %v15321_v44  ;;  %v4067_v58 = vld [vmem:[#allocation2 + $0x60] sm:$0x8] }
 0x405   : > { %v15653_v40 = vpop.permute.xlu1 %6350 }
 0x406   : > { %18988 = vst [vmem:[#allocation42_spill] sm:$0xff] %v15653_v40  ;;  %6636 = vrot.lane.b32.xlu0 %v15640_v48, %s12881_s16  ;;  %v15680_v48 = vsel %vm1373_vm4, %v4670_v32, %v15292_v57  ;;  %v6393_v40 = vsel %vm1282_vm3, %v11500_v53, %v15350_v55 }
 0x407   : > { %4917 = vrot.lane.b32.xlu1 %v15657_v6, %s12881_s16  ;;  %v15698_v57 = vsel %vm1373_vm4, %v6393_v40, %v15354_v36  ;;  %v11380_v36 = vcombine.low %v4067_v58, %v14975_v23  ;;  %v4677_v40 = vsel %vm1282_vm3, %v11381_v46, %v15335_v21  ;;  %v12801_v58 = vld [vmem:[#allocation2 + $0x48] sm:$0xf] }
 0x408   : > { %v15674_v27 = vpop.permute.xlu0 %6348  ;;  %v15723_v32 = vsel %vm1373_vm4, %v4677_v40, %v15366_v47  ;;  %v11503_v47 = vcombine.low %v12801_v58, %v12801_v58  ;;  %v18992_v46 = vld [vmem:[#allocation16_spill] sm:$0xff] }
 0x409   : > { %v15676_v37 = vpop.permute.xlu1 %6184  ;;  %18990 = vst [vmem:[#allocation44_spill] sm:$0xff] %v15723_v32  ;;  %v4675_v28 = vsel %vm1282_vm3, %v11380_v36, %v15335_v21  ;;  %v5794_v21 = vld [vmem:[#allocation2 + $0x40] sm:$0x8] }
 0x40a   : > { %4915 = vrot.lane.b32.xlu0 %v15680_v48, %s12881_s16  ;;  %v15737_v53 = vsel %vm1373_vm4, %v4675_v28, %v15310_v61  ;;  %v6400_v36 = vsel %vm1282_vm3, %v11503_v47, %v18992_v46  ;;  %v12802_v28 = vld [vmem:[#allocation2 + $0x44] sm:$0xf] }
 0x40b   : > { %6642 = vrot.lane.b32.xlu1 %v15684_v45, %s12881_s16  ;;  %18991 = vst [vmem:[#allocation45_spill] sm:$0xff] %v15737_v53  ;;  %v15751_v61 = vsel %vm1373_vm4, %v6400_v36, %v15358_v38  ;;  %v11502_v58 = vcombine.low %v5794_v21, %v12802_v28  ;;  %v18999_v38 = vld [vmem:[#allocation19_spill] sm:$0xff]  ;;  %v4070_v36 = vld [vmem:[#allocation2 + $0x70] sm:$0x8] }
 0x40c   : > { %v15692_v22 = vpop.permute.xlu0 %4455  ;;  %18995 = vst [vmem:[#allocation47_spill] sm:$0xff] %v15751_v61  ;;  %v11383_v21 = vcombine.low %v18999_v38, %v18999_v38 }
 0x40d   : > { %v15694_v14 = vpop.permute.xlu1 %4627 }
 0x40e   : > { %6640 = vrot.lane.b32.xlu0 %v15698_v57, %s12881_s16 }
 0x40f   : > { %4855 = vrot.lane.b32.xlu1 %v15657_v6, %s12880_s30 }
 0x410   : > { %v15704_v44 = vpop.permute.xlu0 %4457 }
 0x411   : > { %v15706_v55 = vpop.permute.xlu1 %6186 }
 0x412   : > { %18989 = vst [vmem:[#allocation43_spill] sm:$0xff] %v15706_v55  ;;  %4853 = vrot.lane.b32.xlu0 %v15680_v48, %s12880_s30 }
 0x413   : > { %6580 = vrot.lane.b32.xlu1 %v15684_v45, %s12880_s30 }
 0x414   : > { %v15717_v8 = vpop.permute.xlu0 %4629 }
 0x415   : > { %v15719_v17 = vpop.permute.xlu1 %6354 }
 0x416   : > { %6578 = vrot.lane.b32.xlu0 %v15698_v57, %s12880_s30 }
 0x417   : > { %4859 = vrot.lane.b32.xlu1 %v15723_v32, %s12880_s30 }
 0x418   : > { %v15731_v23 = vpop.permute.xlu0 %6352 }
 0x419   : > { %v15733_v49 = vpop.permute.xlu1 %4633 }
 0x41a   : > { %4857 = vrot.lane.b32.xlu0 %v15737_v53, %s12880_s30 }
 0x41b   : > { %4921 = vrot.lane.b32.xlu1 %v15723_v32, %s12881_s16  ;;  %v6398_v32 = vsel %vm1282_vm3, %v11502_v58, %v18992_v46  ;;  %v4682_v46 = vsel %vm1282_vm3, %v11383_v21, %v15360_v12 }
 0x41c   : > { %v15745_v40 = vpop.permute.xlu0 %4631 }
 0x41d   : > { %18993 = vst [vmem:[#allocation16_spill] sm:$0xff] %v15745_v40  ;;  %v15747_v55 = vpop.permute.xlu1 %6358 }
 0x41e   : > { %18994 = vst [vmem:[#allocation46_spill] sm:$0xff] %v15747_v55  ;;  %4919 = vrot.lane.b32.xlu0 %v15737_v53, %s12881_s16  ;;  %v15765_v55 = vsel %vm1373_vm4, %v6398_v32, %v15375_v63  ;;  %v15781_v63 = vsel %vm1373_vm4, %v4682_v46, %v15377_v19  ;;  %v19003_v32 = vld [vmem:[#allocation25_spill] sm:$0xff] }
 0x41f   : > { %6584 = vrot.lane.b32.xlu1 %v15751_v61, %s12880_s30  ;;  %18998 = vst [vmem:[#allocation50_spill] sm:$0xff] %v15765_v55  ;;  %19002 = vst [vmem:[#allocation52_spill] sm:$0xff] %v15781_v63  ;;  %v11382_v38 = vcombine.low %v4070_v36, %v19003_v32  ;;  %v12804_v46 = vld [vmem:[#allocation2 + $0x54] sm:$0xf] }
 0x420   : > { %v15759_v47 = vpop.permute.xlu0 %6356 }
 0x421   : > { %18996 = vst [vmem:[#allocation48_spill] sm:$0xff] %v15759_v47  ;;  %v15761_v40 = vpop.permute.xlu1 %6188  ;;  %v4680_v21 = vsel %vm1282_vm3, %v11382_v38, %v15360_v12 }
 0x422   : > { %18997 = vst [vmem:[#allocation49_spill] sm:$0xff] %v15761_v40  ;;  %6582 = vrot.lane.b32.xlu0 %v15765_v55, %s12880_s30  ;;  %v12803_v40 = vld [vmem:[#allocation2 + $0x58] sm:$0xf] }
 0x423   : > { %6646 = vrot.lane.b32.xlu1 %v15751_v61, %s12881_s16  ;;  %v11505_v53 = vcombine.low %v12803_v40, %v12803_v40  ;;  %v5797_v61 = vld [vmem:[#allocation2 + $0x50] sm:$0x8]  ;;  %v15798_v40 = vsel %vm1373_vm4, %v4680_v21, %v15383_v29  ;;  %v19011_v21 = vld [vmem:[#allocation26_spill] sm:$0xff] }
 0x424   : > { %v15775_v28 = vpop.permute.xlu0 %4459  ;;  %19005 = vst [vmem:[#allocation53_spill] sm:$0xff] %v15798_v40  ;;  %v11504_v32 = vcombine.low %v5797_v61, %v12804_v46 }
 0x425   : > { %19000 = vst [vmem:[#allocation19_spill] sm:$0xff] %v15775_v28  ;;  %v15777_v58 = vpop.permute.xlu1 %4461 }
 0x426   : > { %19001 = vst [vmem:[#allocation51_spill] sm:$0xff] %v15777_v58  ;;  %6644 = vrot.lane.b32.xlu0 %v15765_v55, %s12881_s16  ;;  %v6405_v58 = vsel %vm1282_vm3, %v11505_v53, %v15368_v30  ;;  %v6403_v12 = vsel %vm1282_vm3, %v11504_v32, %v15368_v30  ;;  %v11385_v30 = vcombine.low %v19011_v21, %v19011_v21  ;;  %v19027_v55 = vld [vmem:[#allocation21_spill] sm:$0xff] }
 0x427   : > { %4925 = vrot.lane.b32.xlu1 %v15781_v63, %s12881_s16  ;;  %v15802_v36 = vsel %vm1373_vm4, %v6405_v58, %v15385_v7  ;;  %v15816_v29 = vsel %vm1373_vm4, %v6403_v12, %v15390_v15  ;;  %v4073_v58 = vld [vmem:[#allocation2 + $0x80] sm:$0x8]  ;;  %v19012_v15 = vld [vmem:[#allocation20_spill] sm:$0xff] }
 0x428   : > { %v15792_v28 = vpop.permute.xlu0 %4427  ;;  %19006 = vst [vmem:[#allocation54_spill] sm:$0xff] %v15802_v36  ;;  %19009 = vst [vmem:[#allocation57_spill] sm:$0xff] %v15816_v29  ;;  %v11384_v46 = vcombine.low %v4073_v58, %v19012_v15  ;;  %v4687_v32 = vsel %vm1282_vm3, %v11385_v30, %v15399_v59 }
 0x429   : > { %v15794_v19 = vpop.permute.xlu1 %4637 }
 0x42a   : > { %19004 = vst [vmem:[#allocation25_spill] sm:$0xff] %v15794_v19  ;;  %4923 = vrot.lane.b32.xlu0 %v15798_v40, %s12881_s16  ;;  %v4685_v21 = vsel %vm1282_vm3, %v11384_v46, %v15399_v59  ;;  %v5800_v59 = vld [vmem:[#allocation2 + $0x60] sm:$0x8] }
 0x42b   : > { %6650 = vrot.lane.b32.xlu1 %v15802_v36, %s12881_s16  ;;  %v15851_v30 = vsel %vm1373_vm4, %v4685_v21, %v15401_v9  ;;  %v12806_v21 = vld [vmem:[#allocation2 + $0x64] sm:$0xf] }
 0x42c   : > { %v15810_v53 = vpop.permute.xlu0 %4635  ;;  %19017 = vst [vmem:[#allocation61_spill] sm:$0xff] %v15851_v30 }
 0x42d   : > { %19007 = vst [vmem:[#allocation55_spill] sm:$0xff] %v15810_v53  ;;  %v15812_v38 = vpop.permute.xlu1 %6360 }
 0x42e   : > { %19008 = vst [vmem:[#allocation56_spill] sm:$0xff] %v15812_v38  ;;  %6648 = vrot.lane.b32.xlu0 %v15816_v29, %s12881_s16 }
 0x42f   : > { %4863 = vrot.lane.b32.xlu1 %v15781_v63, %s12880_s30 }
 0x430   : > { %v15822_v7 = vpop.permute.xlu0 %6190 }
 0x431   : > { %19010 = vst [vmem:[#allocation58_spill] sm:$0xff] %v15822_v7  ;;  %v4572_v61 = vpop.permute.xlu1 %4571  ;;  %v15839_v7 = vsel %vm1373_vm4, %v4687_v32, %v15433_v34  ;;  %v19018_v34 = vld [vmem:[#allocation22_spill] sm:$0xff]  ;;  %v4049_v32 = vld [vmem:[#allocation2] sm:$0x8] }
 0x432   : > { %4861 = vrot.lane.b32.xlu0 %v15798_v40, %s12880_s30  ;;  %19015 = vst [vmem:[#allocation59_spill] sm:$0xff] %v15839_v7 }
 0x433   : > { %6588 = vrot.lane.b32.xlu1 %v15802_v36, %s12880_s30 }
 0x434   : > { %v15833_v12 = vpop.permute.xlu0 %6362 }
 0x435   : > { %19013 = vst [vmem:[#allocation26_spill] sm:$0xff] %v15833_v12  ;;  %v15835_v38 = vpop.permute.xlu1 %4639 }
 0x436   : > { %19014 = vst [vmem:[#allocation20_spill] sm:$0xff] %v15835_v38  ;;  %6586 = vrot.lane.b32.xlu0 %v15816_v29, %s12880_s30  ;;  %v12805_v38 = vld [vmem:[#allocation2 + $0x68] sm:$0xf] }
 0x437   : > { %4867 = vrot.lane.b32.xlu1 %v15839_v7, %s12880_s30  ;;  %v11507_v36 = vcombine.low %v12805_v38, %v12805_v38  ;;  %v11506_v38 = vcombine.low %v5800_v59, %v12806_v21  ;;  %v19024_v59 = vld [vmem:[#allocation27_spill] sm:$0xff] }
 0x438   : > { %v4574_v58 = vpop.permute.xlu0 %4573  ;;  %v11387_v21 = vcombine.low %v19024_v59, %v19024_v59 }
 0x439   : > { %v15847_v15 = vpop.permute.xlu1 %6364  ;;  %v6410_v46 = vsel %vm1282_vm3, %v11507_v36, %v19018_v34  ;;  %v6408_v36 = vsel %vm1282_vm3, %v11506_v38, %v19018_v34 }
 0x43a   : > { %19016 = vst [vmem:[#allocation60_spill] sm:$0xff] %v15847_v15  ;;  %4865 = vrot.lane.b32.xlu0 %v15851_v30, %s12880_s30  ;;  %v15863_v9 = vsel %vm1373_vm4, %v6410_v46, %v15435_v50  ;;  %v15876_v50 = vsel %vm1373_vm4, %v6408_v36, %v15458_v1  ;;  %v4076_v46 = vld [vmem:[#allocation2 + $0x90] sm:$0x8]  ;;  %v4692_v34 = vsel %vm1282_vm3, %v11387_v21, %v15414_v24  ;;  %v19025_v36 = vld [vmem:[#allocation8_spill] sm:$0xff] }
 0x43b   : > { %4929 = vrot.lane.b32.xlu1 %v15839_v7, %s12881_s16  ;;  %19020 = vst [vmem:[#allocation62_spill] sm:$0xff] %v15863_v9  ;;  %v19021_v7 = vld [vmem:[#allocation3_spill] sm:$0xff]  ;;  %19023 = vst [vmem:[#allocation63_spill] sm:$0xff] %v15876_v50  ;;  %v15892_v59 = vsel %vm1373_vm4, %v4692_v34, %v15460_v3  ;;  %v12808_v3 = vld [vmem:[#allocation2 + $0x74] sm:$0xf] }
 0x43c   : > { %v15859_v29 = vpop.permute.xlu0 %4641  ;;  %v11368_v40 = vcombine.low %v4049_v32, %v19021_v7  ;;  %19026 = vst [vmem:[#allocation27_spill] sm:$0xff] %v15892_v59 }
 0x43d   : > { %19019 = vst [vmem:[#allocation22_spill] sm:$0xff] %v15859_v29  ;;  %v4838_v15 = vpop.permute.xlu1 %4837 }
 0x43e   : > { %4927 = vrot.lane.b32.xlu0 %v15851_v30, %s12881_s16  ;;  %v4645_v7 = vsel %vm1282_vm3, %v11368_v40, %v15792_v28  ;;  %v11386_v30 = vcombine.low %v4076_v46, %v19025_v36  ;;  %v11369_v40 = vcombine.low %v19027_v55, %v19027_v55  ;;  %v19031_v36 = vld [vmem:[#allocation29_spill] sm:$0xff] }
 0x43f   : > { %6592 = vrot.lane.b32.xlu1 %v15863_v9, %s12880_s30  ;;  %v4734_v32 = vsel %vm1373_vm4, %v4645_v7, %v4572_v61  ;;  %v19028_v7 = vld [vmem:[#allocation23_spill] sm:$0xff] }
 0x440   : > { %v15872_v12 = vpop.permute.xlu0 %6366  ;;  %v4968_v53 = vsel %vm1608_vm7, %v4734_v32, %v4838_v15  ;;  %v4690_v61 = vsel %vm1282_vm3, %v11386_v30, %v15414_v24  ;;  %v19030_v32 = vld [vmem:[#allocation6_spill] sm:$0xff] }
 0x441   : > { %19022 = vst [vmem:[#allocation3_spill] sm:$0xff] %v15872_v12  ;;  %v4842_v29 = vpop.permute.xlu1 %4841  ;;  %v5803_v12 = vld [vmem:[#allocation2 + $0x70] sm:$0x8] }
 0x442   : > { %6590 = vrot.lane.b32.xlu0 %v15876_v50, %s12880_s30  ;;  %v11508_v46 = vcombine.low %v5803_v12, %v12808_v3  ;;  %v4647_v12 = vsel %vm1282_vm3, %v11369_v40, %v15792_v28  ;;  %v19032_v3 = vld [vmem:[#allocation7_spill] sm:$0xff] }
 0x443   : > { %6654 = vrot.lane.b32.xlu1 %v15863_v9, %s12881_s16  ;;  %v12807_v9 = vld [vmem:[#allocation2 + $0x78] sm:$0xf] }
 0x444   : > { %v4840_v1 = vpop.permute.xlu0 %4839  ;;  %v11509_v63 = vcombine.low %v12807_v9, %v12807_v9  ;;  %v19029_v9 = vld [vmem:[#allocation18_spill] sm:$0xff]  ;;  %v6413_v30 = vsel %vm1282_vm3, %v11508_v46, %v19028_v7  ;;  %v19034_v46 = vld [vmem:[#allocation17_spill] sm:$0xff] }
 0x445   : > { %v4904_v38 = vpop.permute.xlu1 %4903  ;;  %v15908_v34 = vsel %vm1373_vm4, %v4690_v61, %v19029_v9  ;;  %v4736_v61 = vsel %vm1373_vm4, %v4647_v12, %v4574_v58  ;;  %v4079_v58 = vld [vmem:[#allocation2 + $0xa0] sm:$0x8] }
 0x446   : > { %v5032_v21 = vsel %vm1673_vm6, %v4968_v53, %v4904_v38  ;;  %6652 = vrot.lane.b32.xlu0 %v15876_v50, %s12881_s16  ;;  %v6415_v15 = vsel %vm1282_vm3, %v11509_v63, %v19028_v7  ;;  %v4972_v50 = vsel %vm1608_vm7, %v19031_v36, %v4842_v29  ;;  %v15928_v29 = vsel %vm1373_vm4, %v6413_v30, %v19032_v3  ;;  %v19035_v30 = vld [vmem:[#allocation12_spill] sm:$0xff] }
 0x447   : > { %4933 = vrot.lane.b32.xlu1 %v15892_v59, %s12881_s16  ;;  %v15912_v38 = vsel %vm1373_vm4, %v6415_v15, %v19030_v32  ;;  %v5095_v19 = vshrl.u32 %v5032_v21, 16  ;;  %v5098_v24 = vshll.u32 %v5032_v21, 16  ;;  %v4970_v21 = vsel %vm1608_vm7, %v4736_v61, %v4840_v1 }
 0x448   : > { %v4844_v55 = vpop.permute.xlu0 %4843 }
 0x449   : > { %v4908_v53 = vpop.permute.xlu1 %4907  ;;  %v5100_v15 = vrot.slane %v5098_v24, 4  ;;  %v4974_v1 = vsel %vm1608_vm7, %v19034_v46, %v4844_v55 }
 0x44a   : > { %v5036_v63 = vsel %vm1673_vm6, %v4972_v50, %v4908_v53  ;;  %4931 = vrot.lane.b32.xlu0 %v15908_v34, %s12881_s16  ;;  %v5097_v50 = vrot.slane %v5095_v19, 3 }
 0x44b   : > { %6658 = vrot.lane.b32.xlu1 %v15912_v38, %s12881_s16  ;;  %v5110_v9 = vshrl.u32 %v5036_v63, 16  ;;  %v5113_v32 = vshll.u32 %v5036_v63, 16  ;;  %v11389_v63 = vcombine.low %v19035_v30, %v19035_v30 }
 0x44c   : > { %v4906_v28 = vpop.permute.xlu0 %4905  ;;  %v5101_v61 = vor.u32 %v5100_v15, %v5097_v50 }
 0x44d   : > { %v15931_v40 = vpop.permute.xlu1 %6192  ;;  %v5034_v53 = vsel %vm1673_vm6, %v4970_v21, %v4906_v28  ;;  %v5112_v3 = vrot.slane %v5110_v9, 3  ;;  %v5115_v28 = vrot.slane %v5113_v32, 4 }
 0x44e   : > { %19033 = vst [vmem:[#allocation8_spill] sm:$0xff] %v15931_v40  ;;  %v5102_v36 = vshrl.u32 %v5034_v53, 16  ;;  %v5105_v47 = vshll.u32 %v5034_v53, 16  ;;  %6656 = vrot.lane.b32.xlu0 %v15928_v29, %s12881_s16 }
 0x44f   : > { %4871 = vrot.lane.b32.xlu1 %v15892_v59, %s12880_s30 }
 0x450   : > { %v5104_v7 = vrot.slane %v5102_v36, 3  ;;  %v5107_v12 = vrot.slane %v5105_v47, 4  ;;  %v4910_v19 = vpop.permute.xlu0 %4909  ;;  %v19036_v47 = vld [vmem:[#allocation11_spill] sm:$0xff]  ;;  %v4697_v36 = vsel %vm1282_vm3, %v11389_v63, %v15516_v25 }
 0x451   : > { %v15940_v24 = vpop.permute.xlu1 %6194  ;;  %v5038_v21 = vsel %vm1673_vm6, %v4974_v1, %v4910_v19  ;;  %v11388_v55 = vcombine.low %v4079_v58, %v19036_v47  ;;  %v15959_v1 = vsel %vm1373_vm4, %v4697_v36, %v15537_v39  ;;  %v5806_v63 = vld [vmem:[#allocation2 + $0x80] sm:$0x8] }
 0x452   : > { %v5108_v53 = vor.u32 %v5107_v12, %v5104_v7  ;;  %v5117_v40 = vshrl.u32 %v5038_v21, 16  ;;  %v5120_v59 = vshll.u32 %v5038_v21, 16  ;;  %4869 = vrot.lane.b32.xlu0 %v15908_v34, %s12880_s30  ;;  %19037 = vst [vmem:[#allocation21_spill] sm:$0xff] %v15959_v1  ;;  %v5116_v7 = vor.u32 %v5115_v28, %v5112_v3 }
 0x453   : > { %6596 = vrot.lane.b32.xlu1 %v15912_v38, %s12880_s30  ;;  %v4695_v58 = vsel %vm1282_vm3, %v11388_v55, %v15516_v25  ;;  %v12809_v25 = vld [vmem:[#allocation2 + $0x88] sm:$0xf] }
 0x454   : > { %v5119_v46 = vrot.slane %v5117_v40, 3  ;;  %v5122_v50 = vrot.slane %v5120_v59, 4  ;;  %v15952_v15 = vpop.permute.xlu0 %6160  ;;  %v5109_v32 = vsel %vm1738_vm8, %v5101_v61, %v5108_v53  ;;  %v15975_v19 = vsel %vm1373_vm4, %v4695_v58, %v15518_v18  ;;  %v19039_v61 = vld [vmem:[#allocation24_spill] sm:$0xff]  ;;  %v12810_v53 = vld [vmem:[#allocation2 + $0x84] sm:$0xf] }
 0x455   : > { %v15954_v9 = vpop.permute.xlu1 %6370  ;;  %12227 = vmatprep.mubr.msk.bf16.mxu0 %vm2022_vm9, %v5109_v32  ;;  %19038 = vst [vmem:[#allocation23_spill] sm:$0xff] %v15975_v19  ;;  %v11511_v30 = vcombine.low %v12809_v25, %v12809_v25  ;;  %v11510_v47 = vcombine.low %v5806_v63, %v12810_v53  ;;  %v4082_v58 = vld [vmem:[#allocation2 + $0xb0] sm:$0x8]  ;;  %v12811_v63 = vld [vmem:[#allocation2 + $0x98] sm:$0xf] }
 0x456   : > { %v5123_v12 = vor.u32 %v5122_v50, %v5119_v46  ;;  %6594 = vrot.lane.b32.xlu0 %v15928_v29, %s12880_s30 }
 0x457   : > { %4875 = vrot.lane.b32.xlu1 %v15959_v1, %s12880_s30  ;;  %v6420_v3 = vsel %vm1282_vm3, %v11511_v30, %v19039_v61  ;;  %v6418_v55 = vsel %vm1282_vm3, %v11510_v47, %v19039_v61  ;;  %v11513_v61 = vcombine.low %v12811_v63, %v12811_v63  ;;  %v5782_v63 = vld [vmem:[#allocation2] sm:$0x8] }
 0x458   : > { %v15968_v59 = vpop.permute.xlu0 %6368  ;;  %v5124_v39 = vsel %vm1738_vm8, %v5116_v7, %v5123_v12  ;;  %v15990_v18 = vsel %vm1373_vm4, %v6420_v3, %v15539_v4  ;;  %v16002_v50 = vsel %vm1373_vm4, %v6418_v55, %v15544_v26  ;;  %v19042_v4 = vld [vmem:[#allocation35_spill] sm:$0xff]  ;;  %v19044_v26 = vld [vmem:[#allocation28_spill] sm:$0xff]  ;;  %v5809_v3 = vld [vmem:[#allocation2 + $0x90] sm:$0x8] }
 0x459   : > { %v15970_v40 = vpop.permute.xlu1 %6306  ;;  %12228 = vmatmul.mubr.msk.bf16.vlgmr.msra.gmra.mxu0 %vm2022_vm9, %v5124_v39  ;;  %19040 = vst [vmem:[#allocation18_spill] sm:$0xff] %v15990_v18  ;;  %19041 = vst [vmem:[#allocation6_spill] sm:$0xff] %v16002_v50  ;;  %v11391_v32 = vcombine.low %v19042_v4, %v19042_v4  ;;  %v11390_v30 = vcombine.low %v4082_v58, %v19044_v26  ;;  %v6425_v47 = vsel %vm1282_vm3, %v11513_v61, %v15530_v51  ;;  %v12812_v58 = vld [vmem:[#allocation2 + $0x94] sm:$0xf] }
 0x45a   : > { %4873 = vrot.lane.b32.xlu0 %v15975_v19, %s12880_s30  ;;  %v19045_v61 = vld [vmem:[#allocation9_spill] sm:$0xff] }
 0x45b   : > { %4937 = vrot.lane.b32.xlu1 %v15959_v1, %s12881_s16  ;;  %v4702_v7 = vsel %vm1282_vm3, %v11391_v32, %v15528_v13  ;;  %v4700_v53 = vsel %vm1282_vm3, %v11390_v30, %v15528_v13  ;;  %v16031_v32 = vsel %vm1373_vm4, %v6425_v47, %v15552_v60 }
 0x45c   : > { %v15984_v21 = vpop.permute.xlu0 %6304  ;;  %v16014_v25 = vsel %vm1373_vm4, %v4702_v7, %v15546_v41  ;;  %v16027_v4 = vsel %vm1373_vm4, %v4700_v53, %v15550_v5  ;;  %v11512_v7 = vcombine.low %v5809_v3, %v12812_v58  ;;  %v11495_v3 = vcombine.low %v19045_v61, %v19045_v61 }
 0x45d   : > { %v15986_v28 = vpop.permute.xlu1 %6374  ;;  %19043 = vst [vmem:[#allocation29_spill] sm:$0xff] %v16014_v25 }
 0x45e   : > { %4935 = vrot.lane.b32.xlu0 %v15975_v19, %s12881_s16  ;;  %v6423_v13 = vsel %vm1282_vm3, %v11512_v7, %v15530_v51  ;;  %v19046_v51 = vld [vmem:[#allocation5_spill] sm:$0xff]  ;;  %v19047_v7 = vld [vmem:[#allocation4_spill] sm:$0xff] }
 0x45f   : > { %6600 = vrot.lane.b32.xlu1 %v15990_v18, %s12880_s30  ;;  %v16045_v60 = vsel %vm1373_vm4, %v6423_v13, %v15559_v43 }
 0x460   : > { %v15998_v36 = vpop.permute.xlu0 %6372 }
 0x461   : > { %v4848_v46 = vpop.permute.xlu1 %4847 }
 0x462   : > { %6598 = vrot.lane.b32.xlu0 %v16002_v50, %s12880_s30  ;;  %v4978_v26 = vsel %vm1608_vm7, %v15489_v10, %v4848_v46  ;;  %v4085_v10 = vld [vmem:[#allocation2 + $0xc0] sm:$0x8]  ;;  %v11494_v46 = vcombine.low %v5782_v63, %v19046_v51 }
 0x463   : > { %6662 = vrot.lane.b32.xlu1 %v15990_v18, %s12881_s16  ;;  %v19048_v18 = vld [vmem:[#allocation34_spill] sm:$0xff] }
 0x464   : > { %v4846_v12 = vpop.permute.xlu0 %4845  ;;  %v11393_v61 = vcombine.low %v19048_v18, %v19048_v18 }
 0x465   : > { %v6573_v39 = vpop.permute.xlu1 %6572  ;;  %v4976_v43 = vsel %vm1608_vm7, %v19047_v7, %v4846_v12  ;;  %v19049_v12 = vld [vmem:[#allocation13_spill] sm:$0xff] }
 0x466   : > { %6660 = vrot.lane.b32.xlu0 %v16002_v50, %s12881_s16  ;;  %v11392_v63 = vcombine.low %v4085_v10, %v19049_v12  ;;  %v4707_v18 = vsel %vm1282_vm3, %v11393_v61, %v15578_v31 }
 0x467   : > { %4941 = vrot.lane.b32.xlu1 %v16014_v25, %s12881_s16  ;;  %v16078_v10 = vsel %vm1373_vm4, %v4707_v18, %v15615_v16 }
 0x468   : > { %v6571_v55 = vpop.permute.xlu0 %6570 }
 0x469   : > { %v4852_v41 = vpop.permute.xlu1 %4851 }
 0x46a   : > { %4939 = vrot.lane.b32.xlu0 %v16027_v4, %s12881_s16 }
 0x46b   : > { %6666 = vrot.lane.b32.xlu1 %v16031_v32, %s12881_s16 }
 0x46c   : > { %v16041_v5 = vpop.permute.xlu0 %4849 }
 0x46d   : > { %v4914_v30 = vpop.permute.xlu1 %4913 }
 0x46e   : > { %v5042_v53 = vsel %vm1673_vm6, %v4978_v26, %v4914_v30  ;;  %6664 = vrot.lane.b32.xlu0 %v16045_v60, %s12881_s16  ;;  %v6380_v26 = vsel %vm1282_vm3, %v11495_v3, %v15952_v15 }
 0x46f   : > { %v5132_v47 = vshrl.u32 %v5042_v53, 16  ;;  %v5135_v58 = vshll.u32 %v5042_v53, 16  ;;  %4879 = vrot.lane.b32.xlu1 %v16014_v25, %s12880_s30  ;;  %v6469_v3 = vsel %vm1373_vm4, %v6380_v26, %v15970_v40 }
 0x470   : > { %v4912_v13 = vpop.permute.xlu0 %4911 }
 0x471   : > { %v6577_v50 = vpop.permute.xlu1 %6576  ;;  %v5040_v30 = vsel %vm1673_vm6, %v4976_v43, %v4912_v13  ;;  %v5134_v53 = vrot.slane %v5132_v47, 3  ;;  %v5137_v19 = vrot.slane %v5135_v58, 4  ;;  %v6378_v47 = vsel %vm1282_vm3, %v11494_v46, %v15952_v15 }
 0x472   : > { %v5125_v1 = vshrl.u32 %v5040_v30, 16  ;;  %v5128_v25 = vshll.u32 %v5040_v30, 16  ;;  %4877 = vrot.lane.b32.xlu0 %v16027_v4, %s12880_s30  ;;  %v6703_v58 = vsel %vm1608_vm7, %v6469_v3, %v6573_v39  ;;  %v4705_v30 = vsel %vm1282_vm3, %v11392_v63, %v15578_v31  ;;  %v12813_v31 = vld [vmem:[#allocation2 + $0xa8] sm:$0xf] }
 0x473   : > { %6604 = vrot.lane.b32.xlu1 %v16031_v32, %s12880_s30  ;;  %v6467_v61 = vsel %vm1373_vm4, %v6378_v47, %v15984_v21  ;;  %v5138_v26 = vor.u32 %v5137_v19, %v5134_v53  ;;  %v4982_v21 = vsel %vm1608_vm7, %v15522_v33, %v4852_v41  ;;  %v16093_v3 = vsel %vm1373_vm4, %v4705_v30, %v15580_v42  ;;  %v12814_v42 = vld [vmem:[#allocation2 + $0xa4] sm:$0xf] }
 0x474   : > { %v5127_v51 = vrot.slane %v5125_v1, 3  ;;  %v5130_v7 = vrot.slane %v5128_v25, 4  ;;  %v6575_v43 = vpop.permute.xlu0 %6574  ;;  %v11515_v1 = vcombine.low %v12813_v31, %v12813_v31  ;;  %v6701_v16 = vsel %vm1608_vm7, %v6467_v61, %v6571_v55  ;;  %v5812_v25 = vld [vmem:[#allocation2 + $0xa0] sm:$0x8] }
 0x475   : > { %v6639_v13 = vpop.permute.xlu1 %6638  ;;  %v4980_v30 = vsel %vm1608_vm7, %v15493_v52, %v16041_v5 }
 0x476   : > { %v6767_v40 = vsel %vm1673_vm6, %v6703_v58, %v6639_v13  ;;  %v5131_v15 = vor.u32 %v5130_v7, %v5127_v51  ;;  %6602 = vrot.lane.b32.xlu0 %v16045_v60, %s12880_s30  ;;  %v6430_v55 = vsel %vm1282_vm3, %v11515_v1, %v15561_v35  ;;  %v11514_v7 = vcombine.low %v5812_v25, %v12814_v42 }
 0x477   : > { %v6835_v46 = vshrl.u32 %v6767_v40, 16  ;;  %v6838_v39 = vshll.u32 %v6767_v40, 16  ;;  %4883 = vrot.lane.b32.xlu1 %v16078_v10, %s12880_s30  ;;  %v16106_v13 = vsel %vm1373_vm4, %v6430_v55, %v15617_v20  ;;  %v6707_v40 = vsel %vm1608_vm7, %v15565_v0, %v6577_v50  ;;  %v19050_v0 = vld [vmem:[#allocation37_spill] sm:$0xff] }
 0x478   : > { %v6637_v19 = vpop.permute.xlu0 %6636  ;;  %v5139_v18 = vsel %vm1738_vm8, %v5131_v15, %v5138_v26  ;;  %v6428_v52 = vsel %vm1282_vm3, %v11514_v7, %v15561_v35  ;;  %v11395_v50 = vcombine.low %v19050_v0, %v19050_v0  ;;  %v4088_v7 = vld [vmem:[#allocation2 + $0xd0] sm:$0x8] }
 0x479   : > { %v6837_v12 = vrot.slane %v6835_v46, 3  ;;  %v6840_v63 = vrot.slane %v6838_v39, 4  ;;  %v4918_v53 = vpop.permute.xlu1 %4917  ;;  %v6765_v47 = vsel %vm1673_vm6, %v6701_v16, %v6637_v19  ;;  %12231 = vmatprep.mubr.msk.bf16.mxu0 %vm2022_vm9, %v5139_v18 }
 0x47a   : > { %v5046_v58 = vsel %vm1673_vm6, %v4982_v21, %v4918_v53  ;;  %v6828_v33 = vshrl.u32 %v6765_v47, 16  ;;  %v6831_v41 = vshll.u32 %v6765_v47, 16  ;;  %4881 = vrot.lane.b32.xlu0 %v16093_v3, %s12880_s30 }
 0x47b   : > { %v5147_v51 = vshrl.u32 %v5046_v58, 16  ;;  %4945 = vrot.lane.b32.xlu1 %v16078_v10, %s12881_s16  ;;  %v5150_v61 = vshll.u32 %v5046_v58, 16  ;;  %v6841_v26 = vor.u32 %v6840_v63, %v6837_v12  ;;  %v6705_v12 = vsel %vm1608_vm7, %v15588_v54, %v6575_v43 }
 0x47c   : > { %v6830_v15 = vrot.slane %v6828_v33, 3  ;;  %v6833_v46 = vrot.slane %v6831_v41, 4  ;;  %v4916_v39 = vpop.permute.xlu0 %4915  ;;  %v16128_v41 = vsel %vm1373_vm4, %v6428_v52, %v15634_v56  ;;  %v4712_v56 = vsel %vm1282_vm3, %v11395_v50, %v15599_v62  ;;  %v19052_v52 = vld [vmem:[#allocation38_spill] sm:$0xff] }
 0x47d   : > { %v6643_v31 = vpop.permute.xlu1 %6642  ;;  %v5149_v1 = vrot.slane %v5147_v51, 3  ;;  %v5152_v16 = vrot.slane %v5150_v61, 4  ;;  %v5044_v25 = vsel %vm1673_vm6, %v4980_v30, %v4916_v39 }
 0x47e   : > { %v6771_v20 = vsel %vm1673_vm6, %v6707_v40, %v6643_v31  ;;  %v6834_v21 = vor.u32 %v6833_v46, %v6830_v15  ;;  %v5140_v19 = vshrl.u32 %v5044_v25, 16  ;;  %v5143_v53 = vshll.u32 %v5044_v25, 16  ;;  %4943 = vrot.lane.b32.xlu0 %v16093_v3, %s12881_s16  ;;  %v19051_v31 = vld [vmem:[#allocation30_spill] sm:$0xff] }
 0x47f   : > { %v6850_v18 = vshrl.u32 %v6771_v20, 16  ;;  %6608 = vrot.lane.b32.xlu1 %v16106_v13, %s12880_s30  ;;  %v6853_v5 = vshll.u32 %v6771_v20, 16  ;;  %v5153_v51 = vor.u32 %v5152_v16, %v5149_v1  ;;  %v11394_v1 = vcombine.low %v4088_v7, %v19051_v31  ;;  %v12815_v25 = vld [vmem:[#allocation2 + $0xb8] sm:$0xf] }
 0x480   : > { %v5142_v63 = vrot.slane %v5140_v19, 3  ;;  %v5145_v47 = vrot.slane %v5143_v53, 4  ;;  %v6641_v58 = vpop.permute.xlu0 %6640  ;;  %v6842_v33 = vsel %vm1738_vm8, %v6834_v21, %v6841_v26  ;;  %v16142_v16 = vsel %vm1373_vm4, %v4712_v56, %v15636_v11  ;;  %v5815_v53 = vld [vmem:[#allocation2 + $0xb0] sm:$0x8]  ;;  %v19055_v56 = vld [vmem:[#allocation39_spill] sm:$0xff] }
 0x481   : > { %v4856_v55 = vpop.permute.xlu1 %4855  ;;  %v6852_v42 = vrot.slane %v6850_v18, 3  ;;  %v6769_v35 = vsel %vm1673_vm6, %v6705_v12, %v6641_v58  ;;  %12269 = vmatprep.mubr.msk.bf16.mxu1 %vm2022_vm9, %v6842_v33  ;;  %v6855_v61 = vrot.slane %v6853_v5, 4  ;;  %v11517_v20 = vcombine.low %v12815_v25, %v12815_v25  ;;  %v12816_v58 = vld [vmem:[#allocation2 + $0xb4] sm:$0xf] }
 0x482   : > { %v5146_v30 = vor.u32 %v5145_v47, %v5142_v63  ;;  %v6843_v54 = vshrl.u32 %v6769_v35, 16  ;;  %v6846_v43 = vshll.u32 %v6769_v35, 16  ;;  %6606 = vrot.lane.b32.xlu0 %v16128_v41, %s12880_s30  ;;  %v4710_v18 = vsel %vm1282_vm3, %v11394_v1, %v15599_v62  ;;  %v19053_v63 = vld [vmem:[#allocation42_spill] sm:$0xff] }
 0x483   : > { %6670 = vrot.lane.b32.xlu1 %v16106_v13, %s12881_s16  ;;  %v6856_v21 = vor.u32 %v6855_v61, %v6852_v42  ;;  %v6435_v11 = vsel %vm1282_vm3, %v11517_v20, %v19052_v52  ;;  %v16156_v12 = vsel %vm1373_vm4, %v4710_v18, %v15651_v2  ;;  %v11516_v33 = vcombine.low %v5815_v53, %v12816_v58  ;;  %v19058_v18 = vld [vmem:[#allocation40_spill] sm:$0xff] }
 0x484   : > { %v6845_v40 = vrot.slane %v6843_v54, 3  ;;  %v6848_v26 = vrot.slane %v6846_v43, 4  ;;  %v4854_v15 = vpop.permute.xlu0 %4853  ;;  %v5154_v39 = vsel %vm1738_vm8, %v5146_v30, %v5153_v51  ;;  %v16160_v47 = vsel %vm1373_vm4, %v6435_v11, %v19053_v63  ;;  %v19054_v51 = vld [vmem:[#allocation10_spill] sm:$0xff]  ;;  %v4091_v43 = vld [vmem:[#allocation2 + $0xe0] sm:$0x8] }
 0x485   : > { %v6581_v46 = vpop.permute.xlu1 %6580  ;;  %12232 = vmatmul.mubr.msk.bf16.gmra.mxu0 %vm2022_vm9, %v5154_v39  ;;  %v6433_v62 = vsel %vm1282_vm3, %v11516_v33, %v19052_v52  ;;  %v4986_v2 = vsel %vm1608_vm7, %v19054_v51, %v4856_v55  ;;  %v4984_v55 = vsel %vm1608_vm7, %v19055_v56, %v4854_v15  ;;  %v19056_v39 = vld [vmem:[#allocation31_spill] sm:$0xff] }
 0x486   : > { %v6849_v19 = vor.u32 %v6848_v26, %v6845_v40  ;;  %6668 = vrot.lane.b32.xlu0 %v16128_v41, %s12881_s16  ;;  %v16173_v7 = vsel %vm1373_vm4, %v6433_v62, %v15674_v27  ;;  %v11397_v27 = vcombine.low %v19056_v39, %v19056_v39  ;;  %v6711_v52 = vsel %vm1608_vm7, %v19058_v18, %v6581_v46  ;;  %v12817_v46 = vld [vmem:[#allocation2 + $0xc8] sm:$0xf]  ;;  %v5818_v56 = vld [vmem:[#allocation2 + $0xc0] sm:$0x8] }
 0x487   : > { %4949 = vrot.lane.b32.xlu1 %v16142_v16, %s12881_s16 }
 0x488   : > { %v6579_v0 = vpop.permute.xlu0 %6578  ;;  %v6857_v5 = vsel %vm1738_vm8, %v6849_v19, %v6856_v21  ;;  %v19057_v19 = vld [vmem:[#allocation14_spill] sm:$0xff]  ;;  %v4717_v15 = vsel %vm1282_vm3, %v11397_v27, %v15692_v22 }
 0x489   : > { %v4860_v50 = vpop.permute.xlu1 %4859  ;;  %12270 = vmatmul.mubr.msk.bf16.vlgmr.msra.gmra.mxu1 %vm2022_vm9, %v6857_v5  ;;  %v11396_v53 = vcombine.low %v4091_v43, %v19057_v19  ;;  %v16198_v62 = vsel %vm1373_vm4, %v4717_v15, %v15717_v8  ;;  %v19059_v43 = vld [vmem:[#allocation41_spill] sm:$0xff] }
 0x48a   : > { %4947 = vrot.lane.b32.xlu0 %v16156_v12, %s12881_s16  ;;  %v4990_v8 = vsel %vm1608_vm7, %v15657_v6, %v4860_v50 }
 0x48b   : > { %6674 = vrot.lane.b32.xlu1 %v16160_v47, %s12881_s16  ;;  %v4715_v33 = vsel %vm1282_vm3, %v11396_v53, %v15692_v22  ;;  %v6709_v22 = vsel %vm1608_vm7, %v19059_v43, %v6579_v0 }
 0x48c   : > { %v4858_v42 = vpop.permute.xlu0 %4857 }
 0x48d   : > { %v4922_v35 = vpop.permute.xlu1 %4921  ;;  %v4988_v15 = vsel %vm1608_vm7, %v15680_v48, %v4858_v42  ;;  %v19060_v48 = vld [vmem:[#allocation32_spill] sm:$0xff] }
 0x48e   : > { %v5050_v30 = vsel %vm1673_vm6, %v4986_v2, %v4922_v35  ;;  %6672 = vrot.lane.b32.xlu0 %v16173_v7, %s12881_s16  ;;  %v11399_v42 = vcombine.low %v19060_v48, %v19060_v48 }
 0x48f   : > { %v5162_v61 = vshrl.u32 %v5050_v30, 16  ;;  %v5165_v54 = vshll.u32 %v5050_v30, 16  ;;  %4887 = vrot.lane.b32.xlu1 %v16142_v16, %s12880_s30 }
 0x490   : > { %v4920_v40 = vpop.permute.xlu0 %4919 }
 0x491   : > { %v6585_v26 = vpop.permute.xlu1 %6584  ;;  %v5048_v31 = vsel %vm1673_vm6, %v4984_v55, %v4920_v40  ;;  %v5164_v1 = vrot.slane %v5162_v61, 3  ;;  %v5167_v25 = vrot.slane %v5165_v54, 4  ;;  %v11519_v54 = vcombine.low %v12817_v46, %v12817_v46 }
 0x492   : > { %v5155_v20 = vshrl.u32 %v5048_v31, 16  ;;  %v5158_v21 = vshll.u32 %v5048_v31, 16  ;;  %4885 = vrot.lane.b32.xlu0 %v16156_v12, %s12880_s30 }
 0x493   : > { %6612 = vrot.lane.b32.xlu1 %v16160_v47, %s12880_s30  ;;  %v5168_v2 = vor.u32 %v5167_v25, %v5164_v1  ;;  %v16212_v1 = vsel %vm1373_vm4, %v4715_v33, %v15694_v14  ;;  %v6440_v0 = vsel %vm1282_vm3, %v11519_v54, %v15676_v37  ;;  %v12818_v14 = vld [vmem:[#allocation2 + $0xc4] sm:$0xf] }
 0x494   : > { %v5157_v11 = vrot.slane %v5155_v20, 3  ;;  %v5160_v5 = vrot.slane %v5158_v21, 4  ;;  %v6583_v63 = vpop.permute.xlu0 %6582  ;;  %v11518_v19 = vcombine.low %v5818_v56, %v12818_v14  ;;  %v16225_v53 = vsel %vm1373_vm4, %v6440_v0, %v15719_v17 }
 0x495   : > { %v6647_v58 = vpop.permute.xlu1 %6646 }
 0x496   : > { %v6775_v51 = vsel %vm1673_vm6, %v6711_v52, %v6647_v58  ;;  %v5161_v35 = vor.u32 %v5160_v5, %v5157_v11  ;;  %6610 = vrot.lane.b32.xlu0 %v16173_v7, %s12880_s30  ;;  %v6715_v52 = vsel %vm1608_vm7, %v15684_v45, %v6585_v26  ;;  %v6438_v45 = vsel %vm1282_vm3, %v11518_v19, %v15676_v37 }
 0x497   : > { %v6865_v30 = vshrl.u32 %v6775_v51, 16  ;;  %v6868_v61 = vshll.u32 %v6775_v51, 16  ;;  %4891 = vrot.lane.b32.xlu1 %v16198_v62, %s12880_s30 }
 0x498   : > { %v6645_v39 = vpop.permute.xlu0 %6644  ;;  %v5169_v31 = vsel %vm1738_vm8, %v5161_v35, %v5168_v2 }
 0x499   : > { %v6867_v55 = vrot.slane %v6865_v30, 3  ;;  %v6870_v40 = vrot.slane %v6868_v61, 4  ;;  %v4926_v27 = vpop.permute.xlu1 %4925  ;;  %v6773_v25 = vsel %vm1673_vm6, %v6709_v22, %v6645_v39  ;;  %12235 = vmatprep.mubr.msk.bf16.mxu0 %vm2022_vm9, %v5169_v31  ;;  %v6713_v22 = vsel %vm1608_vm7, %v15698_v57, %v6583_v63 }
 0x49a   : > { %v5054_v20 = vsel %vm1673_vm6, %v4990_v8, %v4926_v27  ;;  %v6858_v6 = vshrl.u32 %v6773_v25, 16  ;;  %v6861_v50 = vshll.u32 %v6773_v25, 16  ;;  %4889 = vrot.lane.b32.xlu0 %v16212_v1, %s12880_s30  ;;  %v16246_v27 = vsel %vm1373_vm4, %v6438_v45, %v15731_v23  ;;  %v19064_v45 = vld [vmem:[#allocation46_spill] sm:$0xff] }
 0x49b   : > { %v5177_v21 = vshrl.u32 %v5054_v20, 16  ;;  %4953 = vrot.lane.b32.xlu1 %v16198_v62, %s12881_s16  ;;  %v5180_v18 = vshll.u32 %v5054_v20, 16  ;;  %v6871_v11 = vor.u32 %v6870_v40, %v6867_v55  ;;  %v4094_v20 = vld [vmem:[#allocation2 + $0xf0] sm:$0x8]  ;;  %v4722_v23 = vsel %vm1282_vm3, %v11399_v42, %v15704_v44  ;;  %v12820_v42 = vld [vmem:[#allocation2 + $0xd4] sm:$0xf] }
 0x49c   : > { %v6860_v5 = vrot.slane %v6858_v6, 3  ;;  %v6863_v58 = vrot.slane %v6861_v50, 4  ;;  %v4924_v33 = vpop.permute.xlu0 %4923 }
 0x49d   : > { %v6651_v51 = vpop.permute.xlu1 %6650  ;;  %v5179_v2 = vrot.slane %v5177_v21, 3  ;;  %v5182_v35 = vrot.slane %v5180_v18, 4  ;;  %v5052_v30 = vsel %vm1673_vm6, %v4988_v15, %v4924_v33  ;;  %v19061_v18 = vld [vmem:[#allocation15_spill] sm:$0xff] }
 0x49e   : > { %v6779_v61 = vsel %vm1673_vm6, %v6715_v52, %v6651_v51  ;;  %v6864_v17 = vor.u32 %v6863_v58, %v6860_v5  ;;  %v5170_v46 = vshrl.u32 %v5052_v30, 16  ;;  %v5173_v54 = vshll.u32 %v5052_v30, 16  ;;  %4951 = vrot.lane.b32.xlu0 %v16212_v1, %s12881_s16  ;;  %v12819_v5 = vld [vmem:[#allocation2 + $0xd8] sm:$0xf]  ;;  %v19062_v30 = vld [vmem:[#allocation43_spill] sm:$0xff] }
 0x49f   : > { %v6880_v43 = vshrl.u32 %v6779_v61, 16  ;;  %6616 = vrot.lane.b32.xlu1 %v16225_v53, %s12880_s30  ;;  %v6883_v26 = vshll.u32 %v6779_v61, 16  ;;  %v5183_v31 = vor.u32 %v5182_v35, %v5179_v2  ;;  %v11398_v52 = vcombine.low %v4094_v20, %v19061_v18  ;;  %v5821_v2 = vld [vmem:[#allocation2 + $0xd0] sm:$0x8] }
 0x4a0   : > { %v5172_v56 = vrot.slane %v5170_v46, 3  ;;  %v5175_v8 = vrot.slane %v5173_v54, 4  ;;  %v6649_v55 = vpop.permute.xlu0 %6648  ;;  %v6872_v39 = vsel %vm1738_vm8, %v6864_v17, %v6871_v11  ;;  %v16260_v11 = vsel %vm1373_vm4, %v4722_v23, %v15733_v49  ;;  %v19063_v54 = vld [vmem:[#allocation16_spill] sm:$0xff] }
 0x4a1   : > { %v4864_v40 = vpop.permute.xlu1 %4863  ;;  %v6882_v25 = vrot.slane %v6880_v43, 3  ;;  %v6777_v37 = vsel %vm1673_vm6, %v6713_v22, %v6649_v55  ;;  %12273 = vmatprep.mubr.msk.bf16.mxu1 %vm2022_vm9, %v6872_v39  ;;  %v6885_v6 = vrot.slane %v6883_v26, 4  ;;  %v11521_v58 = vcombine.low %v12819_v5, %v12819_v5  ;;  %v19065_v22 = vld [vmem:[#allocation44_spill] sm:$0xff] }
 0x4a2   : > { %v5176_v0 = vor.u32 %v5175_v8, %v5172_v56  ;;  %v6873_v57 = vshrl.u32 %v6777_v37, 16  ;;  %v6876_v63 = vshll.u32 %v6777_v37, 16  ;;  %6614 = vrot.lane.b32.xlu0 %v16246_v27, %s12880_s30  ;;  %v4720_v35 = vsel %vm1282_vm3, %v11398_v52, %v15704_v44  ;;  %v19066_v39 = vld [vmem:[#allocation48_spill] sm:$0xff] }
 0x4a3   : > { %6678 = vrot.lane.b32.xlu1 %v16225_v53, %s12881_s16  ;;  %v6886_v33 = vor.u32 %v6885_v6, %v6882_v25  ;;  %v6445_v49 = vsel %vm1282_vm3, %v11521_v58, %v19062_v30  ;;  %v16274_v43 = vsel %vm1373_vm4, %v4720_v35, %v19063_v54  ;;  %v11520_v26 = vcombine.low %v5821_v2, %v12820_v42  ;;  %v19069_v58 = vld [vmem:[#allocation19_spill] sm:$0xff] }
 0x4a4   : > { %v6875_v50 = vrot.slane %v6873_v57, 3  ;;  %v6878_v21 = vrot.slane %v6876_v63, 4  ;;  %v4862_v14 = vpop.permute.xlu0 %4861  ;;  %v5184_v15 = vsel %vm1738_vm8, %v5176_v0, %v5183_v31  ;;  %v16278_v48 = vsel %vm1373_vm4, %v6445_v49, %v19064_v45  ;;  %v19067_v0 = vld [vmem:[#allocation45_spill] sm:$0xff] }
 0x4a5   : > { %v6589_v19 = vpop.permute.xlu1 %6588  ;;  %12236 = vmatmul.mubr.msk.bf16.gmra.mxu0 %vm2022_vm9, %v5184_v15  ;;  %v6443_v44 = vsel %vm1282_vm3, %v11520_v26, %v19062_v30  ;;  %v4994_v56 = vsel %vm1608_vm7, %v19065_v22, %v4864_v40  ;;  %v4992_v6 = vsel %vm1608_vm7, %v19067_v0, %v4862_v14  ;;  %v19068_v63 = vld [vmem:[#allocation33_spill] sm:$0xff]  ;;  %v5824_v0 = vld [vmem:[#allocation2 + $0xe0] sm:$0x8] }
 0x4a6   : > { %v6879_v51 = vor.u32 %v6878_v21, %v6875_v50  ;;  %6676 = vrot.lane.b32.xlu0 %v16246_v27, %s12881_s16  ;;  %v16291_v31 = vsel %vm1373_vm4, %v6443_v44, %v19066_v39  ;;  %v11401_v23 = vcombine.low %v19068_v63, %v19068_v63  ;;  %v4097_v21 = vld [vmem:[#allocation2 + $0x100] sm:$0x8]  ;;  %v19072_v45 = vld [vmem:[#allocation25_spill] sm:$0xff] }
 0x4a7   : > { %4957 = vrot.lane.b32.xlu1 %v16260_v11, %s12881_s16 }
 0x4a8   : > { %v6587_v61 = vpop.permute.xlu0 %6586  ;;  %v6887_v46 = vsel %vm1738_vm8, %v6879_v51, %v6886_v33  ;;  %v4727_v14 = vsel %vm1282_vm3, %v11401_v23, %v19069_v58  ;;  %v19070_v33 = vld [vmem:[#allocation47_spill] sm:$0xff] }
 0x4a9   : > { %v4868_v17 = vpop.permute.xlu1 %4867  ;;  %12274 = vmatmul.mubr.msk.bf16.gmra.mxu1 %vm2022_vm9, %v6887_v46  ;;  %v6719_v51 = vsel %vm1608_vm7, %v19070_v33, %v6589_v19  ;;  %v19071_v46 = vld [vmem:[#allocation36_spill] sm:$0xff]  ;;  %v4800_v42 = vsel %vm1373_vm4, %v4727_v14, %v19072_v45 }
 0x4aa   : > { %4955 = vrot.lane.b32.xlu0 %v16274_v43, %s12881_s16  ;;  %v11400_v54 = vcombine.low %v4097_v21, %v19071_v46  ;;  %v12821_v19 = vld [vmem:[#allocation2 + $0xe8] sm:$0xf] }
 0x4ab   : > { %6682 = vrot.lane.b32.xlu1 %v16278_v48, %s12881_s16  ;;  %v11523_v39 = vcombine.low %v12821_v19, %v12821_v19 }
 0x4ac   : > { %v4866_v8 = vpop.permute.xlu0 %4865 }
 0x4ad   : > { %v4930_v55 = vpop.permute.xlu1 %4929 }
 0x4ae   : > { %v5058_v25 = vsel %vm1673_vm6, %v4994_v56, %v4930_v55  ;;  %6680 = vrot.lane.b32.xlu0 %v16291_v31, %s12881_s16 }
 0x4af   : > { %v5192_v37 = vshrl.u32 %v5058_v25, 16  ;;  %v5195_v20 = vshll.u32 %v5058_v25, 16  ;;  %4895 = vrot.lane.b32.xlu1 %v16260_v11, %s12880_s30  ;;  %v4725_v25 = vsel %vm1282_vm3, %v11400_v54, %v19069_v58  ;;  %v19078_v54 = vld [vmem:[#allocation53_spill] sm:$0xff] }
 0x4b0   : > { %v4928_v40 = vpop.permute.xlu0 %4927  ;;  %v4996_v45 = vsel %vm1608_vm7, %v19078_v54, %v4866_v8 }
 0x4b1   : > { %v6593_v57 = vpop.permute.xlu1 %6592  ;;  %v5056_v50 = vsel %vm1673_vm6, %v4992_v6, %v4928_v40  ;;  %v5194_v15 = vrot.slane %v5192_v37, 3  ;;  %v5197_v18 = vrot.slane %v5195_v20, 4  ;;  %v19073_v37 = vld [vmem:[#allocation50_spill] sm:$0xff]  ;;  %v19074_v6 = vld [vmem:[#allocation52_spill] sm:$0xff] }
 0x4b2   : > { %v5185_v52 = vshrl.u32 %v5056_v50, 16  ;;  %v5188_v5 = vshll.u32 %v5056_v50, 16  ;;  %4893 = vrot.lane.b32.xlu0 %v16274_v43, %s12880_s30  ;;  %v6717_v20 = vsel %vm1608_vm7, %v19073_v37, %v6587_v61  ;;  %v4998_v40 = vsel %vm1608_vm7, %v19074_v6, %v4868_v17  ;;  %v19076_v61 = vld [vmem:[#allocation49_spill] sm:$0xff] }
 0x4b3   : > { %6620 = vrot.lane.b32.xlu1 %v16278_v48, %s12880_s30  ;;  %v5198_v44 = vor.u32 %v5197_v18, %v5194_v15  ;;  %v19075_v18 = vld [vmem:[#allocation55_spill] sm:$0xff]  ;;  %v6450_v14 = vsel %vm1282_vm3, %v11523_v39, %v19076_v61 }
 0x4b4   : > { %v5187_v2 = vrot.slane %v5185_v52, 3  ;;  %v5190_v35 = vrot.slane %v5188_v5, 4  ;;  %v6591_v30 = vpop.permute.xlu0 %6590  ;;  %v4798_v52 = vsel %vm1373_vm4, %v4725_v25, %v19075_v18  ;;  %v19080_v18 = vld [vmem:[#allocation57_spill] sm:$0xff] }
 0x4b5   : > { %v6655_v49 = vpop.permute.xlu1 %6654 }
 0x4b6   : > { %v6783_v26 = vsel %vm1673_vm6, %v6719_v51, %v6655_v49  ;;  %v5191_v22 = vor.u32 %v5190_v35, %v5187_v2  ;;  %6618 = vrot.lane.b32.xlu0 %v16291_v31, %s12880_s30  ;;  %v12822_v2 = vld [vmem:[#allocation2 + $0xe4] sm:$0xf]  ;;  %v19077_v49 = vld [vmem:[#allocation26_spill] sm:$0xff] }
 0x4b7   : > { %v6895_v56 = vshrl.u32 %v6783_v26, 16  ;;  %v6898_v55 = vshll.u32 %v6783_v26, 16  ;;  %4899 = vrot.lane.b32.xlu1 %v4800_v42, %s12880_s30  ;;  %v11522_v35 = vcombine.low %v5824_v0, %v12822_v2  ;;  %v16336_v46 = vsel %vm1373_vm4, %v6450_v14, %v19077_v49 }
 0x4b8   : > { %v6653_v50 = vpop.permute.xlu0 %6652  ;;  %v5199_v15 = vsel %vm1738_vm8, %v5191_v22, %v5198_v44  ;;  %v19079_v44 = vld [vmem:[#allocation54_spill] sm:$0xff] }
 0x4b9   : > { %v6897_v63 = vrot.slane %v6895_v56, 3  ;;  %v6900_v23 = vrot.slane %v6898_v55, 4  ;;  %v4934_v21 = vpop.permute.xlu1 %4933  ;;  %v6781_v5 = vsel %vm1673_vm6, %v6717_v20, %v6653_v50  ;;  %12239 = vmatprep.mubr.msk.bf16.mxu0 %vm2022_vm9, %v5199_v15  ;;  %v6723_v22 = vsel %vm1608_vm7, %v19079_v44, %v6593_v57  ;;  %v12823_v57 = vld [vmem:[#allocation2 + $0x118] sm:$0xf]  ;;  %v4100_v15 = vld [vmem:[#allocation2 + $0x110] sm:$0x8] }
 0x4ba   : > { %v5062_v58 = vsel %vm1673_vm6, %v4998_v40, %v4934_v21  ;;  %v6888_v33 = vshrl.u32 %v6781_v5, 16  ;;  %v6891_v17 = vshll.u32 %v6781_v5, 16  ;;  %4897 = vrot.lane.b32.xlu0 %v4798_v52, %s12880_s30  ;;  %v6448_v8 = vsel %vm1282_vm3, %v11522_v35, %v19076_v61  ;;  %v12824_v44 = vld [vmem:[#allocation2 + $0x114] sm:$0xf] }
 0x4bb   : > { %v5207_v51 = vshrl.u32 %v5062_v58, 16  ;;  %4961 = vrot.lane.b32.xlu1 %v4800_v42, %s12881_s16  ;;  %v5210_v26 = vshll.u32 %v5062_v58, 16  ;;  %v6901_v56 = vor.u32 %v6900_v23, %v6897_v63  ;;  %v11403_v63 = vcombine.low %v12823_v57, %v12823_v57 }
 0x4bc   : > { %v6890_v55 = vrot.slane %v6888_v33, 3  ;;  %v6893_v19 = vrot.slane %v6891_v17, 4  ;;  %v4932_v39 = vpop.permute.xlu0 %4931  ;;  %v6721_v5 = vsel %vm1608_vm7, %v19080_v18, %v6591_v30 }
 0x4bd   : > { %v6659_v25 = vpop.permute.xlu1 %6658  ;;  %v5209_v37 = vrot.slane %v5207_v51, 3  ;;  %v5212_v42 = vrot.slane %v5210_v26, 4  ;;  %v5060_v20 = vsel %vm1673_vm6, %v4996_v45, %v4932_v39 }
 0x4be   : > { %v6787_v0 = vsel %vm1673_vm6, %v6723_v22, %v6659_v25  ;;  %v6894_v6 = vor.u32 %v6893_v19, %v6890_v55  ;;  %v5200_v40 = vshrl.u32 %v5060_v20, 16  ;;  %v5203_v50 = vshll.u32 %v5060_v20, 16  ;;  %4959 = vrot.lane.b32.xlu0 %v4798_v52, %s12881_s16  ;;  %v19081_v52 = vld [vmem:[#allocation56_spill] sm:$0xff]  ;;  %v19083_v20 = vld [vmem:[#allocation22_spill] sm:$0xff] }
 0x4bf   : > { %v6910_v21 = vshrl.u32 %v6787_v0, 16  ;;  %6624 = vrot.lane.b32.xlu1 %v16336_v46, %s12880_s30  ;;  %v6913_v23 = vshll.u32 %v6787_v0, 16  ;;  %v16354_v2 = vsel %vm1373_vm4, %v6448_v8, %v19081_v52  ;;  %v5213_v49 = vor.u32 %v5212_v42, %v5209_v37  ;;  %v5827_v8 = vld [vmem:[#allocation2 + $0xf0] sm:$0x8]  ;;  %v12826_v52 = vld [vmem:[#allocation2 + $0xf4] sm:$0xf] }
 0x4c0   : > { %v5202_v58 = vrot.slane %v5200_v40, 3  ;;  %v5205_v14 = vrot.slane %v5203_v50, 4  ;;  %v6657_v33 = vpop.permute.xlu0 %6656  ;;  %v6902_v51 = vsel %vm1738_vm8, %v6894_v6, %v6901_v56  ;;  %v11402_v22 = vcombine.low %v4100_v15, %v12824_v44  ;;  %v19082_v56 = vld [vmem:[#allocation51_spill] sm:$0xff]  ;;  %v12825_v6 = vld [vmem:[#allocation2 + $0xf8] sm:$0xf] }
 0x4c1   : > { %v4872_v17 = vpop.permute.xlu1 %4871  ;;  %v6912_v54 = vrot.slane %v6910_v21, 3  ;;  %v6785_v61 = vsel %vm1673_vm6, %v6721_v5, %v6657_v33  ;;  %12277 = vmatprep.mubr.msk.bf16.mxu1 %vm2022_vm9, %v6902_v51  ;;  %v6915_v45 = vrot.slane %v6913_v23, 4  ;;  %v4732_v55 = vsel %vm1282_vm3, %v11403_v63, %v19082_v56  ;;  %v19084_v63 = vld [vmem:[#allocation58_spill] sm:$0xff]  ;;  %v19086_v33 = vld [vmem:[#allocation3_spill] sm:$0xff] }
 0x4c2   : > { %v5206_v35 = vor.u32 %v5205_v14, %v5202_v58  ;;  %v6903_v26 = vshrl.u32 %v6785_v61, 16  ;;  %v6906_v30 = vshll.u32 %v6785_v61, 16  ;;  %6622 = vrot.lane.b32.xlu0 %v16354_v2, %s12880_s30  ;;  %v4804_v0 = vsel %vm1373_vm4, %v4732_v55, %v19083_v20  ;;  %v19085_v58 = vld [vmem:[#allocation20_spill] sm:$0xff]  ;;  %v19087_v61 = vld [vmem:[#allocation59_spill] sm:$0xff] }
 0x4c3   : > { %6686 = vrot.lane.b32.xlu1 %v16336_v46, %s12881_s16  ;;  %v11525_v40 = vcombine.low %v12825_v6, %v12825_v6  ;;  %v6916_v50 = vor.u32 %v6915_v45, %v6912_v54  ;;  %v4730_v57 = vsel %vm1282_vm3, %v11402_v22, %v19082_v56  ;;  %v5830_v56 = vld [vmem:[#allocation2 + $0x100] sm:$0x8]  ;;  %v12827_v55 = vld [vmem:[#allocation2 + $0x108] sm:$0xf] }
 0x4c4   : > { %v6905_v19 = vrot.slane %v6903_v26, 3  ;;  %v6908_v39 = vrot.slane %v6906_v30, 4  ;;  %v4870_v25 = vpop.permute.xlu0 %4869  ;;  %v5214_v42 = vsel %vm1738_vm8, %v5206_v35, %v5213_v49  ;;  %v4802_v14 = vsel %vm1373_vm4, %v4730_v57, %v19085_v58  ;;  %v19088_v30 = vld [vmem:[#allocation60_spill] sm:$0xff] }
 0x4c5   : > { %v6597_v37 = vpop.permute.xlu1 %6596  ;;  %12240 = vmatmul.mubr.msk.bf16.gmra.mxu0 %vm2022_vm9, %v5214_v42  ;;  %v6455_v23 = vsel %vm1282_vm3, %v11525_v40, %v19084_v63  ;;  %v11524_v49 = vcombine.low %v5827_v8, %v12826_v52  ;;  %v5002_v35 = vsel %vm1608_vm7, %v19087_v61, %v4872_v17  ;;  %v19089_v17 = vld [vmem:[#allocation8_spill] sm:$0xff] }
 0x4c6   : > { %v6909_v21 = vor.u32 %v6908_v39, %v6905_v19  ;;  %6684 = vrot.lane.b32.xlu0 %v16354_v2, %s12881_s16  ;;  %v16380_v51 = vsel %vm1373_vm4, %v6455_v23, %v19086_v33  ;;  %v11527_v19 = vcombine.low %v12827_v55, %v12827_v55  ;;  %v5833_v23 = vld [vmem:[#allocation2 + $0x110] sm:$0x8] }
 0x4c7   : > { %4965 = vrot.lane.b32.xlu1 %v4804_v0, %s12881_s16  ;;  %v6453_v54 = vsel %vm1282_vm3, %v11524_v49, %v19084_v63  ;;  %v19090_v0 = vld [vmem:[#allocation61_spill] sm:$0xff] }
 0x4c8   : > { %v6595_v15 = vpop.permute.xlu0 %6594  ;;  %v6917_v5 = vsel %vm1738_vm8, %v6909_v21, %v6916_v50  ;;  %v16394_v44 = vsel %vm1373_vm4, %v6453_v54, %v19088_v30  ;;  %v6460_v20 = vsel %vm1282_vm3, %v11527_v19, %v19089_v17  ;;  %v5000_v6 = vsel %vm1608_vm7, %v19090_v0, %v4870_v25  ;;  %v12828_v21 = vld [vmem:[#allocation2 + $0x104] sm:$0xf]  ;;  %v12829_v25 = vld [vmem:[#allocation2 + $0x118] sm:$0xf] }
 0x4c9   : > { %v4876_v18 = vpop.permute.xlu1 %4875  ;;  %12278 = vmatmul.mubr.msk.bf16.gmra.mxu1 %vm2022_vm9, %v6917_v5  ;;  %v11526_v8 = vcombine.low %v5830_v56, %v12828_v21  ;;  %v6533_v57 = vsel %vm1373_vm4, %v6460_v20, %v15954_v9  ;;  %v11529_v52 = vcombine.low %v12829_v25, %v12829_v25  ;;  %v19091_v54 = vld [vmem:[#allocation62_spill] sm:$0xff] }
 0x4ca   : > { %4963 = vrot.lane.b32.xlu0 %v4802_v14, %s12881_s16  ;;  %v6727_v9 = vsel %vm1608_vm7, %v19091_v54, %v6597_v37 }
 0x4cb   : > { %6690 = vrot.lane.b32.xlu1 %v16380_v51, %s12881_s16  ;;  %v6458_v49 = vsel %vm1282_vm3, %v11526_v8, %v19089_v17  ;;  %v6465_v37 = vsel %vm1282_vm3, %v11529_v52, %v15940_v24  ;;  %v19092_v17 = vld [vmem:[#allocation63_spill] sm:$0xff] }
 0x4cc   : > { %v16390_v45 = vpop.permute.xlu0 %4873  ;;  %v6531_v55 = vsel %vm1373_vm4, %v6458_v49, %v15968_v59 }
 0x4cd   : > { %v4938_v26 = vpop.permute.xlu1 %4937 }
 0x4ce   : > { %v5066_v22 = vsel %vm1673_vm6, %v5002_v35, %v4938_v26  ;;  %6688 = vrot.lane.b32.xlu0 %v16394_v44, %s12881_s16 }
 0x4cf   : > { %v5222_v39 = vshrl.u32 %v5066_v22, 16  ;;  %v5225_v42 = vshll.u32 %v5066_v22, 16  ;;  %6628 = vrot.lane.b32.xlu1 %v16380_v51, %s12880_s30  ;;  %v12830_v22 = vld [vmem:[#allocation2 + $0x114] sm:$0xf] }
 0x4d0   : > { %v4936_v40 = vpop.permute.xlu0 %4935  ;;  %v11528_v56 = vcombine.low %v5833_v23, %v12830_v22 }
 0x4d1   : > { %v6601_v50 = vpop.permute.xlu1 %6600  ;;  %v5064_v63 = vsel %vm1673_vm6, %v5000_v6, %v4936_v40  ;;  %v5224_v5 = vrot.slane %v5222_v39, 3  ;;  %v5227_v58 = vrot.slane %v5225_v42, 4  ;;  %v6725_v6 = vsel %vm1608_vm7, %v19092_v17, %v6595_v15  ;;  %v19093_v40 = vld [vmem:[#allocation27_spill] sm:$0xff] }
 0x4d2   : > { %v5215_v14 = vshrl.u32 %v5064_v63, 16  ;;  %v5218_v33 = vshll.u32 %v5064_v63, 16  ;;  %6626 = vrot.lane.b32.xlu0 %v16394_v44, %s12880_s30  ;;  %v5006_v21 = vsel %vm1608_vm7, %v19093_v40, %v4876_v18  ;;  %v6463_v15 = vsel %vm1282_vm3, %v11528_v56, %v15940_v24 }
 0x4d3   : > { %6632 = vrot.lane.b32.xlu1 %v6533_v57, %s12880_s30  ;;  %v5228_v39 = vor.u32 %v5227_v58, %v5224_v5  ;;  %v6537_v58 = vsel %vm1373_vm4, %v6465_v37, %v15986_v28  ;;  %v6535_v52 = vsel %vm1373_vm4, %v6463_v15, %v15998_v36  ;;  %v5004_v28 = vsel %vm1608_vm7, %v15908_v34, %v16390_v45 }
 0x4d4   : > { %v5217_v61 = vrot.slane %v5215_v14, 3  ;;  %v5220_v35 = vrot.slane %v5218_v33, 4  ;;  %v6599_v26 = vpop.permute.xlu0 %6598  ;;  %v6731_v54 = vsel %vm1608_vm7, %v15912_v38, %v6601_v50 }
 0x4d5   : > { %v6663_v30 = vpop.permute.xlu1 %6662  ;;  %v6729_v38 = vsel %vm1608_vm7, %v15928_v29, %v6599_v26 }
 0x4d6   : > { %v6791_v19 = vsel %vm1673_vm6, %v6727_v9, %v6663_v30  ;;  %v5221_v42 = vor.u32 %v5220_v35, %v5217_v61  ;;  %6630 = vrot.lane.b32.xlu0 %v6531_v55, %s12880_s30 }
 0x4d7   : > { %v6925_v20 = vshrl.u32 %v6791_v19, 16  ;;  %v6928_v0 = vshll.u32 %v6791_v19, 16  ;;  %6694 = vrot.lane.b32.xlu1 %v6533_v57, %s12881_s16 }
 0x4d8   : > { %v6661_v63 = vpop.permute.xlu0 %6660  ;;  %v5229_v5 = vsel %vm1738_vm8, %v5221_v42, %v5228_v39 }
 0x4d9   : > { %v6927_v59 = vrot.slane %v6925_v20, 3  ;;  %v6930_v8 = vrot.slane %v6928_v0, 4  ;;  %v4942_v23 = vpop.permute.xlu1 %4941  ;;  %v6789_v57 = vsel %vm1673_vm6, %v6725_v6, %v6661_v63  ;;  %12243 = vmatprep.mubr.msk.bf16.mxu0 %vm2022_vm9, %v5229_v5 }
 0x4da   : > { %v5070_v14 = vsel %vm1673_vm6, %v5006_v21, %v4942_v23  ;;  %v6918_v33 = vshrl.u32 %v6789_v57, 16  ;;  %v6921_v18 = vshll.u32 %v6789_v57, 16  ;;  %6692 = vrot.lane.b32.xlu0 %v6531_v55, %s12881_s16 }
 0x4db   : > { %v5237_v25 = vshrl.u32 %v5070_v14, 16  ;;  %6698 = vrot.lane.b32.xlu1 %v6537_v58, %s12881_s16  ;;  %v5240_v49 = vshll.u32 %v5070_v14, 16  ;;  %v6931_v9 = vor.u32 %v6930_v8, %v6927_v59 }
 0x4dc   : > { %v6920_v24 = vrot.slane %v6918_v33, 3  ;;  %v6923_v61 = vrot.slane %v6921_v18, 4  ;;  %v4940_v35 = vpop.permute.xlu0 %4939 }
 0x4dd   : > { %v6667_v30 = vpop.permute.xlu1 %6666  ;;  %v5239_v22 = vrot.slane %v5237_v25, 3  ;;  %v5242_v56 = vrot.slane %v5240_v49, 4  ;;  %v5068_v55 = vsel %vm1673_vm6, %v5004_v28, %v4940_v35  ;;  %v19095_v35 = vld [vmem:[#allocation23_spill] sm:$0xff] }
 0x4de   : > { %v6795_v19 = vsel %vm1673_vm6, %v6731_v54, %v6667_v30  ;;  %v6924_v36 = vor.u32 %v6923_v61, %v6920_v24  ;;  %v5230_v39 = vshrl.u32 %v5068_v55, 16  ;;  %v5233_v42 = vshll.u32 %v5068_v55, 16  ;;  %6696 = vrot.lane.b32.xlu0 %v6535_v52, %s12881_s16  ;;  %v19094_v52 = vld [vmem:[#allocation21_spill] sm:$0xff] }
 0x4df   : > { %v6940_v20 = vshrl.u32 %v6795_v19, 16  ;;  %v6943_v34 = vshll.u32 %v6795_v19, 16  ;;  %v5243_v6 = vor.u32 %v5242_v56, %v5239_v22 }
 0x4e0   : > { %v5232_v45 = vrot.slane %v5230_v39, 3  ;;  %v5235_v50 = vrot.slane %v5233_v42, 4  ;;  %v6665_v0 = vpop.permute.xlu0 %6664  ;;  %v6932_v17 = vsel %vm1738_vm8, %v6924_v36, %v6931_v9 }
 0x4e1   : > { %v4880_v37 = vpop.permute.xlu1 %4879  ;;  %v6942_v40 = vrot.slane %v6940_v20, 3  ;;  %v6793_v21 = vsel %vm1673_vm6, %v6729_v38, %v6665_v0  ;;  %12281 = vmatprep.mubr.msk.bf16.mxu1 %vm2022_vm9, %v6932_v17  ;;  %v6945_v8 = vrot.slane %v6943_v34, 4  ;;  %v19096_v20 = vld [vmem:[#allocation18_spill] sm:$0xff] }
 0x4e2   : > { %v5236_v59 = vor.u32 %v5235_v50, %v5232_v45  ;;  %v6933_v63 = vshrl.u32 %v6793_v21, 16  ;;  %v6936_v23 = vshll.u32 %v6793_v21, 16  ;;  %v5010_v28 = vsel %vm1608_vm7, %v19094_v52, %v4880_v37 }
 0x4e3   : > { %v6946_v14 = vor.u32 %v6945_v8, %v6942_v40 }
 0x4e4   : > { %v6935_v5 = vrot.slane %v6933_v63, 3  ;;  %v6938_v58 = vrot.slane %v6936_v23, 4  ;;  %v4878_v57 = vpop.permute.xlu0 %4877  ;;  %v5244_v26 = vsel %vm1738_vm8, %v5236_v59, %v5243_v6  ;;  %v19097_v59 = vld [vmem:[#allocation6_spill] sm:$0xff]  ;;  %v19098_v63 = vld [vmem:[#allocation29_spill] sm:$0xff] }
 0x4e5   : > { %v6605_v29 = vpop.permute.xlu1 %6604  ;;  %12244 = vmatmul.mubr.msk.bf16.gmra.mxu0 %vm2022_vm9, %v5244_v26  ;;  %v5008_v30 = vsel %vm1608_vm7, %v19095_v35, %v4878_v57 }
 0x4e6   : > { %v6939_v15 = vor.u32 %v6938_v58, %v6935_v5  ;;  %v6735_v34 = vsel %vm1608_vm7, %v19096_v20, %v6605_v29 }
 0x4e8   : > { %v6603_v33 = vpop.permute.xlu0 %6602  ;;  %v6947_v25 = vsel %vm1738_vm8, %v6939_v15, %v6946_v14 }
 0x4e9   : > { %v4884_v18 = vpop.permute.xlu1 %4883  ;;  %12282 = vmatmul.mubr.msk.bf16.gmra.mxu1 %vm2022_vm9, %v6947_v25  ;;  %v6733_v8 = vsel %vm1608_vm7, %v19097_v59, %v6603_v33 }
 0x4ea   : > { %v5014_v23 = vsel %vm1608_vm7, %v19098_v63, %v4884_v18 }
 0x4ec   : > { %v4882_v49 = vpop.permute.xlu0 %4881 }
 0x4ed   : > { %v4946_v54 = vpop.permute.xlu1 %4945  ;;  %v5012_v33 = vsel %vm1608_vm7, %v16027_v4, %v4882_v49 }
 0x4ee   : > { %v5074_v9 = vsel %vm1673_vm6, %v5010_v28, %v4946_v54 }
 0x4ef   : > { %v5252_v24 = vshrl.u32 %v5074_v9, 16  ;;  %v5255_v61 = vshll.u32 %v5074_v9, 16 }
 0x4f0   : > { %v4944_v22 = vpop.permute.xlu0 %4943 }
 0x4f1   : > { %v6609_v56 = vpop.permute.xlu1 %6608  ;;  %v5072_v55 = vsel %vm1673_vm6, %v5008_v30, %v4944_v22  ;;  %v5254_v19 = vrot.slane %v5252_v24, 3  ;;  %v5257_v36 = vrot.slane %v5255_v61, 4 }
 0x4f2   : > { %v5245_v39 = vshrl.u32 %v5072_v55, 16  ;;  %v5248_v42 = vshll.u32 %v5072_v55, 16  ;;  %v6739_v18 = vsel %vm1608_vm7, %v16031_v32, %v6609_v56 }
 0x4f3   : > { %v5258_v17 = vor.u32 %v5257_v36, %v5254_v19 }
 0x4f4   : > { %v5247_v38 = vrot.slane %v5245_v39, 3  ;;  %v5250_v45 = vrot.slane %v5248_v42, 4  ;;  %v6607_v50 = vpop.permute.xlu0 %6606 }
 0x4f5   : > { %v6671_v0 = vpop.permute.xlu1 %6670  ;;  %v6737_v49 = vsel %vm1608_vm7, %v16045_v60, %v6607_v50 }
 0x4f6   : > { %v6799_v37 = vsel %vm1673_vm6, %v6735_v34, %v6671_v0  ;;  %v5251_v6 = vor.u32 %v5250_v45, %v5247_v38 }
 0x4f7   : > { %v6955_v40 = vshrl.u32 %v6799_v37, 16  ;;  %v6958_v21 = vshll.u32 %v6799_v37, 16 }
 0x4f8   : > { %v6669_v57 = vpop.permute.xlu0 %6668  ;;  %v5259_v26 = vsel %vm1738_vm8, %v5251_v6, %v5258_v17 }
 0x4f9   : > { %v6957_v5 = vrot.slane %v6955_v40, 3  ;;  %v6960_v58 = vrot.slane %v6958_v21, 4  ;;  %v4950_v29 = vpop.permute.xlu1 %4949  ;;  %v6797_v14 = vsel %vm1673_vm6, %v6733_v8, %v6669_v57  ;;  %12247 = vmatprep.mubr.msk.bf16.mxu0 %vm2022_vm9, %v5259_v26 }
 0x4fa   : > { %v5078_v15 = vsel %vm1673_vm6, %v5014_v23, %v4950_v29  ;;  %v6948_v25 = vshrl.u32 %v6797_v14, 16  ;;  %v6951_v52 = vshll.u32 %v6797_v14, 16 }
 0x4fb   : > { %v5267_v28 = vshrl.u32 %v5078_v15, 16  ;;  %v5270_v54 = vshll.u32 %v5078_v15, 16  ;;  %v6961_v9 = vor.u32 %v6960_v58, %v6957_v5 }
 0x4fc   : > { %v6950_v24 = vrot.slane %v6948_v25, 3  ;;  %v6953_v61 = vrot.slane %v6951_v52, 4  ;;  %v4948_v35 = vpop.permute.xlu0 %4947 }
 0x4fd   : > { %v6675_v30 = vpop.permute.xlu1 %6674  ;;  %v5269_v22 = vrot.slane %v5267_v28, 3  ;;  %v5272_v55 = vrot.slane %v5270_v54, 4  ;;  %v5076_v19 = vsel %vm1673_vm6, %v5012_v33, %v4948_v35 }
 0x4fe   : > { %v6803_v36 = vsel %vm1673_vm6, %v6739_v18, %v6675_v30  ;;  %v6954_v39 = vor.u32 %v6953_v61, %v6950_v24  ;;  %v5260_v42 = vshrl.u32 %v5076_v19, 16  ;;  %v5263_v20 = vshll.u32 %v5076_v19, 16 }
 0x4ff   : > { %v6970_v34 = vshrl.u32 %v6803_v36, 16  ;;  %v6973_v4 = vshll.u32 %v6803_v36, 16  ;;  %v5273_v37 = vor.u32 %v5272_v55, %v5269_v22 }
 0x500   : > { %v5262_v32 = vrot.slane %v5260_v42, 3  ;;  %v5265_v56 = vrot.slane %v5263_v20, 4  ;;  %v6673_v38 = vpop.permute.xlu0 %6672  ;;  %v6962_v0 = vsel %vm1738_vm8, %v6954_v39, %v6961_v9 }
 0x501   : > { %v4888_v45 = vpop.permute.xlu1 %4887  ;;  %v6972_v17 = vrot.slane %v6970_v34, 3  ;;  %v6801_v6 = vsel %vm1673_vm6, %v6737_v49, %v6673_v38  ;;  %12285 = vmatprep.mubr.msk.bf16.mxu1 %vm2022_vm9, %v6962_v0  ;;  %v6975_v21 = vrot.slane %v6973_v4, 4 }
 0x502   : > { %v5266_v40 = vor.u32 %v5265_v56, %v5262_v32  ;;  %v6963_v59 = vshrl.u32 %v6801_v6, 16  ;;  %v6966_v8 = vshll.u32 %v6801_v6, 16  ;;  %v5018_v15 = vsel %vm1608_vm7, %v16078_v10, %v4888_v45 }
 0x503   : > { %v6976_v58 = vor.u32 %v6975_v21, %v6972_v17 }
 0x504   : > { %v6965_v63 = vrot.slane %v6963_v59, 3  ;;  %v6968_v23 = vrot.slane %v6966_v8, 4  ;;  %v4886_v5 = vpop.permute.xlu0 %4885  ;;  %v5274_v50 = vsel %vm1738_vm8, %v5266_v40, %v5273_v37  ;;  %v16503_v37 = vld [vmem:[%s18665_s5] ss:$0 sm:$0xff] }
 0x505   : > { %v6613_v60 = vpop.permute.xlu1 %6612  ;;  %12248 = vmatmul.mubr.msk.bf16.gmra.mxu0 %vm2022_vm9, %v5274_v50  ;;  %v5016_v18 = vsel %vm1608_vm7, %v16093_v3, %v4886_v5 }
 0x506   : > { %v6969_v57 = vor.u32 %v6968_v23, %v6965_v63  ;;  %v6743_v10 = vsel %vm1608_vm7, %v16106_v13, %v6613_v60 }
 0x508   : > { %v6611_v29 = vpop.permute.xlu0 %6610  ;;  %v6977_v14 = vsel %vm1738_vm8, %v6969_v57, %v6976_v58 }
 0x509   : > { %v4892_v26 = vpop.permute.xlu1 %4891  ;;  %12286 = vmatmul.mubr.msk.bf16.gmra.mxu1 %vm2022_vm9, %v6977_v14  ;;  %v6741_v32 = vsel %vm1608_vm7, %v16128_v41, %v6611_v29 }
 0x50a   : > { %v5022_v56 = vsel %vm1608_vm7, %v16142_v16, %v4892_v26 }
 0x50c   : > { %v4890_v25 = vpop.permute.xlu0 %4889 }
 0x50d   : > { %v4954_v52 = vpop.permute.xlu1 %4953  ;;  %v5020_v6 = vsel %vm1608_vm7, %v16156_v12, %v4890_v25 }
 0x50e   : > { %v5082_v28 = vsel %vm1673_vm6, %v5018_v15, %v4954_v52 }
 0x50f   : > { %v5282_v33 = vshrl.u32 %v5082_v28, 16  ;;  %v5285_v54 = vshll.u32 %v5082_v28, 16 }
 0x510   : > { %v4952_v9 = vpop.permute.xlu0 %4951 }
 0x511   : > { %v6617_v24 = vpop.permute.xlu1 %6616  ;;  %v5080_v61 = vsel %vm1673_vm6, %v5016_v18, %v4952_v9  ;;  %v5284_v35 = vrot.slane %v5282_v33, 3  ;;  %v5287_v30 = vrot.slane %v5285_v54, 4 }
 0x512   : > { %v5275_v22 = vshrl.u32 %v5080_v61, 16  ;;  %v5278_v55 = vshll.u32 %v5080_v61, 16  ;;  %v6747_v16 = vsel %vm1608_vm7, %v16160_v47, %v6617_v24 }
 0x513   : > { %v5288_v34 = vor.u32 %v5287_v30, %v5284_v35 }
 0x514   : > { %v5277_v19 = vrot.slane %v5275_v22, 3  ;;  %v5280_v36 = vrot.slane %v5278_v55, 4  ;;  %v6615_v39 = vpop.permute.xlu0 %6614 }
 0x515   : > { %v6679_v42 = vpop.permute.xlu1 %6678  ;;  %v6745_v23 = vsel %vm1608_vm7, %v16173_v7, %v6615_v39 }
 0x516   : > { %v6807_v20 = vsel %vm1673_vm6, %v6743_v10, %v6679_v42  ;;  %v5281_v4 = vor.u32 %v5280_v36, %v5277_v19 }
 0x517   : > { %v6985_v3 = vshrl.u32 %v6807_v20, 16  ;;  %v6988_v49 = vshll.u32 %v6807_v20, 16 }
 0x518   : > { %v6677_v0 = vpop.permute.xlu0 %6676  ;;  %v5289_v17 = vsel %vm1738_vm8, %v5281_v4, %v5288_v34 }
 0x519   : > { %v6987_v38 = vrot.slane %v6985_v3, 3  ;;  %v6990_v45 = vrot.slane %v6988_v49, 4  ;;  %v4958_v13 = vpop.permute.xlu1 %4957  ;;  %v6805_v40 = vsel %vm1673_vm6, %v6741_v32, %v6677_v0  ;;  %v12229_v21 = vpop.f32.mrf.mxu0  ;;  %12251 = vmatprep.mubr.msk.bf16.mxu0 %vm2022_vm9, %v5289_v17 }
 0x51a   : > { %v5086_v41 = vsel %vm1673_vm6, %v5022_v56, %v4958_v13  ;;  %v6978_v59 = vshrl.u32 %v6805_v40, 16  ;;  %v6981_v8 = vshll.u32 %v6805_v40, 16  ;;  %v5472_v12 = vadd.f32 %v12229_v21, %v16503_v37 }
 0x51b   : > { %v5297_v63 = vshrl.u32 %v5086_v41, 16  ;;  %v6991_v5 = vor.u32 %v6990_v45, %v6987_v38  ;;  %v5300_v60 = vshll.u32 %v5086_v41, 16  ;;  %v5463_v50 = vpop.f32.mrf.mxu0 }
 0x51c   : > { %v6980_v58 = vrot.slane %v6978_v59, 3  ;;  %v6983_v57 = vrot.slane %v6981_v8, 4  ;;  %v5464_v26 = vadd.f32 %v16503_v37, %v5463_v50  ;;  %v4956_v14 = vpop.permute.xlu0 %4955  ;;  %v5592_v47 = vmax.f32 %v5472_v12, 0.0 }
 0x51d   : > { %v5299_v29 = vrot.slane %v5297_v63, 3  ;;  %v6683_v15 = vpop.permute.xlu1 %6682  ;;  %v5302_v25 = vrot.slane %v5300_v60, 4  ;;  %v5084_v52 = vsel %vm1673_vm6, %v5020_v6, %v4956_v14  ;;  %v12230_v33 = vpop.f32.mrf.mxu0  ;;  %v12664_v60 = vld [vmem:[#allocation2 + $0x1c] ss:$0 sps:$4 sm:$0x11]  }
 0x51e   : > { %v6811_v28 = vsel %vm1673_vm6, %v6747_v16, %v6683_v15  ;;  %v6984_v7 = vor.u32 %v6983_v57, %v6980_v58  ;;  %v5590_v54 = vmax.f32 %v5464_v26, 0.0  ;;  %v5290_v18 = vshrl.u32 %v5084_v52, 16 }
 0x51f   : > { %v5293_v9 = vshll.u32 %v5084_v52, 16  ;;  %v5303_v24 = vor.u32 %v5302_v25, %v5299_v29  ;;  %v11928_v61 = vpack.c.bf16 %v5592_v47, %v5592_v47  ;;  %v7000_v35 = vshrl.u32 %v6811_v28, 16  ;;  %v5466_v22 = vpop.f32.mrf.mxu0 }
 0x520   : > { %v7003_v30 = vshll.u32 %v6811_v28, 16  ;;  %v11926_v55 = vpack.c.bf16 %v5590_v54, %v5590_v54  ;;  %v5292_v10 = vrot.slane %v5290_v18, 3  ;;  %v5475_v36 = vadd.f32 %v12230_v33, %v16503_v37  ;;  %v6681_v39 = vpop.permute.xlu0 %6680 }
 0x521   : > { %v5295_v19 = vrot.slane %v5293_v9, 4  ;;  %v4896_v42 = vpop.permute.xlu1 %4895  ;;  %7485 = vst.msk [vmem:[#allocation2 + $0x24] sm:$0xf] %vm516_vm0, %v11928_v61  ;;  %v7002_v20 = vrot.slane %v7000_v35, 3  ;;  %v5467_v4 = vadd.f32 %v16503_v37, %v5466_v22  ;;  %v6809_v3 = vsel %vm1673_vm6, %v6745_v23, %v6681_v39 }
 0x522   : > { %v7005_v34 = vrot.slane %v7003_v30, 4  ;;  %7483 = vst.msk [vmem:[#allocation2 + $0x14] sm:$0xf] %vm516_vm0, %v11926_v55  ;;  %v5593_v32 = vmax.f32 %v5475_v36, 0.0  ;;  %v6993_v56 = vshrl.u32 %v6809_v3, 16  ;;  %v6996_v38 = vshll.u32 %v6809_v3, 16 }
 0x523   : > { %v5296_v49 = vor.u32 %v5295_v19, %v5292_v10  ;;  %v5591_v45 = vmax.f32 %v5467_v4, 0.0  ;;  %v6992_v0 = vsel %vm1738_vm8, %v6984_v7, %v6991_v5  ;;  %v5026_v12 = vsel %vm1608_vm7, %v16198_v62, %v4896_v42 }
 0x524   : > { %v11929_v13 = vpack.c.bf16 %v5593_v32, %v5593_v32  ;;  %v6995_v17 = vrot.slane %v6993_v56, 3  ;;  %v6998_v6 = vrot.slane %v6996_v38, 4  ;;  %12289 = vmatprep.mubr.msk.bf16.mxu1 %vm2022_vm9, %v6992_v0  ;;  %v4894_v40 = vpop.permute.xlu0 %4893  ;;  %v7006_v59 = vor.u32 %v7005_v34, %v7002_v20 }
 0x525   : > { %v6621_v41 = vpop.permute.xlu1 %6620  ;;  %v5304_v21 = vsel %vm1738_vm8, %v5296_v49, %v5303_v24  ;;  %v11927_v16 = vpack.c.bf16 %v5591_v45, %v5591_v45  ;;  %v7987_v28 = vrot.slane %v12664_v60, 5  ;;  %v5024_v33 = vsel %vm1608_vm7, %v16212_v1, %v4894_v40  ;;  %v12665_v40 = vld [vmem:[#allocation2 + $0x2c] ss:$0 sps:$4 sm:$0x11]  }
 0x526   : > { %12252 = vmatmul.mubr.msk.bf16.gmra.mxu0 %vm2022_vm9, %v5304_v21  ;;  %7486 = vst.msk [vmem:[#allocation2 + $0x28] sm:$0xf] %vm516_vm0, %v11929_v13  ;;  %v6999_v8 = vor.u32 %v6998_v6, %v6995_v17  ;;  %v6751_v20 = vsel %vm1608_vm7, %v16225_v53, %v6621_v41 }
 0x527   : > { %7484 = vst.msk [vmem:[#allocation2 + $0x18] sm:$0xf] %vm516_vm0, %v11927_v16 }
 0x528   : > { %v6619_v63 = vpop.permute.xlu0 %6618  ;;  %v7007_v5 = vsel %vm1738_vm8, %v6999_v8, %v7006_v59  ;;  %v16535_v29 = vld [vmem:[#allocation2 + $0x24] sm:$0xf] }
 0x529   : > { %v4900_v23 = vpop.permute.xlu1 %4899  ;;  %12290 = vmatmul.mubr.msk.bf16.gmra.mxu1 %vm2022_vm9, %v7007_v5  ;;  %v16543_v47 = vld [vmem:[#allocation2 + $0x14] sm:$0xf]  ;;  %v6749_v53 = vsel %vm1608_vm7, %v16246_v27, %v6619_v63 }
 0x52a   : > { %v5030_v41 = vsel %vm1608_vm7, %v16260_v11, %v4900_v23 }
 0x52c   : > { %v4898_v50 = vpop.permute.xlu0 %4897 }
 0x52d   : > { %v4962_v58 = vpop.permute.xlu1 %4961  ;;  %v16537_v26 = vld [vmem:[#allocation2 + $0x28] sm:$0xf]  ;;  %v5028_v11 = vsel %vm1608_vm7, %v16274_v43, %v4898_v50 }
 0x52e   : > { %v5090_v57 = vsel %vm1673_vm6, %v5026_v12, %v4962_v58  ;;  %v16541_v25 = vcombine.low %v16535_v29, %v16537_v26  ;;  %v16545_v52 = vld [vmem:[#allocation2 + $0x18] sm:$0xf] }
 0x52f   : > { %v5312_v14 = vshrl.u32 %v5090_v57, 16  ;;  %v5315_v15 = vshll.u32 %v5090_v57, 16  ;;  %v11657_v62 = vcombine.low %v16543_v47, %v16545_v52 }
 0x530   : > { %v7989_v54 = vrot.slane %v16541_v25, 5  ;;  %v4960_v18 = vpop.permute.xlu0 %4959  ;;  %v7766_v24 = vshrl.u32 %v16541_v25, 16  ;;  %v7769_v22 = vshll.u32 %v16541_v25, 16 }
 0x531   : > { %v5314_v7 = vrot.slane %v5312_v14, 3  ;;  %v6625_v9 = vpop.permute.xlu1 %6624  ;;  %v5317_v61 = vrot.slane %v5315_v15, 4  ;;  %v5088_v35 = vsel %vm1673_vm6, %v5024_v33, %v4960_v18  ;;  %v7986_v30 = vrot.slane %v11657_v62, 5 }
 0x532   : > { %8045 = vrot.lane.b32.xlu1 %v7989_v54, %s12879_s29  ;;  %v5305_v55 = vshrl.u32 %v5088_v35, 16  ;;  %v5308_v10 = vshll.u32 %v5088_v35, 16  ;;  %v7768_v1 = vrot.slane %v7766_v24, 4  ;;  %v7771_v36 = vrot.slane %v7769_v22, 5 }
 0x533   : > { %v7988_v19 = vsel %vm1155_vm2, %v7986_v30, %v7987_v28  ;;  %v7758_v39 = vshrl.u32 %v11657_v62, 16  ;;  %v7761_v42 = vshll.u32 %v11657_v62, 16  ;;  %v5318_v32 = vor.u32 %v5317_v61, %v5314_v7 }
 0x534   : > { %v5307_v34 = vrot.slane %v5305_v55, 3  ;;  %v5310_v4 = vrot.slane %v5308_v10, 4  ;;  %8043 = vrot.lane.b32.xlu0 %v7988_v19, %s12879_s29  ;;  %v6623_v3 = vpop.permute.xlu0 %6622  ;;  %v7772_v38 = vor.u32 %v7771_v36, %v7768_v1  ;;  %v7990_v14 = vrot.slane %v12665_v40, 5 }
 0x535   : > { %v6687_v49 = vpop.permute.xlu1 %6686  ;;  %v7760_v45 = vrot.slane %v7758_v39, 4  ;;  %v7763_v6 = vrot.slane %v7761_v42, 5  ;;  %v6755_v15 = vsel %vm1608_vm7, %v16278_v48, %v6625_v9  ;;  %v6753_v9 = vsel %vm1608_vm7, %v16291_v31, %v6623_v3 }
 0x536   : > { %v6815_v56 = vsel %vm1673_vm6, %v6751_v20, %v6687_v49  ;;  %v5311_v0 = vor.u32 %v5310_v4, %v5307_v34  ;;  %8041 = vrot.lane.b32.xlu1 %v7986_v30, %s12879_s29  ;;  %v7991_v48 = vsel %vm1155_vm2, %v7989_v54, %v7990_v14 }
 0x537   : > { %v7015_v13 = vshrl.u32 %v6815_v56, 16  ;;  %v7018_v17 = vshll.u32 %v6815_v56, 16  ;;  %v7764_v57 = vor.u32 %v7763_v6, %v7760_v45 }
 0x538   : > { %7897 = vrot.lane.b32.xlu0 %v7772_v38, %s12878_s28  ;;  %v6685_v59 = vpop.permute.xlu0 %6684  ;;  %v5319_v5 = vsel %vm1738_vm8, %v5311_v0, %v5318_v32 }
 0x539   : > { %v7017_v21 = vrot.slane %v7015_v13, 3  ;;  %v7020_v16 = vrot.slane %v7018_v17, 4  ;;  %v4966_v8 = vpop.permute.xlu1 %4965  ;;  %v6813_v60 = vsel %vm1673_vm6, %v6749_v53, %v6685_v59  ;;  %12255 = vmatprep.mubr.msk.bf16.mxu0 %vm2022_vm9, %v5319_v5 }
 0x53a   : > { %v5094_v12 = vsel %vm1673_vm6, %v5030_v41, %v4966_v8  ;;  %v7008_v58 = vshrl.u32 %v6813_v60, 16  ;;  %v7011_v27 = vshll.u32 %v6813_v60, 16  ;;  %v16598_v8 = vld [vmem:[%s18669_s9] ss:$0 sm:$0xff] }
 0x53b   : > { %v5327_v63 = vshrl.u32 %v5094_v12, 16  ;;  %v5330_v23 = vshll.u32 %v5094_v12, 16  ;;  %v7021_v62 = vor.u32 %v7020_v16, %v7017_v21 }
 0x53c   : > { %v7010_v28 = vrot.slane %v7008_v58, 3  ;;  %v7013_v33 = vrot.slane %v7011_v27, 4  ;;  %7895 = vrot.lane.b32.xlu0 %v7764_v57, %s12878_s28  ;;  %v4964_v7 = vpop.permute.xlu0 %4963 }
 0x53d   : > { %v6691_v18 = vpop.permute.xlu1 %6690  ;;  %v5329_v24 = vrot.slane %v5327_v63, 3  ;;  %v5332_v61 = vrot.slane %v5330_v23, 4  ;;  %v5092_v35 = vsel %vm1673_vm6, %v5028_v11, %v4964_v7 }
 0x53e   : > { %v6819_v30 = vsel %vm1673_vm6, %v6755_v15, %v6691_v18  ;;  %v7014_v22 = vor.u32 %v7013_v33, %v7010_v28  ;;  %v5320_v43 = vshrl.u32 %v5092_v35, 16  ;;  %v5323_v50 = vshll.u32 %v5092_v35, 16 }
 0x53f   : > { %v7030_v55 = vshrl.u32 %v6819_v30, 16  ;;  %v7033_v10 = vshll.u32 %v6819_v30, 16  ;;  %v5333_v20 = vor.u32 %v5332_v61, %v5329_v24 }
 0x540   : > { %v5322_v1 = vrot.slane %v5320_v43, 3  ;;  %v5325_v19 = vrot.slane %v5323_v50, 4  ;;  %8047 = vrot.lane.b32.xlu0 %v7991_v48, %s12879_s29  ;;  %v6689_v36 = vpop.permute.xlu0 %6688  ;;  %v7022_v42 = vsel %vm1738_vm8, %v7014_v22, %v7021_v62 }
 0x541   : > { %v6629_v39 = vpop.permute.xlu1 %6628  ;;  %v7032_v34 = vrot.slane %v7030_v55, 3  ;;  %v6817_v4 = vsel %vm1673_vm6, %v6753_v9, %v6689_v36  ;;  %12293 = vmatprep.mubr.msk.bf16.mxu1 %vm2022_vm9, %v7022_v42  ;;  %v7035_v49 = vrot.slane %v7033_v10, 4 }
 0x542   : > { %v5326_v25 = vor.u32 %v5325_v19, %v5322_v1  ;;  %v7023_v54 = vshrl.u32 %v6817_v4, 16  ;;  %v7026_v32 = vshll.u32 %v6817_v4, 16  ;;  %v6759_v40 = vsel %vm1608_vm7, %v16336_v46, %v6629_v39 }
 0x543   : > { %v7036_v13 = vor.u32 %v7035_v49, %v7032_v34 }
 0x544   : > { %v7025_v56 = vrot.slane %v7023_v54, 3  ;;  %v7028_v31 = vrot.slane %v7026_v32, 4  ;;  %v6627_v3 = vpop.permute.xlu0 %6626  ;;  %v5334_v45 = vsel %vm1738_vm8, %v5326_v25, %v5333_v20 }
 0x545   : > { %v6633_v38 = vpop.permute.xlu1 %6632  ;;  %v12233_v0 = vpop.f32.mrf.mxu0  ;;  %12256 = vmatmul.mubr.msk.bf16.gmra.mxu0 %vm2022_vm9, %v5334_v45  ;;  %v6757_v11 = vsel %vm1608_vm7, %v16354_v2, %v6627_v3 }
 0x546   : > { %v7029_v17 = vor.u32 %v7028_v31, %v7025_v56  ;;  %v5488_v6 = vadd.f32 %v12233_v0, %v16503_v37  ;;  %v6763_v23 = vsel %vm1608_vm7, %v16380_v51, %v6633_v38 }
 0x547   : > { %v5479_v53 = vpop.f32.mrf.mxu0 }
 0x548   : > { %v5596_v41 = vmax.f32 %v5488_v6, 0.0  ;;  %v5480_v21 = vadd.f32 %v16503_v37, %v5479_v53  ;;  %v6631_v16 = vpop.permute.xlu0 %6630  ;;  %v7037_v5 = vsel %vm1738_vm8, %v7029_v17, %v7036_v13 }
 0x549   : > { %v6695_v59 = vpop.permute.xlu1 %6694  ;;  %v12234_v12 = vpop.f32.mrf.mxu0  ;;  %12294 = vmatmul.mubr.msk.bf16.gmra.mxu1 %vm2022_vm9, %v7037_v5  ;;  %v6761_v7 = vsel %vm1608_vm7, %v16394_v44, %v6631_v16 }
 0x54a   : > { %v6823_v60 = vsel %vm1673_vm6, %v6759_v40, %v6695_v59  ;;  %v12271_v58 = vpop.f32.mrf.mxu1  ;;  %v11932_v27 = vpack.c.bf16 %v5596_v41, %v5596_v41  ;;  %v5594_v46 = vmax.f32 %v5480_v21, 0.0  ;;  %v5491_v14 = vadd.f32 %v12234_v12, %v16503_v37  ;;  %v12667_v59 = vld [vmem:[#allocation2 + $0x3c] ss:$0 sps:$4 sm:$0x11]  }
 0x54b   : > { %v7045_v63 = vshrl.u32 %v6823_v60, 16  ;;  %v7048_v57 = vshll.u32 %v6823_v60, 16  ;;  %v7205_v15 = vadd.f32 %v12271_v58, %v16598_v8  ;;  %v5482_v62 = vpop.f32.mrf.mxu0 }
 0x54c   : > { %v7196_v28 = vpop.f32.mrf.mxu1  ;;  %7489 = vst.msk [vmem:[#allocation2 + $0x44] sm:$0xf] %vm516_vm0, %v11932_v27  ;;  %v11930_v33 = vpack.c.bf16 %v5594_v46, %v5594_v46  ;;  %v5483_v24 = vadd.f32 %v16503_v37, %v5482_v62  ;;  %v6693_v61 = vpop.permute.xlu0 %6692  ;;  %v5597_v35 = vmax.f32 %v5491_v14, 0.0 }
 0x54d   : > { %v7047_v18 = vrot.slane %v7045_v63, 3  ;;  %v6699_v2 = vpop.permute.xlu1 %6698  ;;  %v7325_v30 = vmax.f32 %v7205_v15, 0.0  ;;  %v7197_v51 = vadd.f32 %v16598_v8, %v7196_v28  ;;  %v6821_v22 = vsel %vm1673_vm6, %v6757_v11, %v6693_v61 }
 0x54e   : > { %v12272_v43 = vpop.f32.mrf.mxu1  ;;  %7487 = vst.msk [vmem:[#allocation2 + $0x34] sm:$0xf] %vm516_vm0, %v11930_v33  ;;  %v7050_v50 = vrot.slane %v7048_v57, 4  ;;  %v5595_v55 = vmax.f32 %v5483_v24, 0.0  ;;  %v7038_v10 = vshrl.u32 %v6821_v22, 16  ;;  %v7041_v48 = vshll.u32 %v6821_v22, 16 }
 0x54f   : > { %v11933_v9 = vpack.c.bf16 %v5597_v35, %v5597_v35  ;;  %v11960_v44 = vpack.c.bf16 %v7325_v30, %v7325_v30  ;;  %v7323_v1 = vmax.f32 %v7197_v51, 0.0  ;;  %v6827_v19 = vsel %vm1673_vm6, %v6763_v23, %v6699_v2  ;;  %v12670_v33 = vld [vmem:[#allocation2 + $0x2c] ss:$0 sps:$4 sm:$0x11]  }
 0x550   : > { %v7199_v36 = vpop.f32.mrf.mxu1  ;;  %v11931_v39 = vpack.c.bf16 %v5595_v55, %v5595_v55  ;;  %v7040_v42 = vrot.slane %v7038_v10, 3  ;;  %v7043_v20 = vrot.slane %v7041_v48, 4  ;;  %v7060_v34 = vshrl.u32 %v6827_v19, 16  ;;  %v6697_v4 = vpop.permute.xlu0 %6696  ;;  %v12672_v10 = vld [vmem:[#allocation2 + $0x1c] ss:$0 sps:$4 sm:$0x11]  }
 0x551   : > { %7490 = vst.msk [vmem:[#allocation2 + $0x48] sm:$0xf] %vm516_vm0, %v11933_v9  ;;  %8924 = vst.msk [vmem:[#allocation2 + $0x24] sm:$0xf] %vm516_vm0, %v11960_v44  ;;  %v11958_v25 = vpack.c.bf16 %v7323_v1, %v7323_v1  ;;  %v7063_v49 = vshll.u32 %v6827_v19, 16  ;;  %v7208_v54 = vadd.f32 %v12272_v43, %v16598_v8  ;;  %v7200_v32 = vadd.f32 %v16598_v8, %v7199_v36 }
 0x552   : > { %v7051_v56 = vor.u32 %v7050_v50, %v7047_v18  ;;  %7488 = vst.msk [vmem:[#allocation2 + $0x38] sm:$0xf] %vm516_vm0, %v11931_v39  ;;  %v7044_v31 = vor.u32 %v7043_v20, %v7040_v42  ;;  %v6825_v3 = vsel %vm1673_vm6, %v6761_v7, %v6697_v4  ;;  %v7062_v13 = vrot.slane %v7060_v34, 3 }
 0x553   : > { %8922 = vst.msk [vmem:[#allocation2 + $0x14] sm:$0xf] %vm516_vm0, %v11958_v25  ;;  %v7326_v38 = vmax.f32 %v7208_v54, 0.0  ;;  %v7324_v45 = vmax.f32 %v7200_v32, 0.0  ;;  %v7053_v0 = vshrl.u32 %v6825_v3, 16  ;;  %v7065_v17 = vrot.slane %v7063_v49, 4 }
 0x554   : > { %v7056_v6 = vshll.u32 %v6825_v3, 16  ;;  %v7052_v53 = vsel %vm1738_vm8, %v7044_v31, %v7051_v56  ;;  %v7993_v57 = vrot.slane %v12667_v59, 5  ;;  %v16638_v11 = vld [vmem:[#allocation2 + $0x44] sm:$0xf]  ;;  %v9429_v9 = vrot.slane %v12670_v33, 5 }
 0x555   : > { %v11961_v40 = vpack.c.bf16 %v7326_v38, %v7326_v38  ;;  %v11959_v41 = vpack.c.bf16 %v7324_v45, %v7324_v45  ;;  %v7055_v21 = vrot.slane %v7053_v0, 3  ;;  %12297 = vmatprep.mubr.msk.bf16.mxu1 %vm2022_vm9, %v7052_v53  ;;  %v7066_v5 = vor.u32 %v7065_v17, %v7062_v13  ;;  %v16628_v12 = vld [vmem:[#allocation2 + $0x34] sm:$0xf] }
 0x556   : > { %v7058_v16 = vrot.slane %v7056_v6, 4  ;;  %v9426_v39 = vrot.slane %v12672_v10, 5 }
 0x557   : > { %8925 = vst.msk [vmem:[#allocation2 + $0x28] sm:$0xf] %vm516_vm0, %v11961_v40  ;;  %8923 = vst.msk [vmem:[#allocation2 + $0x18] sm:$0xf] %vm516_vm0, %v11959_v41 }
 0x558   : > { %v7059_v60 = vor.u32 %v7058_v16, %v7055_v21  ;;  %v16632_v27 = vld [vmem:[#allocation2 + $0x48] sm:$0xf]  ;;  %v8961_v28 = vld [vmem:[#allocation2 + $0x24] sm:$0xf] }
 0x559   : > { %v16630_v58 = vld [vmem:[#allocation2 + $0x38] sm:$0xf]  ;;  %v16642_v62 = vcombine.low %v16638_v11, %v16632_v27 }
 0x55a   : > { %v7067_v46 = vsel %vm1738_vm8, %v7059_v60, %v7066_v5  ;;  %v11659_v63 = vcombine.low %v16628_v12, %v16630_v58  ;;  %v8958_v43 = vld [vmem:[#allocation2 + $0x14] sm:$0xf] }
 0x55b   : > { %12298 = vmatmul.mubr.msk.bf16.gmra.mxu1 %vm2022_vm9, %v7067_v46  ;;  %v7782_v51 = vshrl.u32 %v16642_v62, 16  ;;  %v7785_v22 = vshll.u32 %v16642_v62, 16  ;;  %v7995_v50 = vrot.slane %v16642_v62, 5 }
 0x55c   : > { %v7992_v23 = vrot.slane %v11659_v63, 5  ;;  %v7774_v14 = vshrl.u32 %v11659_v63, 16  ;;  %v7777_v15 = vshll.u32 %v11659_v63, 16 }
 0x55d   : > { %v7784_v44 = vrot.slane %v7782_v51, 4  ;;  %v7787_v1 = vrot.slane %v7785_v22, 5 }
 0x55e   : > { %v7994_v7 = vsel %vm1155_vm2, %v7992_v23, %v7993_v57  ;;  %v7776_v18 = vrot.slane %v7774_v14, 4  ;;  %v7779_v24 = vrot.slane %v7777_v15, 5  ;;  %v8962_v61 = vld [vmem:[#allocation2 + $0x28] sm:$0xf]  ;;  %v8959_v2 = vld [vmem:[#allocation2 + $0x18] sm:$0xf] }
 0x55f   : > { %8051 = vrot.lane.b32.xlu1 %v7994_v7, %s12879_s29  ;;  %v16646_v35 = vcombine.low %v8961_v28, %v8962_v61  ;;  %v16651_v55 = vcombine.low %v8958_v43, %v8959_v2  ;;  %v7788_v32 = vor.u32 %v7787_v1, %v7784_v44  ;;  %v12674_v44 = vld [vmem:[#allocation2 + $0x4c] ss:$0 sps:$4 sm:$0x11]  }
 0x560   : > { %v7780_v30 = vor.u32 %v7779_v24, %v7776_v18 }
 0x561   : > { %v9428_v48 = vrot.slane %v16646_v35, 5  ;;  %v9425_v36 = vrot.slane %v16651_v55, 5  ;;  %v9205_v42 = vshrl.u32 %v16646_v35, 16  ;;  %v9208_v20 = vshll.u32 %v16646_v35, 16 }
 0x562   : > { %7899 = vrot.lane.b32.xlu0 %v7780_v30, %s12878_s28  ;;  %v9197_v56 = vshrl.u32 %v16651_v55, 16  ;;  %v9200_v13 = vshll.u32 %v16651_v55, 16 }
 0x563   : > { %8053 = vrot.lane.b32.xlu1 %v7995_v50, %s12879_s29  ;;  %v9430_v4 = vsel %vm1155_vm2, %v9428_v48, %v9429_v9  ;;  %v9427_v38 = vsel %vm1155_vm2, %v9425_v36, %v9426_v39  ;;  %v9207_v45 = vrot.slane %v9205_v42, 4  ;;  %v9210_v0 = vrot.slane %v9208_v20, 5  ;;  %v12676_v42 = vld [vmem:[#allocation2 + $0x5c] ss:$0 sps:$4 sm:$0x11]  }
 0x564   : > { %v9202_v14 = vrot.slane %v9200_v13, 5 }
 0x565   : > { %v12237_v19 = vpop.f32.mrf.mxu0  ;;  %v9211_v57 = vor.u32 %v9210_v0, %v9207_v45 }
 0x566   : > { %v5504_v34 = vadd.f32 %v12237_v19, %v16503_v37  ;;  %8049 = vrot.lane.b32.xlu0 %v7992_v23, %s12879_s29  ;;  %v9199_v23 = vrot.slane %v9197_v56, 4 }
 0x567   : > { %9486 = vrot.lane.b32.xlu1 %v9430_v4, %s12879_s29  ;;  %v5495_v25 = vpop.f32.mrf.mxu0 }
 0x568   : > { %v5600_v49 = vmax.f32 %v5504_v34, 0.0  ;;  %v5496_v54 = vadd.f32 %v16503_v37, %v5495_v25  ;;  %v9203_v22 = vor.u32 %v9202_v14, %v9199_v23  ;;  %v9435_v25 = vrot.slane %v12674_v44, 5 }
 0x569   : > { %v12238_v31 = vpop.f32.mrf.mxu0  ;;  %v12275_v3 = vpop.f32.mrf.mxu1 }
 0x56a   : > { %v11936_v17 = vpack.c.bf16 %v5600_v49, %v5600_v49  ;;  %v5598_v6 = vmax.f32 %v5496_v54, 0.0  ;;  %v5507_v53 = vadd.f32 %v12238_v31, %v16503_v37  ;;  %v7221_v40 = vadd.f32 %v12275_v3, %v16598_v8  ;;  %7901 = vrot.lane.b32.xlu0 %v7788_v32, %s12878_s28 }
 0x56b   : > { %9482 = vrot.lane.b32.xlu1 %v9427_v38, %s12879_s29  ;;  %v5498_v41 = vpop.f32.mrf.mxu0  ;;  %v7212_v21 = vpop.f32.mrf.mxu1  ;;  %v7999_v38 = vrot.slane %v12676_v42, 5 }
 0x56c   : > { %7493 = vst.msk [vmem:[#allocation2 + $0x64] sm:$0xf] %vm516_vm0, %v11936_v17  ;;  %v11934_v16 = vpack.c.bf16 %v5598_v6, %v5598_v6  ;;  %v5601_v59 = vmax.f32 %v5507_v53, 0.0  ;;  %v7329_v5 = vmax.f32 %v7221_v40, 0.0  ;;  %v5499_v60 = vadd.f32 %v16503_v37, %v5498_v41 }
 0x56d   : > { %v7213_v46 = vadd.f32 %v16598_v8, %v7212_v21  ;;  %v12276_v63 = vpop.f32.mrf.mxu1  ;;  %v12678_v53 = vld [vmem:[#allocation2 + $0x3c] ss:$0 sps:$4 sm:$0x11]  }
 0x56e   : > { %7491 = vst.msk [vmem:[#allocation2 + $0x54] sm:$0xf] %vm516_vm0, %v11934_v16  ;;  %v11937_v15 = vpack.c.bf16 %v5601_v59, %v5601_v59  ;;  %v11964_v28 = vpack.c.bf16 %v7329_v5, %v7329_v5  ;;  %v5599_v33 = vmax.f32 %v5499_v60, 0.0  ;;  %v7224_v7 = vadd.f32 %v12276_v63, %v16598_v8  ;;  %v12679_v60 = vld [vmem:[#allocation2 + $0x4c] ss:$0 sps:$4 sm:$0x11]  }
 0x56f   : > { %v7327_v18 = vmax.f32 %v7213_v46, 0.0  ;;  %9336 = vrot.lane.b32.xlu1 %v9211_v57, %s12878_s28  ;;  %v7215_v24 = vpop.f32.mrf.mxu1  ;;  %v9432_v59 = vrot.slane %v12678_v53, 5 }
 0x570   : > { %7494 = vst.msk [vmem:[#allocation2 + $0x68] sm:$0xf] %vm516_vm0, %v11937_v15  ;;  %8928 = vst.msk [vmem:[#allocation2 + $0x44] sm:$0xf] %vm516_vm0, %v11964_v28  ;;  %v11935_v61 = vpack.c.bf16 %v5599_v33, %v5599_v33  ;;  %v7330_v2 = vmax.f32 %v7224_v7, 0.0  ;;  %v7216_v30 = vadd.f32 %v16598_v8, %v7215_v24 }
 0x571   : > { %v11962_v51 = vpack.c.bf16 %v7327_v18, %v7327_v18 }
 0x572   : > { %7492 = vst.msk [vmem:[#allocation2 + $0x58] sm:$0xf] %vm516_vm0, %v11935_v61  ;;  %v11965_v43 = vpack.c.bf16 %v7330_v2, %v7330_v2  ;;  %v7328_v10 = vmax.f32 %v7216_v30, 0.0  ;;  %v7996_v61 = vrot.slane %v12679_v60, 5 }
 0x573   : > { %8926 = vst.msk [vmem:[#allocation2 + $0x34] sm:$0xf] %vm516_vm0, %v11962_v51  ;;  %9334 = vrot.lane.b32.xlu1 %v9203_v22, %s12878_s28 }
 0x574   : > { %8929 = vst.msk [vmem:[#allocation2 + $0x48] sm:$0xf] %vm516_vm0, %v11965_v43  ;;  %v11963_v9 = vpack.c.bf16 %v7328_v10, %v7328_v10  ;;  %v7997_v55 = vsel %vm1155_vm2, %v7995_v50, %v7996_v61 }
 0x575   : > { %v16691_v1 = vld [vmem:[#allocation2 + $0x54] sm:$0xf] }
 0x576   : > { %8927 = vst.msk [vmem:[#allocation2 + $0x38] sm:$0xf] %vm516_vm0, %v11963_v9 }
 0x577   : > { %v8967_v20 = vld [vmem:[#allocation2 + $0x44] sm:$0xf] }
 0x579   : > { %v16693_v19 = vld [vmem:[#allocation2 + $0x58] sm:$0xf] }
 0x57a   : > { %19099 = vst [vmem:[#allocation7_spill] sm:$0xff] %v16693_v19  ;;  %v16697_v39 = vcombine.low %v16691_v1, %v16693_v19  ;;  %v8964_v45 = vld [vmem:[#allocation2 + $0x34] sm:$0xf] }
 0x57b   : > { %v8968_v34 = vld [vmem:[#allocation2 + $0x48] sm:$0xf] }
 0x57c   : > { %v16699_v4 = vcombine.low %v8967_v20, %v8968_v34  ;;  %v7790_v49 = vshrl.u32 %v16697_v39, 16  ;;  %v7793_v54 = vshll.u32 %v16697_v39, 16  ;;  %v7998_v17 = vrot.slane %v16697_v39, 5 }
 0x57d   : > { %v8965_v32 = vld [vmem:[#allocation2 + $0x38] sm:$0xf] }
 0x57e   : > { %v9434_v56 = vrot.slane %v16699_v4, 5  ;;  %v7792_v31 = vrot.slane %v7790_v49, 4  ;;  %v7795_v3 = vrot.slane %v7793_v54, 5  ;;  %v16708_v6 = vcombine.low %v8964_v45, %v8965_v32 }
 0x57f   : > { %v9221_v40 = vshrl.u32 %v16699_v4, 16  ;;  %v9224_v41 = vshll.u32 %v16699_v4, 16  ;;  %v8000_v21 = vsel %vm1155_vm2, %v7998_v17, %v7999_v38 }
 0x580   : > { %v9436_v0 = vsel %vm1155_vm2, %v9434_v56, %v9435_v25  ;;  %v7796_v13 = vor.u32 %v7795_v3, %v7792_v31  ;;  %v9431_v16 = vrot.slane %v16708_v6, 5  ;;  %v9213_v14 = vshrl.u32 %v16708_v6, 16 }
 0x581   : > { %9494 = vrot.lane.b32.xlu1 %v9436_v0, %s12879_s29  ;;  %v9223_v57 = vrot.slane %v9221_v40, 4  ;;  %v9226_v23 = vrot.slane %v9224_v41, 5  ;;  %v9216_v15 = vshll.u32 %v16708_v6, 16  ;;  %v16743_v0 = vld [vmem:[#allocation2 + $0x64] sm:$0xf] }
 0x582   : > { %7903 = vrot.lane.b32.xlu0 %v7796_v13, %s12878_s28  ;;  %v9433_v7 = vsel %vm1155_vm2, %v9431_v16, %v9432_v59  ;;  %v9215_v10 = vrot.slane %v9213_v14, 4  ;;  %19100 = vst [vmem:[#allocation17_spill] sm:$0xff] %v16743_v0  ;;  %v16752_v41 = vld [vmem:[#allocation2 + $0x68] sm:$0xf] }
 0x583   : > { %v9227_v43 = vor.u32 %v9226_v23, %v9223_v57  ;;  %v9218_v9 = vrot.slane %v9216_v15, 5  ;;  %19101 = vst [vmem:[#allocation12_spill] sm:$0xff] %v16752_v41  ;;  %v16761_v59 = vcombine.low %v16743_v0, %v16752_v41 }
 0x585   : > { %8059 = vrot.lane.b32.xlu1 %v8000_v21, %s12879_s29  ;;  %v12241_v5 = vpop.f32.mrf.mxu0  ;;  %v9219_v45 = vor.u32 %v9218_v9, %v9215_v10 }
 0x586   : > { %v5520_v46 = vadd.f32 %v12241_v5, %v16503_v37  ;;  %9484 = vrot.lane.b32.xlu0 %v9428_v48, %s12879_s29 }
 0x587   : > { %v5511_v63 = vpop.f32.mrf.mxu0 }
 0x588   : > { %v5604_v28 = vmax.f32 %v5520_v46, 0.0  ;;  %v5512_v33 = vadd.f32 %v16503_v37, %v5511_v63  ;;  %v7798_v46 = vshrl.u32 %v16761_v59, 16  ;;  %v7801_v63 = vshll.u32 %v16761_v59, 16 }
 0x589   : > { %9490 = vrot.lane.b32.xlu1 %v9433_v7, %s12879_s29  ;;  %v12242_v18 = vpop.f32.mrf.mxu0  ;;  %v12279_v24 = vpop.f32.mrf.mxu1 }
 0x58a   : > { %v11940_v2 = vpack.c.bf16 %v5604_v28, %v5604_v28  ;;  %v5602_v35 = vmax.f32 %v5512_v33, 0.0  ;;  %v5523_v48 = vadd.f32 %v12242_v18, %v16503_v37  ;;  %v7237_v30 = vadd.f32 %v12279_v24, %v16598_v8  ;;  %9480 = vrot.lane.b32.xlu0 %v9425_v36, %s12879_s29 }
 0x58b   : > { %v5514_v51 = vpop.f32.mrf.mxu0  ;;  %v7228_v22 = vpop.f32.mrf.mxu1  ;;  %v7803_v33 = vrot.slane %v7801_v63, 5 }
 0x58c   : > { %7497 = vst.msk [vmem:[#allocation2 + $0x84] sm:$0xf] %vm516_vm0, %v11940_v2  ;;  %v11938_v44 = vpack.c.bf16 %v5602_v35, %v5602_v35  ;;  %v5605_v42 = vmax.f32 %v5523_v48, 0.0  ;;  %v7333_v20 = vmax.f32 %v7237_v30, 0.0  ;;  %v5515_v34 = vadd.f32 %v16503_v37, %v5514_v51 }
 0x58d   : > { %v7229_v25 = vadd.f32 %v16598_v8, %v7228_v22  ;;  %9340 = vrot.lane.b32.xlu1 %v9227_v43, %s12878_s28  ;;  %v12280_v49 = vpop.f32.mrf.mxu1 }
 0x58e   : > { %7495 = vst.msk [vmem:[#allocation2 + $0x74] sm:$0xf] %vm516_vm0, %v11938_v44  ;;  %v11941_v36 = vpack.c.bf16 %v5605_v42, %v5605_v42  ;;  %v11968_v54 = vpack.c.bf16 %v7333_v20, %v7333_v20  ;;  %v5603_v32 = vmax.f32 %v5515_v34, 0.0  ;;  %v7240_v31 = vadd.f32 %v12280_v49, %v16598_v8  ;;  %8055 = vrot.lane.b32.xlu0 %v7997_v55, %s12879_s29 }
 0x58f   : > { %v7331_v3 = vmax.f32 %v7229_v25, 0.0  ;;  %v7231_v38 = vpop.f32.mrf.mxu1  ;;  %v12685_v25 = vld [vmem:[#allocation2 + $0x6c] ss:$0 sps:$4 sm:$0x11]  }
 0x590   : > { %7498 = vst.msk [vmem:[#allocation2 + $0x88] sm:$0xf] %vm516_vm0, %v11941_v36  ;;  %v11939_v13 = vpack.c.bf16 %v5603_v32, %v5603_v32  ;;  %v7334_v62 = vmax.f32 %v7240_v31, 0.0  ;;  %v7232_v50 = vadd.f32 %v16598_v8, %v7231_v38  ;;  %8932 = vst.msk [vmem:[#allocation2 + $0x64] sm:$0xf] %vm516_vm0, %v11968_v54 }
 0x591   : > { %v11966_v6 = vpack.c.bf16 %v7331_v3, %v7331_v3  ;;  %9338 = vrot.lane.b32.xlu1 %v9219_v45, %s12878_s28  ;;  %v8001_v45 = vrot.slane %v16761_v59, 5 }
 0x592   : > { %7496 = vst.msk [vmem:[#allocation2 + $0x78] sm:$0xf] %vm516_vm0, %v11939_v13  ;;  %v11969_v53 = vpack.c.bf16 %v7334_v62, %v7334_v62  ;;  %v7332_v40 = vmax.f32 %v7232_v50, 0.0  ;;  %9488 = vrot.lane.b32.xlu0 %v9431_v16, %s12879_s29  ;;  %v12681_v16 = vld [vmem:[#allocation2 + $0x5c] ss:$0 sps:$4 sm:$0x11]  }
 0x593   : > { %8930 = vst.msk [vmem:[#allocation2 + $0x54] sm:$0xf] %vm516_vm0, %v11966_v6  ;;  %v9438_v39 = vrot.slane %v12681_v16, 5  ;;  %v8002_v13 = vrot.slane %v12685_v25, 5 }
 0x594   : > { %v11967_v21 = vpack.c.bf16 %v7332_v40, %v7332_v40  ;;  %8933 = vst.msk [vmem:[#allocation2 + $0x68] sm:$0xf] %vm516_vm0, %v11969_v53 }
 0x595   : > { %v16768_v60 = vld [vmem:[#allocation2 + $0x74] sm:$0xf] }
 0x596   : > { %8931 = vst.msk [vmem:[#allocation2 + $0x58] sm:$0xf] %vm516_vm0, %v11967_v21  ;;  %9492 = vrot.lane.b32.xlu0 %v9434_v56, %s12879_s29  ;;  %19103 = vst [vmem:[#allocation24_spill] sm:$0xff] %v16768_v60 }
 0x597   : > { %v8973_v57 = vld [vmem:[#allocation2 + $0x64] sm:$0xf] }
 0x599   : > { %v16763_v5 = vld [vmem:[#allocation2 + $0x78] sm:$0xf] }
 0x59a   : > { %19102 = vst [vmem:[#allocation11_spill] sm:$0xff] %v16763_v5  ;;  %8057 = vrot.lane.b32.xlu0 %v7998_v17, %s12879_s29  ;;  %v16774_v4 = vcombine.low %v16768_v60, %v16763_v5  ;;  %v8970_v23 = vld [vmem:[#allocation2 + $0x54] sm:$0xf]  ;;  %v7800_v17 = vrot.slane %v7798_v46, 4 }
 0x59b   : > { %v8974_v56 = vld [vmem:[#allocation2 + $0x68] sm:$0xf] }
 0x59c   : > { %v16776_v15 = vcombine.low %v8973_v57, %v8974_v56  ;;  %v7806_v7 = vshrl.u32 %v16774_v4, 16  ;;  %v7809_v2 = vshll.u32 %v16774_v4, 16  ;;  %v7804_v43 = vor.u32 %v7803_v33, %v7800_v17 }
 0x59d   : > { %v8971_v14 = vld [vmem:[#allocation2 + $0x58] sm:$0xf] }
 0x59e   : > { %v11765_v28 = vcombine.low %v8970_v23, %v8971_v14  ;;  %v9237_v35 = vshrl.u32 %v16776_v15, 16  ;;  %v9240_v48 = vshll.u32 %v16776_v15, 16  ;;  %v7808_v9 = vrot.slane %v7806_v7, 4 }
 0x59f   : > { %v7811_v44 = vrot.slane %v7809_v2, 5  ;;  %v8003_v23 = vsel %vm1155_vm2, %v8001_v45, %v8002_v13  ;;  %v9440_v2 = vrot.slane %v16776_v15, 5 }
 0x5a0   : > { %v9437_v18 = vrot.slane %v11765_v28, 5  ;;  %v9229_v24 = vshrl.u32 %v11765_v28, 16  ;;  %v9232_v61 = vshll.u32 %v11765_v28, 16  ;;  %v9239_v20 = vrot.slane %v9237_v35, 4 }
 0x5a1   : > { %v9242_v34 = vrot.slane %v9240_v48, 5  ;;  %v7812_v32 = vor.u32 %v7811_v44, %v7808_v9 }
 0x5a2   : > { %9496 = vrot.lane.b32.xlu0 %v9437_v18, %s12879_s29  ;;  %v9439_v30 = vsel %vm1155_vm2, %v9437_v18, %v9438_v39  ;;  %v9231_v51 = vrot.slane %v9229_v24, 4  ;;  %v9234_v22 = vrot.slane %v9232_v61, 5  ;;  %v16802_v18 = vld [vmem:[#allocation2 + $0x84] sm:$0xf] }
 0x5a3   : > { %9498 = vrot.lane.b32.xlu1 %v9439_v30, %s12879_s29  ;;  %v9243_v38 = vor.u32 %v9242_v34, %v9239_v20  ;;  %19104 = vst [vmem:[#allocation35_spill] sm:$0xff] %v16802_v18 }
 0x5a4   : > { %v9235_v10 = vor.u32 %v9234_v22, %v9231_v51  ;;  %v16811_v51 = vld [vmem:[#allocation2 + $0x88] sm:$0xf] }
 0x5a5   : > { %v12245_v42 = vpop.f32.mrf.mxu0  ;;  %19105 = vst [vmem:[#allocation28_spill] sm:$0xff] %v16811_v51  ;;  %v16821_v15 = vcombine.low %v16802_v18, %v16811_v51 }
 0x5a6   : > { %v5536_v49 = vadd.f32 %v12245_v42, %v16503_v37  ;;  %7905 = vrot.lane.b32.xlu0 %v7804_v43, %s12878_s28  ;;  %v8004_v43 = vrot.slane %v16774_v4, 5 }
 0x5a7   : > { %9342 = vrot.lane.b32.xlu1 %v9235_v10, %s12878_s28  ;;  %v5527_v55 = vpop.f32.mrf.mxu0  ;;  %v7814_v44 = vshrl.u32 %v16821_v15, 16  ;;  %v7817_v42 = vshll.u32 %v16821_v15, 16 }
 0x5a8   : > { %v5608_v36 = vmax.f32 %v5536_v49, 0.0  ;;  %v5528_v54 = vadd.f32 %v16503_v37, %v5527_v55 }
 0x5a9   : > { %v12246_v31 = vpop.f32.mrf.mxu0  ;;  %v12283_v3 = vpop.f32.mrf.mxu1  ;;  %v7816_v55 = vrot.slane %v7814_v44, 4 }
 0x5aa   : > { %v11944_v62 = vpack.c.bf16 %v5608_v36, %v5608_v36  ;;  %v5606_v50 = vmax.f32 %v5528_v54, 0.0  ;;  %v5539_v6 = vadd.f32 %v12246_v31, %v16503_v37  ;;  %v7253_v53 = vadd.f32 %v12283_v3, %v16598_v8  ;;  %7907 = vrot.lane.b32.xlu0 %v7812_v32, %s12878_s28 }
 0x5ab   : > { %9344 = vrot.lane.b32.xlu1 %v9243_v38, %s12878_s28  ;;  %v5530_v40 = vpop.f32.mrf.mxu0  ;;  %v7244_v21 = vpop.f32.mrf.mxu1  ;;  %v7819_v36 = vrot.slane %v7817_v42, 5 }
 0x5ac   : > { %7501 = vst.msk [vmem:[#allocation2 + $0xa4] sm:$0xf] %vm516_vm0, %v11944_v62  ;;  %v11942_v16 = vpack.c.bf16 %v5606_v50, %v5606_v50  ;;  %v5609_v46 = vmax.f32 %v5539_v6, 0.0  ;;  %v7337_v63 = vmax.f32 %v7253_v53, 0.0  ;;  %v5531_v59 = vadd.f32 %v16503_v37, %v5530_v40 }
 0x5ad   : > { %v7245_v56 = vadd.f32 %v16598_v8, %v7244_v21  ;;  %v12284_v57 = vpop.f32.mrf.mxu1  ;;  %v12691_v50 = vld [vmem:[#allocation2 + $0x8c] ss:$0 sps:$4 sm:$0x11]   ;;  %v7820_v53 = vor.u32 %v7819_v36, %v7816_v55 }
 0x5ae   : > { %7499 = vst.msk [vmem:[#allocation2 + $0x94] sm:$0xf] %vm516_vm0, %v11942_v16  ;;  %v11945_v14 = vpack.c.bf16 %v5609_v46, %v5609_v46  ;;  %v11972_v28 = vpack.c.bf16 %v7337_v63, %v7337_v63  ;;  %v5607_v39 = vmax.f32 %v5531_v59, 0.0  ;;  %v7256_v17 = vadd.f32 %v12284_v57, %v16598_v8  ;;  %8063 = vrot.lane.b32.xlu0 %v8003_v23, %s12879_s29  ;;  %v12690_v59 = vld [vmem:[#allocation2 + $0x7c] ss:$0 sps:$4 sm:$0x11]  }
 0x5af   : > { %v7335_v33 = vmax.f32 %v7245_v56, 0.0  ;;  %8061 = vrot.lane.b32.xlu1 %v8001_v45, %s12879_s29  ;;  %v7247_v7 = vpop.f32.mrf.mxu1  ;;  %v12688_v45 = vld [vmem:[#allocation2 + $0x6c] ss:$0 sps:$4 sm:$0x11]   ;;  %v16846_v56 = vld [vmem:[%s18665_s5] ss:$0 sm:$0xff] }
 0x5b0   : > { %7502 = vst.msk [vmem:[#allocation2 + $0xa8] sm:$0xf] %vm516_vm0, %v11945_v14  ;;  %v11943_v37 = vpack.c.bf16 %v5607_v39, %v5607_v39  ;;  %v7338_v24 = vmax.f32 %v7256_v17, 0.0  ;;  %v7248_v61 = vadd.f32 %v16598_v8, %v7247_v7  ;;  %8936 = vst.msk [vmem:[#allocation2 + $0x84] sm:$0xf] %vm516_vm0, %v11972_v28  ;;  %v9441_v63 = vrot.slane %v12688_v45, 5 }
 0x5b1   : > { %v11970_v35 = vpack.c.bf16 %v7335_v33, %v7335_v33 }
 0x5b2   : > { %7500 = vst.msk [vmem:[#allocation2 + $0x98] sm:$0xf] %vm516_vm0, %v11943_v37  ;;  %v11973_v48 = vpack.c.bf16 %v7338_v24, %v7338_v24  ;;  %v7336_v30 = vmax.f32 %v7248_v61, 0.0  ;;  %9500 = vrot.lane.b32.xlu0 %v9440_v2, %s12879_s29  ;;  %v9442_v24 = vsel %vm1155_vm2, %v9440_v2, %v9441_v63  ;;  %v8005_v61 = vrot.slane %v12690_v59, 5 }
 0x5b3   : > { %8934 = vst.msk [vmem:[#allocation2 + $0x74] sm:$0xf] %vm516_vm0, %v11970_v35  ;;  %v8007_v35 = vrot.slane %v16821_v15, 5  ;;  %v16876_v59 = vld [vmem:[#allocation2 + $0xa4] sm:$0xf] }
 0x5b4   : > { %v11971_v22 = vpack.c.bf16 %v7336_v30, %v7336_v30  ;;  %8937 = vst.msk [vmem:[#allocation2 + $0x88] sm:$0xf] %vm516_vm0, %v11973_v48  ;;  %v8008_v48 = vrot.slane %v12691_v50, 5  ;;  %v12692_v30 = vld [vmem:[#allocation2 + $0x7c] ss:$0 sps:$4 sm:$0x11]  }
 0x5b5   : > { %v16825_v9 = vld [vmem:[#allocation2 + $0x94] sm:$0xf]  ;;  %v9444_v50 = vrot.slane %v12692_v30, 5  ;;  %19108 = vst [vmem:[#allocation4_spill] sm:$0xff] %v16876_v59 }
 0x5b6   : > { %8935 = vst.msk [vmem:[#allocation2 + $0x78] sm:$0xf] %vm516_vm0, %v11971_v22  ;;  %8065 = vrot.lane.b32.xlu0 %v8004_v43, %s12879_s29  ;;  %19107 = vst [vmem:[#allocation5_spill] sm:$0xff] %v16825_v9 }
 0x5b7   : > { %v8979_v23 = vld [vmem:[#allocation2 + $0x84] sm:$0xf] }
 0x5b9   : > { %v16823_v10 = vld [vmem:[#allocation2 + $0x98] sm:$0xf] }
 0x5ba   : > { %19106 = vst [vmem:[#allocation9_spill] sm:$0xff] %v16823_v10  ;;  %v16831_v20 = vcombine.low %v16825_v9, %v16823_v10  ;;  %v8976_v34 = vld [vmem:[#allocation2 + $0x74] sm:$0xf] }
 0x5bb   : > { %v8980_v16 = vld [vmem:[#allocation2 + $0x88] sm:$0xf] }
 0x5bc   : > { %v7822_v54 = vshrl.u32 %v16831_v20, 16  ;;  %v7825_v38 = vshll.u32 %v16831_v20, 16  ;;  %v16851_v28 = vcombine.low %v8979_v23, %v8980_v16 }
 0x5bd   : > { %v8977_v25 = vld [vmem:[#allocation2 + $0x78] sm:$0xf] }
 0x5be   : > { %v16833_v49 = vcombine.low %v8976_v34, %v8977_v25  ;;  %v7824_v40 = vrot.slane %v7822_v54, 4  ;;  %v7827_v21 = vrot.slane %v7825_v38, 5  ;;  %v9253_v36 = vshrl.u32 %v16851_v28, 16 }
 0x5bf   : > { %v9256_v2 = vshll.u32 %v16851_v28, 16 }
 0x5c0   : > { %v9443_v32 = vrot.slane %v16833_v49, 5  ;;  %v9245_v31 = vshrl.u32 %v16833_v49, 16  ;;  %v9248_v3 = vshll.u32 %v16833_v49, 16  ;;  %v7828_v33 = vor.u32 %v7827_v21, %v7824_v40 }
 0x5c1   : > { %v9255_v63 = vrot.slane %v9253_v36, 4 }
 0x5c2   : > { %9504 = vrot.lane.b32.xlu0 %v9443_v32, %s12879_s29  ;;  %v9247_v13 = vrot.slane %v9245_v31, 4  ;;  %v9250_v62 = vrot.slane %v9248_v3, 5 }
 0x5c4   : > { %v9251_v6 = vor.u32 %v9250_v62, %v9247_v13  ;;  %v8006_v13 = vsel %vm1155_vm2, %v8004_v43, %v8005_v61  ;;  %v8009_v62 = vsel %vm1155_vm2, %v8007_v35, %v8008_v48  ;;  %v9446_v43 = vrot.slane %v16851_v28, 5 }
 0x5c5   : > { %v12249_v46 = vpop.f32.mrf.mxu0 }
 0x5c6   : > { %v5552_v57 = vadd.f32 %v16846_v56, %v12249_v46  ;;  %9346 = vrot.lane.b32.xlu1 %v9251_v6, %s12878_s28  ;;  %7909 = vrot.lane.b32.xlu0 %v7820_v53, %s12878_s28  ;;  %v16869_v6 = vpop.permute.xlu0 %8043 }
 0x5c7   : > { %v5543_v14 = vpop.f32.mrf.mxu0 }
 0x5c8   : > { %v5612_v39 = vmax.f32 %v5552_v57, 0.0  ;;  %v5544_v17 = vadd.f32 %v16846_v56, %v5543_v14 }
 0x5c9   : > { %v12250_v7 = vpop.f32.mrf.mxu0  ;;  %v12287_v37 = vpop.f32.mrf.mxu1 }
 0x5ca   : > { %v11948_v22 = vpack.c.bf16 %v5612_v39, %v5612_v39  ;;  %v5610_v44 = vmax.f32 %v5544_v17, 0.0  ;;  %v5555_v42 = vadd.f32 %v16846_v56, %v12250_v7  ;;  %v7269_v34 = vadd.f32 %v12287_v37, %v16598_v8  ;;  %9502 = vrot.lane.b32.xlu1 %v9442_v24, %s12879_s29  ;;  %7911 = vrot.lane.b32.xlu0 %v7828_v33, %s12878_s28  ;;  %v16890_v24 = vld [vmem:[#allocation2 + $0xa8] sm:$0xf]  ;;  %v16892_v61 = vpop.permute.xlu0 %7897 }
 0x5cb   : > { %v5546_v25 = vpop.f32.mrf.mxu0  ;;  %v7260_v55 = vpop.f32.mrf.mxu1  ;;  %v9258_v39 = vrot.slane %v9256_v2, 5  ;;  %v9445_v33 = vsel %vm1155_vm2, %v9443_v32, %v9444_v50  ;;  %19109 = vst [vmem:[#allocation34_spill] sm:$0xff] %v16890_v24  ;;  %v8010_v32 = vrot.slane %v16831_v20, 5  ;;  %v16903_v30 = vcombine.low %v16876_v59, %v16890_v24  ;;  %v12707_v24 = vld [vmem:[#allocation2 + $0xbc] ss:$0 sps:$4 sm:$0x11]  }
 0x5cc   : > { %7505 = vst.msk [vmem:[#allocation2 + $0xc4] sm:$0xf] %vm516_vm0, %v11948_v22  ;;  %v11946_v15 = vpack.c.bf16 %v5610_v44, %v5610_v44  ;;  %v5613_v54 = vmax.f32 %v5555_v42, 0.0  ;;  %v7341_v31 = vmax.f32 %v7269_v34, 0.0  ;;  %v5547_v3 = vadd.f32 %v16846_v56, %v5546_v25  ;;  %v16907_v44 = vpop.permute.xlu1 %8045 }
 0x5cd   : > { %v7261_v38 = vadd.f32 %v16598_v8, %v7260_v55  ;;  %v12288_v45 = vpop.f32.mrf.mxu1  ;;  %v9259_v49 = vor.u32 %v9258_v39, %v9255_v63  ;;  %v7830_v25 = vshrl.u32 %v16903_v30, 16  ;;  %v7833_v55 = vshll.u32 %v16903_v30, 16 }
 0x5ce   : > { %7503 = vst.msk [vmem:[#allocation2 + $0xb4] sm:$0xf] %vm516_vm0, %v11946_v15  ;;  %v11949_v53 = vpack.c.bf16 %v5613_v54, %v5613_v54  ;;  %v11976_v40 = vpack.c.bf16 %v7341_v31, %v7341_v31  ;;  %v5611_v21 = vmax.f32 %v5547_v3, 0.0  ;;  %v7272_v16 = vadd.f32 %v12288_v45, %v16598_v8  ;;  %8067 = vrot.lane.b32.xlu1 %v8006_v13, %s12879_s29  ;;  %v16909_v42 = vpop.permute.xlu0 %7895 }
 0x5cf   : > { %8071 = vrot.lane.b32.xlu0 %v8009_v62, %s12879_s29  ;;  %v7339_v46 = vmax.f32 %v7261_v38, 0.0  ;;  %v7263_v4 = vpop.f32.mrf.mxu1  ;;  %v7832_v31 = vrot.slane %v7830_v25, 4  ;;  %v7835_v3 = vrot.slane %v7833_v55, 5 }
 0x5d0   : > { %7506 = vst.msk [vmem:[#allocation2 + $0xc8] sm:$0xf] %vm516_vm0, %v11949_v53  ;;  %v11947_v57 = vpack.c.bf16 %v5611_v21, %v5611_v21  ;;  %v7342_v23 = vmax.f32 %v7272_v16, 0.0  ;;  %v7264_v14 = vadd.f32 %v16598_v8, %v7263_v4  ;;  %8940 = vst.msk [vmem:[#allocation2 + $0xa4] sm:$0xf] %vm516_vm0, %v11976_v40  ;;  %v16923_v45 = vpop.permute.xlu1 %8041 }
 0x5d1   : > { %v11974_v17 = vpack.c.bf16 %v7339_v46, %v7339_v46  ;;  %v12697_v40 = vld [vmem:[#allocation2 + $0x8c] ss:$0 sps:$4 sm:$0x11]  }
 0x5d2   : > { %7504 = vst.msk [vmem:[#allocation2 + $0xb8] sm:$0xf] %vm516_vm0, %v11947_v57  ;;  %v11977_v7 = vpack.c.bf16 %v7342_v23, %v7342_v23  ;;  %v7340_v37 = vmax.f32 %v7264_v14, 0.0  ;;  %9506 = vrot.lane.b32.xlu1 %v9445_v33, %s12879_s29  ;;  %v12699_v46 = vld [vmem:[#allocation2 + $0xac] ss:$0 sps:$4 sm:$0x11]   ;;  %v7836_v57 = vor.u32 %v7835_v3, %v7832_v31 }
 0x5d3   : > { %9508 = vrot.lane.b32.xlu0 %v9446_v43, %s12879_s29  ;;  %8938 = vst.msk [vmem:[#allocation2 + $0x94] sm:$0xf] %vm516_vm0, %v11974_v17 }
 0x5d4   : > { %v11975_v48 = vpack.c.bf16 %v7340_v37, %v7340_v37  ;;  %8941 = vst.msk [vmem:[#allocation2 + $0xa8] sm:$0xf] %vm516_vm0, %v11977_v7  ;;  %v16934_v4 = vpop.permute.xlu1 %8051  ;;  %v9447_v7 = vrot.slane %v12697_v40, 5  ;;  %v12698_v37 = vld [vmem:[#allocation2 + $0x9c] ss:$0 sps:$4 sm:$0x11]  }
 0x5d5   : > { %v16912_v34 = vld [vmem:[#allocation2 + $0xb4] sm:$0xf]  ;;  %v8014_v40 = vrot.slane %v12699_v46, 5 }
 0x5d6   : > { %8939 = vst.msk [vmem:[#allocation2 + $0x98] sm:$0xf] %vm516_vm0, %v11975_v48  ;;  %9348 = vrot.lane.b32.xlu1 %v9259_v49, %s12878_s28  ;;  %19111 = vst [vmem:[#allocation37_spill] sm:$0xff] %v16912_v34 }
 0x5d7   : > { %8073 = vrot.lane.b32.xlu0 %v8010_v32, %s12879_s29  ;;  %v8985_v49 = vld [vmem:[#allocation2 + $0xa4] sm:$0xf] }
 0x5d9   : > { %v16905_v22 = vld [vmem:[#allocation2 + $0xb8] sm:$0xf] }
 0x5da   : > { %19110 = vst [vmem:[#allocation13_spill] sm:$0xff] %v16905_v22  ;;  %8069 = vrot.lane.b32.xlu1 %v8007_v35, %s12879_s29  ;;  %v16918_v36 = vcombine.low %v16912_v34, %v16905_v22  ;;  %v8982_v2 = vld [vmem:[#allocation2 + $0x94] sm:$0xf]  ;;  %v16925_v35 = vpop.permute.xlu0 %8047 }
 0x5db   : > { %v8986_v17 = vld [vmem:[#allocation2 + $0xa8] sm:$0xf] }
 0x5dc   : > { %v7838_v38 = vshrl.u32 %v16918_v36, 16  ;;  %v7841_v53 = vshll.u32 %v16918_v36, 16  ;;  %v16941_v55 = vcombine.low %v8985_v49, %v8986_v17 }
 0x5dd   : > { %v8983_v15 = vld [vmem:[#allocation2 + $0x98] sm:$0xf] }
 0x5de   : > { %v16920_v54 = vcombine.low %v8982_v2, %v8983_v15  ;;  %v16936_v63 = vpop.permute.xlu0 %7899  ;;  %v7840_v14 = vrot.slane %v7838_v38, 4  ;;  %v7843_v39 = vrot.slane %v7841_v53, 5  ;;  %v8013_v53 = vrot.slane %v16903_v30, 5 }
 0x5df   : > { %v9272_v46 = vshll.u32 %v16941_v55, 16  ;;  %v19118_v51 = vrot.slane %v16941_v55, 5 }
 0x5e0   : > { %v9449_v13 = vrot.slane %v16920_v54, 5  ;;  %v9261_v62 = vshrl.u32 %v16920_v54, 16  ;;  %v9264_v50 = vshll.u32 %v16920_v54, 16  ;;  %v7844_v31 = vor.u32 %v7843_v39, %v7840_v14 }
 0x5e1   : > { %v9269_v39 = vshrl.u32 %v16941_v55, 16 }
 0x5e2   : > { %9512 = vrot.lane.b32.xlu0 %v9449_v13, %s12879_s29  ;;  %v9263_v21 = vrot.slane %v9261_v62, 4  ;;  %v9266_v16 = vrot.slane %v9264_v50, 5  ;;  %v9448_v62 = vsel %vm1155_vm2, %v9446_v43, %v9447_v7  ;;  %v8011_v50 = vrot.slane %v12698_v37, 5 }
 0x5e4   : > { %v9267_v23 = vor.u32 %v9266_v16, %v9263_v21  ;;  %v12700_v21 = vld [vmem:[#allocation2 + $0x9c] ss:$0 sps:$4 sm:$0x11]   ;;  %v16948_v16 = vpop.permute.xlu1 %8053 }
 0x5e6   : > { %v12253_v33 = vpop.f32.mrf.mxu0  ;;  %7913 = vrot.lane.b32.xlu0 %v7836_v57, %s12878_s28  ;;  %9350 = vrot.lane.b32.xlu1 %v9267_v23, %s12878_s28  ;;  %v16950_v57 = vpop.permute.xlu0 %8049 }
 0x5e7   : > { %v5568_v48 = vadd.f32 %v16846_v56, %v12253_v33 }
 0x5e8   : > { %v5559_v25 = vpop.f32.mrf.mxu0 }
 0x5e9   : > { %v5616_v2 = vmax.f32 %v5568_v48, 0.0  ;;  %v5560_v15 = vadd.f32 %v16846_v56, %v5559_v25  ;;  %v12291_v38 = vpop.f32.mrf.mxu1 }
 0x5ea   : > { %v12254_v3 = vpop.f32.mrf.mxu0  ;;  %v7285_v14 = vadd.f32 %v12291_v38, %v16598_v8  ;;  %7915 = vrot.lane.b32.xlu0 %v7844_v31, %s12878_s28  ;;  %9510 = vrot.lane.b32.xlu1 %v9448_v62, %s12879_s29  ;;  %v16963_v8 = vld [vmem:[%s18669_s9] ss:$0 sm:$0xff]  ;;  %v8015_v31 = vsel %vm1155_vm2, %v8013_v53, %v8014_v40  ;;  %v16979_v40 = vpop.permute.xlu1 %9486 }
 0x5eb   : > { %v11952_v23 = vpack.c.bf16 %v5616_v2, %v5616_v2  ;;  %v5614_v17 = vmax.f32 %v5560_v15, 0.0  ;;  %v5571_v33 = vadd.f32 %v16846_v56, %v12254_v3  ;;  %v7276_v43 = vpop.f32.mrf.mxu1  ;;  %v8012_v15 = vsel %vm1155_vm2, %v8010_v32, %v8011_v50 }
 0x5ec   : > { %v5562_v28 = vpop.f32.mrf.mxu0  ;;  %v7345_v48 = vmax.f32 %v7285_v14, 0.0  ;;  %v7277_v25 = vadd.f32 %v16963_v8, %v7276_v43  ;;  %v9450_v3 = vrot.slane %v12700_v21, 5  ;;  %v18777_v32 = vrot.slane %v16941_v55, 5  ;;  %v16977_v14 = vld [vmem:[#allocation2 + $0xc4] sm:$0xf]  ;;  %v16981_v21 = vpop.permute.xlu0 %7901 }
 0x5ed   : > { %7509 = vst.msk [vmem:[#allocation2 + $0xe4] sm:$0xf] %vm516_vm0, %v11952_v23  ;;  %v11950_v7 = vpack.c.bf16 %v5614_v17, %v5614_v17  ;;  %v5617_v37 = vmax.f32 %v5571_v33, 0.0  ;;  %v5563_v49 = vadd.f32 %v16846_v56, %v5562_v28  ;;  %v12292_v2 = vpop.f32.mrf.mxu1  ;;  %v9271_v50 = vrot.slane %v9269_v39, 4  ;;  %19112 = vst [vmem:[#allocation30_spill] sm:$0xff] %v16977_v14 }
 0x5ee   : > { %v11980_v62 = vpack.c.bf16 %v7345_v48, %v7345_v48  ;;  %v7288_v17 = vadd.f32 %v16963_v8, %v12292_v2  ;;  %8075 = vrot.lane.b32.xlu1 %v8012_v15, %s12879_s29  ;;  %8079 = vrot.lane.b32.xlu0 %v8015_v31, %s12879_s29  ;;  %v7343_v33 = vmax.f32 %v7277_v25, 0.0  ;;  %v9451_v39 = vsel %vm1155_vm2, %v9449_v13, %v9450_v3  ;;  %v17001_v31 = vpop.permute.xlu1 %9482 }
 0x5ef   : > { %7507 = vst.msk [vmem:[#allocation2 + $0xd4] sm:$0xf] %vm516_vm0, %v11950_v7  ;;  %v11953_v38 = vpack.c.bf16 %v5617_v37, %v5617_v37  ;;  %v5615_v23 = vmax.f32 %v5563_v49, 0.0  ;;  %v7279_v20 = vpop.f32.mrf.mxu1  ;;  %v9274_v37 = vrot.slane %v9272_v46, 5  ;;  %v16995_v46 = vld [vmem:[#allocation2 + $0xc8] sm:$0xf] }
 0x5f0   : > { %v7346_v43 = vmax.f32 %v7288_v17, 0.0  ;;  %v7280_v7 = vadd.f32 %v16963_v8, %v7279_v20  ;;  %8944 = vst.msk [vmem:[#allocation2 + $0xc4] sm:$0xf] %vm516_vm0, %v11980_v62  ;;  %v11978_v48 = vpack.c.bf16 %v7343_v33, %v7343_v33  ;;  %19113 = vst [vmem:[#allocation38_spill] sm:$0xff] %v16995_v46  ;;  %v18776_v13 = vrot.slane %v16918_v36, 5 }
 0x5f1   : > { %7510 = vst.msk [vmem:[#allocation2 + $0xe8] sm:$0xf] %vm516_vm0, %v11953_v38  ;;  %v11951_v28 = vpack.c.bf16 %v5615_v23, %v5615_v23  ;;  %v9275_v54 = vor.u32 %v9274_v37, %v9271_v50  ;;  %v17010_v3 = vcombine.low %v16977_v14, %v16995_v46 }
 0x5f2   : > { %v11981_v49 = vpack.c.bf16 %v7346_v43, %v7346_v43  ;;  %v7344_v25 = vmax.f32 %v7280_v7, 0.0  ;;  %9514 = vrot.lane.b32.xlu1 %v9451_v39, %s12879_s29  ;;  %9516 = vrot.lane.b32.xlu0 %v18777_v32, %s12879_s29  ;;  %8942 = vst.msk [vmem:[#allocation2 + $0xb4] sm:$0xf] %vm516_vm0, %v11978_v48  ;;  %v17023_v20 = vpop.permute.xlu1 %9336 }
 0x5f3   : > { %7508 = vst.msk [vmem:[#allocation2 + $0xd8] sm:$0xf] %vm516_vm0, %v11951_v28  ;;  %v7846_v23 = vshrl.u32 %v17010_v3, 16  ;;  %v7849_v17 = vshll.u32 %v17010_v3, 16 }
 0x5f4   : > { %v11979_v2 = vpack.c.bf16 %v7344_v25, %v7344_v25  ;;  %v16997_v15 = vpop.permute.xlu0 %7903  ;;  %8945 = vst.msk [vmem:[#allocation2 + $0xc8] sm:$0xf] %vm516_vm0, %v11981_v49 }
 0x5f5   : > { %v7848_v30 = vrot.slane %v7846_v23, 4 }
 0x5f6   : > { %8943 = vst.msk [vmem:[#allocation2 + $0xb8] sm:$0xf] %vm516_vm0, %v11979_v2  ;;  %9352 = vrot.lane.b32.xlu1 %v9275_v54, %s12878_s28  ;;  %8081 = vrot.lane.b32.xlu0 %v18776_v13, %s12879_s29  ;;  %v17021_v33 = vld [vmem:[#allocation2 + $0xd4] sm:$0xf]  ;;  %v17040_v32 = vpop.permute.xlu1 %9334 }
 0x5f7   : > { %19115 = vst [vmem:[#allocation10_spill] sm:$0xff] %v17021_v33  ;;  %v12705_v13 = vld [vmem:[#allocation2 + $0xac] ss:$0 sps:$4 sm:$0x11]  }
 0x5f8   : > { %v17012_v38 = vpop.permute.xlu0 %9484  ;;  %v9453_v34 = vrot.slane %v12705_v13, 5  ;;  %v8991_v13 = vld [vmem:[#allocation2 + $0xc4] sm:$0xf] }
 0x5f9   : > { %v8988_v43 = vld [vmem:[#allocation2 + $0xb4] sm:$0xf] }
 0x5fa   : > { %v17014_v62 = vld [vmem:[#allocation2 + $0xd8] sm:$0xf]  ;;  %8077 = vrot.lane.b32.xlu1 %v8013_v53, %s12879_s29  ;;  %v7851_v53 = vrot.slane %v7849_v17, 5  ;;  %v17047_v59 = vpop.permute.xlu1 %9494 }
 0x5fb   : > { %19114 = vst [vmem:[#allocation42_spill] sm:$0xff] %v17014_v62  ;;  %v17029_v28 = vcombine.low %v17021_v33, %v17014_v62  ;;  %19117 = vst [vmem:[#allocation31_spill] sm:$0xff] %v17047_v59  ;;  %v8992_v9 = vld [vmem:[#allocation2 + $0xc8] sm:$0xf] }
 0x5fc   : > { %v17025_v50 = vpop.permute.xlu0 %9480  ;;  %v7852_v62 = vor.u32 %v7851_v53, %v7848_v30  ;;  %v12709_v30 = vld [vmem:[#allocation2 + $0xbc] ss:$0 sps:$4 sm:$0x11]   ;;  %v17057_v18 = vcombine.low %v8991_v13, %v8992_v9  ;;  %v19120_v13 = vrot.slane %v16918_v36, 5  ;;  %v17082_v36 = vld [vmem:[#allocation2 + $0xe4] sm:$0xf] }
 0x5fd   : > { %v8989_v7 = vld [vmem:[#allocation2 + $0xb8] sm:$0xf]  ;;  %v7854_v25 = vshrl.u32 %v17029_v28, 16  ;;  %v7857_v2 = vshll.u32 %v17029_v28, 16  ;;  %v9456_v9 = vrot.slane %v12709_v30, 5  ;;  %19121 = vst [vmem:[#allocation40_spill] sm:$0xff] %v17082_v36 }
 0x5fe   : > { %v17031_v37 = vcombine.low %v8988_v43, %v8989_v7  ;;  %v12706_v43 = vld [vmem:[#allocation2 + $0xcc] ss:$0 sps:$4 sm:$0x11]  }
 0x5ff   : > { %v7856_v33 = vrot.slane %v7854_v25, 4  ;;  %v7859_v46 = vrot.slane %v7857_v2, 5 }
 0x600   : > { %v17033_v48 = vpop.permute.xlu0 %8055  ;;  %v18788_v39 = vrot.slane %v17031_v37, 5  ;;  %v9277_v49 = vshrl.u32 %v17031_v37, 16  ;;  %v9280_v54 = vshll.u32 %v17031_v37, 16 }
 0x601   : > { %19116 = vst [vmem:[#allocation39_spill] sm:$0xff] %v17033_v48  ;;  %v7860_v2 = vor.u32 %v7859_v46, %v7856_v33 }
 0x602   : > { %9520 = vrot.lane.b32.xlu0 %v18788_v39, %s12879_s29  ;;  %v9279_v23 = vrot.slane %v9277_v49, 4  ;;  %v9282_v17 = vrot.slane %v9280_v54, 5  ;;  %v8019_v54 = vrot.slane %v17010_v3, 5  ;;  %v8020_v39 = vrot.slane %v12706_v43, 5 }
 0x604   : > { %v17045_v7 = vpop.permute.xlu0 %9488  ;;  %v9283_v14 = vor.u32 %v9282_v17, %v9279_v23 }
 0x605   : > { %v12257_v22 = vpop.f32.mrf.mxu0 }
 0x606   : > { %v5584_v10 = vadd.f32 %v16846_v56, %v12257_v22  ;;  %7917 = vrot.lane.b32.xlu0 %v7852_v62, %s12878_s28  ;;  %9354 = vrot.lane.b32.xlu1 %v9283_v14, %s12878_s28  ;;  %v9454_v22 = vsel %vm1155_vm2, %v19118_v51, %v9453_v34  ;;  %v8017_v62 = vrot.slane %v12707_v24, 5  ;;  %v8021_v51 = vsel %vm1155_vm2, %v8019_v54, %v8020_v39  ;;  %v17068_v24 = vpop.permute.xlu1 %8059 }
 0x607   : > { %v5575_v49 = vpop.f32.mrf.mxu0  ;;  %19119 = vst [vmem:[#allocation14_spill] sm:$0xff] %v17068_v24  ;;  %v9288_v39 = vshll.u32 %v17057_v18, 16 }
 0x608   : > { %v5620_v53 = vmax.f32 %v5584_v10, 0.0  ;;  %v5576_v25 = vadd.f32 %v16846_v56, %v5575_v49  ;;  %v17059_v60 = vpop.permute.xlu0 %9492 }
 0x609   : > { %v12258_v23 = vpop.f32.mrf.mxu0  ;;  %v12295_v17 = vpop.f32.mrf.mxu1 }
 0x60a   : > { %v11956_v14 = vpack.c.bf16 %v5620_v53, %v5620_v53  ;;  %v5618_v5 = vmax.f32 %v5576_v25, 0.0  ;;  %v5587_v43 = vadd.f32 %v16846_v56, %v12258_v23  ;;  %v7301_v10 = vadd.f32 %v16963_v8, %v12295_v17  ;;  %7919 = vrot.lane.b32.xlu0 %v7860_v2, %s12878_s28  ;;  %9518 = vrot.lane.b32.xlu1 %v9454_v22, %s12879_s29 }
 0x60b   : > { %v5578_v46 = vpop.f32.mrf.mxu0  ;;  %v7292_v33 = vpop.f32.mrf.mxu1  ;;  %v8018_v23 = vsel %vm1155_vm2, %v19120_v13, %v8017_v62  ;;  %v9285_v17 = vshrl.u32 %v17057_v18, 16  ;;  %v19123_v13 = vrot.slane %v17031_v37, 5 }
 0x60c   : > { %7513 = vst.msk [vmem:[#allocation2 + $0x104] sm:$0xf] %vm516_vm0, %v11956_v14  ;;  %v11954_v34 = vpack.c.bf16 %v5618_v5, %v5618_v5  ;;  %v5621_v55 = vmax.f32 %v5587_v43, 0.0  ;;  %v7349_v49 = vmax.f32 %v7301_v10, 0.0  ;;  %v5579_v53 = vadd.f32 %v16846_v56, %v5578_v46  ;;  %v17085_v10 = vpop.permute.xlu0 %8057 }
 0x60d   : > { %v7293_v25 = vadd.f32 %v16963_v8, %v7292_v33  ;;  %v12296_v2 = vpop.f32.mrf.mxu1  ;;  %19122 = vst [vmem:[#allocation41_spill] sm:$0xff] %v17085_v10  ;;  %v12715_v10 = vld [vmem:[#allocation2 + $0xdc] ss:$0 sps:$4 sm:$0x11]  }
 0x60e   : > { %7511 = vst.msk [vmem:[#allocation2 + $0xf4] sm:$0xf] %vm516_vm0, %v11954_v34  ;;  %v11957_v30 = vpack.c.bf16 %v5621_v55, %v5621_v55  ;;  %v11984_v22 = vpack.c.bf16 %v7349_v49, %v7349_v49  ;;  %v5619_v5 = vmax.f32 %v5579_v53, 0.0  ;;  %v7304_v14 = vadd.f32 %v16963_v8, %v12296_v2  ;;  %8087 = vrot.lane.b32.xlu0 %v8021_v51, %s12879_s29  ;;  %v17090_v53 = vpop.permute.xlu1 %9490 }
 0x60f   : > { %v7347_v56 = vmax.f32 %v7293_v25, 0.0  ;;  %8083 = vrot.lane.b32.xlu1 %v8018_v23, %s12879_s29  ;;  %v7295_v43 = vpop.f32.mrf.mxu1  ;;  %v18794_v34 = vrot.slane %v17057_v18, 5  ;;  %v9287_v51 = vrot.slane %v9285_v17, 4  ;;  %v9290_v49 = vrot.slane %v9288_v39, 5  ;;  %v17101_v17 = vld [vmem:[#allocation2 + $0xe8] sm:$0xf] }
 0x610   : > { %7514 = vst.msk [vmem:[#allocation2 + $0x108] sm:$0xf] %vm516_vm0, %v11957_v30  ;;  %v11955_v62 = vpack.c.bf16 %v5619_v5, %v5619_v5  ;;  %v7350_v46 = vmax.f32 %v7304_v14, 0.0  ;;  %v7296_v33 = vadd.f32 %v16963_v8, %v7295_v43  ;;  %8948 = vst.msk [vmem:[#allocation2 + $0xe4] sm:$0xf] %vm516_vm0, %v11984_v22  ;;  %v9457_v23 = vsel %vm1155_vm2, %v19123_v13, %v9456_v9 }
 0x611   : > { %v11982_v55 = vpack.c.bf16 %v7347_v56, %v7347_v56  ;;  %19124 = vst [vmem:[#allocation32_spill] sm:$0xff] %v17101_v17  ;;  %v18793_v22 = vrot.slane %v17029_v28, 5  ;;  %v9291_v5 = vor.u32 %v9290_v49, %v9287_v51  ;;  %v17114_v37 = vcombine.low %v17082_v36, %v17101_v17 }
 0x612   : > { %7512 = vst.msk [vmem:[#allocation2 + $0xf8] sm:$0xf] %vm516_vm0, %v11955_v62  ;;  %v11985_v25 = vpack.c.bf16 %v7350_v46, %v7350_v46  ;;  %v7348_v2 = vmax.f32 %v7296_v33, 0.0  ;;  %9524 = vrot.lane.b32.xlu0 %v18794_v34, %s12879_s29  ;;  %v17116_v9 = vpop.permute.xlu1 %9340 }
 0x613   : > { %8946 = vst.msk [vmem:[#allocation2 + $0xd4] sm:$0xf] %vm516_vm0, %v11982_v55  ;;  %9522 = vrot.lane.b32.xlu1 %v9457_v23, %s12879_s29  ;;  %v7862_v62 = vshrl.u32 %v17114_v37, 16  ;;  %v7865_v46 = vshll.u32 %v17114_v37, 16  ;;  %v17147_v24 = vld [vmem:[#allocation2 + $0x104] sm:$0xf] }
 0x614   : > { %v11983_v39 = vpack.c.bf16 %v7348_v2, %v7348_v2  ;;  %v17103_v30 = vpop.permute.xlu0 %9496  ;;  %8949 = vst.msk [vmem:[#allocation2 + $0xe8] sm:$0xf] %vm516_vm0, %v11985_v25  ;;  %19130 = vst [vmem:[#allocation48_spill] sm:$0xff] %v17147_v24 }
 0x615   : > { %19125 = vst [vmem:[#allocation15_spill] sm:$0xff] %v17103_v30  ;;  %v17127_v33 = vld [vmem:[#allocation2 + $0xf4] sm:$0xf]  ;;  %v7867_v34 = vrot.slane %v7865_v46, 5 }
 0x616   : > { %8947 = vst.msk [vmem:[#allocation2 + $0xd8] sm:$0xf] %vm516_vm0, %v11983_v39  ;;  %8089 = vrot.lane.b32.xlu0 %v18793_v22, %s12879_s29  ;;  %19128 = vst [vmem:[#allocation46_spill] sm:$0xff] %v17127_v33  ;;  %v17134_v2 = vpop.permute.xlu1 %9338  ;;  %v7864_v22 = vrot.slane %v7862_v62, 4 }
 0x617   : > { %9356 = vrot.lane.b32.xlu1 %v9291_v5, %s12878_s28 }
 0x618   : > { %v17118_v14 = vpop.permute.xlu0 %7905 }
 0x619   : > { %19126 = vst [vmem:[#allocation43_spill] sm:$0xff] %v17118_v14  ;;  %v17120_v56 = vld [vmem:[#allocation2 + $0xf8] sm:$0xf] }
 0x61a   : > { %19127 = vst [vmem:[#allocation16_spill] sm:$0xff] %v17120_v56  ;;  %v17132_v51 = vcombine.low %v17127_v33, %v17120_v56  ;;  %v8994_v23 = vld [vmem:[#allocation2 + $0xd4] sm:$0xf] }
 0x61b   : > { %v12299_v43 = vpop.f32.mrf.mxu1  ;;  %8085 = vrot.lane.b32.xlu1 %v8019_v54, %s12879_s29  ;;  %v8998_v48 = vld [vmem:[#allocation2 + $0xe8] sm:$0xf] }
 0x61c   : > { %v7317_v55 = vadd.f32 %v16963_v8, %v12299_v43  ;;  %v17137_v54 = vpop.permute.xlu0 %7907  ;;  %v7870_v33 = vshrl.u32 %v17132_v51, 16 }
 0x61d   : > { %v7308_v49 = vpop.f32.mrf.mxu1  ;;  %v8995_v25 = vld [vmem:[#allocation2 + $0xd8] sm:$0xf]  ;;  %19129 = vst [vmem:[#allocation44_spill] sm:$0xff] %v17137_v54  ;;  %v7873_v54 = vshll.u32 %v17132_v51, 16 }
 0x61e   : > { %v7353_v13 = vmax.f32 %v7317_v55, 0.0  ;;  %v7309_v3 = vadd.f32 %v16963_v8, %v7308_v49  ;;  %v17139_v5 = vcombine.low %v8994_v23, %v8995_v25  ;;  %v17149_v25 = vpop.permute.xlu1 %9498  ;;  %v7872_v59 = vrot.slane %v7870_v33, 4 }
 0x61f   : > { %v12300_v39 = vpop.f32.mrf.mxu1  ;;  %19131 = vst [vmem:[#allocation45_spill] sm:$0xff] %v17149_v25  ;;  %v12714_v25 = vld [vmem:[#allocation2 + $0xec] ss:$0 sps:$4 sm:$0x11]  }
 0x620   : > { %v11988_v43 = vpack.c.bf16 %v7353_v13, %v7353_v13  ;;  %v7351_v17 = vmax.f32 %v7309_v3, 0.0  ;;  %v7320_v56 = vadd.f32 %v16963_v8, %v12300_v39  ;;  %v9461_v41 = vrot.slane %v17139_v5, 5  ;;  %v12713_v3 = vld [vmem:[#allocation2 + $0xcc] ss:$0 sps:$4 sm:$0x11]   ;;  %v17156_v19 = vpop.permute.xlu0 %8063 }
 0x621   : > { %v7311_v36 = vpop.f32.mrf.mxu1  ;;  %v9293_v55 = vshrl.u32 %v17139_v5, 16  ;;  %v9296_v49 = vshll.u32 %v17139_v5, 16  ;;  %v9459_v30 = vrot.slane %v12713_v3, 5  ;;  %v8028_v5 = vrot.slane %v17132_v51, 5  ;;  %v17228_v51 = vld [vmem:[#allocation2 + $0x8] sm:$0xf] }
 0x622   : > { %v11986_v62 = vpack.c.bf16 %v7351_v17, %v7351_v17  ;;  %v7354_v46 = vmax.f32 %v7320_v56, 0.0  ;;  %v7312_v13 = vadd.f32 %v16963_v8, %v7311_v36  ;;  %8952 = vst.msk [vmem:[#allocation2 + $0x104] sm:$0xf] %vm516_vm0, %v11988_v43  ;;  %9528 = vrot.lane.b32.xlu0 %v9461_v41, %s12879_s29  ;;  %v7868_v17 = vor.u32 %v7867_v34, %v7864_v22  ;;  %v17159_v36 = vld [vmem:[#allocation2 + $0x108] sm:$0xf] }
 0x623   : > { %v9295_v23 = vrot.slane %v9293_v55, 4  ;;  %v9298_v39 = vrot.slane %v9296_v49, 5  ;;  %v7875_v8 = vrot.slane %v7873_v54, 5  ;;  %19132 = vst [vmem:[#allocation33_spill] sm:$0xff] %v17159_v36  ;;  %v17164_v55 = vpop.permute.xlu1 %9342  ;;  %v8997_v34 = vld [vmem:[#allocation2 + $0xe4] sm:$0xf] }
 0x624   : > { %v11989_v14 = vpack.c.bf16 %v7354_v46, %v7354_v46  ;;  %v7352_v0 = vmax.f32 %v7312_v13, 0.0  ;;  %8950 = vst.msk [vmem:[#allocation2 + $0xf4] sm:$0xf] %vm516_vm0, %v11986_v62  ;;  %v17167_v33 = vcombine.low %v8997_v34, %v8998_v48  ;;  %v17169_v54 = vpop.permute.xlu0 %9500  ;;  %v8026_v62 = vrot.slane %v12714_v25, 5  ;;  %19141 = vst [vmem:[#allocation55_spill] sm:$0xff] %v17228_v51 }
 0x625   : > { %v9299_v56 = vor.u32 %v9298_v39, %v9295_v23  ;;  %v7876_v22 = vor.u32 %v7875_v8, %v7872_v59  ;;  %v8023_v46 = vrot.slane %v12715_v10, 5  ;;  %v12717_v13 = vld [vmem:[#allocation2 + $0xdc] ss:$0 sps:$4 sm:$0x11]   ;;  %v17195_v8 = vld [vmem:[#allocation2 + $0x8] sm:$0xf] }
 0x626   : > { %v11987_v43 = vpack.c.bf16 %v7352_v0, %v7352_v0  ;;  %8953 = vst.msk [vmem:[#allocation2 + $0x108] sm:$0xf] %vm516_vm0, %v11989_v14  ;;  %7921 = vrot.lane.b32.xlu0 %v7868_v17, %s12878_s28  ;;  %v19133_v0 = vrot.slane %v17057_v18, 5  ;;  %v8025_v14 = vrot.slane %v17114_v37, 5  ;;  %v9301_v3 = vshrl.u32 %v17167_v33, 16  ;;  %19136 = vst [vmem:[#allocation47_spill] sm:$0xff] %v17195_v8 }
 0x627   : > { %9358 = vrot.lane.b32.xlu1 %v9299_v56, %s12878_s28  ;;  %v9304_v59 = vshll.u32 %v17167_v33, 16  ;;  %v17179_v48 = vpop.permute.xlu1 %9344  ;;  %v19134_v18 = vrot.slane %v17029_v28, 5  ;;  %v9462_v37 = vrot.slane %v12717_v13, 5  ;;  %v17191_v17 = vcombine.low %v17147_v24, %v17159_v36  ;;  %v17193_v56 = vld [vmem:[#allocation2 + $0x4] sm:$0xf] }
 0x628   : > { %8951 = vst.msk [vmem:[#allocation2 + $0xf8] sm:$0xf] %vm516_vm0, %v11987_v43  ;;  %v9460_v49 = vsel %vm1155_vm2, %v19133_v0, %v9459_v30  ;;  %v8027_v23 = vsel %vm1155_vm2, %v8025_v14, %v8026_v62  ;;  %v17187_v25 = vpop.permute.xlu0 %8065  ;;  %19135 = vst [vmem:[#allocation19_spill] sm:$0xff] %v17193_v56  ;;  %v9464_v28 = vrot.slane %v17167_v33, 5  ;;  %v9303_v43 = vrot.slane %v9301_v3, 4 }
 0x629   : > { %v8024_v30 = vsel %vm1155_vm2, %v19134_v18, %v8023_v46  ;;  %v9306_v34 = vrot.slane %v9304_v59, 5  ;;  %v9463_v0 = vsel %vm1155_vm2, %v9461_v41, %v9462_v37  ;;  %v7878_v33 = vshrl.u32 %v17191_v17, 16  ;;  %v12721_v24 = vld [vmem:[#allocation2 + $0xec] ss:$0 sps:$4 sm:$0x11]  }
 0x62a   : > { %7923 = vrot.lane.b32.xlu0 %v7876_v22, %s12878_s28  ;;  %v7881_v13 = vshll.u32 %v17191_v17, 16 }
 0x62b   : > { %9526 = vrot.lane.b32.xlu1 %v9460_v49, %s12879_s29  ;;  %v9000_v39 = vld [vmem:[#allocation2 + $0xf4] sm:$0xf]  ;;  %v17207_v49 = vcombine.low %v17193_v56, %v17195_v8  ;;  %v17209_v62 = vpop.permute.xlu1 %8061  ;;  %v9307_v3 = vor.u32 %v9306_v34, %v9303_v43 }
 0x62c   : > { %v7883_v34 = vrot.slane %v7881_v13, 5  ;;  %v12722_v13 = vld [vmem:[#allocation2 + $0xfc] ss:$0 sps:$4 sm:$0x11]  }
 0x62d   : > { %v7753_v18 = vshll.u32 %v17207_v49, 16 }
 0x62e   : > { %8095 = vrot.lane.b32.xlu0 %v8027_v23, %s12879_s29  ;;  %v7750_v23 = vshrl.u32 %v17207_v49, 16 }
 0x62f   : > { %8091 = vrot.lane.b32.xlu1 %v8024_v30, %s12879_s29  ;;  %v9001_v10 = vld [vmem:[#allocation2 + $0xf8] sm:$0xf]  ;;  %v7755_v8 = vrot.slane %v7753_v18, 5  ;;  %v9003_v18 = vld [vmem:[#allocation2 + $0x104] sm:$0xf] }
 0x630   : > { %v17198_v22 = vcombine.low %v9000_v39, %v9001_v10  ;;  %v7880_v10 = vrot.slane %v7878_v33, 4  ;;  %v17226_v39 = vld [vmem:[#allocation2 + $0x4] sm:$0xf] }
 0x631   : > { %19140 = vst [vmem:[#allocation52_spill] sm:$0xff] %v17226_v39  ;;  %v17235_v56 = vcombine.low %v17226_v39, %v17228_v51  ;;  %v7567_v51 = vld [vmem:[#allocation2 + $0x114] sm:$0xf]  ;;  %v7568_v39 = vld [vmem:[#allocation2 + $0x118] sm:$0xf] }
 0x632   : > { %9532 = vrot.lane.b32.xlu0 %v9464_v28, %s12879_s29  ;;  %v9309_v41 = vshrl.u32 %v17198_v22, 16  ;;  %v9312_v59 = vshll.u32 %v17198_v22, 16  ;;  %v9467_v43 = vrot.slane %v17198_v22, 5  ;;  %v9465_v22 = vrot.slane %v12721_v24, 5 }
 0x633   : > { %9530 = vrot.lane.b32.xlu1 %v9463_v0, %s12879_s29 }
 0x634   : > { %v17211_v46 = vpop.permute.xlu0 %9504  ;;  %v9311_v0 = vrot.slane %v9309_v41, 4  ;;  %v9314_v36 = vrot.slane %v9312_v59, 5  ;;  %v9004_v41 = vld [vmem:[#allocation2 + $0x108] sm:$0xf]  ;;  %v9189_v59 = vshrl.u32 %v17235_v56, 16  ;;  %v9466_v24 = vsel %vm1155_vm2, %v9464_v28, %v9465_v22 }
 0x635   : > { %19137 = vst [vmem:[#allocation36_spill] sm:$0xff] %v17211_v46 }
 0x636   : > { %8097 = vrot.lane.b32.xlu0 %v8028_v5, %s12879_s29  ;;  %v9315_v46 = vor.u32 %v9314_v36, %v9311_v0 }
 0x637   : > { %9360 = vrot.lane.b32.xlu1 %v9307_v3, %s12878_s28  ;;  %v7752_v3 = vrot.slane %v7750_v23, 4  ;;  %v9192_v23 = vshll.u32 %v17235_v56, 16 }
 0x638   : > { %v17222_v30 = vpop.permute.xlu1 %9346  ;;  %v17224_v37 = vpop.permute.xlu0 %7909 }
 0x639   : > { %19138 = vst [vmem:[#allocation25_spill] sm:$0xff] %v17222_v30  ;;  %19139 = vst [vmem:[#allocation50_spill] sm:$0xff] %v17224_v37  ;;  %v7884_v37 = vor.u32 %v7883_v34, %v7880_v10  ;;  %v8029_v10 = vrot.slane %v12722_v13, 5  ;;  %v12724_v34 = vld [vmem:[#allocation2 + $0xfc] ss:$0 sps:$4 sm:$0x11]  }
 0x63a   : > { %9536 = vrot.lane.b32.xlu0 %v9467_v43, %s12879_s29  ;;  %v9468_v22 = vrot.slane %v12724_v34, 5 }
 0x63b   : > { %8093 = vrot.lane.b32.xlu1 %v8025_v14, %s12879_s29  ;;  %v7756_v14 = vor.u32 %v7755_v8, %v7752_v3  ;;  %v9191_v8 = vrot.slane %v9189_v59, 4  ;;  %v8031_v3 = vrot.slane %v17191_v17, 5  ;;  %v8030_v28 = vsel %vm1155_vm2, %v8028_v5, %v8029_v10  ;;  %v9006_v59 = vld [vmem:[#allocation2 + $0x114] sm:$0xf]  ;;  %v9007_v17 = vld [vmem:[#allocation2 + $0x118] sm:$0xf] }
 0x63c   : > { %v17237_v33 = vpop.permute.xlu1 %9502  ;;  %v17239_v30 = vpop.permute.xlu0 %7911  ;;  %v9469_v5 = vsel %vm1155_vm2, %v9467_v43, %v9468_v22  ;;  %v7983_v43 = vrot.slane %v17207_v49, 5 }
 0x63d   : > { %19142 = vst [vmem:[#allocation49_spill] sm:$0xff] %v17237_v33  ;;  %19143 = vst [vmem:[#allocation26_spill] sm:$0xff] %v17239_v30  ;;  %v17245_v33 = vcombine.low %v9003_v18, %v9004_v41 }
 0x63e   : > { %7925 = vrot.lane.b32.xlu0 %v7884_v37, %s12878_s28  ;;  %v17252_v37 = vcombine.low %v7567_v51, %v7568_v39 }
 0x63f   : > { %9362 = vrot.lane.b32.xlu1 %v9315_v46, %s12878_s28  ;;  %v9194_v46 = vrot.slane %v9192_v23, 5  ;;  %v9317_v41 = vshrl.u32 %v17245_v33, 16  ;;  %v9320_v18 = vshll.u32 %v17245_v33, 16 }
 0x640   : > { %v17247_v36 = vpop.permute.xlu1 %8067  ;;  %v7889_v39 = vshll.u32 %v17252_v37, 16 }
 0x641   : > { %v17254_v0 = vpop.permute.xlu0 %8071  ;;  %v9195_v13 = vor.u32 %v9194_v46, %v9191_v8  ;;  %v9319_v23 = vrot.slane %v9317_v41, 4  ;;  %v17271_v8 = vcombine.low %v9006_v59, %v9007_v17 }
 0x642   : > { %7893 = vrot.lane.b32.xlu0 %v7756_v14, %s12878_s28  ;;  %19144 = vst [vmem:[#allocation53_spill] sm:$0xff] %v17254_v0  ;;  %v7886_v14 = vshrl.u32 %v17252_v37, 16  ;;  %v7891_v34 = vrot.slane %v7889_v39, 5 }
 0x643   : > { %9534 = vrot.lane.b32.xlu1 %v9466_v24, %s12879_s29  ;;  %v9322_v24 = vrot.slane %v9320_v18, 5  ;;  %v9325_v18 = vshrl.u32 %v17271_v8, 16  ;;  %v9328_v22 = vshll.u32 %v17271_v8, 16 }
 0x644   : > { %v17264_v51 = vpop.permute.xlu1 %9506  ;;  %v7888_v10 = vrot.slane %v7886_v14, 4 }
 0x645   : > { %19145 = vst [vmem:[#allocation54_spill] sm:$0xff] %v17264_v51  ;;  %v17266_v0 = vpop.permute.xlu0 %9508  ;;  %v9323_v46 = vor.u32 %v9322_v24, %v9319_v23  ;;  %v12727_v51 = vld [vmem:[#allocation2 + $0x10c] ss:$0 sps:$4 sm:$0x11]   ;;  %v9327_v39 = vrot.slane %v9325_v18, 4  ;;  %v9330_v59 = vrot.slane %v9328_v22, 5 }
 0x646   : > { %8101 = vrot.lane.b32.xlu0 %v8031_v3, %s12879_s29  ;;  %v7892_v41 = vor.u32 %v7891_v34, %v7888_v10  ;;  %v8032_v14 = vrot.slane %v12727_v51, 5  ;;  %v12729_v24 = vld [vmem:[#allocation2 + $0x10c] ss:$0 sps:$4 sm:$0x11]  }
 0x647   : > { %8099 = vrot.lane.b32.xlu1 %v8030_v28, %s12879_s29  ;;  %v9470_v28 = vrot.slane %v17245_v33, 5  ;;  %v8034_v33 = vrot.slane %v17252_v37, 5  ;;  %v9331_v51 = vor.u32 %v9330_v59, %v9327_v39  ;;  %v12730_v37 = vld [vmem:[#allocation2 + $0xc] ss:$0 sps:$4 sm:$0x11]  }
 0x648   : > { %v17274_v30 = vpop.permute.xlu1 %9348  ;;  %v8033_v49 = vsel %vm1155_vm2, %v8031_v3, %v8032_v14  ;;  %v9473_v3 = vrot.slane %v17271_v8, 5  ;;  %v7984_v18 = vrot.slane %v12730_v37, 5  ;;  %v12731_v22 = vld [vmem:[#allocation2 + $0x11c] ss:$0 sps:$4 sm:$0x11]  }
 0x649   : > { %v12732_v37 = vld [vmem:[#allocation2 + $0xc] ss:$0 sps:$4 sm:$0x11]  }
 0x64a   : > { %9332 = vrot.lane.b32.xlu0 %v9195_v13, %s12878_s28  ;;  %v17281_v13 = vpop.permute.xlu0 %8073  ;;  %v7985_v8 = vsel %vm1155_vm2, %v7983_v43, %v7984_v18  ;;  %v9423_v18 = vrot.slane %v12732_v37, 5  ;;  %v12834_v37 = vld [vmem:[#allocation2 + $0x24] sm:$0xf] }
 0x64b   : > { %9538 = vrot.lane.b32.xlu1 %v9469_v5, %s12879_s29  ;;  %v9422_v5 = vrot.slane %v17235_v56, 5 }
 0x64c   : > { %v17286_v17 = vpop.permute.xlu1 %8069 }
 0x64e   : > { %9540 = vrot.lane.b32.xlu0 %v9470_v28, %s12879_s29 }
 0x64f   : > { %9364 = vrot.lane.b32.xlu1 %v9323_v46, %s12878_s28  ;;  %v7518_v46 = vld [vmem:[#allocation2 + $0x10] sm:$0x8] }
 0x650   : > { %v11622_v14 = vcombine.low %v7518_v46, %v16543_v47  ;;  %v12833_v46 = vld [vmem:[#allocation2 + $0x14] sm:$0xf] }
 0x652   : > { %8037 = vrot.lane.b32.xlu0 %v7983_v43, %s12879_s29 }
 0x653   : > { %7927 = vrot.lane.b32.xlu1 %v7892_v41, %s12878_s28  ;;  %v9471_v41 = vrot.slane %v12729_v24, 5  ;;  %v8957_v24 = vld [vmem:[#allocation2 + $0x10] sm:$0x8] }
 0x654   : > { %v17288_v23 = vpop.permute.xlu0 %9512 }
 0x655   : > { %v9472_v59 = vsel %vm1155_vm2, %v9470_v28, %v9471_v41 }
 0x656   : > { %8105 = vrot.lane.b32.xlu0 %v8034_v33, %s12879_s29 }
 0x657   : > { %8103 = vrot.lane.b32.xlu1 %v8033_v49, %s12879_s29  ;;  %v8116_v49 = vsel %vm1282_vm3, %v11622_v14, %v16909_v42 }
 0x658   : > { %v17294_v10 = vpop.permute.xlu1 %9350  ;;  %v17296_v34 = vpop.permute.xlu0 %7913  ;;  %v17314_v47 = vsel %vm1373_vm4, %v8116_v49, %v16923_v45 }
 0x659   : > { %19146 = vst [vmem:[#allocation57_spill] sm:$0xff] %v17296_v34  ;;  %v7521_v34 = vld [vmem:[#allocation2 + $0x20] sm:$0x8] }
 0x65a   : > { %9476 = vrot.lane.b32.xlu0 %v9422_v5, %s12879_s29  ;;  %v11624_v14 = vcombine.low %v7521_v34, %v16535_v29 }
 0x65b   : > { %9366 = vrot.lane.b32.xlu1 %v9331_v51, %s12878_s28  ;;  %v8035_v51 = vrot.slane %v12731_v22, 5  ;;  %v12733_v22 = vld [vmem:[#allocation2 + $0x11c] ss:$0 sps:$4 sm:$0x11]   ;;  %s11861_s28 = sshll.u32 %s19293_s19, 8 }
 0x65c   : > { %v17302_v39 = vpop.permute.xlu1 %9510  ;;  %v17304_v56 = vpop.permute.xlu0 %7915  ;;  %v8121_v49 = vsel %vm1282_vm3, %v11624_v14, %v16892_v61  ;;  %s18556_s21 = scalar_lea.vmem %s18675_s15, %s11861_s28 }
 0x65d   : > { %19147 = vst [vmem:[#allocation56_spill] sm:$0xff] %v17304_v56  ;;  %v11726_v56 = vcombine.low %v8957_v24, %v12833_v46  ;;  %v8036_v43 = vsel %vm1155_vm2, %v8034_v33, %v8035_v51  ;;  %v9424_v33 = vsel %vm1155_vm2, %v9422_v5, %v9423_v18  ;;  %v9474_v24 = vrot.slane %v12733_v22, 5  ;;  %v12835_v18 = vld [vmem:[#allocation2 + $0x18] sm:$0xf] }
 0x65e   : > { %9544 = vrot.lane.b32.xlu0 %v9473_v3, %s12879_s29  ;;  %v17343_v34 = vsel %vm1373_vm4, %v8121_v49, %v16907_v44  ;;  %v11623_v5 = vcombine.low %v16545_v52, %v16545_v52  ;;  %v11727_v22 = vcombine.low %v12835_v18, %v12835_v18 }
 0x65f   : > { %9542 = vrot.lane.b32.xlu1 %v9472_v59, %s12879_s29  ;;  %v9555_v45 = vsel %vm1282_vm3, %v11726_v56, %v17040_v32  ;;  %v9475_v56 = vsel %vm1155_vm2, %v9473_v3, %v9474_v24 }
 0x660   : > { %v17316_v28 = vpop.permute.xlu1 %8075  ;;  %v17321_v41 = vpop.permute.xlu0 %8079  ;;  %v17329_v59 = vsel %vm1373_vm4, %v9555_v45, %v17025_v50  ;;  %v8960_v50 = vld [vmem:[#allocation2 + $0x20] sm:$0x8]  ;;  %v8118_v51 = vsel %vm1282_vm3, %v11623_v5, %v16909_v42  ;;  %v9557_v14 = vsel %vm1282_vm3, %v11727_v22, %v17040_v32  ;;  %v7524_v45 = vld [vmem:[#allocation2 + $0x30] sm:$0x8] }
 0x661   : > { %v11728_v46 = vcombine.low %v8960_v50, %v12834_v37  ;;  %v17368_v42 = vsel %vm1373_vm4, %v8118_v51, %v16869_v6  ;;  %v17382_v24 = vsel %vm1373_vm4, %v9557_v14, %v17001_v31  ;;  %v11625_v6 = vcombine.low %v16537_v26, %v16537_v26  ;;  %v12744_v50 = vld [vmem:[%s18670_s10 + $0x20] ss:$0 sps:$4 sm:$0xff]  }
 0x662   : > { %8303 = vrot.lane.b32.xlu0 %v17314_v47, %s12880_s30  ;;  %v11626_v32 = vcombine.low %v7524_v45, %v16628_v12  ;;  %v12745_v31 = vld [vmem:[%s18671_s11 + $0x20] ss:$0 sps:$4 sm:$0xff]   ;;  %v12836_v12 = vld [vmem:[#allocation2 + $0x34] sm:$0xf]  ;;  %12435 = vmatprep.subr.msk.bf16.mxu1 %vm2071_vm5, %v12744_v50  ;;  %v10564_v18 = vsel %vm2071_vm5, %v12744_v50, 0  ;;  %v12747_v50 = vld [vmem:[%s18671_s11 + $0x18] sm:$0xff]  }
 0x663   : > { %8039 = vrot.lane.b32.xlu1 %v7985_v8, %s12879_s29  ;;  %v9560_v3 = vsel %vm1282_vm3, %v11728_v46, %v17023_v20  ;;  %v12746_v46 = vld [vmem:[%s18670_s10 + $0x18] sm:$0xff]   ;;  %12434 = vmatprep.subr.msk.bf16.mxu0 %vm2071_vm5, %v12745_v31  ;;  %v10325_v22 = vsel %vm2071_vm5, %v12745_v31, 0 }
 0x664   : > { %v17337_v8 = vpop.permute.xlu1 %9514  ;;  %v17339_v29 = vpop.permute.xlu0 %9516  ;;  %v17364_v52 = vsel %vm1373_vm4, %v9560_v3, %v17012_v38  ;;  %v8963_v38 = vld [vmem:[#allocation2 + $0x30] sm:$0x8]  ;;  %v8126_v26 = vsel %vm1282_vm3, %v11626_v32, %v16936_v63  ;;  %12344 = vmatpush3.bf16.msra.mxu1 %v10564_v18  ;;  %12302 = vmatpush3.bf16.msra.mxu0 %v10325_v22 }
 0x665   : > { %v11730_v5 = vcombine.low %v8963_v38, %v12836_v12  ;;  %12345 = vmatprep.subr.bf16.mxu1 %v12746_v46  ;;  %12303 = vmatprep.subr.bf16.mxu0 %v12747_v50  ;;  %v12750_v12 = vld [vmem:[%s18670_s10 + $0x8] sm:$0xff]  }
 0x666   : > { %9742 = vrot.lane.b32.xlu0 %v17329_v59, %s12880_s30 }
 0x667   : > { %8107 = vrot.lane.b32.xlu1 %v8036_v43, %s12879_s29  ;;  %v9565_v14 = vsel %vm1282_vm3, %v11730_v5, %v17134_v2 }
 0x668   : > { %v17353_v43 = vpop.permute.xlu1 %9352  ;;  %v17358_v44 = vpop.permute.xlu0 %8081  ;;  %v17430_v38 = vsel %vm1373_vm4, %v9565_v14, %v17045_v7  ;;  %v12748_v7 = vld [vmem:[%s18670_s10 + $0x10] sm:$0xff]   ;;  %12346 = vmatpush3.bf16.msra.mxu1 %v12746_v46  ;;  %12304 = vmatpush3.bf16.msra.mxu0 %v12747_v50  ;;  %v12838_v14 = vld [vmem:[#allocation2 + $0x38] sm:$0xf] }
 0x669   : > { %12347 = vmatprep.subr.bf16.mxu1 %v12748_v7 }
 0x66a   : > { %8307 = vrot.lane.b32.xlu0 %v17343_v34, %s12880_s30 }
 0x66b   : > { %9478 = vrot.lane.b32.xlu1 %v9424_v33, %s12879_s29 }
 0x66c   : > { %v17378_v33 = vpop.permute.xlu1 %8077  ;;  %12348 = vmatpush3.bf16.msra.mxu1 %v12748_v7 }
 0x66d   : > { %12349 = vmatprep.subr.bf16.mxu1 %v12750_v12 }
 0x66e   : > { %8369 = vrot.lane.b32.xlu0 %v17343_v34, %s12881_s16 }
 0x66f   : > { %9546 = vrot.lane.b32.xlu1 %v9475_v56, %s12879_s29  ;;  %v8123_v56 = vsel %vm1282_vm3, %v11625_v6, %v16892_v61  ;;  %v17414_v61 = vsel %vm1373_vm4, %v8126_v26, %v16950_v57  ;;  %v12749_v26 = vld [vmem:[%s18671_s11 + $0x10] sm:$0xff]  }
 0x670   : > { %v17410_v3 = vsel %vm1373_vm4, %v8123_v56, %v16925_v35  ;;  %v12837_v35 = vld [vmem:[#allocation2 + $0x28] sm:$0xf]  ;;  %12305 = vmatprep.subr.bf16.mxu0 %v12749_v26  ;;  %12350 = vmatpush3.bf16.msra.mxu1 %v12750_v12 }
 0x671   : > { %v11729_v57 = vcombine.low %v12837_v35, %v12837_v35  ;;  %12306 = vmatpush3.bf16.msra.mxu0 %v12749_v26  ;;  %v8966_v26 = vld [vmem:[#allocation2 + $0x40] sm:$0x8] }
 0x672   : > { %9746 = vrot.lane.b32.xlu0 %v17364_v52, %s12880_s30 }
 0x673   : > { %8305 = vrot.lane.b32.xlu1 %v17368_v42, %s12880_s30  ;;  %v9562_v6 = vsel %vm1282_vm3, %v11729_v57, %v17023_v20  ;;  %v7527_v20 = vld [vmem:[#allocation2 + $0x40] sm:$0x8] }
 0x674   : > { %v17376_v49 = vpop.permute.xlu0 %9520  ;;  %v17448_v31 = vsel %vm1373_vm4, %v9562_v6, %v16979_v40  ;;  %v11627_v40 = vcombine.low %v16630_v58, %v16630_v58  ;;  %v11628_v5 = vcombine.low %v7527_v20, %v16638_v11  ;;  %v12751_v58 = vld [vmem:[%s18671_s11 + $0x8] sm:$0xff]   ;;  %v12752_v11 = vld [vmem:[%s18670_s10] sm:$0xff]  }
 0x675   : > { %v12753_v57 = vld [vmem:[%s18671_s11] sm:$0xff]   ;;  %12307 = vmatprep.subr.bf16.mxu0 %v12751_v58  ;;  %12351 = vmatprep.subr.bf16.mxu1 %v12752_v11 }
 0x676   : > { %9808 = vrot.lane.b32.xlu0 %v17364_v52, %s12881_s16  ;;  %v8128_v18 = vsel %vm1282_vm3, %v11627_v40, %v16936_v63  ;;  %v8131_v22 = vsel %vm1282_vm3, %v11628_v5, %v16981_v21  ;;  %v11731_v63 = vcombine.low %v12838_v14, %v12838_v14  ;;  %12308 = vmatpush3.bf16.msra.mxu0 %v12751_v58 }
 0x677   : > { %9744 = vrot.lane.b32.xlu1 %v17382_v24, %s12880_s30  ;;  %v17488_v6 = vsel %vm1373_vm4, %v8128_v18, %v16934_v4  ;;  %v17492_v50 = vsel %vm1373_vm4, %v8131_v22, %v16948_v16  ;;  %12352 = vmatpush3.bf16.msra.mxu1 %v12752_v11  ;;  %v12839_v16 = vld [vmem:[#allocation2 + $0x44] sm:$0xf]  ;;  %v7530_v18 = vld [vmem:[#allocation2 + $0x50] sm:$0x8]  ;;  %v11629_v14 = vcombine.low %v16632_v27, %v16632_v27 }
 0x678   : > { %v17401_v51 = vpop.permute.xlu1 %9354  ;;  %v17403_v37 = vpop.permute.xlu0 %7917  ;;  %19148 = vst [vmem:[#allocation51_spill] sm:$0xff] %v17492_v50  ;;  %v9567_v7 = vsel %vm1282_vm3, %v11731_v63, %v17134_v2  ;;  %12309 = vmatprep.subr.bf16.mxu0 %v12753_v57  ;;  %v11732_v12 = vcombine.low %v8966_v26, %v12839_v16  ;;  %v8969_v11 = vld [vmem:[#allocation2 + $0x50] sm:$0x8]  ;;  %v11630_v63 = vcombine.low %v7530_v18, %v16691_v1  ;;  %v19151_v27 = vld [vmem:[#allocation39_spill] sm:$0xff] }
 0x679   : > { %v17504_v4 = vsel %vm1373_vm4, %v9567_v7, %v17090_v53  ;;  %v12840_v7 = vld [vmem:[#allocation2 + $0x54] sm:$0xf] }
 0x67a   : > { %8373 = vrot.lane.b32.xlu0 %v17414_v61, %s12881_s16  ;;  %12310 = vmatpush3.bf16.msra.mxu0 %v12753_v57  ;;  %v9570_v2 = vsel %vm1282_vm3, %v11732_v12, %v17116_v9  ;;  %v8136_v57 = vsel %vm1282_vm3, %v11630_v63, %v16997_v15  ;;  %v11734_v26 = vcombine.low %v8969_v11, %v12840_v7  ;;  %v12841_v11 = vld [vmem:[#allocation2 + $0x48] sm:$0xf] }
 0x67b   : > { %8309 = vrot.lane.b32.xlu1 %v17410_v3, %s12880_s30  ;;  %v17518_v53 = vsel %vm1373_vm4, %v9570_v2, %v17059_v60  ;;  %v8133_v60 = vsel %vm1282_vm3, %v11629_v14, %v16981_v21  ;;  %v19153_v2 = vld [vmem:[#allocation41_spill] sm:$0xff]  ;;  %v11733_v14 = vcombine.low %v12841_v11, %v12841_v11  ;;  %v19160_v11 = vld [vmem:[#allocation31_spill] sm:$0xff] }
 0x67c   : > { %v17426_v45 = vpop.permute.xlu1 %9518  ;;  %v17434_v32 = vpop.permute.xlu0 %7919  ;;  %19149 = vst [vmem:[#allocation22_spill] sm:$0xff] %v17518_v53  ;;  %v17545_v1 = vsel %vm1373_vm4, %v8133_v60, %v19151_v27  ;;  %v17549_v18 = vsel %vm1373_vm4, %v8136_v57, %v19153_v2  ;;  %v9575_v21 = vsel %vm1282_vm3, %v11734_v26, %v17164_v55  ;;  %v19156_v60 = vld [vmem:[#allocation15_spill] sm:$0xff] }
 0x67d   : > { %19152 = vst [vmem:[#allocation20_spill] sm:$0xff] %v17545_v1  ;;  %19154 = vst [vmem:[#allocation3_spill] sm:$0xff] %v17549_v18  ;;  %v17563_v27 = vsel %vm1373_vm4, %v9575_v21, %v19156_v60  ;;  %v9572_v57 = vsel %vm1282_vm3, %v11733_v14, %v17116_v9  ;;  %v7533_v9 = vld [vmem:[#allocation2 + $0x60] sm:$0x8] }
 0x67e   : > { %9812 = vrot.lane.b32.xlu0 %v17430_v38, %s12881_s16  ;;  %19157 = vst [vmem:[#allocation60_spill] sm:$0xff] %v17563_v27  ;;  %v19164_v60 = vld [vmem:[#allocation7_spill] sm:$0xff] }
 0x67f   : > { %8371 = vrot.lane.b32.xlu1 %v17410_v3, %s12881_s16 }
 0x680   : > { %v17465_v46 = vpop.permute.xlu0 %8087 }
 0x681   : > { %v17450_v56 = vpop.permute.xlu1 %8083 }
 0x682   : > { %8311 = vrot.lane.b32.xlu0 %v17414_v61, %s12880_s30 }
 0x683   : > { %9748 = vrot.lane.b32.xlu1 %v17448_v31, %s12880_s30 }
 0x684   : > { %v17496_v20 = vpop.permute.xlu0 %9524 }
 0x685   : > { %v17481_v35 = vpop.permute.xlu1 %9522 }
 0x686   : > { %9750 = vrot.lane.b32.xlu0 %v17430_v38, %s12880_s30 }
 0x687   : > { %9810 = vrot.lane.b32.xlu1 %v17448_v31, %s12881_s16 }
 0x688   : > { %v17514_v5 = vpop.permute.xlu0 %8089 }
 0x689   : > { %v17506_v40 = vpop.permute.xlu1 %9356 }
 0x68a   : > { %8315 = vrot.lane.b32.xlu0 %v17492_v50, %s12880_s30 }
 0x68b   : > { %8375 = vrot.lane.b32.xlu1 %v17488_v6, %s12881_s16 }
 0x68d   : > { %v17524_v22 = vpop.permute.xlu1 %8085 }
 0x68e   : > { %8377 = vrot.lane.b32.xlu0 %v17492_v50, %s12881_s16 }
 0x68f   : > { %9814 = vrot.lane.b32.xlu1 %v17504_v4, %s12881_s16 }
 0x692   : > { %9754 = vrot.lane.b32.xlu0 %v17518_v53, %s12880_s30 }
 0x693   : > { %8313 = vrot.lane.b32.xlu1 %v17488_v6, %s12880_s30 }
 0x694   : > { %v17526_v58 = vpop.permute.xlu0 %9528 }
 0x696   : > { %9816 = vrot.lane.b32.xlu0 %v17518_v53, %s12881_s16  ;;  %v19165_v53 = vld [vmem:[#allocation17_spill] sm:$0xff] }
 0x697   : > { %9752 = vrot.lane.b32.xlu1 %v17504_v4, %s12880_s30 }
 0x698   : > { %v17541_v12 = vpop.permute.xlu0 %7921 }
 0x699   : > { %v17539_v16 = vpop.permute.xlu1 %9358  ;;  %19150 = vst [vmem:[#allocation58_spill] sm:$0xff] %v17541_v12 }
 0x69a   : > { %8381 = vrot.lane.b32.xlu0 %v17549_v18, %s12881_s16 }
 0x69b   : > { %8317 = vrot.lane.b32.xlu1 %v17545_v1, %s12880_s30 }
 0x69c   : > { %v17559_v7 = vpop.permute.xlu0 %7923 }
 0x69d   : > { %v17557_v63 = vpop.permute.xlu1 %9526  ;;  %19155 = vst [vmem:[#allocation59_spill] sm:$0xff] %v17559_v7  ;;  %v17577_v7 = vsel %vm1373_vm4, %v9572_v57, %v19160_v11  ;;  %v19166_v11 = vld [vmem:[#allocation43_spill] sm:$0xff] }
 0x69e   : > { %9820 = vrot.lane.b32.xlu0 %v17563_v27, %s12881_s16  ;;  %19161 = vst [vmem:[#allocation62_spill] sm:$0xff] %v17577_v7 }
 0x69f   : > { %8379 = vrot.lane.b32.xlu1 %v17545_v1, %s12881_s16  ;;  %v11631_v1 = vcombine.low %v19164_v60, %v19164_v60  ;;  %v19169_v60 = vld [vmem:[#allocation14_spill] sm:$0xff] }
 0x6a0   : > { %v17573_v2 = vpop.permute.xlu0 %8095 }
 0x6a1   : > { %v17571_v26 = vpop.permute.xlu1 %8091  ;;  %19159 = vst [vmem:[#allocation61_spill] sm:$0xff] %v17573_v2  ;;  %v11632_v2 = vcombine.low %v7533_v9, %v19165_v53  ;;  %v8138_v57 = vsel %vm1282_vm3, %v11631_v1, %v16997_v15  ;;  %v8972_v1 = vld [vmem:[#allocation2 + $0x60] sm:$0x8] }
 0x6a2   : > { %19158 = vst [vmem:[#allocation8_spill] sm:$0xff] %v17571_v26  ;;  %8319 = vrot.lane.b32.xlu0 %v17549_v18, %s12880_s30  ;;  %v17604_v53 = vsel %vm1373_vm4, %v8138_v57, %v19169_v60  ;;  %v19174_v57 = vld [vmem:[#allocation45_spill] sm:$0xff] }
 0x6a3   : > { %9756 = vrot.lane.b32.xlu1 %v17577_v7, %s12880_s30  ;;  %v8141_v18 = vsel %vm1282_vm3, %v11632_v2, %v19166_v11  ;;  %19170 = vst [vmem:[#allocation18_spill] sm:$0xff] %v17604_v53 }
 0x6a4   : > { %v17585_v14 = vpop.permute.xlu0 %9532  ;;  %v17608_v9 = vsel %vm1373_vm4, %v8141_v18, %v17209_v62  ;;  %v12843_v62 = vld [vmem:[#allocation2 + $0x64] sm:$0xf] }
 0x6a5   : > { %v17583_v21 = vpop.permute.xlu1 %9530  ;;  %19163 = vst [vmem:[#allocation27_spill] sm:$0xff] %v17585_v14  ;;  %19171 = vst [vmem:[#allocation6_spill] sm:$0xff] %v17608_v9  ;;  %v11736_v18 = vcombine.low %v8972_v1, %v12843_v62  ;;  %v8975_v62 = vld [vmem:[#allocation2 + $0x70] sm:$0x8] }
 0x6a6   : > { %19162 = vst [vmem:[#allocation63_spill] sm:$0xff] %v17583_v21  ;;  %9758 = vrot.lane.b32.xlu0 %v17563_v27, %s12880_s30  ;;  %v12842_v21 = vld [vmem:[#allocation2 + $0x58] sm:$0xf] }
 0x6a7   : > { %9818 = vrot.lane.b32.xlu1 %v17577_v7, %s12881_s16  ;;  %v11735_v50 = vcombine.low %v12842_v21, %v12842_v21 }
 0x6a8   : > { %v17600_v26 = vpop.permute.xlu0 %8097 }
 0x6a9   : > { %v17598_v14 = vpop.permute.xlu1 %9360  ;;  %19168 = vst [vmem:[#allocation23_spill] sm:$0xff] %v17600_v26  ;;  %v9577_v15 = vsel %vm1282_vm3, %v11735_v50, %v17164_v55  ;;  %v9580_v55 = vsel %vm1282_vm3, %v11736_v18, %v17179_v48  ;;  %v19180_v18 = vld [vmem:[#allocation12_spill] sm:$0xff] }
 0x6aa   : > { %19167 = vst [vmem:[#allocation21_spill] sm:$0xff] %v17598_v14  ;;  %8323 = vrot.lane.b32.xlu0 %v17608_v9, %s12880_s30  ;;  %v17622_v60 = vsel %vm1373_vm4, %v9577_v15, %v19174_v57  ;;  %v7536_v15 = vld [vmem:[#allocation2 + $0x70] sm:$0x8] }
 0x6ab   : > { %8383 = vrot.lane.b32.xlu1 %v17604_v53, %s12881_s16  ;;  %19175 = vst [vmem:[#allocation41_spill] sm:$0xff] %v17622_v60 }
 0x6ac   : > { %v17618_v21 = vpop.permute.xlu0 %9536 }
 0x6ad   : > { %v17616_v2 = vpop.permute.xlu1 %8093  ;;  %19173 = vst [vmem:[#allocation39_spill] sm:$0xff] %v17618_v21  ;;  %v17636_v21 = vsel %vm1373_vm4, %v9580_v55, %v17169_v54  ;;  %v19182_v55 = vld [vmem:[#allocation44_spill] sm:$0xff] }
 0x6ae   : > { %19172 = vst [vmem:[#allocation29_spill] sm:$0xff] %v17616_v2  ;;  %8385 = vrot.lane.b32.xlu0 %v17608_v9, %s12881_s16  ;;  %19178 = vst [vmem:[#allocation7_spill] sm:$0xff] %v17636_v21  ;;  %v11633_v9 = vcombine.low %v19180_v18, %v19180_v18  ;;  %v19187_v18 = vld [vmem:[#allocation25_spill] sm:$0xff] }
 0x6af   : > { %9822 = vrot.lane.b32.xlu1 %v17622_v60, %s12881_s16 }
 0x6b0   : > { %v17632_v27 = vpop.permute.xlu0 %7925  ;;  %v8143_v54 = vsel %vm1282_vm3, %v11633_v9, %v19166_v11  ;;  %v19189_v9 = vld [vmem:[#allocation36_spill] sm:$0xff] }
 0x6b1   : > { %v17630_v50 = vpop.permute.xlu1 %9362  ;;  %19177 = vst [vmem:[#allocation31_spill] sm:$0xff] %v17632_v27  ;;  %v19181_v27 = vld [vmem:[#allocation24_spill] sm:$0xff] }
 0x6b2   : > { %19176 = vst [vmem:[#allocation15_spill] sm:$0xff] %v17630_v50  ;;  %9762 = vrot.lane.b32.xlu0 %v17636_v21, %s12880_s30  ;;  %v11634_v7 = vcombine.low %v7536_v15, %v19181_v27  ;;  %v17663_v27 = vsel %vm1373_vm4, %v8143_v54, %v17156_v19 }
 0x6b3   : > { %8321 = vrot.lane.b32.xlu1 %v17604_v53, %s12880_s30  ;;  %v12844_v53 = vld [vmem:[#allocation2 + $0x74] sm:$0xf]  ;;  %19185 = vst [vmem:[#allocation45_spill] sm:$0xff] %v17663_v27 }
 0x6b4   : > { %v17644_v57 = vpop.permute.xlu0 %7893  ;;  %v11738_v50 = vcombine.low %v8975_v62, %v12844_v53  ;;  %v12845_v62 = vld [vmem:[#allocation2 + $0x68] sm:$0xf] }
 0x6b5   : > { %v17642_v1 = vpop.permute.xlu1 %9534 }
 0x6b6   : > { %19179 = vst [vmem:[#allocation17_spill] sm:$0xff] %v17642_v1  ;;  %9824 = vrot.lane.b32.xlu0 %v17636_v21, %s12881_s16  ;;  %v8146_v1 = vsel %vm1282_vm3, %v11634_v7, %v19182_v55  ;;  %v9585_v11 = vsel %vm1282_vm3, %v11738_v50, %v19187_v18  ;;  %v19193_v21 = vld [vmem:[#allocation49_spill] sm:$0xff] }
 0x6b7   : > { %9760 = vrot.lane.b32.xlu1 %v17622_v60, %s12880_s30  ;;  %v17667_v15 = vsel %vm1373_vm4, %v8146_v1, %v17187_v25  ;;  %v17681_v19 = vsel %vm1373_vm4, %v9585_v11, %v19189_v9  ;;  %v11737_v25 = vcombine.low %v12845_v62, %v12845_v62  ;;  %v7539_v11 = vld [vmem:[#allocation2 + $0x80] sm:$0x8] }
 0x6b8   : > { %v17659_v14 = vpop.permute.xlu0 %8101  ;;  %19186 = vst [vmem:[#allocation12_spill] sm:$0xff] %v17667_v15  ;;  %19190 = vst [vmem:[#allocation44_spill] sm:$0xff] %v17681_v19 }
 0x6b9   : > { %v17657_v26 = vpop.permute.xlu1 %8099  ;;  %19184 = vst [vmem:[#allocation14_spill] sm:$0xff] %v17659_v14  ;;  %v9582_v50 = vsel %vm1282_vm3, %v11737_v25, %v17179_v48  ;;  %v19196_v48 = vld [vmem:[#allocation11_spill] sm:$0xff] }
 0x6ba   : > { %19183 = vst [vmem:[#allocation43_spill] sm:$0xff] %v17657_v26  ;;  %8389 = vrot.lane.b32.xlu0 %v17667_v15, %s12881_s16  ;;  %v11635_v25 = vcombine.low %v19196_v48, %v19196_v48 }
 0x6bb   : > { %8325 = vrot.lane.b32.xlu1 %v17663_v27, %s12880_s30 }
 0x6bc   : > { %v17677_v53 = vpop.permute.xlu0 %9332 }
 0x6bd   : > { %v17675_v7 = vpop.permute.xlu1 %9538 }
 0x6be   : > { %19188 = vst [vmem:[#allocation24_spill] sm:$0xff] %v17675_v7  ;;  %9828 = vrot.lane.b32.xlu0 %v17681_v19, %s12881_s16  ;;  %v17695_v7 = vsel %vm1373_vm4, %v9582_v50, %v19193_v21  ;;  %v8148_v21 = vsel %vm1282_vm3, %v11635_v25, %v19182_v55  ;;  %v19198_v50 = vld [vmem:[#allocation50_spill] sm:$0xff] }
 0x6bf   : > { %8387 = vrot.lane.b32.xlu1 %v17663_v27, %s12881_s16  ;;  %19194 = vst [vmem:[#allocation49_spill] sm:$0xff] %v17695_v7  ;;  %v19197_v27 = vld [vmem:[#allocation35_spill] sm:$0xff]  ;;  %v17722_v48 = vsel %vm1373_vm4, %v8148_v21, %v17247_v36 }
 0x6c0   : > { %v17691_v54 = vpop.permute.xlu0 %9540  ;;  %19201 = vst [vmem:[#allocation50_spill] sm:$0xff] %v17722_v48 }
 0x6c1   : > { %v17689_v1 = vpop.permute.xlu1 %9364  ;;  %19192 = vst [vmem:[#allocation36_spill] sm:$0xff] %v17691_v54  ;;  %v11636_v54 = vcombine.low %v7539_v11, %v19197_v27  ;;  %v8978_v27 = vld [vmem:[#allocation2 + $0x80] sm:$0x8] }
 0x6c2   : > { %19191 = vst [vmem:[#allocation25_spill] sm:$0xff] %v17689_v1  ;;  %8327 = vrot.lane.b32.xlu0 %v17667_v15, %s12880_s30 }
 0x6c3   : > { %9764 = vrot.lane.b32.xlu1 %v17695_v7, %s12880_s30  ;;  %v8151_v15 = vsel %vm1282_vm3, %v11636_v54, %v19198_v50  ;;  %v12847_v54 = vld [vmem:[#allocation2 + $0x84] sm:$0xf] }
 0x6c4   : > { %v17703_v62 = vpop.permute.xlu0 %8037  ;;  %v17726_v11 = vsel %vm1373_vm4, %v8151_v15, %v17286_v17  ;;  %v11740_v25 = vcombine.low %v8978_v27, %v12847_v54  ;;  %v8981_v54 = vld [vmem:[#allocation2 + $0x90] sm:$0x8] }
 0x6c5   : > { %v17701_v9 = vpop.permute.xlu1 %7927  ;;  %19202 = vst [vmem:[#allocation65_spill] sm:$0xff] %v17726_v11 }
 0x6c6   : > { %19195 = vst [vmem:[#allocation64_spill] sm:$0xff] %v17701_v9  ;;  %9766 = vrot.lane.b32.xlu0 %v17681_v19, %s12880_s30  ;;  %v12846_v19 = vld [vmem:[#allocation2 + $0x78] sm:$0xf]  ;;  %v9590_v15 = vsel %vm1282_vm3, %v11740_v25, %v17274_v30  ;;  %v19209_v25 = vld [vmem:[#allocation28_spill] sm:$0xff] }
 0x6c7   : > { %9826 = vrot.lane.b32.xlu1 %v17695_v7, %s12881_s16  ;;  %v11739_v7 = vcombine.low %v12846_v19, %v12846_v19  ;;  %v17754_v19 = vsel %vm1373_vm4, %v9590_v15, %v17266_v0  ;;  %v19211_v15 = vld [vmem:[#allocation26_spill] sm:$0xff] }
 0x6c8   : > { %v17718_v1 = vpop.permute.xlu0 %8105  ;;  %19208 = vst [vmem:[#allocation69_spill] sm:$0xff] %v17754_v19 }
 0x6c9   : > { %v17716_v9 = vpop.permute.xlu1 %8103  ;;  %19200 = vst [vmem:[#allocation35_spill] sm:$0xff] %v17718_v1  ;;  %v9587_v55 = vsel %vm1282_vm3, %v11739_v7, %v19187_v18  ;;  %v19204_v1 = vld [vmem:[#allocation54_spill] sm:$0xff] }
 0x6ca   : > { %19199 = vst [vmem:[#allocation11_spill] sm:$0xff] %v17716_v9  ;;  %8331 = vrot.lane.b32.xlu0 %v17726_v11, %s12880_s30  ;;  %v17740_v17 = vsel %vm1373_vm4, %v9587_v55, %v19204_v1  ;;  %v7542_v1 = vld [vmem:[#allocation2 + $0x90] sm:$0x8] }
 0x6cb   : > { %8391 = vrot.lane.b32.xlu1 %v17722_v48, %s12881_s16  ;;  %19205 = vst [vmem:[#allocation54_spill] sm:$0xff] %v17740_v17 }
 0x6cc   : > { %v17736_v21 = vpop.permute.xlu0 %9476 }
 0x6cd   : > { %v17734_v36 = vpop.permute.xlu1 %9366 }
 0x6ce   : > { %19203 = vst [vmem:[#allocation66_spill] sm:$0xff] %v17734_v36  ;;  %8393 = vrot.lane.b32.xlu0 %v17726_v11, %s12881_s16  ;;  %v11637_v11 = vcombine.low %v19209_v25, %v19209_v25  ;;  %v12848_v36 = vld [vmem:[#allocation2 + $0x94] sm:$0xf] }
 0x6cf   : > { %9830 = vrot.lane.b32.xlu1 %v17740_v17, %s12881_s16  ;;  %v11742_v9 = vcombine.low %v8981_v54, %v12848_v36  ;;  %v19213_v25 = vld [vmem:[#allocation53_spill] sm:$0xff]  ;;  %v12849_v54 = vld [vmem:[#allocation2 + $0x88] sm:$0xf] }
 0x6d0   : > { %v17750_v7 = vpop.permute.xlu0 %9544  ;;  %v8153_v0 = vsel %vm1282_vm3, %v11637_v11, %v19198_v50 }
 0x6d1   : > { %v17748_v18 = vpop.permute.xlu1 %9542  ;;  %19207 = vst [vmem:[#allocation68_spill] sm:$0xff] %v17750_v7  ;;  %v9595_v50 = vsel %vm1282_vm3, %v11742_v9, %v17294_v10  ;;  %v7515_v9 = vld [vmem:[#allocation2] sm:$0x8] }
 0x6d2   : > { %19206 = vst [vmem:[#allocation67_spill] sm:$0xff] %v17748_v18  ;;  %9770 = vrot.lane.b32.xlu0 %v17754_v19, %s12880_s30  ;;  %v19210_v18 = vld [vmem:[#allocation5_spill] sm:$0xff] }
 0x6d3   : > { %8329 = vrot.lane.b32.xlu1 %v17722_v48, %s12880_s30  ;;  %v11638_v7 = vcombine.low %v7542_v1, %v19210_v18  ;;  %v17779_v18 = vsel %vm1373_vm4, %v8153_v0, %v19213_v25 }
 0x6d4   : > { %v8304_v55 = vpop.permute.xlu0 %8303  ;;  %19214 = vst [vmem:[#allocation5_spill] sm:$0xff] %v17779_v18 }
 0x6d5   : > { %v17760_v27 = vpop.permute.xlu1 %8039  ;;  %v8156_v48 = vsel %vm1282_vm3, %v11638_v7, %v19211_v15  ;;  %v17797_v7 = vsel %vm1373_vm4, %v9595_v50, %v17288_v23  ;;  %v19219_v23 = vld [vmem:[#allocation19_spill] sm:$0xff] }
 0x6d6   : > { %9832 = vrot.lane.b32.xlu0 %v17754_v19, %s12881_s16  ;;  %v17783_v1 = vsel %vm1373_vm4, %v8156_v48, %v17281_v13  ;;  %19216 = vst [vmem:[#allocation53_spill] sm:$0xff] %v17797_v7  ;;  %v11741_v13 = vcombine.low %v12849_v54, %v12849_v54  ;;  %v11620_v50 = vcombine.low %v7515_v9, %v19219_v23  ;;  %v7545_v54 = vld [vmem:[#allocation2 + $0xa0] sm:$0x8] }
 0x6d7   : > { %9768 = vrot.lane.b32.xlu1 %v17740_v17, %s12880_s30  ;;  %19215 = vst [vmem:[#allocation26_spill] sm:$0xff] %v17783_v1  ;;  %v19221_v17 = vld [vmem:[#allocation4_spill] sm:$0xff] }
 0x6d8   : > { %v17775_v26 = vpop.permute.xlu0 %9742  ;;  %v9592_v48 = vsel %vm1282_vm3, %v11741_v13, %v17274_v30  ;;  %v8954_v30 = vld [vmem:[#allocation2] sm:$0x8]  ;;  %v19220_v13 = vld [vmem:[#allocation9_spill] sm:$0xff]  ;;  %v11640_v60 = vcombine.low %v7545_v54, %v19221_v17 }
 0x6d9   : > { %v17773_v14 = vpop.permute.xlu1 %8107  ;;  %v17809_v19 = vsel %vm1373_vm4, %v9592_v48, %v17302_v39  ;;  %v8111_v39 = vsel %vm1282_vm3, %v11620_v50, %v17644_v57  ;;  %v19222_v48 = vld [vmem:[#allocation57_spill] sm:$0xff]  ;;  %v8984_v54 = vld [vmem:[#allocation2 + $0xa0] sm:$0x8] }
 0x6da   : > { %19212 = vst [vmem:[#allocation28_spill] sm:$0xff] %v17773_v14  ;;  %8397 = vrot.lane.b32.xlu0 %v17783_v1, %s12881_s16  ;;  %19218 = vst [vmem:[#allocation71_spill] sm:$0xff] %v17809_v19  ;;  %v8161_v23 = vsel %vm1282_vm3, %v11640_v60, %v19222_v48  ;;  %v19226_v60 = vld [vmem:[#allocation47_spill] sm:$0xff] }
 0x6db   : > { %8333 = vrot.lane.b32.xlu1 %v17779_v18, %s12880_s30 }
 0x6dc   : > { %v17793_v36 = vpop.permute.xlu0 %8307 }
 0x6dd   : > { %v17791_v11 = vpop.permute.xlu1 %9478 }
 0x6de   : > { %9836 = vrot.lane.b32.xlu0 %v17797_v7, %s12881_s16 }
 0x6df   : > { %8395 = vrot.lane.b32.xlu1 %v17779_v18, %s12881_s16 }
 0x6e0   : > { %v8370_v25 = vpop.permute.xlu0 %8369 }
 0x6e1   : > { %v17805_v0 = vpop.permute.xlu1 %9546 }
 0x6e2   : > { %19217 = vst [vmem:[#allocation70_spill] sm:$0xff] %v17805_v0  ;;  %8335 = vrot.lane.b32.xlu0 %v17783_v1, %s12880_s30  ;;  %v11639_v0 = vcombine.low %v19220_v13, %v19220_v13  ;;  %v19223_v1 = vld [vmem:[#allocation52_spill] sm:$0xff] }
 0x6e3   : > { %9772 = vrot.lane.b32.xlu1 %v17809_v19, %s12880_s30  ;;  %v11724_v2 = vcombine.low %v8954_v30, %v19223_v1  ;;  %v11621_v1 = vcombine.low %v19226_v60, %v19226_v60 }
 0x6e4   : > { %v17816_v14 = vpop.permute.xlu0 %9746  ;;  %v8158_v9 = vsel %vm1282_vm3, %v11639_v0, %v19211_v15  ;;  %v8200_v15 = vsel %vm1373_vm4, %v8111_v39, %v17703_v62  ;;  %v12850_v0 = vld [vmem:[#allocation2 + $0x98] sm:$0xf] }
 0x6e5   : > { %v8306_v18 = vpop.permute.xlu1 %8305  ;;  %v17836_v50 = vsel %vm1373_vm4, %v8158_v9, %v17316_v28  ;;  %v8434_v30 = vsel %vm1608_vm7, %v8200_v15, %v8304_v55  ;;  %v12851_v9 = vld [vmem:[#allocation2 + $0xa4] sm:$0xf]  ;;  %v9550_v39 = vsel %vm1282_vm3, %v11724_v2, %v17677_v53 }
 0x6e6   : > { %9774 = vrot.lane.b32.xlu0 %v17797_v7, %s12880_s30  ;;  %19224 = vst [vmem:[#allocation19_spill] sm:$0xff] %v17836_v50  ;;  %v11743_v7 = vcombine.low %v12850_v0, %v12850_v0  ;;  %v8498_v28 = vsel %vm1673_vm6, %v8434_v30, %v8370_v25  ;;  %v11744_v62 = vcombine.low %v8984_v54, %v12851_v9  ;;  %v8987_v54 = vld [vmem:[#allocation2 + $0xb0] sm:$0x8] }
 0x6e7   : > { %9834 = vrot.lane.b32.xlu1 %v17809_v19, %s12881_s16  ;;  %v17840_v19 = vsel %vm1373_vm4, %v8161_v23, %v17378_v33  ;;  %v8113_v25 = vsel %vm1282_vm3, %v11621_v1, %v17644_v57  ;;  %v8561_v60 = vshrl.u32 %v8498_v28, 16  ;;  %v9639_v2 = vsel %vm1373_vm4, %v9550_v39, %v17736_v21 }
 0x6e8   : > { %v9809_v17 = vpop.permute.xlu0 %9808  ;;  %19225 = vst [vmem:[#allocation9_spill] sm:$0xff] %v17840_v19  ;;  %v9597_v33 = vsel %vm1282_vm3, %v11743_v7, %v17294_v10  ;;  %v9600_v15 = vsel %vm1282_vm3, %v11744_v62, %v17353_v43  ;;  %v8564_v10 = vshll.u32 %v8498_v28, 16  ;;  %v7548_v7 = vld [vmem:[#allocation2 + $0xb0] sm:$0x8]  ;;  %v9873_v30 = vsel %vm1608_vm7, %v9639_v2, %v17775_v26  ;;  %v19228_v26 = vld [vmem:[#allocation34_spill] sm:$0xff] }
 0x6e9   : > { %v17832_v13 = vpop.permute.xlu1 %9744  ;;  %v17860_v55 = vsel %vm1373_vm4, %v9597_v33, %v17337_v8  ;;  %v8202_v8 = vsel %vm1373_vm4, %v8113_v25, %v17760_v27  ;;  %v19227_v33 = vld [vmem:[#allocation55_spill] sm:$0xff]  ;;  %v9937_v62 = vsel %vm1673_vm6, %v9873_v30, %v9809_v17  ;;  %v17883_v21 = vsel %vm1373_vm4, %v9600_v15, %v17339_v29  ;;  %v19229_v17 = vld [vmem:[#allocation37_spill] sm:$0xff] }
 0x6ea   : > { %8339 = vrot.lane.b32.xlu0 %v17840_v19, %s12880_s30  ;;  %v8436_v57 = vsel %vm1608_vm7, %v8202_v8, %v8306_v18  ;;  %v11725_v9 = vcombine.low %v19227_v33, %v19227_v33  ;;  %v8563_v27 = vrot.slane %v8561_v60, 3  ;;  %v8566_v39 = vrot.slane %v8564_v10, 4  ;;  %v12852_v8 = vld [vmem:[#allocation2 + $0xb4] sm:$0xf]  ;;  %v19230_v33 = vld [vmem:[#allocation56_spill] sm:$0xff] }
 0x6eb   : > { %8399 = vrot.lane.b32.xlu1 %v17836_v50, %s12881_s16  ;;  %v11641_v18 = vcombine.low %v19228_v26, %v19228_v26  ;;  %v11642_v2 = vcombine.low %v7548_v7, %v19229_v17  ;;  %v11746_v30 = vcombine.low %v8987_v54, %v12852_v8  ;;  %v10003_v29 = vshll.u32 %v9937_v62, 16  ;;  %v12853_v8 = vld [vmem:[#allocation2 + $0xa8] sm:$0xf] }
 0x6ec   : > { %v8374_v0 = vpop.permute.xlu0 %8373  ;;  %v9552_v26 = vsel %vm1282_vm3, %v11725_v9, %v17677_v53  ;;  %v8438_v7 = vsel %vm1608_vm7, %v17314_v47, %v17793_v36  ;;  %v8567_v54 = vor.u32 %v8566_v39, %v8563_v27 }
 0x6ed   : > { %v17856_v23 = vpop.permute.xlu1 %8309  ;;  %v9605_v47 = vsel %vm1282_vm3, %v11746_v30, %v17401_v51  ;;  %v9641_v36 = vsel %vm1373_vm4, %v9552_v26, %v17791_v11  ;;  %v10005_v27 = vrot.slane %v10003_v29, 4  ;;  %v11745_v30 = vcombine.low %v12853_v8, %v12853_v8 }
 0x6ee   : > { %8401 = vrot.lane.b32.xlu0 %v17840_v19, %s12881_s16 }
 0x6ef   : > { %9838 = vrot.lane.b32.xlu1 %v17860_v55, %s12881_s16 }
 0x6f0   : > { %v9813_v28 = vpop.permute.xlu0 %9812 }
 0x6f1   : > { %v8372_v1 = vpop.permute.xlu1 %8371 }
 0x6f2   : > { %v8500_v19 = vsel %vm1673_vm6, %v8436_v57, %v8372_v1  ;;  %9778 = vrot.lane.b32.xlu0 %v17883_v21, %s12880_s30  ;;  %v10000_v57 = vshrl.u32 %v9937_v62, 16  ;;  %v8502_v62 = vsel %vm1673_vm6, %v8438_v7, %v8374_v0  ;;  %v9875_v0 = vsel %vm1608_vm7, %v9641_v36, %v17832_v13 }
 0x6f3   : > { %v8568_v25 = vshrl.u32 %v8500_v19, 16  ;;  %v8571_v12 = vshll.u32 %v8500_v19, 16  ;;  %8337 = vrot.lane.b32.xlu1 %v17836_v50, %s12880_s30  ;;  %v8163_v19 = vsel %vm1282_vm3, %v11641_v18, %v19222_v48  ;;  %v8166_v50 = vsel %vm1282_vm3, %v11642_v2, %v19230_v33 }
 0x6f4   : > { %v17892_v1 = vpop.permute.xlu0 %8311  ;;  %v17910_v48 = vsel %vm1373_vm4, %v8163_v19, %v17321_v41  ;;  %v17914_v53 = vsel %vm1373_vm4, %v8166_v50, %v17358_v44  ;;  %v10002_v9 = vrot.slane %v10000_v57, 3  ;;  %v9877_v44 = vsel %vm1608_vm7, %v17329_v59, %v17816_v14 }
 0x6f5   : > { %v8570_v15 = vrot.slane %v8568_v25, 3  ;;  %v8573_v60 = vrot.slane %v8571_v12, 4  ;;  %v9749_v10 = vpop.permute.xlu1 %9748  ;;  %v8576_v50 = vshrl.u32 %v8502_v62, 16  ;;  %v8579_v18 = vshll.u32 %v8502_v62, 16 }
 0x6f6   : > { %9840 = vrot.lane.b32.xlu0 %v17883_v21, %s12881_s16  ;;  %v9941_v11 = vsel %vm1673_vm6, %v9877_v44, %v9813_v28  ;;  %v17937_v59 = vsel %vm1373_vm4, %v9605_v47, %v17376_v49  ;;  %v10006_v14 = vor.u32 %v10005_v27, %v10002_v9  ;;  %v8440_v57 = vsel %vm1608_vm7, %v17368_v42, %v17856_v23 }
 0x6f7   : > { %v8574_v12 = vor.u32 %v8573_v60, %v8570_v15  ;;  %9776 = vrot.lane.b32.xlu1 %v17860_v55, %s12880_s30  ;;  %v8578_v19 = vrot.slane %v8576_v50, 3  ;;  %v8581_v26 = vrot.slane %v8579_v18, 4  ;;  %v10015_v7 = vshrl.u32 %v9941_v11, 16 }
 0x6f8   : > { %v17922_v25 = vpop.permute.xlu0 %9750  ;;  %v10018_v62 = vshll.u32 %v9941_v11, 16  ;;  %v9602_v42 = vsel %vm1282_vm3, %v11745_v30, %v17353_v43  ;;  %v9879_v23 = vsel %vm1608_vm7, %v17382_v24, %v9749_v10  ;;  %v7551_v43 = vld [vmem:[#allocation2 + $0xc0] sm:$0x8] }
 0x6f9   : > { %v9811_v39 = vpop.permute.xlu1 %9810  ;;  %v8575_v41 = vsel %vm1738_vm8, %v8567_v54, %v8574_v12  ;;  %v8582_v44 = vor.u32 %v8581_v26, %v8578_v19  ;;  %v10017_v50 = vrot.slane %v10015_v7, 3 }
 0x6fa   : > { %v9939_v17 = vsel %vm1673_vm6, %v9875_v0, %v9811_v39  ;;  %12353 = vmatprep.mubr.msk.bf16.mxu1 %vm2022_vm9, %v8575_v41  ;;  %8405 = vrot.lane.b32.xlu0 %v17914_v53, %s12881_s16  ;;  %v17956_v41 = vsel %vm1373_vm4, %v9602_v42, %v17426_v45 }
 0x6fb   : > { %v10007_v13 = vshrl.u32 %v9939_v17, 16  ;;  %v10010_v2 = vshll.u32 %v9939_v17, 16  ;;  %8341 = vrot.lane.b32.xlu1 %v17910_v48, %s12880_s30  ;;  %v10020_v17 = vrot.slane %v10018_v62, 4 }
 0x6fc   : > { %v17942_v60 = vpop.permute.xlu0 %8315 }
 0x6fd   : > { %v10009_v28 = vrot.slane %v10007_v13, 3  ;;  %v10012_v29 = vrot.slane %v10010_v2, 4  ;;  %v8376_v15 = vpop.permute.xlu1 %8375 }
 0x6fe   : > { %v8504_v54 = vsel %vm1673_vm6, %v8440_v57, %v8376_v15  ;;  %9844 = vrot.lane.b32.xlu0 %v17937_v59, %s12881_s16  ;;  %v10021_v15 = vor.u32 %v10020_v17, %v10017_v50 }
 0x6ff   : > { %v10013_v12 = vor.u32 %v10012_v29, %v10009_v28  ;;  %v8583_v36 = vshrl.u32 %v8504_v54, 16  ;;  %v8586_v49 = vshll.u32 %v8504_v54, 16  ;;  %8403 = vrot.lane.b32.xlu1 %v17910_v48, %s12881_s16  ;;  %v19232_v28 = vld [vmem:[#allocation13_spill] sm:$0xff] }
 0x700   : > { %v8378_v27 = vpop.permute.xlu0 %8377  ;;  %v11643_v29 = vcombine.low %v19232_v28, %v19232_v28 }
 0x701   : > { %v8585_v47 = vrot.slane %v8583_v36, 3  ;;  %v8588_v0 = vrot.slane %v8586_v49, 4  ;;  %v9815_v9 = vpop.permute.xlu1 %9814  ;;  %v10014_v39 = vsel %vm1738_vm8, %v10006_v14, %v10013_v12  ;;  %v19231_v14 = vld [vmem:[#allocation30_spill] sm:$0xff]  ;;  %v8990_v49 = vld [vmem:[#allocation2 + $0xc0] sm:$0x8] }
 0x702   : > { %v9943_v18 = vsel %vm1673_vm6, %v9879_v23, %v9815_v9  ;;  %12311 = vmatprep.mubr.msk.bf16.mxu0 %vm2022_vm9, %v10014_v39  ;;  %8343 = vrot.lane.b32.xlu0 %v17914_v53, %s12880_s30  ;;  %v11644_v57 = vcombine.low %v7551_v43, %v19231_v14  ;;  %v8168_v26 = vsel %vm1282_vm3, %v11643_v29, %v19230_v33  ;;  %v12854_v23 = vld [vmem:[#allocation2 + $0xb8] sm:$0xf] }
 0x703   : > { %v8589_v11 = vor.u32 %v8588_v0, %v8585_v47  ;;  %v10022_v24 = vshrl.u32 %v9943_v18, 16  ;;  %v10025_v10 = vshll.u32 %v9943_v18, 16  ;;  %9780 = vrot.lane.b32.xlu1 %v17956_v41, %s12880_s30  ;;  %v17982_v36 = vsel %vm1373_vm4, %v8168_v26, %v17450_v56  ;;  %v12855_v0 = vld [vmem:[#allocation2 + $0xc4] sm:$0xf] }
 0x704   : > { %v17964_v8 = vpop.permute.xlu0 %9754  ;;  %v8171_v7 = vsel %vm1282_vm3, %v11644_v57, %v17403_v37  ;;  %v11747_v33 = vcombine.low %v12854_v23, %v12854_v23  ;;  %v8442_v47 = vsel %vm1608_vm7, %v17343_v34, %v17892_v1  ;;  %v11748_v9 = vcombine.low %v8990_v49, %v12855_v0 }
 0x705   : > { %v10024_v13 = vrot.slane %v10022_v24, 3  ;;  %v10027_v45 = vrot.slane %v10025_v10, 4  ;;  %v8314_v2 = vpop.permute.xlu1 %8313  ;;  %v8590_v30 = vsel %vm1738_vm8, %v8582_v44, %v8589_v11  ;;  %v17986_v42 = vsel %vm1373_vm4, %v8171_v7, %v17524_v22 }
 0x706   : > { %12354 = vmatmul.mubr.msk.bf16.vlgmr.msra.gmra.mxu1 %vm2022_vm9, %v8590_v30  ;;  %9782 = vrot.lane.b32.xlu0 %v17937_v59, %s12880_s30  ;;  %v8506_v56 = vsel %vm1673_vm6, %v8442_v47, %v8378_v27  ;;  %v9607_v22 = vsel %vm1282_vm3, %v11747_v33, %v17401_v51  ;;  %v9610_v34 = vsel %vm1282_vm3, %v11748_v9, %v17506_v40  ;;  %v7554_v51 = vld [vmem:[#allocation2 + $0xd0] sm:$0x8] }
 0x707   : > { %v10028_v19 = vor.u32 %v10027_v45, %v10024_v13  ;;  %9842 = vrot.lane.b32.xlu1 %v17956_v41, %s12881_s16  ;;  %v18003_v50 = vsel %vm1373_vm4, %v9607_v22, %v17481_v35  ;;  %v8591_v1 = vshrl.u32 %v8506_v56, 16  ;;  %v8594_v18 = vshll.u32 %v8506_v56, 16  ;;  %v8993_v13 = vld [vmem:[#allocation2 + $0xd0] sm:$0x8] }
 0x708   : > { %v9817_v62 = vpop.permute.xlu0 %9816  ;;  %v9881_v27 = vsel %vm1608_vm7, %v17364_v52, %v17922_v25  ;;  %v8444_v35 = vsel %vm1608_vm7, %v17410_v3, %v8314_v2  ;;  %v18020_v10 = vsel %vm1373_vm4, %v9610_v34, %v17496_v20  ;;  %v19233_v52 = vld [vmem:[#allocation38_spill] sm:$0xff]  ;;  %v8446_v23 = vsel %vm1608_vm7, %v17414_v61, %v17942_v60 }
 0x709   : > { %v9753_v54 = vpop.permute.xlu1 %9752  ;;  %v10029_v12 = vsel %vm1738_vm8, %v10021_v15, %v10028_v19  ;;  %v9945_v11 = vsel %vm1673_vm6, %v9881_v27, %v9817_v62  ;;  %v8593_v45 = vrot.slane %v8591_v1, 3  ;;  %v8596_v30 = vrot.slane %v8594_v18, 4  ;;  %v19234_v25 = vld [vmem:[#allocation10_spill] sm:$0xff] }
 0x70a   : > { %12312 = vmatmul.mubr.msk.bf16.vlgmr.msra.gmra.mxu0 %vm2022_vm9, %v10029_v12  ;;  %8347 = vrot.lane.b32.xlu0 %v17986_v42, %s12880_s30  ;;  %v11645_v3 = vcombine.low %v19233_v52, %v19233_v52  ;;  %v11646_v2 = vcombine.low %v7554_v51, %v19234_v25  ;;  %v10030_v28 = vshrl.u32 %v9945_v11, 16  ;;  %v10033_v29 = vshll.u32 %v9945_v11, 16  ;;  %v12856_v12 = vld [vmem:[#allocation2 + $0xd4] sm:$0xf] }
 0x70b   : > { %8407 = vrot.lane.b32.xlu1 %v17982_v36, %s12881_s16  ;;  %v11750_v49 = vcombine.low %v8993_v13, %v12856_v12  ;;  %v8597_v33 = vor.u32 %v8596_v30, %v8593_v45  ;;  %v9883_v60 = vsel %vm1608_vm7, %v17448_v31, %v9753_v54 }
 0x70c   : > { %v8382_v44 = vpop.permute.xlu0 %8381  ;;  %v8173_v7 = vsel %vm1282_vm3, %v11645_v3, %v17403_v37  ;;  %v8176_v62 = vsel %vm1282_vm3, %v11646_v2, %v17434_v32  ;;  %v10032_v0 = vrot.slane %v10030_v28, 3  ;;  %v10035_v9 = vrot.slane %v10033_v29, 4 }
 0x70d   : > { %v17999_v39 = vpop.permute.xlu1 %8317  ;;  %v8510_v47 = vsel %vm1673_vm6, %v8446_v23, %v8382_v44  ;;  %v18045_v37 = vsel %vm1373_vm4, %v8173_v7, %v17465_v46  ;;  %v18049_v22 = vsel %vm1373_vm4, %v8176_v62, %v17514_v5  ;;  %v9615_v61 = vsel %vm1282_vm3, %v11750_v49, %v17539_v16 }
 0x70e   : > { %8409 = vrot.lane.b32.xlu0 %v17986_v42, %s12881_s16  ;;  %v9885_v46 = vsel %vm1608_vm7, %v17430_v38, %v17964_v8  ;;  %v8606_v18 = vshrl.u32 %v8510_v47, 16  ;;  %v8609_v5 = vshll.u32 %v8510_v47, 16  ;;  %v18070_v38 = vsel %vm1373_vm4, %v9615_v61, %v17526_v58 }
 0x70f   : > { %9846 = vrot.lane.b32.xlu1 %v18003_v50, %s12881_s16  ;;  %v10036_v8 = vor.u32 %v10035_v9, %v10032_v0  ;;  %v8448_v11 = vsel %vm1608_vm7, %v17488_v6, %v17999_v39  ;;  %v19235_v9 = vld [vmem:[#allocation40_spill] sm:$0xff] }
 0x710   : > { %v9821_v17 = vpop.permute.xlu0 %9820  ;;  %v8608_v30 = vrot.slane %v8606_v18, 3 }
 0x711   : > { %v8380_v43 = vpop.permute.xlu1 %8379  ;;  %v9949_v27 = vsel %vm1673_vm6, %v9885_v46, %v9821_v17 }
 0x712   : > { %v8508_v24 = vsel %vm1673_vm6, %v8444_v35, %v8380_v43  ;;  %9786 = vrot.lane.b32.xlu0 %v18020_v10, %s12880_s30  ;;  %v12857_v35 = vld [vmem:[#allocation2 + $0xc8] sm:$0xf]  ;;  %v10048_v3 = vshll.u32 %v9949_v27, 16 }
 0x713   : > { %v8598_v14 = vshrl.u32 %v8508_v24, 16  ;;  %v8601_v57 = vshll.u32 %v8508_v24, 16  ;;  %8345 = vrot.lane.b32.xlu1 %v17982_v36, %s12880_s30  ;;  %v11749_v43 = vcombine.low %v12857_v35, %v12857_v35 }
 0x714   : > { %v18029_v26 = vpop.permute.xlu0 %8319 }
 0x715   : > { %v8600_v20 = vrot.slane %v8598_v14, 3  ;;  %v8603_v15 = vrot.slane %v8601_v57, 4  ;;  %v9757_v19 = vpop.permute.xlu1 %9756  ;;  %v8611_v14 = vrot.slane %v8609_v5, 4  ;;  %v10045_v57 = vshrl.u32 %v9949_v27, 16  ;;  %v19237_v27 = vld [vmem:[#allocation58_spill] sm:$0xff] }
 0x716   : > { %9848 = vrot.lane.b32.xlu0 %v18020_v10, %s12881_s16  ;;  %v9612_v6 = vsel %vm1282_vm3, %v11749_v43, %v17506_v40  ;;  %v9887_v39 = vsel %vm1608_vm7, %v17504_v4, %v9757_v19  ;;  %v7557_v40 = vld [vmem:[#allocation2 + $0xe0] sm:$0x8] }
 0x717   : > { %v8604_v56 = vor.u32 %v8603_v15, %v8600_v20  ;;  %9784 = vrot.lane.b32.xlu1 %v18003_v50, %s12880_s30  ;;  %v18089_v62 = vsel %vm1373_vm4, %v9612_v6, %v17557_v63  ;;  %v8612_v12 = vor.u32 %v8611_v14, %v8608_v30  ;;  %v10047_v49 = vrot.slane %v10045_v57, 3  ;;  %v12858_v30 = vld [vmem:[#allocation2 + $0xd8] sm:$0xf]  ;;  %v19240_v14 = vld [vmem:[#allocation51_spill] sm:$0xff] }
 0x718   : > { %v18055_v34 = vpop.permute.xlu0 %9758  ;;  %v8450_v57 = vsel %vm1608_vm7, %v19240_v14, %v18029_v26  ;;  %v19242_v26 = vld [vmem:[#allocation21_spill] sm:$0xff] }
 0x719   : > { %v9819_v44 = vpop.permute.xlu1 %9818  ;;  %v8605_v1 = vsel %vm1738_vm8, %v8597_v33, %v8604_v56  ;;  %v10050_v33 = vrot.slane %v10048_v3, 4 }
 0x71a   : > { %v9947_v51 = vsel %vm1673_vm6, %v9883_v60, %v9819_v44  ;;  %12357 = vmatprep.mubr.msk.bf16.mxu1 %vm2022_vm9, %v8605_v1  ;;  %8413 = vrot.lane.b32.xlu0 %v18049_v22, %s12881_s16  ;;  %v11648_v44 = vcombine.low %v7557_v40, %v19235_v9  ;;  %v19236_v1 = vld [vmem:[#allocation42_spill] sm:$0xff] }
 0x71b   : > { %v10037_v31 = vshrl.u32 %v9947_v51, 16  ;;  %v10040_v54 = vshll.u32 %v9947_v51, 16  ;;  %8349 = vrot.lane.b32.xlu1 %v18045_v37, %s12880_s30  ;;  %v11647_v46 = vcombine.low %v19236_v1, %v19236_v1  ;;  %v10051_v18 = vor.u32 %v10050_v33, %v10047_v49  ;;  %v19244_v49 = vld [vmem:[#allocation20_spill] sm:$0xff] }
 0x71c   : > { %v18075_v45 = vpop.permute.xlu0 %8323 }
 0x71d   : > { %v10039_v17 = vrot.slane %v10037_v31, 3  ;;  %v10042_v24 = vrot.slane %v10040_v54, 4  ;;  %v8384_v13 = vpop.permute.xlu1 %8383  ;;  %v8178_v51 = vsel %vm1282_vm3, %v11647_v46, %v17434_v32  ;;  %v8181_v31 = vsel %vm1282_vm3, %v11648_v44, %v19237_v27  ;;  %v19247_v46 = vld [vmem:[#allocation46_spill] sm:$0xff] }
 0x71e   : > { %v8512_v52 = vsel %vm1673_vm6, %v8448_v11, %v8384_v13  ;;  %9852 = vrot.lane.b32.xlu0 %v18070_v38, %s12881_s16  ;;  %v11751_v32 = vcombine.low %v12858_v30, %v12858_v30 }
 0x71f   : > { %v10043_v25 = vor.u32 %v10042_v24, %v10039_v17  ;;  %v8613_v2 = vshrl.u32 %v8512_v52, 16  ;;  %v8616_v58 = vshll.u32 %v8512_v52, 16  ;;  %8411 = vrot.lane.b32.xlu1 %v18045_v37, %s12881_s16  ;;  %v8996_v17 = vld [vmem:[#allocation2 + $0xe0] sm:$0x8]  ;;  %v19239_v24 = vld [vmem:[#allocation29_spill] sm:$0xff] }
 0x720   : > { %v8386_v15 = vpop.permute.xlu0 %8385  ;;  %v18119_v13 = vsel %vm1373_vm4, %v8181_v31, %v19239_v24  ;;  %v9617_v3 = vsel %vm1282_vm3, %v11751_v32, %v17539_v16  ;;  %v7560_v16 = vld [vmem:[#allocation2 + $0xf0] sm:$0x8]  ;;  %v19248_v24 = vld [vmem:[#allocation59_spill] sm:$0xff]  ;;  %v12860_v32 = vld [vmem:[#allocation2 + $0xf4] sm:$0xf] }
 0x721   : > { %v8615_v28 = vrot.slane %v8613_v2, 3  ;;  %v8618_v29 = vrot.slane %v8616_v58, 4  ;;  %v9823_v20 = vpop.permute.xlu1 %9822  ;;  %v10044_v7 = vsel %vm1738_vm8, %v10036_v8, %v10043_v25  ;;  %v19238_v8 = vld [vmem:[#allocation8_spill] sm:$0xff]  ;;  %v8514_v52 = vsel %vm1673_vm6, %v8450_v57, %v8386_v15  ;;  %v12859_v25 = vld [vmem:[#allocation2 + $0xe4] sm:$0xf]  ;;  %v19243_v15 = vld [vmem:[#allocation22_spill] sm:$0xff] }
 0x722   : > { %v9951_v23 = vsel %vm1673_vm6, %v9887_v39, %v9823_v20  ;;  %12315 = vmatprep.mubr.msk.bf16.mxu0 %vm2022_vm9, %v10044_v7  ;;  %8351 = vrot.lane.b32.xlu0 %v18049_v22, %s12880_s30  ;;  %v18115_v11 = vsel %vm1373_vm4, %v8178_v51, %v19238_v8  ;;  %v11752_v2 = vcombine.low %v8996_v17, %v12859_v25  ;;  %v19241_v39 = vld [vmem:[#allocation63_spill] sm:$0xff]  ;;  %v8621_v20 = vshrl.u32 %v8514_v52, 16 }
 0x723   : > { %v8619_v47 = vor.u32 %v8618_v29, %v8615_v28  ;;  %v10052_v4 = vshrl.u32 %v9951_v23, 16  ;;  %v10055_v19 = vshll.u32 %v9951_v23, 16  ;;  %9788 = vrot.lane.b32.xlu1 %v18089_v62, %s12880_s30  ;;  %v18136_v28 = vsel %vm1373_vm4, %v9617_v3, %v19241_v39  ;;  %v19249_v57 = vld [vmem:[#allocation3_spill] sm:$0xff] }
 0x724   : > { %v18097_v60 = vpop.permute.xlu0 %9762  ;;  %v9620_v29 = vsel %vm1282_vm3, %v11752_v2, %v19242_v26  ;;  %v8624_v7 = vshll.u32 %v8514_v52, 16  ;;  %v8454_v52 = vsel %vm1608_vm7, %v19249_v57, %v18075_v45 }
 0x725   : > { %v10054_v56 = vrot.slane %v10052_v4, 3  ;;  %v10057_v63 = vrot.slane %v10055_v19, 4  ;;  %v8322_v61 = vpop.permute.xlu1 %8321  ;;  %v8620_v0 = vsel %vm1738_vm8, %v8612_v12, %v8619_v47  ;;  %v9889_v12 = vsel %vm1608_vm7, %v19243_v15, %v18055_v34  ;;  %v19245_v19 = vld [vmem:[#allocation27_spill] sm:$0xff]  ;;  %v19246_v34 = vld [vmem:[#allocation32_spill] sm:$0xff] }
 0x726   : > { %12358 = vmatmul.mubr.msk.bf16.gmra.mxu1 %vm2022_vm9, %v8620_v0  ;;  %9790 = vrot.lane.b32.xlu0 %v18070_v38, %s12880_s30  ;;  %v8452_v23 = vsel %vm1608_vm7, %v19244_v49, %v8322_v61  ;;  %v8623_v0 = vrot.slane %v8621_v20, 3  ;;  %v8626_v9 = vrot.slane %v8624_v7, 4  ;;  %v11649_v61 = vcombine.low %v19246_v34, %v19246_v34  ;;  %v19252_v7 = vld [vmem:[#allocation15_spill] sm:$0xff] }
 0x727   : > { %v10058_v5 = vor.u32 %v10057_v63, %v10054_v56  ;;  %9850 = vrot.lane.b32.xlu1 %v18089_v62, %s12881_s16  ;;  %v18153_v56 = vsel %vm1373_vm4, %v9620_v29, %v19245_v19  ;;  %v8999_v63 = vld [vmem:[#allocation2 + $0xf0] sm:$0x8]  ;;  %v19251_v29 = vld [vmem:[#allocation23_spill] sm:$0xff] }
 0x728   : > { %v9825_v35 = vpop.permute.xlu0 %9824  ;;  %v8183_v17 = vsel %vm1282_vm3, %v11649_v61, %v19237_v27  ;;  %v11754_v14 = vcombine.low %v8999_v63, %v12860_v32  ;;  %v8627_v3 = vor.u32 %v8626_v9, %v8623_v0  ;;  %v19250_v27 = vld [vmem:[#allocation61_spill] sm:$0xff]  ;;  %v19255_v61 = vld [vmem:[#allocation39_spill] sm:$0xff] }
 0x729   : > { %v9761_v54 = vpop.permute.xlu1 %9760  ;;  %v10059_v43 = vsel %vm1738_vm8, %v10051_v18, %v10058_v5  ;;  %v9953_v47 = vsel %vm1673_vm6, %v9889_v12, %v9825_v35  ;;  %v11650_v18 = vcombine.low %v7560_v16, %v19247_v46  ;;  %v18178_v39 = vsel %vm1373_vm4, %v8183_v17, %v19250_v27  ;;  %v19253_v16 = vld [vmem:[#allocation62_spill] sm:$0xff] }
 0x72a   : > { %12316 = vmatmul.mubr.msk.bf16.gmra.mxu0 %vm2022_vm9, %v10059_v43  ;;  %8355 = vrot.lane.b32.xlu0 %v18119_v13, %s12880_s30  ;;  %v10060_v5 = vshrl.u32 %v9953_v47, 16  ;;  %v10063_v51 = vshll.u32 %v9953_v47, 16  ;;  %v9625_v45 = vsel %vm1282_vm3, %v11754_v14, %v19252_v7  ;;  %v19254_v47 = vld [vmem:[#allocation60_spill] sm:$0xff] }
 0x72b   : > { %8415 = vrot.lane.b32.xlu1 %v18115_v11, %s12881_s16  ;;  %v8186_v30 = vsel %vm1282_vm3, %v11650_v18, %v19248_v24  ;;  %v19256_v18 = vld [vmem:[#allocation18_spill] sm:$0xff] }
 0x72c   : > { %v8390_v6 = vpop.permute.xlu0 %8389  ;;  %v18182_v20 = vsel %vm1373_vm4, %v8186_v30, %v19251_v29  ;;  %v10062_v15 = vrot.slane %v10060_v5, 3  ;;  %v10065_v12 = vrot.slane %v10063_v51, 4 }
 0x72d   : > { %v18132_v58 = vpop.permute.xlu1 %8325  ;;  %v8518_v25 = vsel %vm1673_vm6, %v8454_v52, %v8390_v6  ;;  %v9891_v6 = vsel %vm1608_vm7, %v19253_v16, %v9761_v54 }
 0x72e   : > { %8417 = vrot.lane.b32.xlu0 %v18119_v13, %s12881_s16  ;;  %v8636_v19 = vshrl.u32 %v8518_v25, 16  ;;  %v8639_v63 = vshll.u32 %v8518_v25, 16  ;;  %v10066_v46 = vor.u32 %v10065_v12, %v10062_v15  ;;  %v8456_v5 = vsel %vm1608_vm7, %v19256_v18, %v18132_v58  ;;  %v19258_v12 = vld [vmem:[#allocation17_spill] sm:$0xff]  ;;  %v19260_v18 = vld [vmem:[#allocation16_spill] sm:$0xff] }
 0x72f   : > { %9854 = vrot.lane.b32.xlu1 %v18136_v28, %s12881_s16 }
 0x730   : > { %v9829_v33 = vpop.permute.xlu0 %9828  ;;  %v8638_v17 = vrot.slane %v8636_v19, 3  ;;  %v8641_v30 = vrot.slane %v8639_v63, 4 }
 0x731   : > { %v8388_v40 = vpop.permute.xlu1 %8387 }
 0x732   : > { %v8516_v4 = vsel %vm1673_vm6, %v8452_v23, %v8388_v40  ;;  %9794 = vrot.lane.b32.xlu0 %v18153_v56, %s12880_s30 }
 0x733   : > { %v8628_v44 = vshrl.u32 %v8516_v4, 16  ;;  %v8631_v1 = vshll.u32 %v8516_v4, 16  ;;  %8353 = vrot.lane.b32.xlu1 %v18115_v11, %s12880_s30  ;;  %v9893_v4 = vsel %vm1608_vm7, %v19254_v47, %v18097_v60  ;;  %v18203_v60 = vsel %vm1373_vm4, %v9625_v45, %v19255_v61  ;;  %v19259_v61 = vld [vmem:[#allocation48_spill] sm:$0xff] }
 0x734   : > { %v18162_v8 = vpop.permute.xlu0 %8327  ;;  %v9957_v9 = vsel %vm1673_vm6, %v9893_v4, %v9829_v33 }
 0x735   : > { %v8630_v31 = vrot.slane %v8628_v44, 3  ;;  %v8633_v35 = vrot.slane %v8631_v1, 4  ;;  %v9765_v43 = vpop.permute.xlu1 %9764  ;;  %v12861_v1 = vld [vmem:[#allocation2 + $0xe8] sm:$0xf]  ;;  %v10075_v32 = vshrl.u32 %v9957_v9, 16  ;;  %v10078_v57 = vshll.u32 %v9957_v9, 16 }
 0x736   : > { %9856 = vrot.lane.b32.xlu0 %v18153_v56, %s12881_s16  ;;  %v11753_v34 = vcombine.low %v12861_v1, %v12861_v1 }
 0x737   : > { %v8634_v2 = vor.u32 %v8633_v35, %v8630_v31  ;;  %9792 = vrot.lane.b32.xlu1 %v18136_v28, %s12880_s30  ;;  %v10077_v47 = vrot.slane %v10075_v32, 3  ;;  %v10080_v19 = vrot.slane %v10078_v57, 4 }
 0x738   : > { %v18188_v23 = vpop.permute.xlu0 %9766  ;;  %v9622_v58 = vsel %vm1282_vm3, %v11753_v34, %v19242_v26  ;;  %v7563_v26 = vld [vmem:[#allocation2 + $0x100] sm:$0x8] }
 0x739   : > { %v9827_v49 = vpop.permute.xlu1 %9826  ;;  %v8635_v40 = vsel %vm1738_vm8, %v8627_v3, %v8634_v2  ;;  %v19257_v2 = vld [vmem:[#allocation41_spill] sm:$0xff] }
 0x73a   : > { %v9955_v0 = vsel %vm1673_vm6, %v9891_v6, %v9827_v49  ;;  %12361 = vmatprep.mubr.msk.bf16.mxu1 %vm2022_vm9, %v8635_v40  ;;  %8421 = vrot.lane.b32.xlu0 %v18182_v20, %s12881_s16  ;;  %v9895_v27 = vsel %vm1608_vm7, %v19257_v2, %v9765_v43  ;;  %v18222_v49 = vsel %vm1373_vm4, %v9622_v58, %v19258_v12  ;;  %v9002_v2 = vld [vmem:[#allocation2 + $0x100] sm:$0x8]  ;;  %v12863_v12 = vld [vmem:[#allocation2 + $0x104] sm:$0xf] }
 0x73b   : > { %v10067_v54 = vshrl.u32 %v9955_v0, 16  ;;  %v10070_v44 = vshll.u32 %v9955_v0, 16  ;;  %8357 = vrot.lane.b32.xlu1 %v18178_v39, %s12880_s30  ;;  %v8642_v40 = vor.u32 %v8641_v30, %v8638_v17  ;;  %v19261_v17 = vld [vmem:[#allocation31_spill] sm:$0xff] }
 0x73c   : > { %v18208_v35 = vpop.permute.xlu0 %8331 }
 0x73d   : > { %v10069_v33 = vrot.slane %v10067_v54, 3  ;;  %v10072_v51 = vrot.slane %v10070_v44, 4  ;;  %v8392_v31 = vpop.permute.xlu1 %8391 }
 0x73e   : > { %v8520_v14 = vsel %vm1673_vm6, %v8456_v5, %v8392_v31  ;;  %9860 = vrot.lane.b32.xlu0 %v18203_v60, %s12881_s16  ;;  %v11651_v5 = vcombine.low %v19260_v18, %v19260_v18  ;;  %v19269_v18 = vld [vmem:[#allocation36_spill] sm:$0xff] }
 0x73f   : > { %v10073_v52 = vor.u32 %v10072_v51, %v10069_v33  ;;  %v8643_v3 = vshrl.u32 %v8520_v14, 16  ;;  %v8646_v25 = vshll.u32 %v8520_v14, 16  ;;  %8419 = vrot.lane.b32.xlu1 %v18178_v39, %s12881_s16  ;;  %v10081_v33 = vor.u32 %v10080_v19, %v10077_v47 }
 0x740   : > { %v8394_v6 = vpop.permute.xlu0 %8393  ;;  %v8188_v31 = vsel %vm1282_vm3, %v11651_v5, %v19248_v24  ;;  %v19264_v24 = vld [vmem:[#allocation6_spill] sm:$0xff] }
 0x741   : > { %v8645_v29 = vrot.slane %v8643_v3, 3  ;;  %v8648_v45 = vrot.slane %v8646_v25, 4  ;;  %v9831_v16 = vpop.permute.xlu1 %9830  ;;  %v10074_v15 = vsel %vm1738_vm8, %v10066_v46, %v10073_v52  ;;  %v11652_v46 = vcombine.low %v7563_v26, %v19259_v61  ;;  %v19262_v52 = vld [vmem:[#allocation43_spill] sm:$0xff]  ;;  %v19263_v25 = vld [vmem:[#allocation14_spill] sm:$0xff]  ;;  %v19265_v26 = vld [vmem:[#allocation24_spill] sm:$0xff] }
 0x742   : > { %v9959_v4 = vsel %vm1673_vm6, %v9895_v27, %v9831_v16  ;;  %12319 = vmatprep.mubr.msk.bf16.mxu0 %vm2022_vm9, %v10074_v15  ;;  %8359 = vrot.lane.b32.xlu0 %v18182_v20, %s12880_s30  ;;  %v18248_v3 = vsel %vm1373_vm4, %v8188_v31, %v19262_v52  ;;  %v12862_v27 = vld [vmem:[#allocation2 + $0xf8] sm:$0xf] }
 0x743   : > { %v8649_v63 = vor.u32 %v8648_v45, %v8645_v29  ;;  %v10082_v43 = vshrl.u32 %v9959_v4, 16  ;;  %v10085_v0 = vshll.u32 %v9959_v4, 16  ;;  %9796 = vrot.lane.b32.xlu1 %v18222_v49, %s12880_s30  ;;  %v8191_v30 = vsel %vm1282_vm3, %v11652_v46, %v19261_v17 }
 0x744   : > { %v18230_v1 = vpop.permute.xlu0 %9770  ;;  %v8264_v58 = vsel %vm1373_vm4, %v8191_v30, %v19263_v25  ;;  %v11755_v29 = vcombine.low %v12862_v27, %v12862_v27  ;;  %v8458_v45 = vsel %vm1608_vm7, %v19264_v24, %v18162_v8  ;;  %v19266_v8 = vld [vmem:[#allocation25_spill] sm:$0xff] }
 0x745   : > { %v10084_v9 = vrot.slane %v10082_v43, 3  ;;  %v10087_v54 = vrot.slane %v10085_v0, 4  ;;  %v8330_v44 = vpop.permute.xlu1 %8329  ;;  %v8650_v34 = vsel %vm1738_vm8, %v8642_v40, %v8649_v63  ;;  %v8522_v16 = vsel %vm1673_vm6, %v8458_v45, %v8394_v6  ;;  %v7566_v43 = vld [vmem:[#allocation2 + $0x110] sm:$0x8] }
 0x746   : > { %12362 = vmatmul.mubr.msk.bf16.gmra.mxu1 %vm2022_vm9, %v8650_v34  ;;  %9798 = vrot.lane.b32.xlu0 %v18203_v60, %s12880_s30  ;;  %v9627_v15 = vsel %vm1282_vm3, %v11755_v29, %v19252_v7  ;;  %v11756_v40 = vcombine.low %v9002_v2, %v12863_v12  ;;  %v8651_v0 = vshrl.u32 %v8522_v16, 16  ;;  %v19267_v7 = vld [vmem:[#allocation7_spill] sm:$0xff]  ;;  %v19271_v12 = vld [vmem:[#allocation64_spill] sm:$0xff] }
 0x747   : > { %v10088_v51 = vor.u32 %v10087_v54, %v10084_v9  ;;  %9858 = vrot.lane.b32.xlu1 %v18222_v49, %s12881_s16  ;;  %v18266_v19 = vsel %vm1373_vm4, %v9627_v15, %v19265_v26  ;;  %v8654_v9 = vshll.u32 %v8522_v16, 16  ;;  %v9897_v6 = vsel %vm1608_vm7, %v19267_v7, %v18188_v23  ;;  %v19268_v54 = vld [vmem:[#allocation45_spill] sm:$0xff] }
 0x748   : > { %v9833_v14 = vpop.permute.xlu0 %9832  ;;  %v9630_v63 = vsel %vm1282_vm3, %v11756_v40, %v19266_v8  ;;  %v8460_v34 = vsel %vm1608_vm7, %v19268_v54, %v8330_v44  ;;  %v8653_v52 = vrot.slane %v8651_v0, 3  ;;  %v19270_v23 = vld [vmem:[#allocation33_spill] sm:$0xff]  ;;  %v19273_v54 = vld [vmem:[#allocation11_spill] sm:$0xff] }
 0x749   : > { %v9769_v32 = vpop.permute.xlu1 %9768  ;;  %v10089_v57 = vsel %vm1738_vm8, %v10081_v33, %v10088_v51  ;;  %v9703_v5 = vsel %vm1373_vm4, %v9630_v63, %v19269_v18  ;;  %v12864_v33 = vld [vmem:[#allocation2 + $0x114] sm:$0xf]  ;;  %v9961_v31 = vsel %vm1673_vm6, %v9897_v6, %v9833_v14  ;;  %v8656_v25 = vrot.slane %v8654_v9, 4 }
 0x74a   : > { %12320 = vmatmul.mubr.msk.bf16.gmra.mxu0 %vm2022_vm9, %v10089_v57  ;;  %8363 = vrot.lane.b32.xlu0 %v8264_v58, %s12880_s30  ;;  %v11654_v51 = vcombine.low %v7566_v43, %v12864_v33  ;;  %v9005_v57 = vld [vmem:[#allocation2 + $0x110] sm:$0x8]  ;;  %v11653_v44 = vcombine.low %v19270_v23, %v19270_v23  ;;  %v10090_v27 = vshrl.u32 %v9961_v31, 16  ;;  %v10093_v29 = vshll.u32 %v9961_v31, 16  ;;  %v12865_v26 = vld [vmem:[#allocation2 + $0x114] sm:$0xf] }
 0x74b   : > { %8423 = vrot.lane.b32.xlu1 %v18248_v3, %s12881_s16  ;;  %v11758_v63 = vcombine.low %v9005_v57, %v12865_v26  ;;  %v19272_v43 = vld [vmem:[#allocation12_spill] sm:$0xff]  ;;  %v8657_v9 = vor.u32 %v8656_v25, %v8653_v52  ;;  %v19275_v18 = vld [vmem:[#allocation49_spill] sm:$0xff] }
 0x74c   : > { %v8398_v4 = vpop.permute.xlu0 %8397  ;;  %v8193_v15 = vsel %vm1282_vm3, %v11653_v44, %v19261_v17  ;;  %v8196_v40 = vsel %vm1282_vm3, %v11654_v51, %v19271_v12  ;;  %v8462_v0 = vsel %vm1608_vm7, %v19272_v43, %v18208_v35  ;;  %v9899_v33 = vsel %vm1608_vm7, %v19275_v18, %v9769_v32  ;;  %v19276_v57 = vld [vmem:[#allocation44_spill] sm:$0xff] }
 0x74d   : > { %v18262_v47 = vpop.permute.xlu1 %8333  ;;  %v8526_v7 = vsel %vm1673_vm6, %v8462_v0, %v8398_v4  ;;  %v8266_v17 = vsel %vm1373_vm4, %v8193_v15, %v19273_v54  ;;  %v10092_v51 = vrot.slane %v10090_v27, 3  ;;  %v10095_v35 = vrot.slane %v10093_v29, 4  ;;  %v12866_v29 = vld [vmem:[#allocation2 + $0x108] sm:$0xf] }
 0x74e   : > { %8425 = vrot.lane.b32.xlu0 %v8264_v58, %s12881_s16  ;;  %v8666_v52 = vshrl.u32 %v8526_v7, 16  ;;  %v8669_v25 = vshll.u32 %v8526_v7, 16 }
 0x74f   : > { %9862 = vrot.lane.b32.xlu1 %v18266_v19, %s12881_s16  ;;  %v10096_v15 = vor.u32 %v10095_v35, %v10092_v51  ;;  %v19280_v51 = vld [vmem:[#allocation54_spill] sm:$0xff] }
 0x750   : > { %v9837_v46 = vpop.permute.xlu0 %9836  ;;  %v8671_v7 = vrot.slane %v8669_v25, 4  ;;  %v19281_v25 = vld [vmem:[#allocation67_spill] sm:$0xff] }
 0x751   : > { %v8396_v61 = vpop.permute.xlu1 %8395 }
 0x752   : > { %v8524_v30 = vsel %vm1673_vm6, %v8460_v34, %v8396_v61  ;;  %9802 = vrot.lane.b32.xlu0 %v9703_v5, %s12880_s30  ;;  %v19274_v34 = vld [vmem:[#allocation35_spill] sm:$0xff] }
 0x753   : > { %v8658_v58 = vshrl.u32 %v8524_v30, 16  ;;  %v8661_v2 = vshll.u32 %v8524_v30, 16  ;;  %8361 = vrot.lane.b32.xlu1 %v18248_v3, %s12880_s30  ;;  %v8268_v61 = vsel %vm1373_vm4, %v8196_v40, %v19274_v34  ;;  %v19279_v40 = vld [vmem:[#allocation50_spill] sm:$0xff] }
 0x754   : > { %v18287_v16 = vpop.permute.xlu0 %8335  ;;  %v8464_v26 = vsel %vm1608_vm7, %v19279_v40, %v18262_v47 }
 0x755   : > { %v8660_v24 = vrot.slane %v8658_v58, 3  ;;  %v8663_v45 = vrot.slane %v8661_v2, 4  ;;  %v9773_v14 = vpop.permute.xlu1 %9772  ;;  %v19277_v2 = vld [vmem:[#allocation66_spill] sm:$0xff] }
 0x756   : > { %9864 = vrot.lane.b32.xlu0 %v9703_v5, %s12881_s16  ;;  %v9901_v5 = vsel %vm1608_vm7, %v19276_v57, %v18230_v1  ;;  %v9635_v32 = vsel %vm1282_vm3, %v11758_v63, %v19277_v2  ;;  %v19278_v1 = vld [vmem:[#allocation68_spill] sm:$0xff]  ;;  %v9903_v35 = vsel %vm1608_vm7, %v19280_v51, %v9773_v14  ;;  %v12867_v14 = vld [vmem:[#allocation2 + $0x118] sm:$0xf] }
 0x757   : > { %v8664_v6 = vor.u32 %v8663_v45, %v8660_v24  ;;  %9800 = vrot.lane.b32.xlu1 %v18266_v19, %s12880_s30  ;;  %v9965_v23 = vsel %vm1673_vm6, %v9901_v5, %v9837_v46  ;;  %v11757_v24 = vcombine.low %v12866_v29, %v12866_v29  ;;  %v9707_v45 = vsel %vm1373_vm4, %v9635_v32, %v19278_v1 }
 0x758   : > { %v18306_v30 = vpop.permute.xlu0 %9774  ;;  %v10108_v34 = vshll.u32 %v9965_v23, 16 }
 0x759   : > { %v9835_v31 = vpop.permute.xlu1 %9834  ;;  %v8665_v4 = vsel %vm1738_vm8, %v8657_v9, %v8664_v6  ;;  %v8668_v9 = vrot.slane %v8666_v52, 3  ;;  %v10105_v6 = vshrl.u32 %v9965_v23, 16  ;;  %v9632_v47 = vsel %vm1282_vm3, %v11757_v24, %v19266_v8 }
 0x75a   : > { %v9963_v58 = vsel %vm1673_vm6, %v9899_v33, %v9835_v31  ;;  %12365 = vmatprep.mubr.msk.bf16.mxu1 %vm2022_vm9, %v8665_v4  ;;  %8429 = vrot.lane.b32.xlu0 %v8268_v61, %s12881_s16  ;;  %v11655_v24 = vcombine.low %v12867_v14, %v12867_v14 }
 0x75b   : > { %v10097_v44 = vshrl.u32 %v9963_v58, 16  ;;  %v10100_v27 = vshll.u32 %v9963_v58, 16  ;;  %8365 = vrot.lane.b32.xlu1 %v8266_v17, %s12880_s30  ;;  %v9705_v58 = vsel %vm1373_vm4, %v9632_v47, %v19281_v25  ;;  %v8672_v32 = vor.u32 %v8671_v7, %v8668_v9  ;;  %v12868_v9 = vld [vmem:[#allocation2 + $0x118] sm:$0xf] }
 0x75c   : > { %v18324_v46 = vpop.permute.xlu0 %8339  ;;  %v10107_v23 = vrot.slane %v10105_v6, 3  ;;  %v11759_v7 = vcombine.low %v12868_v9, %v12868_v9 }
 0x75d   : > { %v10099_v43 = vrot.slane %v10097_v44, 3  ;;  %v10102_v63 = vrot.slane %v10100_v27, 4  ;;  %v8400_v0 = vpop.permute.xlu1 %8399  ;;  %v10110_v44 = vrot.slane %v10108_v34, 4 }
 0x75e   : > { %v8528_v54 = vsel %vm1673_vm6, %v8464_v26, %v8400_v0  ;;  %9868 = vrot.lane.b32.xlu0 %v9707_v45, %s12881_s16  ;;  %v8198_v0 = vsel %vm1282_vm3, %v11655_v24, %v19271_v12  ;;  %v9637_v12 = vsel %vm1282_vm3, %v11759_v7, %v19277_v2 }
 0x75f   : > { %v10103_v61 = vor.u32 %v10102_v63, %v10099_v43  ;;  %v8673_v18 = vshrl.u32 %v8528_v54, 16  ;;  %v8676_v33 = vshll.u32 %v8528_v54, 16  ;;  %8427 = vrot.lane.b32.xlu1 %v8266_v17, %s12881_s16  ;;  %v10111_v43 = vor.u32 %v10110_v44, %v10107_v23 }
 0x760   : > { %v8402_v5 = vpop.permute.xlu0 %8401 }
 0x761   : > { %v8675_v31 = vrot.slane %v8673_v18, 3  ;;  %v8678_v4 = vrot.slane %v8676_v33, 4  ;;  %v9839_v57 = vpop.permute.xlu1 %9838  ;;  %v10104_v52 = vsel %vm1738_vm8, %v10096_v15, %v10103_v61  ;;  %v19282_v61 = vld [vmem:[#allocation28_spill] sm:$0xff]  ;;  %v19283_v33 = vld [vmem:[#allocation65_spill] sm:$0xff] }
 0x762   : > { %v9967_v17 = vsel %vm1673_vm6, %v9903_v35, %v9839_v57  ;;  %12323 = vmatprep.mubr.msk.bf16.mxu0 %vm2022_vm9, %v10104_v52  ;;  %v8270_v18 = vsel %vm1373_vm4, %v8198_v0, %v19282_v61  ;;  %v8466_v47 = vsel %vm1608_vm7, %v19283_v33, %v18287_v16 }
 0x763   : > { %v8679_v8 = vor.u32 %v8678_v4, %v8675_v31  ;;  %v10112_v27 = vshrl.u32 %v9967_v17, 16  ;;  %v10115_v29 = vshll.u32 %v9967_v17, 16  ;;  %9804 = vrot.lane.b32.xlu1 %v9705_v58, %s12880_s30  ;;  %v8530_v51 = vsel %vm1673_vm6, %v8466_v47, %v8402_v5  ;;  %v19284_v4 = vld [vmem:[#allocation70_spill] sm:$0xff] }
 0x764   : > { %v9779_v40 = vpop.permute.xlu0 %9778  ;;  %v9709_v57 = vsel %vm1373_vm4, %v9637_v12, %v19284_v4  ;;  %v8681_v52 = vshrl.u32 %v8530_v51, 16  ;;  %v8684_v25 = vshll.u32 %v8530_v51, 16  ;;  %v19289_v4 = vld [vmem:[#allocation53_spill] sm:$0xff] }
 0x765   : > { %v10114_v1 = vrot.slane %v10112_v27, 3  ;;  %v10117_v45 = vrot.slane %v10115_v29, 4  ;;  %v8338_v15 = vpop.permute.xlu1 %8337  ;;  %v8680_v26 = vsel %vm1738_vm8, %v8672_v32, %v8679_v8  ;;  %v19286_v32 = vld [vmem:[#allocation5_spill] sm:$0xff] }
 0x766   : > { %12366 = vmatmul.mubr.msk.bf16.gmra.mxu1 %vm2022_vm9, %v8680_v26  ;;  %v8468_v23 = vsel %vm1608_vm7, %v19286_v32, %v8338_v15  ;;  %v8683_v8 = vrot.slane %v8681_v52, 3  ;;  %v8686_v27 = vrot.slane %v8684_v25, 4  ;;  %v19287_v15 = vld [vmem:[#allocation26_spill] sm:$0xff]  ;;  %v19290_v32 = vld [vmem:[#allocation19_spill] sm:$0xff] }
 0x767   : > { %v10118_v63 = vor.u32 %v10117_v45, %v10114_v1  ;;  %9866 = vrot.lane.b32.xlu1 %v9705_v58, %s12881_s16  ;;  %v19285_v58 = vld [vmem:[#allocation69_spill] sm:$0xff]  ;;  %v8470_v0 = vsel %vm1608_vm7, %v19287_v15, %v18324_v46 }
 0x768   : > { %v9841_v54 = vpop.permute.xlu0 %9840  ;;  %v9905_v16 = vsel %vm1608_vm7, %v19285_v58, %v18306_v30  ;;  %v12754_v30 = vld [vmem:[%s18673_s13] sm:$0xff]   ;;  %v8687_v9 = vor.u32 %v8686_v27, %v8683_v8 }
 0x769   : > { %v9777_v6 = vpop.permute.xlu1 %9776  ;;  %v10119_v34 = vsel %vm1738_vm8, %v10111_v43, %v10118_v63  ;;  %v9969_v2 = vsel %vm1673_vm6, %v9905_v16, %v9841_v54  ;;  %12385 = vmatprep.subr.bf16.mxu0 %v12754_v30 }
 0x76a   : > { %12324 = vmatmul.mubr.msk.bf16.gmra.mxu0 %vm2022_vm9, %v10119_v34  ;;  %v10120_v24 = vshrl.u32 %v9969_v2, 16  ;;  %v10123_v1 = vshll.u32 %v9969_v2, 16  ;;  %v19288_v34 = vld [vmem:[#allocation71_spill] sm:$0xff] }
 0x76b   : > { %8431 = vrot.lane.b32.xlu1 %v8270_v18, %s12881_s16  ;;  %12386 = vmatpush3.bf16.msra.mxu0 %v12754_v30  ;;  %v9907_v61 = vsel %vm1608_vm7, %v19288_v34, %v9777_v6 }
 0x76c   : > { %v8406_v31 = vpop.permute.xlu0 %8405  ;;  %v10122_v18 = vrot.slane %v10120_v24, 3  ;;  %v10125_v33 = vrot.slane %v10123_v1, 4 }
 0x76d   : > { %v8342_v35 = vpop.permute.xlu1 %8341  ;;  %v8534_v7 = vsel %vm1673_vm6, %v8470_v0, %v8406_v31 }
 0x76e   : > { %v8696_v52 = vshrl.u32 %v8534_v7, 16  ;;  %v8699_v46 = vshll.u32 %v8534_v7, 16  ;;  %v10126_v6 = vor.u32 %v10125_v33, %v10122_v18 }
 0x76f   : > { %9870 = vrot.lane.b32.xlu1 %v9709_v57, %s12881_s16  ;;  %v9909_v57 = vsel %vm1608_vm7, %v19289_v4, %v9779_v40 }
 0x770   : > { %v9845_v17 = vpop.permute.xlu0 %9844  ;;  %v8698_v27 = vrot.slane %v8696_v52, 3  ;;  %v8701_v40 = vrot.slane %v8699_v46, 4 }
 0x771   : > { %v8404_v5 = vpop.permute.xlu1 %8403  ;;  %v9973_v31 = vsel %vm1673_vm6, %v9909_v57, %v9845_v17 }
 0x772   : > { %v8532_v44 = vsel %vm1673_vm6, %v8468_v23, %v8404_v5  ;;  %v8472_v23 = vsel %vm1608_vm7, %v19290_v32, %v8342_v35  ;;  %v10138_v24 = vshll.u32 %v9973_v31, 16  ;;  %v8702_v7 = vor.u32 %v8701_v40, %v8698_v27 }
 0x773   : > { %v8688_v29 = vshrl.u32 %v8532_v44, 16  ;;  %v8691_v14 = vshll.u32 %v8532_v44, 16 }
 0x774   : > { %v18365_v63 = vpop.permute.xlu0 %8343 }
 0x775   : > { %v8690_v45 = vrot.slane %v8688_v29, 3  ;;  %v8693_v26 = vrot.slane %v8691_v14, 4  ;;  %v9781_v43 = vpop.permute.xlu1 %9780  ;;  %v10135_v29 = vshrl.u32 %v9973_v31, 16 }
 0x776   : > { %v9911_v17 = vsel %vm1608_vm7, %v17860_v55, %v9781_v43 }
 0x777   : > { %v8694_v54 = vor.u32 %v8693_v26, %v8690_v45 }
 0x778   : > { %v9783_v51 = vpop.permute.xlu0 %9782 }
 0x779   : > { %v9843_v47 = vpop.permute.xlu1 %9842  ;;  %v8695_v12 = vsel %vm1738_vm8, %v8687_v9, %v8694_v54  ;;  %v10137_v54 = vrot.slane %v10135_v29, 3  ;;  %v9913_v27 = vsel %vm1608_vm7, %v17883_v21, %v9783_v51 }
 0x77a   : > { %v9971_v25 = vsel %vm1673_vm6, %v9907_v61, %v9843_v47  ;;  %12369 = vmatprep.mubr.msk.bf16.mxu1 %vm2022_vm9, %v8695_v12  ;;  %v10140_v61 = vrot.slane %v10138_v24, 4 }
 0x77b   : > { %v10127_v58 = vshrl.u32 %v9971_v25, 16  ;;  %v10130_v16 = vshll.u32 %v9971_v25, 16 }
 0x77c   : > { %v8348_v8 = vpop.permute.xlu0 %8347  ;;  %v10141_v52 = vor.u32 %v10140_v61, %v10137_v54 }
 0x77d   : > { %v10129_v5 = vrot.slane %v10127_v58, 3  ;;  %v10132_v2 = vrot.slane %v10130_v16, 4  ;;  %v8408_v44 = vpop.permute.xlu1 %8407  ;;  %v19291_v16 = vld [vmem:[#allocation9_spill] sm:$0xff]  ;;  %v8478_v21 = vsel %vm1608_vm7, %v17914_v53, %v8348_v8 }
 0x77e   : > { %v8536_v14 = vsel %vm1673_vm6, %v8472_v23, %v8408_v44 }
 0x77f   : > { %v10133_v1 = vor.u32 %v10132_v2, %v10129_v5  ;;  %v8703_v45 = vshrl.u32 %v8536_v14, 16  ;;  %v8706_v26 = vshll.u32 %v8536_v14, 16 }
 0x780   : > { %v8410_v35 = vpop.permute.xlu0 %8409 }
 0x781   : > { %v8705_v30 = vrot.slane %v8703_v45, 3  ;;  %v8708_v15 = vrot.slane %v8706_v26, 4  ;;  %v9847_v0 = vpop.permute.xlu1 %9846  ;;  %v10134_v9 = vsel %vm1738_vm8, %v10126_v6, %v10133_v1  ;;  %v8474_v6 = vsel %vm1608_vm7, %v19291_v16, %v18365_v63 }
 0x782   : > { %v9975_v34 = vsel %vm1673_vm6, %v9911_v17, %v9847_v0  ;;  %12327 = vmatprep.mubr.msk.bf16.mxu0 %vm2022_vm9, %v10134_v9  ;;  %v8538_v32 = vsel %vm1673_vm6, %v8474_v6, %v8410_v35 }
 0x783   : > { %v8709_v18 = vor.u32 %v8708_v15, %v8705_v30  ;;  %v10142_v33 = vshrl.u32 %v9975_v34, 16  ;;  %v10145_v47 = vshll.u32 %v9975_v34, 16  ;;  %v8711_v2 = vshrl.u32 %v8538_v32, 16 }
 0x784   : > { %v9787_v55 = vpop.permute.xlu0 %9786  ;;  %v8714_v44 = vshll.u32 %v8538_v32, 16 }
 0x785   : > { %v10144_v12 = vrot.slane %v10142_v33, 3  ;;  %v10147_v4 = vrot.slane %v10145_v47, 4  ;;  %v8346_v57 = vpop.permute.xlu1 %8345  ;;  %v8710_v43 = vsel %vm1738_vm8, %v8702_v7, %v8709_v18  ;;  %v8713_v45 = vrot.slane %v8711_v2, 3 }
 0x786   : > { %12370 = vmatmul.mubr.msk.bf16.gmra.mxu1 %vm2022_vm9, %v8710_v43  ;;  %v8476_v40 = vsel %vm1608_vm7, %v17910_v48, %v8346_v57  ;;  %v8716_v63 = vrot.slane %v8714_v44, 4 }
 0x787   : > { %v10148_v46 = vor.u32 %v10147_v4, %v10144_v12  ;;  %v9917_v4 = vsel %vm1608_vm7, %v17937_v59, %v9787_v55 }
 0x788   : > { %v9849_v31 = vpop.permute.xlu0 %9848  ;;  %v8717_v48 = vor.u32 %v8716_v63, %v8713_v45 }
 0x789   : > { %v9785_v25 = vpop.permute.xlu1 %9784  ;;  %v10149_v58 = vsel %vm1738_vm8, %v10141_v52, %v10148_v46  ;;  %v9977_v24 = vsel %vm1673_vm6, %v9913_v27, %v9849_v31 }
 0x78a   : > { %12328 = vmatmul.mubr.msk.bf16.gmra.mxu0 %vm2022_vm9, %v10149_v58  ;;  %v10150_v30 = vshrl.u32 %v9977_v24, 16  ;;  %v10153_v15 = vshll.u32 %v9977_v24, 16  ;;  %v9915_v34 = vsel %vm1608_vm7, %v17956_v41, %v9785_v25 }
 0x78c   : > { %v8414_v5 = vpop.permute.xlu0 %8413  ;;  %v10152_v61 = vrot.slane %v10150_v30, 3  ;;  %v10155_v18 = vrot.slane %v10153_v15, 4 }
 0x78d   : > { %v8350_v23 = vpop.permute.xlu1 %8349  ;;  %v8542_v51 = vsel %vm1673_vm6, %v8478_v21, %v8414_v5 }
 0x78e   : > { %v8726_v57 = vshrl.u32 %v8542_v51, 16  ;;  %v8729_v43 = vshll.u32 %v8542_v51, 16  ;;  %v10156_v41 = vor.u32 %v10155_v18, %v10152_v61  ;;  %v8480_v25 = vsel %vm1608_vm7, %v17982_v36, %v8350_v23 }
 0x790   : > { %v9853_v14 = vpop.permute.xlu0 %9852  ;;  %v8728_v32 = vrot.slane %v8726_v57, 3  ;;  %v8731_v59 = vrot.slane %v8729_v43, 4 }
 0x791   : > { %v8412_v29 = vpop.permute.xlu1 %8411  ;;  %v9981_v8 = vsel %vm1673_vm6, %v9917_v4, %v9853_v14 }
 0x792   : > { %v8540_v1 = vsel %vm1673_vm6, %v8476_v40, %v8412_v29  ;;  %v10165_v55 = vshrl.u32 %v9981_v8, 16  ;;  %v10168_v2 = vshll.u32 %v9981_v8, 16  ;;  %v8732_v45 = vor.u32 %v8731_v59, %v8728_v32 }
 0x793   : > { %v8718_v26 = vshrl.u32 %v8540_v1, 16  ;;  %v8721_v17 = vshll.u32 %v8540_v1, 16 }
 0x794   : > { %v8352_v7 = vpop.permute.xlu0 %8351  ;;  %v10167_v63 = vrot.slane %v10165_v55, 3 }
 0x795   : > { %v8720_v0 = vrot.slane %v8718_v26, 3  ;;  %v8723_v35 = vrot.slane %v8721_v17, 4  ;;  %v9789_v9 = vpop.permute.xlu1 %9788  ;;  %v10170_v17 = vrot.slane %v10168_v2, 4 }
 0x796   : > { %v9919_v29 = vsel %vm1608_vm7, %v18003_v50, %v9789_v9 }
 0x797   : > { %v8724_v54 = vor.u32 %v8723_v35, %v8720_v0  ;;  %v10171_v51 = vor.u32 %v10170_v17, %v10167_v63 }
 0x798   : > { %v9791_v47 = vpop.permute.xlu0 %9790 }
 0x799   : > { %v9851_v33 = vpop.permute.xlu1 %9850  ;;  %v8725_v12 = vsel %vm1738_vm8, %v8717_v48, %v8724_v54  ;;  %v9921_v8 = vsel %vm1608_vm7, %v18020_v10, %v9791_v47 }
 0x79a   : > { %v9979_v53 = vsel %vm1673_vm6, %v9915_v34, %v9851_v33  ;;  %12373 = vmatprep.mubr.msk.bf16.mxu1 %vm2022_vm9, %v8725_v12  ;;  %v8482_v33 = vsel %vm1608_vm7, %v17986_v42, %v8352_v7 }
 0x79b   : > { %v10157_v52 = vshrl.u32 %v9979_v53, 16  ;;  %v10160_v46 = vshll.u32 %v9979_v53, 16 }
 0x79c   : > { %v8356_v6 = vpop.permute.xlu0 %8355 }
 0x79d   : > { %v10159_v31 = vrot.slane %v10157_v52, 3  ;;  %v10162_v58 = vrot.slane %v10160_v46, 4  ;;  %v8416_v16 = vpop.permute.xlu1 %8415  ;;  %v8486_v10 = vsel %vm1608_vm7, %v18049_v22, %v8356_v6 }
 0x79e   : > { %v8544_v5 = vsel %vm1673_vm6, %v8480_v25, %v8416_v16 }
 0x79f   : > { %v10163_v44 = vor.u32 %v10162_v58, %v10159_v31  ;;  %v8733_v27 = vshrl.u32 %v8544_v5, 16  ;;  %v8736_v40 = vshll.u32 %v8544_v5, 16 }
 0x7a0   : > { %v8418_v36 = vpop.permute.xlu0 %8417 }
 0x7a1   : > { %v8735_v14 = vrot.slane %v8733_v27, 3  ;;  %v8738_v24 = vrot.slane %v8736_v40, 4  ;;  %v9855_v1 = vpop.permute.xlu1 %9854  ;;  %v10164_v23 = vsel %vm1738_vm8, %v10156_v41, %v10163_v44  ;;  %v8546_v12 = vsel %vm1673_vm6, %v8482_v33, %v8418_v36 }
 0x7a2   : > { %v9983_v26 = vsel %vm1673_vm6, %v9919_v29, %v9855_v1  ;;  %12331 = vmatprep.mubr.msk.bf16.mxu0 %vm2022_vm9, %v10164_v23  ;;  %v8741_v43 = vshrl.u32 %v8546_v12, 16  ;;  %v8744_v53 = vshll.u32 %v8546_v12, 16 }
 0x7a3   : > { %v8739_v30 = vor.u32 %v8738_v24, %v8735_v14  ;;  %v10172_v15 = vshrl.u32 %v9983_v26, 16  ;;  %v10175_v0 = vshll.u32 %v9983_v26, 16 }
 0x7a4   : > { %v9795_v50 = vpop.permute.xlu0 %9794  ;;  %v8743_v58 = vrot.slane %v8741_v43, 3  ;;  %v8746_v42 = vrot.slane %v8744_v53, 4 }
 0x7a5   : > { %v10174_v35 = vrot.slane %v10172_v15, 3  ;;  %v10177_v21 = vrot.slane %v10175_v0, 4  ;;  %v8354_v48 = vpop.permute.xlu1 %8353  ;;  %v8740_v9 = vsel %vm1738_vm8, %v8732_v45, %v8739_v30  ;;  %v9925_v23 = vsel %vm1608_vm7, %v18070_v38, %v9795_v50 }
 0x7a6   : > { %12374 = vmatmul.mubr.msk.bf16.gmra.mxu1 %vm2022_vm9, %v8740_v9  ;;  %v8484_v52 = vsel %vm1608_vm7, %v18045_v37, %v8354_v48  ;;  %v8747_v37 = vor.u32 %v8746_v42, %v8743_v58 }
 0x7a7   : > { %v10178_v54 = vor.u32 %v10177_v21, %v10174_v35 }
 0x7a8   : > { %v9857_v61 = vpop.permute.xlu0 %9856 }
 0x7a9   : > { %v9793_v34 = vpop.permute.xlu1 %9792  ;;  %v10179_v18 = vsel %vm1738_vm8, %v10171_v51, %v10178_v54  ;;  %v9985_v25 = vsel %vm1673_vm6, %v9921_v8, %v9857_v61 }
 0x7aa   : > { %12332 = vmatmul.mubr.msk.bf16.gmra.mxu0 %vm2022_vm9, %v10179_v18  ;;  %v10180_v32 = vshrl.u32 %v9985_v25, 16  ;;  %v10183_v59 = vshll.u32 %v9985_v25, 16  ;;  %v9923_v40 = vsel %vm1608_vm7, %v18089_v62, %v9793_v34 }
 0x7ac   : > { %v8422_v57 = vpop.permute.xlu0 %8421  ;;  %v10182_v29 = vrot.slane %v10180_v32, 3  ;;  %v10185_v14 = vrot.slane %v10183_v59, 4 }
 0x7ad   : > { %v8358_v4 = vpop.permute.xlu1 %8357  ;;  %v8550_v47 = vsel %vm1673_vm6, %v8486_v10, %v8422_v57 }
 0x7ae   : > { %v8756_v45 = vshrl.u32 %v8550_v47, 16  ;;  %v8759_v63 = vshll.u32 %v8550_v47, 16  ;;  %v10186_v62 = vor.u32 %v10185_v14, %v10182_v29  ;;  %v8488_v30 = vsel %vm1608_vm7, %v18115_v11, %v8358_v4 }
 0x7b0   : > { %v9861_v41 = vpop.permute.xlu0 %9860  ;;  %v8758_v48 = vrot.slane %v8756_v45, 3  ;;  %v8761_v38 = vrot.slane %v8759_v63, 4 }
 0x7b1   : > { %v8420_v46 = vpop.permute.xlu1 %8419  ;;  %v9989_v6 = vsel %vm1673_vm6, %v9925_v23, %v9861_v41 }
 0x7b2   : > { %v8548_v31 = vsel %vm1673_vm6, %v8484_v52, %v8420_v46  ;;  %v10195_v50 = vshrl.u32 %v9989_v6, 16  ;;  %v10198_v51 = vshll.u32 %v9989_v6, 16  ;;  %v8762_v43 = vor.u32 %v8761_v38, %v8758_v48 }
 0x7b3   : > { %v8748_v7 = vshrl.u32 %v8548_v31, 16  ;;  %v8751_v16 = vshll.u32 %v8548_v31, 16 }
 0x7b4   : > { %v8360_v44 = vpop.permute.xlu0 %8359  ;;  %v10197_v53 = vrot.slane %v10195_v50, 3  ;;  %v10200_v52 = vrot.slane %v10198_v51, 4 }
 0x7b5   : > { %v8750_v55 = vrot.slane %v8748_v7, 3  ;;  %v8753_v5 = vrot.slane %v8751_v16, 4  ;;  %v9797_v2 = vpop.permute.xlu1 %9796 }
 0x7b6   : > { %v9927_v18 = vsel %vm1608_vm7, %v18136_v28, %v9797_v2  ;;  %v10201_v16 = vor.u32 %v10200_v52, %v10197_v53 }
 0x7b7   : > { %v8754_v27 = vor.u32 %v8753_v5, %v8750_v55  ;;  %v8490_v5 = vsel %vm1608_vm7, %v18119_v13, %v8360_v44 }
 0x7b8   : > { %v9799_v1 = vpop.permute.xlu0 %9798 }
 0x7b9   : > { %v9859_v24 = vpop.permute.xlu1 %9858  ;;  %v8755_v36 = vsel %vm1738_vm8, %v8747_v37, %v8754_v27  ;;  %v9929_v14 = vsel %vm1608_vm7, %v18153_v56, %v9799_v1 }
 0x7ba   : > { %v9987_v22 = vsel %vm1673_vm6, %v9923_v40, %v9859_v24  ;;  %12377 = vmatprep.mubr.msk.bf16.mxu1 %vm2022_vm9, %v8755_v36 }
 0x7bb   : > { %v10187_v26 = vshrl.u32 %v9987_v22, 16  ;;  %v10190_v17 = vshll.u32 %v9987_v22, 16 }
 0x7bc   : > { %v8364_v21 = vpop.permute.xlu0 %8363 }
 0x7bd   : > { %v10189_v15 = vrot.slane %v10187_v26, 3  ;;  %v10192_v0 = vrot.slane %v10190_v17, 4  ;;  %v8424_v35 = vpop.permute.xlu1 %8423 }
 0x7be   : > { %v8552_v9 = vsel %vm1673_vm6, %v8488_v30, %v8424_v35 }
 0x7bf   : > { %v10193_v54 = vor.u32 %v10192_v0, %v10189_v15  ;;  %v8763_v34 = vshrl.u32 %v8552_v9, 16  ;;  %v8766_v61 = vshll.u32 %v8552_v9, 16 }
 0x7c0   : > { %v8426_v11 = vpop.permute.xlu0 %8425 }
 0x7c1   : > { %v8765_v33 = vrot.slane %v8763_v34, 3  ;;  %v8768_v12 = vrot.slane %v8766_v61, 4  ;;  %v9863_v57 = vpop.permute.xlu1 %9862  ;;  %v10194_v4 = vsel %vm1738_vm8, %v10186_v62, %v10193_v54  ;;  %v8554_v2 = vsel %vm1673_vm6, %v8490_v5, %v8426_v11 }
 0x7c2   : > { %v9991_v8 = vsel %vm1673_vm6, %v9927_v18, %v9863_v57  ;;  %12335 = vmatprep.mubr.msk.bf16.mxu0 %vm2022_vm9, %v10194_v4  ;;  %v8771_v27 = vshrl.u32 %v8554_v2, 16  ;;  %v8774_v40 = vshll.u32 %v8554_v2, 16 }
 0x7c3   : > { %v8769_v46 = vor.u32 %v8768_v12, %v8765_v33  ;;  %v10202_v41 = vshrl.u32 %v9991_v8, 16  ;;  %v10205_v25 = vshll.u32 %v9991_v8, 16 }
 0x7c4   : > { %v9803_v7 = vpop.permute.xlu0 %9802  ;;  %v8773_v63 = vrot.slane %v8771_v27, 3  ;;  %v8776_v22 = vrot.slane %v8774_v40, 4 }
 0x7c5   : > { %v10204_v31 = vrot.slane %v10202_v41, 3  ;;  %v10207_v58 = vrot.slane %v10205_v25, 4  ;;  %v8362_v42 = vpop.permute.xlu1 %8361  ;;  %v8770_v28 = vsel %vm1738_vm8, %v8762_v43, %v8769_v46  ;;  %v9933_v12 = vsel %vm1608_vm7, %v18203_v60, %v9803_v7  ;;  %v18489_v7 = vld [vmem:[%s18672_s12] ss:$0 sm:$0xff] }
 0x7c6   : > { %12378 = vmatmul.mubr.msk.bf16.gmra.mxu1 %vm2022_vm9, %v8770_v28  ;;  %v18464_v29 = vpop.f32.mrf.mxu1  ;;  %v8492_v24 = vsel %vm1608_vm7, %v18178_v39, %v8362_v42  ;;  %v8494_v39 = vsel %vm1608_vm7, %v18182_v20, %v8364_v21  ;;  %v8777_v35 = vor.u32 %v8776_v22, %v8773_v63 }
 0x7c7   : > { %v10208_v32 = vor.u32 %v10207_v58, %v10204_v31 }
 0x7c8   : > { %v9865_v10 = vpop.permute.xlu0 %9864  ;;  %v10600_v6 = vpop.f32.mrf.mxu1 }
 0x7c9   : > { %v9801_v59 = vpop.permute.xlu1 %9800  ;;  %v10209_v55 = vsel %vm1738_vm8, %v10201_v16, %v10208_v32  ;;  %v9993_v13 = vsel %vm1673_vm6, %v9929_v14, %v9865_v10 }
 0x7ca   : > { %12336 = vmatmul.mubr.msk.bf16.gmra.mxu0 %vm2022_vm9, %v10209_v55  ;;  %v18462_v37 = vpop.f32.mrf.mxu0  ;;  %v10210_v62 = vshrl.u32 %v9993_v13, 16  ;;  %v10213_v30 = vshll.u32 %v9993_v13, 16  ;;  %v12356_v48 = vpop.f32.mrf.mxu1  ;;  %v9931_v51 = vsel %vm1608_vm7, %v18222_v49, %v9801_v59 }
 0x7cc   : > { %v10361_v36 = vpop.f32.mrf.mxu0  ;;  %v8430_v44 = vpop.permute.xlu0 %8429  ;;  %v10212_v54 = vrot.slane %v10210_v62, 3  ;;  %v10215_v34 = vrot.slane %v10213_v30, 4 }
 0x7cd   : > { %v8366_v47 = vpop.permute.xlu1 %8365  ;;  %v8558_v38 = vsel %vm1673_vm6, %v8494_v39, %v8430_v44  ;;  %v10603_v11 = vpop.f32.mrf.mxu1  ;;  %v10601_v53 = vadd.f32 %v10600_v6, %v10361_v36 }
 0x7ce   : > { %v12314_v15 = vpop.f32.mrf.mxu0  ;;  %v8786_v57 = vshrl.u32 %v8558_v38, 16  ;;  %v8789_v20 = vshll.u32 %v8558_v38, 16  ;;  %v10216_v52 = vor.u32 %v10215_v34, %v10212_v54  ;;  %v8496_v46 = vsel %vm1608_vm7, %v18248_v3, %v8366_v47 }
 0x7cf   : > { %v10734_v40 = vadd.f32 %v18489_v7, %v10601_v53  ;;  %v10612_v63 = vadd.f32 %v12356_v48, %v12314_v15 }
 0x7d0   : > { %v9869_v9 = vpop.permute.xlu0 %9868  ;;  %v10364_v61 = vpop.f32.mrf.mxu0  ;;  %v8788_v31 = vrot.slane %v8786_v57, 3  ;;  %v8791_v58 = vrot.slane %v8789_v20, 4 }
 0x7d1   : > { %v8428_v23 = vpop.permute.xlu1 %8427  ;;  %v9997_v4 = vsel %vm1673_vm6, %v9933_v12, %v9869_v9  ;;  %v10604_v8 = vadd.f32 %v10603_v11, %v10364_v61  ;;  %v10766_v30 = vmax.f32 %v10734_v40, 0.0 }
 0x7d2   : > { %v8556_v45 = vsel %vm1673_vm6, %v8492_v24, %v8428_v23  ;;  %v10225_v42 = vshrl.u32 %v9997_v4, 16  ;;  %v10228_v16 = vshll.u32 %v9997_v4, 16  ;;  %v8792_v14 = vor.u32 %v8791_v58, %v8788_v31 }
 0x7d3   : > { %v8778_v26 = vshrl.u32 %v8556_v45, 16  ;;  %v8781_v17 = vshll.u32 %v8556_v45, 16  ;;  %v10735_v5 = vadd.f32 %v18489_v7, %v10604_v8 }
 0x7d4   : > { %v10227_v24 = vrot.slane %v10225_v42, 3  ;;  %v10230_v23 = vrot.slane %v10228_v16, 4 }
 0x7d5   : > { %v8780_v0 = vrot.slane %v8778_v26, 3  ;;  %v8783_v56 = vrot.slane %v8781_v17, 4  ;;  %v9805_v1 = vpop.permute.xlu1 %9804  ;;  %v10767_v22 = vmax.f32 %v10735_v5, 0.0  ;;  %v10609_v17 = vadd.f32 %v18464_v29, %v18462_v37 }
 0x7d6   : > { %v9935_v3 = vsel %vm1608_vm7, %v18266_v19, %v9805_v1  ;;  %v10737_v1 = vadd.f32 %v18489_v7, %v10612_v63 }
 0x7d7   : > { %v8784_v50 = vor.u32 %v8783_v56, %v8780_v0  ;;  %v10231_v0 = vor.u32 %v10230_v23, %v10227_v24  ;;  %v10736_v48 = vadd.f32 %v18489_v7, %v10609_v17 }
 0x7d8   : > { %v10769_v37 = vmax.f32 %v10737_v1, 0.0 }
 0x7d9   : > { %v9867_v18 = vpop.permute.xlu1 %9866  ;;  %v8785_v33 = vsel %vm1738_vm8, %v8777_v35, %v8784_v50  ;;  %v10798_v35 = vpack.c.bf16 %v10767_v22, %v10766_v30 }
 0x7da   : > { %v9995_v21 = vsel %vm1673_vm6, %v9931_v51, %v9867_v18  ;;  %12381 = vmatprep.mubr.msk.bf16.mxu1 %vm2022_vm9, %v8785_v33  ;;  %v10768_v51 = vmax.f32 %v10736_v48, 0.0 }
 0x7db   : > { %v10217_v43 = vshrl.u32 %v9995_v21, 16  ;;  %v10220_v49 = vshll.u32 %v9995_v21, 16 }
 0x7dc   : > { %v10799_v18 = vpack.c.bf16 %v10769_v37, %v10768_v51 }
 0x7dd   : > { %v10219_v41 = vrot.slane %v10217_v43, 3  ;;  %v10222_v25 = vrot.slane %v10220_v49, 4  ;;  %v8432_v60 = vpop.permute.xlu1 %8431 }
 0x7de   : > { %v8560_v28 = vsel %vm1673_vm6, %v8496_v46, %v8432_v60 }
 0x7df   : > { %v10223_v32 = vor.u32 %v10222_v25, %v10219_v41  ;;  %v8793_v59 = vshrl.u32 %v8560_v28, 16  ;;  %v8796_v55 = vshll.u32 %v8560_v28, 16 }
 0x7e1   : > { %v8795_v2 = vrot.slane %v8793_v59, 3  ;;  %v8798_v10 = vrot.slane %v8796_v55, 4  ;;  %v9871_v47 = vpop.permute.xlu1 %9870  ;;  %v10224_v27 = vsel %vm1738_vm8, %v10216_v52, %v10223_v32 }
 0x7e2   : > { %v9999_v36 = vsel %vm1673_vm6, %v9935_v3, %v9871_v47  ;;  %12339 = vmatprep.mubr.msk.bf16.mxu0 %vm2022_vm9, %v10224_v27 }
 0x7e3   : > { %v8799_v13 = vor.u32 %v8798_v10, %v8795_v2  ;;  %v10232_v44 = vshrl.u32 %v9999_v36, 16  ;;  %v10235_v45 = vshll.u32 %v9999_v36, 16 }
 0x7e5   : > { %v10234_v19 = vrot.slane %v10232_v44, 3  ;;  %v10237_v6 = vrot.slane %v10235_v45, 4  ;;  %v8800_v26 = vsel %vm1738_vm8, %v8792_v14, %v8799_v13 }
 0x7e6   : > { %v12359_v62 = vpop.f32.mrf.mxu1  ;;  %12382 = vmatmul.mubr.msk.bf16.gmra.mxu1 %vm2022_vm9, %v8800_v26 }
 0x7e7   : > { %v10238_v56 = vor.u32 %v10237_v6, %v10234_v19 }
 0x7e8   : > { %v10616_v39 = vpop.f32.mrf.mxu1 }
 0x7e9   : > { %v10239_v15 = vsel %vm1738_vm8, %v10231_v0, %v10238_v56 }
 0x7ea   : > { %v12317_v38 = vpop.f32.mrf.mxu0  ;;  %12340 = vmatmul.mubr.msk.bf16.gmra.mxu0 %vm2022_vm9, %v10239_v15  ;;  %v12360_v29 = vpop.f32.mrf.mxu1 }
 0x7eb   : > { %12387 = vmatprep.mubr.msk.bf16.mxu0 %vm1373_vm4, %v10798_v35  ;;  %v10625_v54 = vadd.f32 %v12359_v62, %v12317_v38 }
 0x7ec   : > { %v10377_v50 = vpop.f32.mrf.mxu0  ;;  %v10619_v33 = vpop.f32.mrf.mxu1 }
 0x7ed   : > { %v10617_v9 = vadd.f32 %v10616_v39, %v10377_v50  ;;  %v10740_v11 = vadd.f32 %v18489_v7, %v10625_v54 }
 0x7ee   : > { %v12318_v34 = vpop.f32.mrf.mxu0 }
 0x7ef   : > { %v10628_v61 = vadd.f32 %v12360_v29, %v12318_v34  ;;  %v10738_v57 = vadd.f32 %v18489_v7, %v10617_v9  ;;  %v10772_v8 = vmax.f32 %v10740_v11, 0.0 }
 0x7f0   : > { %v10380_v12 = vpop.f32.mrf.mxu0 }
 0x7f1   : > { %v10741_v20 = vadd.f32 %v18489_v7, %v10628_v61  ;;  %v10620_v21 = vadd.f32 %v10619_v33, %v10380_v12  ;;  %v10770_v49 = vmax.f32 %v10738_v57, 0.0 }
 0x7f2   : > { %12388 = vmatmul.mubr.msk.bf16.vlgmr.msra.gmra.mxu0 %vm1373_vm4, %v10799_v18 }
 0x7f3   : > { %v10739_v4 = vadd.f32 %v18489_v7, %v10620_v21  ;;  %v10773_v43 = vmax.f32 %v10741_v20, 0.0 }
 0x7f5   : > { %v10771_v53 = vmax.f32 %v10739_v4, 0.0  ;;  %v10801_v46 = vpack.c.bf16 %v10773_v43, %v10772_v8 }
 0x7f7   : > { %v10800_v52 = vpack.c.bf16 %v10771_v53, %v10770_v49 }
 0x7f9   : > { %12391 = vmatprep.mubr.msk.bf16.mxu0 %vm1373_vm4, %v10800_v52 }
 0x7fa   : > { %12392 = vmatmul.mubr.msk.bf16.gmra.mxu0 %vm1373_vm4, %v10801_v46 }
 0x806   : > { %v12363_v41 = vpop.f32.mrf.mxu1 }
 0x808   : > { %v10632_v25 = vpop.f32.mrf.mxu1 }
 0x80a   : > { %v12321_v60 = vpop.f32.mrf.mxu0  ;;  %v12364_v31 = vpop.f32.mrf.mxu1 }
 0x80b   : > { %v10641_v28 = vadd.f32 %v12363_v41, %v12321_v60 }
 0x80c   : > { %v10393_v58 = vpop.f32.mrf.mxu0  ;;  %v10635_v59 = vpop.f32.mrf.mxu1 }
 0x80d   : > { %v10633_v42 = vadd.f32 %v10632_v25, %v10393_v58  ;;  %v10744_v10 = vadd.f32 %v18489_v7, %v10641_v28 }
 0x80e   : > { %v12322_v16 = vpop.f32.mrf.mxu0 }
 0x80f   : > { %v10644_v32 = vadd.f32 %v12364_v31, %v12322_v16  ;;  %v10742_v5 = vadd.f32 %v18489_v7, %v10633_v42  ;;  %v10776_v24 = vmax.f32 %v10744_v10, 0.0 }
 0x810   : > { %v10396_v55 = vpop.f32.mrf.mxu0 }
 0x811   : > { %v10745_v3 = vadd.f32 %v18489_v7, %v10644_v32  ;;  %v10636_v2 = vadd.f32 %v10635_v59, %v10396_v55  ;;  %v10774_v40 = vmax.f32 %v10742_v5, 0.0 }
 0x813   : > { %v10743_v47 = vadd.f32 %v18489_v7, %v10636_v2  ;;  %v10777_v27 = vmax.f32 %v10745_v3, 0.0 }
 0x815   : > { %v10775_v14 = vmax.f32 %v10743_v47, 0.0  ;;  %v10803_v23 = vpack.c.bf16 %v10777_v27, %v10776_v24 }
 0x817   : > { %v10802_v36 = vpack.c.bf16 %v10775_v14, %v10774_v40 }
 0x819   : > { %12395 = vmatprep.mubr.msk.bf16.mxu0 %vm1373_vm4, %v10802_v36 }
 0x81a   : > { %12396 = vmatmul.mubr.msk.bf16.gmra.mxu0 %vm1373_vm4, %v10803_v23 }
 0x826   : > { %v12367_v13 = vpop.f32.mrf.mxu1 }
 0x828   : > { %v10648_v44 = vpop.f32.mrf.mxu1 }
 0x82a   : > { %v12325_v45 = vpop.f32.mrf.mxu0  ;;  %v12368_v63 = vpop.f32.mrf.mxu1 }
 0x82b   : > { %v10657_v6 = vadd.f32 %v12367_v13, %v12325_v45 }
 0x82c   : > { %v10409_v22 = vpop.f32.mrf.mxu0  ;;  %v10651_v62 = vpop.f32.mrf.mxu1 }
 0x82d   : > { %v10649_v19 = vadd.f32 %v10648_v44, %v10409_v22  ;;  %v10748_v39 = vadd.f32 %v18489_v7, %v10657_v6 }
 0x82e   : > { %v12326_v26 = vpop.f32.mrf.mxu0 }
 0x82f   : > { %v10660_v17 = vadd.f32 %v12368_v63, %v12326_v26  ;;  %v10746_v0 = vadd.f32 %v18489_v7, %v10649_v19  ;;  %v10780_v37 = vmax.f32 %v10748_v39, 0.0 }
 0x830   : > { %v10412_v30 = vpop.f32.mrf.mxu0 }
 0x831   : > { %v10749_v56 = vadd.f32 %v18489_v7, %v10660_v17  ;;  %v10652_v1 = vadd.f32 %v10651_v62, %v10412_v30  ;;  %v10778_v48 = vmax.f32 %v10746_v0, 0.0 }
 0x833   : > { %v10747_v35 = vadd.f32 %v18489_v7, %v10652_v1  ;;  %v10781_v15 = vmax.f32 %v10749_v56, 0.0 }
 0x835   : > { %v10779_v38 = vmax.f32 %v10747_v35, 0.0  ;;  %v10805_v50 = vpack.c.bf16 %v10781_v15, %v10780_v37 }
 0x837   : > { %v10804_v29 = vpack.c.bf16 %v10779_v38, %v10778_v48 }
 0x839   : > { %12399 = vmatprep.mubr.msk.bf16.mxu0 %vm1373_vm4, %v10804_v29 }
 0x83a   : > { %12400 = vmatmul.mubr.msk.bf16.gmra.mxu0 %vm1373_vm4, %v10805_v50 }
 0x846   : > { %v12371_v9 = vpop.f32.mrf.mxu1 }
 0x848   : > { %v10664_v51 = vpop.f32.mrf.mxu1 }
 0x84a   : > { %v12329_v54 = vpop.f32.mrf.mxu0  ;;  %v12372_v34 = vpop.f32.mrf.mxu1 }
 0x84b   : > { %v10673_v33 = vadd.f32 %v12371_v9, %v12329_v54 }
 0x84c   : > { %v10425_v61 = vpop.f32.mrf.mxu0  ;;  %v10667_v20 = vpop.f32.mrf.mxu1 }
 0x84d   : > { %v10665_v18 = vadd.f32 %v10664_v51, %v10425_v61  ;;  %v10752_v49 = vadd.f32 %v18489_v7, %v10673_v33 }
 0x84e   : > { %v12330_v12 = vpop.f32.mrf.mxu0 }
 0x84f   : > { %v10676_v57 = vadd.f32 %v12372_v34, %v12330_v12  ;;  %v10750_v11 = vadd.f32 %v18489_v7, %v10665_v18  ;;  %v10784_v41 = vmax.f32 %v10752_v49, 0.0  ;;  %v18548_v49 = vld [vmem:[%s18674_s14] ss:$0 sm:$0xff] }
 0x850   : > { %v10428_v21 = vpop.f32.mrf.mxu0 }
 0x851   : > { %v10753_v4 = vadd.f32 %v18489_v7, %v10676_v57  ;;  %v10668_v43 = vadd.f32 %v10667_v20, %v10428_v21  ;;  %v10782_v52 = vmax.f32 %v10750_v11, 0.0 }
 0x853   : > { %v10751_v53 = vadd.f32 %v18489_v7, %v10668_v43  ;;  %v10785_v8 = vmax.f32 %v10753_v4, 0.0 }
 0x855   : > { %v10783_v46 = vmax.f32 %v10751_v53, 0.0  ;;  %v10807_v60 = vpack.c.bf16 %v10785_v8, %v10784_v41 }
 0x857   : > { %v10806_v25 = vpack.c.bf16 %v10783_v46, %v10782_v52 }
 0x859   : > { %12403 = vmatprep.mubr.msk.bf16.mxu0 %vm1373_vm4, %v10806_v25 }
 0x85a   : > { %12404 = vmatmul.mubr.msk.bf16.gmra.mxu0 %vm1373_vm4, %v10807_v60 }
 0x866   : > { %v12375_v31 = vpop.f32.mrf.mxu1 }
 0x868   : > { %v10680_v58 = vpop.f32.mrf.mxu1 }
 0x86a   : > { %v12333_v42 = vpop.f32.mrf.mxu0  ;;  %v12376_v28 = vpop.f32.mrf.mxu1 }
 0x86b   : > { %v10689_v59 = vadd.f32 %v12375_v31, %v12333_v42 }
 0x86c   : > { %v10441_v16 = vpop.f32.mrf.mxu0  ;;  %v10683_v3 = vpop.f32.mrf.mxu1 }
 0x86d   : > { %v10681_v32 = vadd.f32 %v10680_v58, %v10441_v16  ;;  %v10756_v40 = vadd.f32 %v18489_v7, %v10689_v59 }
 0x86e   : > { %v12334_v55 = vpop.f32.mrf.mxu0 }
 0x86f   : > { %v10692_v5 = vadd.f32 %v12376_v28, %v12334_v55  ;;  %v10754_v10 = vadd.f32 %v18489_v7, %v10681_v32  ;;  %v10788_v13 = vmax.f32 %v10756_v40, 0.0 }
 0x870   : > { %v10444_v2 = vpop.f32.mrf.mxu0 }
 0x871   : > { %v10757_v47 = vadd.f32 %v18489_v7, %v10692_v5  ;;  %v10684_v27 = vadd.f32 %v10683_v3, %v10444_v2  ;;  %v10786_v36 = vmax.f32 %v10754_v10, 0.0 }
 0x873   : > { %v10755_v14 = vadd.f32 %v18489_v7, %v10684_v27  ;;  %v10789_v24 = vmax.f32 %v10757_v47, 0.0 }
 0x875   : > { %v10787_v23 = vmax.f32 %v10755_v14, 0.0  ;;  %v10809_v45 = vpack.c.bf16 %v10789_v24, %v10788_v13 }
 0x877   : > { %v10808_v44 = vpack.c.bf16 %v10787_v23, %v10786_v36 }
 0x879   : > { %12407 = vmatprep.mubr.msk.bf16.mxu0 %vm1373_vm4, %v10808_v44 }
 0x87a   : > { %12408 = vmatmul.mubr.msk.bf16.gmra.mxu0 %vm1373_vm4, %v10809_v45 }
 0x886   : > { %v12379_v63 = vpop.f32.mrf.mxu1 }
 0x888   : > { %v10696_v22 = vpop.f32.mrf.mxu1 }
 0x88a   : > { %v12337_v19 = vpop.f32.mrf.mxu0  ;;  %v12380_v6 = vpop.f32.mrf.mxu1 }
 0x88b   : > { %v10705_v62 = vadd.f32 %v12379_v63, %v12337_v19 }
 0x88c   : > { %v10457_v26 = vpop.f32.mrf.mxu0  ;;  %v10699_v56 = vpop.f32.mrf.mxu1 }
 0x88d   : > { %v10697_v17 = vadd.f32 %v10696_v22, %v10457_v26  ;;  %v10760_v48 = vadd.f32 %v18489_v7, %v10705_v62 }
 0x88e   : > { %v12338_v30 = vpop.f32.mrf.mxu0 }
 0x88f   : > { %v10708_v0 = vadd.f32 %v12380_v6, %v12338_v30  ;;  %v10758_v39 = vadd.f32 %v18489_v7, %v10697_v17  ;;  %v10792_v9 = vmax.f32 %v10760_v48, 0.0 }
 0x890   : > { %v10460_v1 = vpop.f32.mrf.mxu0 }
 0x891   : > { %v10761_v35 = vadd.f32 %v18489_v7, %v10708_v0  ;;  %v10700_v15 = vadd.f32 %v10699_v56, %v10460_v1  ;;  %v10790_v29 = vmax.f32 %v10758_v39, 0.0 }
 0x893   : > { %v10759_v38 = vadd.f32 %v18489_v7, %v10700_v15  ;;  %v10793_v37 = vmax.f32 %v10761_v35, 0.0 }
 0x895   : > { %v10791_v50 = vmax.f32 %v10759_v38, 0.0  ;;  %v10811_v54 = vpack.c.bf16 %v10793_v37, %v10792_v9 }
 0x897   : > { %v10810_v51 = vpack.c.bf16 %v10791_v50, %v10790_v29 }
 0x899   : > { %12411 = vmatprep.mubr.msk.bf16.mxu0 %vm1373_vm4, %v10810_v51 }
 0x89a   : > { %12412 = vmatmul.mubr.msk.bf16.gmra.mxu0 %vm1373_vm4, %v10811_v54 }
 0x8a6   : > { %v12383_v34 = vpop.f32.mrf.mxu1 }
 0x8a8   : > { %v10712_v61 = vpop.f32.mrf.mxu1 }
 0x8aa   : > { %v12341_v18 = vpop.f32.mrf.mxu0  ;;  %v12384_v33 = vpop.f32.mrf.mxu1 }
 0x8ab   : > { %v10721_v20 = vadd.f32 %v12383_v34, %v12341_v18 }
 0x8ac   : > { %v10473_v12 = vpop.f32.mrf.mxu0  ;;  %v10715_v4 = vpop.f32.mrf.mxu1 }
 0x8ad   : > { %v10713_v57 = vadd.f32 %v10712_v61, %v10473_v12  ;;  %v10764_v46 = vadd.f32 %v18489_v7, %v10721_v20 }
 0x8ae   : > { %v12342_v21 = vpop.f32.mrf.mxu0 }
 0x8af   : > { %v10724_v11 = vadd.f32 %v12384_v33, %v12342_v21  ;;  %v10762_v53 = vadd.f32 %v18489_v7, %v10713_v57  ;;  %v10796_v32 = vmax.f32 %v10764_v46, 0.0 }
 0x8b0   : > { %v10476_v43 = vpop.f32.mrf.mxu0 }
 0x8b1   : > { %v10765_v8 = vadd.f32 %v18489_v7, %v10724_v11  ;;  %v10716_v52 = vadd.f32 %v10715_v4, %v10476_v43  ;;  %v10794_v42 = vmax.f32 %v10762_v53, 0.0 }
 0x8b2   : > { %v12389_v41 = vpop.f32.mrf.mxu0 }
 0x8b3   : > { %v10763_v25 = vadd.f32 %v18489_v7, %v10716_v52  ;;  %v10920_v60 = vadd.f32 %v12389_v41, %v18548_v49  ;;  %v10797_v31 = vmax.f32 %v10765_v8, 0.0 }
 0x8b4   : > { %v10911_v58 = vpop.f32.mrf.mxu0 }
 0x8b5   : > { %v10795_v28 = vmax.f32 %v10763_v25, 0.0  ;;  %11040 = vst.msk [vmem:[%s18556_s21 + $0x10] sm:$0xff] %vm1373_vm4, %v10920_v60  ;;  %v10912_v16 = vadd.f32 %v18548_v49, %v10911_v58  ;;  %v10813_v5 = vpack.c.bf16 %v10797_v31, %v10796_v32 }
 0x8b6   : > { %v12390_v59 = vpop.f32.mrf.mxu0 }
 0x8b7   : > { %v10812_v55 = vpack.c.bf16 %v10795_v28, %v10794_v42  ;;  %11038 = vst.msk [vmem:[%s18556_s21] sm:$0xff] %vm1373_vm4, %v10912_v16  ;;  %v10923_v7 = vadd.f32 %v12390_v59, %v18548_v49 }
 0x8b8   : > { %v10914_v3 = vpop.f32.mrf.mxu0 }
 0x8b9   : > { %11041 = vst.msk [vmem:[%s18556_s21 + $0x18] sm:$0xff] %vm1373_vm4, %v10923_v7  ;;  %v10915_v2 = vadd.f32 %v18548_v49, %v10914_v3  ;;  %12415 = vmatprep.mubr.msk.bf16.mxu0 %vm1373_vm4, %v10812_v55 }
 0x8ba   : > { %v12393_v10 = vpop.f32.mrf.mxu0  ;;  %12416 = vmatmul.mubr.msk.bf16.gmra.mxu0 %vm1373_vm4, %v10813_v5 }
 0x8bb   : > { %11039 = vst.msk [vmem:[%s18556_s21 + $0x8] sm:$0xff] %vm1373_vm4, %v10915_v2  ;;  %v10936_v47 = vadd.f32 %v12393_v10, %v18548_v49 }
 0x8bc   : > { %v10927_v27 = vpop.f32.mrf.mxu0 }
 0x8bd   : > { %11044 = vst.msk [vmem:[%s18556_s21 + $0x30] sm:$0xff] %vm1373_vm4, %v10936_v47  ;;  %v10928_v40 = vadd.f32 %v18548_v49, %v10927_v27 }
 0x8be   : > { %v12394_v14 = vpop.f32.mrf.mxu0 }
 0x8bf   : > { %11042 = vst.msk [vmem:[%s18556_s21 + $0x20] sm:$0xff] %vm1373_vm4, %v10928_v40  ;;  %v10939_v24 = vadd.f32 %v12394_v14, %v18548_v49 }
 0x8c0   : > { %v10930_v36 = vpop.f32.mrf.mxu0 }
 0x8c1   : > { %11045 = vst.msk [vmem:[%s18556_s21 + $0x38] sm:$0xff] %vm1373_vm4, %v10939_v24  ;;  %v10931_v23 = vadd.f32 %v18548_v49, %v10930_v36 }
 0x8c3   : > { %11043 = vst.msk [vmem:[%s18556_s21 + $0x28] sm:$0xff] %vm1373_vm4, %v10931_v23 }
 0x8da   : > { %v12397_v13 = vpop.f32.mrf.mxu0 }
 0x8db   : > { %v10952_v44 = vadd.f32 %v12397_v13, %v18548_v49 }
 0x8dc   : > { %v10943_v45 = vpop.f32.mrf.mxu0 }
 0x8dd   : > { %11048 = vst.msk [vmem:[%s18556_s21 + $0x50] sm:$0xff] %vm1373_vm4, %v10952_v44  ;;  %v10944_v63 = vadd.f32 %v18548_v49, %v10943_v45 }
 0x8de   : > { %v12398_v22 = vpop.f32.mrf.mxu0 }
 0x8df   : > { %11046 = vst.msk [vmem:[%s18556_s21 + $0x40] sm:$0xff] %vm1373_vm4, %v10944_v63  ;;  %v10955_v19 = vadd.f32 %v12398_v22, %v18548_v49 }
 0x8e0   : > { %v10946_v6 = vpop.f32.mrf.mxu0 }
 0x8e1   : > { %11049 = vst.msk [vmem:[%s18556_s21 + $0x58] sm:$0xff] %vm1373_vm4, %v10955_v19  ;;  %v10947_v26 = vadd.f32 %v18548_v49, %v10946_v6 }
 0x8e3   : > { %11047 = vst.msk [vmem:[%s18556_s21 + $0x48] sm:$0xff] %vm1373_vm4, %v10947_v26 }
 0x8fa   : > { %v12401_v17 = vpop.f32.mrf.mxu0 }
 0x8fb   : > { %v10968_v62 = vadd.f32 %v12401_v17, %v18548_v49 }
 0x8fc   : > { %v10959_v30 = vpop.f32.mrf.mxu0 }
 0x8fd   : > { %11052 = vst.msk [vmem:[%s18556_s21 + $0x70] sm:$0xff] %vm1373_vm4, %v10968_v62  ;;  %v10960_v0 = vadd.f32 %v18548_v49, %v10959_v30 }
 0x8fe   : > { %v12402_v56 = vpop.f32.mrf.mxu0 }
 0x8ff   : > { %11050 = vst.msk [vmem:[%s18556_s21 + $0x60] sm:$0xff] %vm1373_vm4, %v10960_v0  ;;  %v10971_v1 = vadd.f32 %v12402_v56, %v18548_v49 }
 0x900   : > { %v10962_v39 = vpop.f32.mrf.mxu0 }
 0x901   : > { %11053 = vst.msk [vmem:[%s18556_s21 + $0x78] sm:$0xff] %vm1373_vm4, %v10971_v1  ;;  %v10963_v35 = vadd.f32 %v18548_v49, %v10962_v39 }
 0x903   : > { %11051 = vst.msk [vmem:[%s18556_s21 + $0x68] sm:$0xff] %vm1373_vm4, %v10963_v35 }
 0x91a   : > { %v12405_v15 = vpop.f32.mrf.mxu0 }
 0x91b   : > { %v10984_v48 = vadd.f32 %v12405_v15, %v18548_v49 }
 0x91c   : > { %v10975_v38 = vpop.f32.mrf.mxu0 }
 0x91d   : > { %11056 = vst.msk [vmem:[%s18556_s21 + $0x90] sm:$0xff] %vm1373_vm4, %v10984_v48  ;;  %v10976_v37 = vadd.f32 %v18548_v49, %v10975_v38 }
 0x91e   : > { %v12406_v29 = vpop.f32.mrf.mxu0 }
 0x91f   : > { %11054 = vst.msk [vmem:[%s18556_s21 + $0x80] sm:$0xff] %vm1373_vm4, %v10976_v37  ;;  %v10987_v50 = vadd.f32 %v12406_v29, %v18548_v49 }
 0x920   : > { %v10978_v9 = vpop.f32.mrf.mxu0 }
 0x921   : > { %11057 = vst.msk [vmem:[%s18556_s21 + $0x98] sm:$0xff] %vm1373_vm4, %v10987_v50  ;;  %v10979_v51 = vadd.f32 %v18548_v49, %v10978_v9 }
 0x923   : > { %11055 = vst.msk [vmem:[%s18556_s21 + $0x88] sm:$0xff] %vm1373_vm4, %v10979_v51 }
 0x93a   : > { %v12409_v54 = vpop.f32.mrf.mxu0 }
 0x93b   : > { %v11000_v34 = vadd.f32 %v12409_v54, %v18548_v49 }
 0x93c   : > { %v10991_v61 = vpop.f32.mrf.mxu0 }
 0x93d   : > { %11060 = vst.msk [vmem:[%s18556_s21 + $0xb0] sm:$0xff] %vm1373_vm4, %v11000_v34  ;;  %v10992_v18 = vadd.f32 %v18548_v49, %v10991_v61 }
 0x93e   : > { %v12410_v33 = vpop.f32.mrf.mxu0 }
 0x93f   : > { %11058 = vst.msk [vmem:[%s18556_s21 + $0xa0] sm:$0xff] %vm1373_vm4, %v10992_v18  ;;  %v11003_v12 = vadd.f32 %v12410_v33, %v18548_v49 }
 0x940   : > { %v10994_v57 = vpop.f32.mrf.mxu0 }
 0x941   : > { %11061 = vst.msk [vmem:[%s18556_s21 + $0xb8] sm:$0xff] %vm1373_vm4, %v11003_v12  ;;  %v10995_v20 = vadd.f32 %v18548_v49, %v10994_v57 }
 0x943   : > { %11059 = vst.msk [vmem:[%s18556_s21 + $0xa8] sm:$0xff] %vm1373_vm4, %v10995_v20 }
 0x95a   : > { %v12413_v21 = vpop.f32.mrf.mxu0 }
 0x95b   : > { %v11016_v11 = vadd.f32 %v12413_v21, %v18548_v49 }
 0x95c   : > { %v11007_v4 = vpop.f32.mrf.mxu0 }
 0x95d   : > { %11064 = vst.msk [vmem:[%s18556_s21 + $0xd0] sm:$0xff] %vm1373_vm4, %v11016_v11  ;;  %v11008_v43 = vadd.f32 %v18548_v49, %v11007_v4 }
 0x95e   : > { %v12414_v53 = vpop.f32.mrf.mxu0 }
 0x95f   : > { %11062 = vst.msk [vmem:[%s18556_s21 + $0xc0] sm:$0xff] %vm1373_vm4, %v11008_v43  ;;  %v11019_v8 = vadd.f32 %v12414_v53, %v18548_v49 }
 0x960   : > { %v11010_v52 = vpop.f32.mrf.mxu0 }
 0x961   : > { %11065 = vst.msk [vmem:[%s18556_s21 + $0xd8] sm:$0xff] %vm1373_vm4, %v11019_v8  ;;  %v11011_v46 = vadd.f32 %v18548_v49, %v11010_v52 }
 0x963   : > { %11063 = vst.msk [vmem:[%s18556_s21 + $0xc8] sm:$0xff] %vm1373_vm4, %v11011_v46 }
 0x97a   : > { %v12417_v41 = vpop.f32.mrf.mxu0 }
 0x97b   : > { %v11032_v25 = vadd.f32 %v12417_v41, %v18548_v49 }
 0x97c   : > { %v11023_v60 = vpop.f32.mrf.mxu0 }
 0x97d   : > { %11068 = vst.msk [vmem:[%s18556_s21 + $0xf0] sm:$0xff] %vm1373_vm4, %v11032_v25  ;;  %v11024_v31 = vadd.f32 %v18548_v49, %v11023_v60 }
 0x97e   : > { %v12418_v58 = vpop.f32.mrf.mxu0 }
 0x97f   : > { %11066 = vst.msk [vmem:[%s18556_s21 + $0xe0] sm:$0xff] %vm1373_vm4, %v11024_v31  ;;  %v11035_v42 = vadd.f32 %v12418_v58, %v18548_v49 }
 0x980   : > { %v11026_v28 = vpop.f32.mrf.mxu0 }
 0x981   : > { %11069 = vst.msk [vmem:[%s18556_s21 + $0xf8] sm:$0xff] %vm1373_vm4, %v11035_v42  ;;  %v11027_v16 = vadd.f32 %v18548_v49, %v11026_v28 }
 0x983   : > { %11067 = vst.msk [vmem:[%s18556_s21 + $0xe8] sm:$0xff] %vm1373_vm4, %v11027_v16 }
 0x984 PF: > { %s25_s18 = sadd.s32 1, %s12875_s18  }
 0x985   : > { %p22_p4 = scmp.ge.s32.totalorder %s25_s18, 4  }
 0x987   :  { %24 = sbr.rel (!%p22_p4) target bundleno = 1 (0x1), region = 114 }

</bundles_post_ra>
